<compile_context>
chip_gen: v5e
topology: v5e:2x2
jax: 0.10.0
libtpu: 0.0.40
codegen_flags: <defaults>
</compile_context>

<pallas_src>
import math
import functools

import jax
import jax.numpy as jnp
from jax.experimental import pallas as pl
from jax.experimental.pallas import tpu as pltpu

F32 = jnp.float32
LN_EPS = 1e-5          # nn.Transformer layer_norm_eps default
NEG_INF = -1e30        # additive attention mask (identical to -inf post-softmax)
NEG_BIG = -1e30        # finite stand-in for -inf log-prob outside base support
TINY = 1e-30           # clamp for log arguments


# ----------------------------- in-kernel helpers -----------------------------

def _gelu(x):
    # TODO(synk): PyTorch nn.GELU() is erf-exact; tanh approximation used here
    # for robust Mosaic lowering (~1e-3 difference).
    c = math.sqrt(2.0 / math.pi)
    return 0.5 * x * (1.0 + jnp.tanh(c * (x + 0.044715 * x * x * x)))


def _softmax_approx(x):
    # attention softmax: approximate reciprocal is fine (EUP slot, ~ULP error)
    m = jnp.max(x, axis=-1, keepdims=True)
    e = jnp.exp(x - m)
    return e * pl.reciprocal(jnp.sum(e, axis=-1, keepdims=True), approx=True)


def _softmax_exact(x):
    # spline knot parameterization: exact division so knots sum exactly to 2*bound
    m = jnp.max(x, axis=-1, keepdims=True)
    e = jnp.exp(x - m)
    return e / jnp.sum(e, axis=-1, keepdims=True)


def _softplus(x):
    return jnp.maximum(x, 0.0) + jnp.log(1.0 + jnp.exp(-jnp.abs(x)))


def _layernorm(y, g, b):
    mu = jnp.mean(y, axis=-1, keepdims=True)
    var = jnp.mean((y - mu) ** 2, axis=-1, keepdims=True)
    return (y - mu) * jax.lax.rsqrt(var + LN_EPS) * g + b


# ------------------- BlockSpec helpers (grid is (batch,)) --------------------

def _const_spec(a):
    nd = a.ndim
    return pl.BlockSpec(a.shape, lambda b, _nd=nd: (0,) * _nd)


def _batch_spec(a):
    nd = a.ndim
    return pl.BlockSpec((1,) + a.shape[1:],
                        lambda b, _nd=nd: (b,) + (0,) * (_nd - 1))


# ------------------------ weight packing (trace time) -------------------------

def _pack_transformer(params):
    """Pack per-layer weights into a small number of stacked operands."""
    enc = params['enc_layers']
    dec = params['dec_layers']

    def attn_pack(layers, key):
        w = jnp.stack([jnp.stack([l[key]['wq'], l[key]['wk'],
                                  l[key]['wv'], l[key]['wo']]) for l in layers])
        b = jnp.stack([jnp.stack([l[key]['bq'], l[key]['bk'],
                                  l[key]['bv'], l[key]['bo']]) for l in layers])
        return w, b                              # (L,4,D,D), (L,4,1,D)

    e_aw, e_ab = attn_pack(enc, 'sa')
    e_ln = jnp.stack([jnp.stack([l['ln1_g'], l['ln1_b'],
                                 l['ln2_g'], l['ln2_b']]) for l in enc])   # (L,4,1,D)
    e_fw1 = jnp.stack([l['ffn_w1'] for l in enc])
    e_fb1 = jnp.stack([l['ffn_b1'] for l in enc])
    e_fw2 = jnp.stack([l['ffn_w2'] for l in enc])
    e_fb2 = jnp.stack([l['ffn_b2'] for l in enc])

    d_saw, d_sab = attn_pack(dec, 'sa')
    d_caw, d_cab = attn_pack(dec, 'ca')
    d_ln = jnp.stack([jnp.stack([l['ln1_g'], l['ln1_b'], l['ln2_g'], l['ln2_b'],
                                 l['ln3_g'], l['ln3_b']]) for l in dec])   # (L,6,1,D)
    d_fw1 = jnp.stack([l['ffn_w1'] for l in dec])
    d_fb1 = jnp.stack([l['ffn_b1'] for l in dec])
    d_fw2 = jnp.stack([l['ffn_w2'] for l in dec])
    d_fb2 = jnp.stack([l['ffn_b2'] for l in dec])

    fin_ln = jnp.stack([params['enc_norm'][0], params['enc_norm'][1],
                        params['dec_norm'][0], params['dec_norm'][1]])     # (4,1,D)

    return [params['w_reco'], params['b_reco'],
            params['w_parton'], params['b_parton'],
            e_aw, e_ab, e_ln, e_fw1, e_fb1, e_fw2, e_fb2,
            d_saw, d_sab, d_caw, d_cab, d_ln,
            d_fw1, d_fb1, d_fw2, d_fb2, fin_ln]


def _pack_flow(flow, n_bins):
    wh = jnp.stack([flow['w2'], flow['w3'], flow['w4']], axis=1)   # (T,3,H,H)
    bh = jnp.stack([flow['b2'], flow['b3'], flow['b4']], axis=1)   # (T,3,1,H)
    w5, b5 = flow['w5'], flow['b5']       # (T, H, 3*bins-1), (T, 1, 3*bins-1)
    return [flow['w1'], flow['b1'], wh, bh,
            w5[:, :, :n_bins], b5[:, :, :n_bins],
            w5[:, :, n_bins:2 * n_bins], b5[:, :, n_bins:2 * n_bins],
            w5[:, :, 2 * n_bins:], b5[:, :, 2 * n_bins:]]


# -------- kernel 1: fused embed + encoder stack + decoder stack (per event) ----

def _transformer_kernel(reco_ref, rmask_ref, parton_ref, cmask_ref,
                        w_reco, b_reco, w_parton, b_parton,
                        e_aw, e_ab, e_ln, e_fw1, e_fb1, e_fw2, e_fb2,
                        d_saw, d_sab, d_caw, d_cab, d_ln,
                        d_fw1, d_fb1, d_fw2, d_fb2, fin_ln,
                        out_ref, *, nhead):
    n_enc = e_aw.shape[0]
    n_dec = d_saw.shape[0]

    reco = reco_ref[0]          # (Lq, nreco)
    rmask = rmask_ref[0]        # (Lq, 1)
    parton = parton_ref[0]      # (Lp, nparton)
    causal = cmask_ref[...]     # (Lq, Lq), built once in the wrapper

    # embeddings: gelu(linear(reco) * mask), gelu(linear(parton))
    mem = _gelu(jnp.dot(parton, w_parton[...], preferred_element_type=F32)
                + b_parton[...])
    x = _gelu((jnp.dot(reco, w_reco[...], preferred_element_type=F32)
               + b_reco[...]) * rmask)

    def mha(xq, xkv, aw_ref, ab_ref, li, mask):
        # fused full-width projections (one D-wide matmul each), then small
        # per-head score/value matmuls, then a single fused output projection.
        ab = ab_ref[li]                                    # (4, 1, D)
        q = jnp.dot(xq, aw_ref[li, 0], preferred_element_type=F32) + ab[0]
        k = jnp.dot(xkv, aw_ref[li, 1], preferred_element_type=F32) + ab[1]
        v = jnp.dot(xkv, aw_ref[li, 2], preferred_element_type=F32) + ab[2]
        hd = q.shape[-1] // nhead
        scale = 1.0 / math.sqrt(hd)
        heads = []
        for h in range(nhead):                             # static unroll (8)
            sl = slice(h * hd, (h + 1) * hd)
            s = jax.lax.dot_general(q[:, sl], k[:, sl],
                                    (((1,), (1,)), ((), ())),
                                    preferred_element_type=F32) * scale
            if mask is not None:
                s = s + mask
            heads.append(jnp.dot(_softmax_approx(s), v[:, sl],
                                 preferred_element_type=F32))
        o = jnp.concatenate(heads, axis=-1)                # (Lq, D)
        return jnp.dot(o, aw_ref[li, 3], preferred_element_type=F32) + ab[3]

    def ffn(y, w1_ref, b1_ref, w2_ref, b2_ref, li):
        h = _gelu(jnp.dot(y, w1_ref[li], preferred_element_type=F32) + b1_ref[li])
        return jnp.dot(h, w2_ref[li], preferred_element_type=F32) + b2_ref[li]

    # ---- encoder (post-norm), layer loop as fori_loop over stacked weights ----
    def enc_body(li, m):
        ln = e_ln[li]
        m = _layernorm(m + mha(m, m, e_aw, e_ab, li, None), ln[0], ln[1])
        m = _layernorm(m + ffn(m, e_fw1, e_fb1, e_fw2, e_fb2, li), ln[2], ln[3])
        return m

    mem = jax.lax.fori_loop(0, n_enc, enc_body, mem)
    mem = _layernorm(mem, fin_ln[0], fin_ln[1])

    # ---- decoder (post-norm, causal self-attn + cross-attn) ----
    def dec_body(li, y):
        ln = d_ln[li]
        y = _layernorm(y + mha(y, y, d_saw, d_sab, li, causal), ln[0], ln[1])
        y = _layernorm(y + mha(y, mem, d_caw, d_cab, li, None), ln[2], ln[3])
        y = _layernorm(y + ffn(y, d_fw1, d_fb1, d_fw2, d_fb2, li), ln[4], ln[5])
        return y

    x = jax.lax.fori_loop(0, n_dec, dec_body, x)
    out_ref[0] = _layernorm(x, fin_ln[2], fin_ln[3])


def fused_transformer(params, reco, rmask, parton, *, nhead):
    b, lq, _ = reco.shape
    d = params['w_reco'].shape[1]

    # causal tgt mask (depends only on Lq) built ONCE here, not per grid step
    rows_i = jnp.arange(lq)[:, None]
    cols_i = jnp.arange(lq)[None, :]
    tgt_mask = jnp.where(cols_i > rows_i, NEG_INF, 0.0).astype(F32)

    weights = _pack_transformer(params)
    inputs = [reco, rmask, parton, tgt_mask] + weights
    in_specs = [_batch_spec(reco), _batch_spec(rmask), _batch_spec(parton)]
    in_specs += [_const_spec(w) for w in [tgt_mask] + weights]

    # NOTE: one event per grid step keeps a "parallel" axis of length B (>=2)
    # so both v7x TensorCores are fed.  If batch grows, block several events per
    # step (flatten rows into the matmuls) before further tuning.
    return pl.pallas_call(
        functools.partial(_transformer_kernel, nhead=nhead),
        grid=(b,),
        out_shape=jax.ShapeDtypeStruct((b, lq, d), F32),
        in_specs=in_specs,
        out_specs=pl.BlockSpec((1, lq, d), lambda i: (i, 0, 0)),
        compiler_params=pltpu.CompilerParams(dimension_semantics=("parallel",)),
    )(*inputs)


# ------ kernel 2: fused flow (hyper MLPs + composed RQS splines + base) --------
# zuko MaskedAutoregressiveTransform with features=1: the autoregressive x-column
# of the first masked layer is identically zero, so each hyper-MLP depends on the
# context only (dense context->params MLP, exactly equivalent).
# Rows are flattened (B * no_max_objects) so the whole flow is one grid-less call.

def _flow_kernel(x_ref, ctx_ref, fw1, fb1, fwh, fbh,
                 w5w, b5w, w5h, b5h, w5d, b5d, o_ref, *, bound):
    n_t = fw1.shape[0]          # number of composed transforms (5)
    n_hid = fwh.shape[1]        # extra hidden layers (3)
    n_bins = w5w.shape[-1]      # spline bins (16)

    x0 = x_ref[...]             # (R, 1)
    ctx = ctx_ref[...]          # (R, D)

    row = jax.lax.broadcasted_iota(jnp.int32, (n_bins, n_bins + 1), 0)
    col = jax.lax.broadcasted_iota(jnp.int32, (n_bins, n_bins + 1), 1)
    cumsum_m = (row < col).astype(F32)      # widths @ cumsum_m -> cumulative knots

    def body(t, carry):
        x, ladj = carry
        # ---- hyper MLP (ReLU) for transform t ----
        h = jnp.maximum(jnp.dot(ctx, fw1[t], preferred_element_type=F32)
                        + fb1[t], 0.0)
        for j in range(n_hid):                       # static unroll (3)
            h = jnp.maximum(jnp.dot(h, fwh[t, j], preferred_element_type=F32)
                            + fbh[t, j], 0.0)
        w_raw = jnp.dot(h, w5w[t], preferred_element_type=F32) + b5w[t]  # (R,bins)
        h_raw = jnp.dot(h, w5h[t], preferred_element_type=F32) + b5h[t]  # (R,bins)
        d_raw = jnp.dot(h, w5d[t], preferred_element_type=F32) + b5d[t]  # (R,bins-1)

        # TODO(synk): zuko's soft-clipped RQS parameterization approximated with
        # the standard softmax/softplus parameterization (Durkan et al.).
        widths = _softmax_exact(w_raw) * (2.0 * bound)
        heights = _softmax_exact(h_raw) * (2.0 * bound)
        cw = jnp.dot(widths, cumsum_m, preferred_element_type=F32) - bound
        ch = jnp.dot(heights, cumsum_m, preferred_element_type=F32) - bound
        d_soft = _softplus(d_raw)                    # (R, bins-1) interior derivs

        inside = jnp.logical_and(x > -bound, x < bound)
        low = cw[:, :n_bins]
        up = cw[:, 1:]
        onehot = jnp.logical_and(x >= low, x < up).astype(F32)
        hit = jnp.sum(onehot, axis=-1, keepdims=True) > 0.5
        valid = jnp.logical_and(inside, hit)

        def sel(a):
            return jnp.sum(onehot * a, axis=-1, keepdims=True)

        xk = sel(low)
        yk = sel(ch[:, :n_bins])
        wk = jnp.where(valid, sel(widths), 1.0)
        hk = jnp.where(valid, sel(heights), 1.0)
        # knot derivatives of the hit bin; boundary derivatives fixed to 1
        # (replaces the former concat([1, softplus(d), 1]) + overlapping slices)
        dk = onehot[:, :1] + jnp.sum(onehot[:, 1:] * d_soft,
                                     axis=-1, keepdims=True)
        dk1 = (onehot[:, n_bins - 1:] +
               jnp.sum(onehot[:, :n_bins - 1] * d_soft, axis=-1, keepdims=True))

        theta = (x - xk) / wk
        slope = hk / wk
        tt = theta * (1.0 - theta)
        num = hk * (slope * theta * theta + dk * tt)
        den = slope + (dk1 + dk - 2.0 * slope) * tt
        y = jnp.clip(yk + num / den, -bound, bound)  # guard fp overshoot
        ld = (2.0 * jnp.log(jnp.maximum(slope, TINY))
              + jnp.log(jnp.maximum(dk1 * theta * theta + 2.0 * slope * tt
                                    + dk * (1.0 - theta) ** 2, TINY))
              - 2.0 * jnp.log(jnp.maximum(den, TINY)))
        x = jnp.where(valid, y, x)                   # identity outside [-B, B]
        ladj = ladj + jnp.where(valid, ld, 0.0)
        return x, ladj

    x, ladj = jax.lax.fori_loop(0, n_t, body, (x0, jnp.zeros_like(x0)))

    # BoxUniform(-1, 1) base.
    # TODO(synk): closed interval + finite NEG_BIG instead of torch's half-open
    # support with -inf (avoids NaN/-inf poisoning of the masked mean).
    in_support = jnp.logical_and(x >= -1.0, x <= 1.0)
    base_lp = jnp.where(in_support, -math.log(2.0), NEG_BIG)
    o_ref[...] = base_lp + ladj


def fused_flow(x_flat, ctx_flat, flow, *, n_bins, bound):
    rows = x_flat.shape[0]
    weights = _pack_flow(flow, n_bins)
    # Grid-less call: all rows (B * no_max_objects) processed in one step; all
    # weights (~1.3 MB) and activations live in VMEM for the whole call.
    out = pl.pallas_call(
        functools.partial(_flow_kernel, bound=bound),
        out_shape=jax.ShapeDtypeStruct((rows, 1), F32),
    )(x_flat, ctx_flat, *weights)
    return out[:, 0]


# ------------------------------ parameter setup --------------------------------

def _linear_init(key, fan_in, fan_out):
    kw, kb = jax.random.split(key)
    s = 1.0 / math.sqrt(fan_in)
    w = jax.random.uniform(kw, (fan_in, fan_out), F32, minval=-s, maxval=s)
    b = jax.random.uniform(kb, (1, fan_out), F32, minval=-s, maxval=s)
    return w, b


def _attn_init(key, d):
    ks = jax.random.split(key, 4)
    wq, bq = _linear_init(ks[0], d, d)
    wk, bk = _linear_init(ks[1], d, d)
    wv, bv = _linear_init(ks[2], d, d)
    wo, bo = _linear_init(ks[3], d, d)
    return dict(wq=wq, bq=bq, wk=wk, bk=bk, wv=wv, bv=bv, wo=wo, bo=bo)


def _ln_init(d):
    return jnp.ones((1, d), F32), jnp.zeros((1, d), F32)


def init_params(key, *, no_recoVars, no_partonVars, d_model, dff, n_enc, n_dec,
                flow_transforms, flow_hidden, flow_bins, flow_context):
    keys = jax.random.split(key, 8)
    params = {}
    params['w_reco'], params['b_reco'] = _linear_init(keys[0], no_recoVars, d_model)
    params['w_parton'], params['b_parton'] = _linear_init(keys[1], no_partonVars, d_model)

    def enc_layer(k):
        ks = jax.random.split(k, 3)
        g1, b1 = _ln_init(d_model)
        g2, b2 = _ln_init(d_model)
        w1, bb1 = _linear_init(ks[1], d_model, dff)
        w2, bb2 = _linear_init(ks[2], dff, d_model)
        return dict(sa=_attn_init(ks[0], d_model), ln1_g=g1, ln1_b=b1,
                    ffn_w1=w1, ffn_b1=bb1, ffn_w2=w2, ffn_b2=bb2,
                    ln2_g=g2, ln2_b=b2)

    def dec_layer(k):
        ks = jax.random.split(k, 4)
        g1, b1 = _ln_init(d_model)
        g2, b2 = _ln_init(d_model)
        g3, b3 = _ln_init(d_model)
        w1, bb1 = _linear_init(ks[2], d_model, dff)
        w2, bb2 = _linear_init(ks[3], dff, d_model)
        return dict(sa=_attn_init(ks[0], d_model), ca=_attn_init(ks[1], d_model),
                    ln1_g=g1, ln1_b=b1, ln2_g=g2, ln2_b=b2, ln3_g=g3, ln3_b=b3,
                    ffn_w1=w1, ffn_b1=bb1, ffn_w2=w2, ffn_b2=bb2)

    params['enc_layers'] = [enc_layer(k) for k in jax.random.split(keys[2], n_enc)]
    params['dec_layers'] = [dec_layer(k) for k in jax.random.split(keys[3], n_dec)]
    params['enc_norm'] = _ln_init(d_model)
    params['dec_norm'] = _ln_init(d_model)

    # flow hyper MLPs: context(64) -> 128 x4 (ReLU) -> 3*bins-1, one per transform
    n_out = 3 * flow_bins - 1
    dims = [flow_context] + [flow_hidden] * 4 + [n_out]
    fkeys = jax.random.split(keys[4], flow_transforms * 5)
    flow = {}
    for li in range(5):
        ws, bs = [], []
        for t in range(flow_transforms):
            w, b = _linear_init(fkeys[t * 5 + li], dims[li], dims[li + 1])
            ws.append(w)
            bs.append(b)
        flow[f'w{li + 1}'] = jnp.stack(ws, axis=0)        # (T, in, out)
        flow[f'b{li + 1}'] = jnp.stack(bs, axis=0)        # (T, 1, out)
    params['flow'] = flow
    return params


# --------------------------------- forward -------------------------------------

def flow_existjet_forward(params, scaling_reco_lab, scaling_partons_lab,
                          scaling_RegressedBoost_lab, mask_reco, mask_boost,
                          rand_matrix, *, nhead=8, no_max_objects=10,
                          flow_bins=16, flow_bound=1.0, makeExistContinuos=0.4):
    del scaling_RegressedBoost_lab, mask_boost      # unused by the reference forward
    b, r, nreco = scaling_reco_lab.shape

    # null token [0, -1, -1, -1] prepended to the reco sequence
    null_token = jnp.full((b, 1, nreco), -1.0, F32).at[:, 0, 0].set(0.0)
    reco = jnp.concatenate([null_token, scaling_reco_lab.astype(F32)], axis=1)
    mask_wnull = jnp.concatenate([jnp.ones((b, 1), F32), mask_reco.astype(F32)], axis=1)

    output_decoder = fused_transformer(
        params, reco, mask_wnull[..., None],
        scaling_partons_lab.astype(F32), nhead=nhead)              # (B, Lq, D)

    # ---- existence flow log-prob ----
    nmo = no_max_objects
    mask_nmo = mask_reco[:, :nmo].astype(F32)
    no_objects_per_event = jnp.sum(mask_nmo, axis=1)
    pt = scaling_reco_lab[:, :nmo, 0]
    continuos_exist = jnp.where(pt == 0.0, rand_matrix * makeExistContinuos,
                                1.0 - rand_matrix * makeExistContinuos).astype(F32)

    # flatten (B, nmo) rows so the flow runs as one grid-less kernel call
    ctx = output_decoder[:, :nmo].reshape(b * nmo, -1)             # (B*nmo, D)
    x_in = continuos_exist.reshape(b * nmo, 1)                     # (B*nmo, 1)
    lp_flat = fused_flow(x_in, ctx, params['flow'],
                         n_bins=flow_bins, bound=flow_bound)       # (B*nmo,)
    flow_prob_exist = lp_flat.reshape(b, nmo)                      # (B, nmo)

    masked_lp = jnp.where(mask_nmo > 0, flow_prob_exist, 0.0)      # mask via where
    denom = jnp.maximum(no_objects_per_event, 1.0)                 # guard zero-jet events
    flow_prob_exist_batch = jnp.sum(masked_lp, axis=1) / denom
    avg_flow_prob_exist = jnp.mean(flow_prob_exist_batch)
    return avg_flow_prob_exist, flow_prob_exist_batch, flow_prob_exist


# ----------------------------------- main ---------------------------------------

if __name__ == "__main__":
    key = jax.random.PRNGKey(0)
    kp, kreco, kparton, kboost, krand = jax.random.split(key, 5)

    # small shapes consistent with the module
    B = 2
    no_recoVars = 4        # null token is 4-dim and concatenated with reco => 4
    no_partonVars = 4
    no_recoObjects = 18
    parton_seq = 8
    d_model = 64
    dff = 128
    nhead = 8
    n_enc = n_dec = 4
    no_max_objects = 10
    flow_transforms = 5
    flow_bins = 16
    flow_hidden = 128

    params = init_params(kp, no_recoVars=no_recoVars, no_partonVars=no_partonVars,
                         d_model=d_model, dff=dff, n_enc=n_enc, n_dec=n_dec,
                         flow_transforms=flow_transforms, flow_hidden=flow_hidden,
                         flow_bins=flow_bins, flow_context=d_model)

    n_obj = jnp.array([7, 12])
    mask_reco = jnp.arange(no_recoObjects)[None, :] < n_obj[:, None]          # (B, 18) bool
    scaling_reco_lab = jax.random.normal(kreco, (B, no_recoObjects, no_recoVars), F32)
    scaling_reco_lab = scaling_reco_lab * mask_reco[..., None].astype(F32)    # padded jets: pt == 0
    scaling_partons_lab = jax.random.normal(kparton, (B, parton_seq, no_partonVars), F32)
    scaling_boost = jax.random.normal(kboost, (B, 1, 4), F32)                 # unused (as in reference)
    mask_boost = jnp.ones((B, 1), jnp.bool_)
    rand_matrix = jax.random.uniform(krand, (B, no_max_objects), F32)         # replaces torch.rand

    fwd = jax.jit(functools.partial(flow_existjet_forward, nhead=nhead,
                                    no_max_objects=no_max_objects,
                                    flow_bins=flow_bins, flow_bound=1.0,
                                    makeExistContinuos=0.4))
    avg, per_event, per_jet = fwd(params, scaling_reco_lab, scaling_partons_lab,
                                  scaling_boost, mask_reco, mask_boost, rand_matrix)
    jax.block_until_ready((avg, per_event, per_jet))

    assert per_jet.shape == (B, no_max_objects)
    assert per_event.shape == (B,)
    assert bool(jnp.isfinite(avg))
    assert bool(jnp.all(jnp.isfinite(per_event)))
    print("KERNEL_OK")
</pallas_src>

<mosaic_0001>
module attributes {stable_mosaic.version = 11 : i64} {
  func.func @_transformer_kernel(%arg0: i32, %arg1: memref<1x19x4xf32, #tpu.memory_space<vmem>>, %arg2: memref<1x19x1xf32, #tpu.memory_space<vmem>>, %arg3: memref<1x8x4xf32, #tpu.memory_space<vmem>>, %arg4: memref<19x19xf32, #tpu.memory_space<vmem>>, %arg5: memref<4x64xf32, #tpu.memory_space<vmem>>, %arg6: memref<1x64xf32, #tpu.memory_space<vmem>>, %arg7: memref<4x64xf32, #tpu.memory_space<vmem>>, %arg8: memref<1x64xf32, #tpu.memory_space<vmem>>, %arg9: memref<4x4x64x64xf32, #tpu.memory_space<vmem>>, %arg10: memref<4x4x1x64xf32, #tpu.memory_space<vmem>>, %arg11: memref<4x4x1x64xf32, #tpu.memory_space<vmem>>, %arg12: memref<4x64x128xf32, #tpu.memory_space<vmem>>, %arg13: memref<4x1x128xf32, #tpu.memory_space<vmem>>, %arg14: memref<4x128x64xf32, #tpu.memory_space<vmem>>, %arg15: memref<4x1x64xf32, #tpu.memory_space<vmem>>, %arg16: memref<4x4x64x64xf32, #tpu.memory_space<vmem>>, %arg17: memref<4x4x1x64xf32, #tpu.memory_space<vmem>>, %arg18: memref<4x4x64x64xf32, #tpu.memory_space<vmem>>, %arg19: memref<4x4x1x64xf32, #tpu.memory_space<vmem>>, %arg20: memref<4x6x1x64xf32, #tpu.memory_space<vmem>>, %arg21: memref<4x64x128xf32, #tpu.memory_space<vmem>>, %arg22: memref<4x1x128xf32, #tpu.memory_space<vmem>>, %arg23: memref<4x128x64xf32, #tpu.memory_space<vmem>>, %arg24: memref<4x1x64xf32, #tpu.memory_space<vmem>>, %arg25: memref<4x1x64xf32, #tpu.memory_space<vmem>>, %arg26: memref<1x19x64xf32, #tpu.memory_space<vmem>>) attributes {dimension_semantics = [#tpu.dimension_semantics<parallel>], iteration_bounds = array<i64: 2>, scalar_prefetch = 0 : i64, scratch_operands = 0 : i64, tpu.core_type = #tpu.core_type<tc>, window_params = [{transform_indices = @transform_0, window_bounds = array<i64: 1, 19, 4>}, {transform_indices = @transform_1, window_bounds = array<i64: 1, 19, 1>}, {transform_indices = @transform_2, window_bounds = array<i64: 1, 8, 4>}, {pipeline_mode = #tpu.pipeline_mode<synchronous>, transform_indices = @transform_3, window_bounds = array<i64: 19, 19>}, {pipeline_mode = #tpu.pipeline_mode<synchronous>, transform_indices = @transform_4, window_bounds = array<i64: 4, 64>}, {pipeline_mode = #tpu.pipeline_mode<synchronous>, transform_indices = @transform_5, window_bounds = array<i64: 1, 64>}, {pipeline_mode = #tpu.pipeline_mode<synchronous>, transform_indices = @transform_6, window_bounds = array<i64: 4, 64>}, {pipeline_mode = #tpu.pipeline_mode<synchronous>, transform_indices = @transform_7, window_bounds = array<i64: 1, 64>}, {pipeline_mode = #tpu.pipeline_mode<synchronous>, transform_indices = @transform_8, window_bounds = array<i64: 4, 4, 64, 64>}, {pipeline_mode = #tpu.pipeline_mode<synchronous>, transform_indices = @transform_9, window_bounds = array<i64: 4, 4, 1, 64>}, {pipeline_mode = #tpu.pipeline_mode<synchronous>, transform_indices = @transform_10, window_bounds = array<i64: 4, 4, 1, 64>}, {pipeline_mode = #tpu.pipeline_mode<synchronous>, transform_indices = @transform_11, window_bounds = array<i64: 4, 64, 128>}, {pipeline_mode = #tpu.pipeline_mode<synchronous>, transform_indices = @transform_12, window_bounds = array<i64: 4, 1, 128>}, {pipeline_mode = #tpu.pipeline_mode<synchronous>, transform_indices = @transform_13, window_bounds = array<i64: 4, 128, 64>}, {pipeline_mode = #tpu.pipeline_mode<synchronous>, transform_indices = @transform_14, window_bounds = array<i64: 4, 1, 64>}, {pipeline_mode = #tpu.pipeline_mode<synchronous>, transform_indices = @transform_15, window_bounds = array<i64: 4, 4, 64, 64>}, {pipeline_mode = #tpu.pipeline_mode<synchronous>, transform_indices = @transform_16, window_bounds = array<i64: 4, 4, 1, 64>}, {pipeline_mode = #tpu.pipeline_mode<synchronous>, transform_indices = @transform_17, window_bounds = array<i64: 4, 4, 64, 64>}, {pipeline_mode = #tpu.pipeline_mode<synchronous>, transform_indices = @transform_18, window_bounds = array<i64: 4, 4, 1, 64>}, {pipeline_mode = #tpu.pipeline_mode<synchronous>, transform_indices = @transform_19, window_bounds = array<i64: 4, 6, 1, 64>}, {pipeline_mode = #tpu.pipeline_mode<synchronous>, transform_indices = @transform_20, window_bounds = array<i64: 4, 64, 128>}, {pipeline_mode = #tpu.pipeline_mode<synchronous>, transform_indices = @transform_21, window_bounds = array<i64: 4, 1, 128>}, {pipeline_mode = #tpu.pipeline_mode<synchronous>, transform_indices = @transform_22, window_bounds = array<i64: 4, 128, 64>}, {pipeline_mode = #tpu.pipeline_mode<synchronous>, transform_indices = @transform_23, window_bounds = array<i64: 4, 1, 64>}, {pipeline_mode = #tpu.pipeline_mode<synchronous>, transform_indices = @transform_24, window_bounds = array<i64: 4, 1, 64>}, {transform_indices = @transform_25, window_bounds = array<i64: 1, 19, 64>}]} {
    %c0 = arith.constant 0 : index
    %c0_0 = arith.constant 0 : index
    %c0_1 = arith.constant 0 : index
    %0 = vector.load %arg1[%c0, %c0_0, %c0_1] : memref<1x19x4xf32, #tpu.memory_space<vmem>>, vector<1x19x4xf32>
    %1 = vector.shape_cast %0 : vector<1x19x4xf32> to vector<19x4xf32>
    %c0_2 = arith.constant 0 : index
    %c0_3 = arith.constant 0 : index
    %c0_4 = arith.constant 0 : index
    %2 = vector.load %arg2[%c0_2, %c0_3, %c0_4] : memref<1x19x1xf32, #tpu.memory_space<vmem>>, vector<1x19x1xf32>
    %3 = vector.shape_cast %2 : vector<1x19x1xf32> to vector<19x1xf32>
    %c0_5 = arith.constant 0 : index
    %c0_6 = arith.constant 0 : index
    %c0_7 = arith.constant 0 : index
    %4 = vector.load %arg3[%c0_5, %c0_6, %c0_7] : memref<1x8x4xf32, #tpu.memory_space<vmem>>, vector<1x8x4xf32>
    %5 = vector.shape_cast %4 : vector<1x8x4xf32> to vector<8x4xf32>
    %c0_8 = arith.constant 0 : index
    %c0_9 = arith.constant 0 : index
    %6 = vector.load %arg4[%c0_8, %c0_9] : memref<19x19xf32, #tpu.memory_space<vmem>>, vector<19x19xf32>
    %c0_10 = arith.constant 0 : index
    %c0_11 = arith.constant 0 : index
    %7 = vector.load %arg7[%c0_10, %c0_11] : memref<4x64xf32, #tpu.memory_space<vmem>>, vector<4x64xf32>
    %cst = arith.constant dense<0.000000e+00> : vector<8x64xf32>
    %8 = tpu.matmul %5, %7, %cst {dimension_numbers = #tpu.dot_dimension_numbers<[1], [0], [0], [1], [0, 0, 1, 1], [], []>} : vector<8x4xf32>, vector<4x64xf32>, vector<8x64xf32> -> vector<8x64xf32>
    %c0_12 = arith.constant 0 : index
    %c0_13 = arith.constant 0 : index
    %9 = vector.load %arg8[%c0_12, %c0_13] : memref<1x64xf32, #tpu.memory_space<vmem>>, vector<1x64xf32>
    %10 = vector.broadcast %9 : vector<1x64xf32> to vector<8x64xf32>
    %11 = arith.addf %8, %10 : vector<8x64xf32>
    %cst_14 = arith.constant 5.000000e-01 : f32
    %12 = vector.broadcast %cst_14 : f32 to vector<8x64xf32>
    %13 = arith.mulf %12, %11 : vector<8x64xf32>
    %cst_15 = arith.constant 4.471500e-02 : f32
    %14 = vector.broadcast %cst_15 : f32 to vector<8x64xf32>
    %15 = arith.mulf %14, %11 : vector<8x64xf32>
    %16 = arith.mulf %15, %11 : vector<8x64xf32>
    %17 = arith.mulf %16, %11 : vector<8x64xf32>
    %18 = arith.addf %11, %17 : vector<8x64xf32>
    %cst_16 = arith.constant 0.797884583 : f32
    %19 = vector.broadcast %cst_16 : f32 to vector<8x64xf32>
    %20 = arith.mulf %19, %18 : vector<8x64xf32>
    %21 = math.tanh %20 : vector<8x64xf32>
    %cst_17 = arith.constant 1.000000e+00 : f32
    %22 = vector.broadcast %cst_17 : f32 to vector<8x64xf32>
    %23 = arith.addf %22, %21 : vector<8x64xf32>
    %24 = arith.mulf %13, %23 : vector<8x64xf32>
    %c0_18 = arith.constant 0 : index
    %c0_19 = arith.constant 0 : index
    %25 = vector.load %arg5[%c0_18, %c0_19] : memref<4x64xf32, #tpu.memory_space<vmem>>, vector<4x64xf32>
    %cst_20 = arith.constant dense<0.000000e+00> : vector<19x64xf32>
    %26 = tpu.matmul %1, %25, %cst_20 {dimension_numbers = #tpu.dot_dimension_numbers<[1], [0], [0], [1], [0, 0, 1, 1], [], []>} : vector<19x4xf32>, vector<4x64xf32>, vector<19x64xf32> -> vector<19x64xf32>
    %c0_21 = arith.constant 0 : index
    %c0_22 = arith.constant 0 : index
    %27 = vector.load %arg6[%c0_21, %c0_22] : memref<1x64xf32, #tpu.memory_space<vmem>>, vector<1x64xf32>
    %28 = vector.broadcast %27 : vector<1x64xf32> to vector<19x64xf32>
    %29 = arith.addf %26, %28 : vector<19x64xf32>
    %30 = vector.broadcast %3 : vector<19x1xf32> to vector<19x64xf32>
    %31 = arith.mulf %29, %30 : vector<19x64xf32>
    %cst_23 = arith.constant 5.000000e-01 : f32
    %32 = vector.broadcast %cst_23 : f32 to vector<19x64xf32>
    %33 = arith.mulf %32, %31 : vector<19x64xf32>
    %cst_24 = arith.constant 4.471500e-02 : f32
    %34 = vector.broadcast %cst_24 : f32 to vector<19x64xf32>
    %35 = arith.mulf %34, %31 : vector<19x64xf32>
    %36 = arith.mulf %35, %31 : vector<19x64xf32>
    %37 = arith.mulf %36, %31 : vector<19x64xf32>
    %38 = arith.addf %31, %37 : vector<19x64xf32>
    %cst_25 = arith.constant 0.797884583 : f32
    %39 = vector.broadcast %cst_25 : f32 to vector<19x64xf32>
    %40 = arith.mulf %39, %38 : vector<19x64xf32>
    %41 = math.tanh %40 : vector<19x64xf32>
    %cst_26 = arith.constant 1.000000e+00 : f32
    %42 = vector.broadcast %cst_26 : f32 to vector<19x64xf32>
    %43 = arith.addf %42, %41 : vector<19x64xf32>
    %44 = arith.mulf %33, %43 : vector<19x64xf32>
    %c0_i32 = arith.constant 0 : i32
    %c4_i32 = arith.constant 4 : i32
    %45 = arith.addi %c0_i32, %c4_i32 : i32
    %c1_i32 = arith.constant 1 : i32
    %46 = scf.for %arg27 = %c0_i32 to %45 step %c1_i32 iter_args(%arg28 = %24) -> (vector<8x64xf32>)  : i32 {
      %104 = arith.index_cast %arg27 : i32 to index
      %c0_54 = arith.constant 0 : index
      %c0_55 = arith.constant 0 : index
      %c0_56 = arith.constant 0 : index
      %105 = vector.load %arg11[%104, %c0_54, %c0_55, %c0_56] : memref<4x4x1x64xf32, #tpu.memory_space<vmem>>, vector<1x4x1x64xf32>
      %106 = vector.shape_cast %105 : vector<1x4x1x64xf32> to vector<4x1x64xf32>
      %107 = arith.index_cast %arg27 : i32 to index
      %c0_57 = arith.constant 0 : index
      %c0_58 = arith.constant 0 : index
      %c0_59 = arith.constant 0 : index
      %108 = vector.load %arg10[%107, %c0_57, %c0_58, %c0_59] : memref<4x4x1x64xf32, #tpu.memory_space<vmem>>, vector<1x4x1x64xf32>
      %109 = vector.shape_cast %108 : vector<1x4x1x64xf32> to vector<4x1x64xf32>
      %110 = arith.index_cast %arg27 : i32 to index
      %c0_60 = arith.constant 0 : index
      %c0_61 = arith.constant 0 : index
      %c0_62 = arith.constant 0 : index
      %111 = vector.load %arg9[%110, %c0_60, %c0_61, %c0_62] : memref<4x4x64x64xf32, #tpu.memory_space<vmem>>, vector<1x1x64x64xf32>
      %112 = vector.shape_cast %111 : vector<1x1x64x64xf32> to vector<64x64xf32>
      %cst_63 = arith.constant dense<0.000000e+00> : vector<8x64xf32>
      %113 = tpu.matmul %arg28, %112, %cst_63 {dimension_numbers = #tpu.dot_dimension_numbers<[1], [0], [0], [1], [0, 0, 1, 1], [], []>} : vector<8x64xf32>, vector<64x64xf32>, vector<8x64xf32> -> vector<8x64xf32>
      %114 = vector.extract_strided_slice %109 {offsets = [0, 0, 0], sizes = [1, 1, 64], strides = [1, 1, 1]} : vector<4x1x64xf32> to vector<1x1x64xf32>
      %115 = vector.shape_cast %114 : vector<1x1x64xf32> to vector<1x64xf32>
      %116 = vector.broadcast %115 : vector<1x64xf32> to vector<8x64xf32>
      %117 = arith.addf %113, %116 : vector<8x64xf32>
      %118 = arith.index_cast %arg27 : i32 to index
      %c1_64 = arith.constant 1 : index
      %c0_65 = arith.constant 0 : index
      %c0_66 = arith.constant 0 : index
      %119 = vector.load %arg9[%118, %c1_64, %c0_65, %c0_66] : memref<4x4x64x64xf32, #tpu.memory_space<vmem>>, vector<1x1x64x64xf32>
      %120 = vector.shape_cast %119 : vector<1x1x64x64xf32> to vector<64x64xf32>
      %cst_67 = arith.constant dense<0.000000e+00> : vector<8x64xf32>
      %121 = tpu.matmul %arg28, %120, %cst_67 {dimension_numbers = #tpu.dot_dimension_numbers<[1], [0], [0], [1], [0, 0, 1, 1], [], []>} : vector<8x64xf32>, vector<64x64xf32>, vector<8x64xf32> -> vector<8x64xf32>
      %122 = vector.extract_strided_slice %109 {offsets = [1, 0, 0], sizes = [1, 1, 64], strides = [1, 1, 1]} : vector<4x1x64xf32> to vector<1x1x64xf32>
      %123 = vector.shape_cast %122 : vector<1x1x64xf32> to vector<1x64xf32>
      %124 = vector.broadcast %123 : vector<1x64xf32> to vector<8x64xf32>
      %125 = arith.addf %121, %124 : vector<8x64xf32>
      %126 = arith.index_cast %arg27 : i32 to index
      %c2_68 = arith.constant 2 : index
      %c0_69 = arith.constant 0 : index
      %c0_70 = arith.constant 0 : index
      %127 = vector.load %arg9[%126, %c2_68, %c0_69, %c0_70] : memref<4x4x64x64xf32, #tpu.memory_space<vmem>>, vector<1x1x64x64xf32>
      %128 = vector.shape_cast %127 : vector<1x1x64x64xf32> to vector<64x64xf32>
      %cst_71 = arith.constant dense<0.000000e+00> : vector<8x64xf32>
      %129 = tpu.matmul %arg28, %128, %cst_71 {dimension_numbers = #tpu.dot_dimension_numbers<[1], [0], [0], [1], [0, 0, 1, 1], [], []>} : vector<8x64xf32>, vector<64x64xf32>, vector<8x64xf32> -> vector<8x64xf32>
      %130 = vector.extract_strided_slice %109 {offsets = [2, 0, 0], sizes = [1, 1, 64], strides = [1, 1, 1]} : vector<4x1x64xf32> to vector<1x1x64xf32>
      %131 = vector.shape_cast %130 : vector<1x1x64xf32> to vector<1x64xf32>
      %132 = vector.broadcast %131 : vector<1x64xf32> to vector<8x64xf32>
      %133 = arith.addf %129, %132 : vector<8x64xf32>
      %134 = vector.extract_strided_slice %117 {offsets = [0, 0], sizes = [8, 8], strides = [1, 1]} : vector<8x64xf32> to vector<8x8xf32>
      %135 = vector.extract_strided_slice %125 {offsets = [0, 0], sizes = [8, 8], strides = [1, 1]} : vector<8x64xf32> to vector<8x8xf32>
      %cst_72 = arith.constant dense<0.000000e+00> : vector<8x8xf32>
      %136 = tpu.matmul %134, %135, %cst_72 {dimension_numbers = #tpu.dot_dimension_numbers<[1], [1], [0], [0], [0, 0, 1, 0], [], []>} : vector<8x8xf32>, vector<8x8xf32>, vector<8x8xf32> -> vector<8x8xf32>
      %cst_73 = arith.constant 0.353553385 : f32
      %137 = vector.broadcast %cst_73 : f32 to vector<8x8xf32>
      %138 = arith.mulf %136, %137 : vector<8x8xf32>
      %cst_74 = arith.constant dense<0xFF800000> : vector<8xf32>
      %139 = vector.multi_reduction <maximumf>, %138, %cst_74 [1] : vector<8x8xf32> to vector<8xf32>
      %140 = vector.shape_cast %139 : vector<8xf32> to vector<8x1xf32>
      %141 = vector.broadcast %140 : vector<8x1xf32> to vector<8x8xf32>
      %142 = arith.subf %138, %141 : vector<8x8xf32>
      %143 = math.exp %142 : vector<8x8xf32>
      %cst_75 = arith.constant dense<0.000000e+00> : vector<8xf32>
      %144 = vector.multi_reduction <add>, %143, %cst_75 [1] : vector<8x8xf32> to vector<8xf32>
      %145 = vector.shape_cast %144 : vector<8xf32> to vector<8x1xf32>
      %146 = tpu.reciprocal %145 {approx = true} : vector<8x1xf32> -> vector<8x1xf32>
      %147 = vector.broadcast %146 : vector<8x1xf32> to vector<8x8xf32>
      %148 = arith.mulf %143, %147 : vector<8x8xf32>
      %149 = vector.extract_strided_slice %133 {offsets = [0, 0], sizes = [8, 8], strides = [1, 1]} : vector<8x64xf32> to vector<8x8xf32>
      %cst_76 = arith.constant dense<0.000000e+00> : vector<8x8xf32>
      %150 = tpu.matmul %148, %149, %cst_76 {dimension_numbers = #tpu.dot_dimension_numbers<[1], [0], [0], [1], [0, 0, 1, 1], [], []>} : vector<8x8xf32>, vector<8x8xf32>, vector<8x8xf32> -> vector<8x8xf32>
      %151 = vector.extract_strided_slice %117 {offsets = [0, 8], sizes = [8, 8], strides = [1, 1]} : vector<8x64xf32> to vector<8x8xf32>
      %152 = vector.extract_strided_slice %125 {offsets = [0, 8], sizes = [8, 8], strides = [1, 1]} : vector<8x64xf32> to vector<8x8xf32>
      %cst_77 = arith.constant dense<0.000000e+00> : vector<8x8xf32>
      %153 = tpu.matmul %151, %152, %cst_77 {dimension_numbers = #tpu.dot_dimension_numbers<[1], [1], [0], [0], [0, 0, 1, 0], [], []>} : vector<8x8xf32>, vector<8x8xf32>, vector<8x8xf32> -> vector<8x8xf32>
      %cst_78 = arith.constant 0.353553385 : f32
      %154 = vector.broadcast %cst_78 : f32 to vector<8x8xf32>
      %155 = arith.mulf %153, %154 : vector<8x8xf32>
      %cst_79 = arith.constant dense<0xFF800000> : vector<8xf32>
      %156 = vector.multi_reduction <maximumf>, %155, %cst_79 [1] : vector<8x8xf32> to vector<8xf32>
      %157 = vector.shape_cast %156 : vector<8xf32> to vector<8x1xf32>
      %158 = vector.broadcast %157 : vector<8x1xf32> to vector<8x8xf32>
      %159 = arith.subf %155, %158 : vector<8x8xf32>
      %160 = math.exp %159 : vector<8x8xf32>
      %cst_80 = arith.constant dense<0.000000e+00> : vector<8xf32>
      %161 = vector.multi_reduction <add>, %160, %cst_80 [1] : vector<8x8xf32> to vector<8xf32>
      %162 = vector.shape_cast %161 : vector<8xf32> to vector<8x1xf32>
      %163 = tpu.reciprocal %162 {approx = true} : vector<8x1xf32> -> vector<8x1xf32>
      %164 = vector.broadcast %163 : vector<8x1xf32> to vector<8x8xf32>
      %165 = arith.mulf %160, %164 : vector<8x8xf32>
      %166 = vector.extract_strided_slice %133 {offsets = [0, 8], sizes = [8, 8], strides = [1, 1]} : vector<8x64xf32> to vector<8x8xf32>
      %cst_81 = arith.constant dense<0.000000e+00> : vector<8x8xf32>
      %167 = tpu.matmul %165, %166, %cst_81 {dimension_numbers = #tpu.dot_dimension_numbers<[1], [0], [0], [1], [0, 0, 1, 1], [], []>} : vector<8x8xf32>, vector<8x8xf32>, vector<8x8xf32> -> vector<8x8xf32>
      %168 = vector.extract_strided_slice %117 {offsets = [0, 16], sizes = [8, 8], strides = [1, 1]} : vector<8x64xf32> to vector<8x8xf32>
      %169 = vector.extract_strided_slice %125 {offsets = [0, 16], sizes = [8, 8], strides = [1, 1]} : vector<8x64xf32> to vector<8x8xf32>
      %cst_82 = arith.constant dense<0.000000e+00> : vector<8x8xf32>
      %170 = tpu.matmul %168, %169, %cst_82 {dimension_numbers = #tpu.dot_dimension_numbers<[1], [1], [0], [0], [0, 0, 1, 0], [], []>} : vector<8x8xf32>, vector<8x8xf32>, vector<8x8xf32> -> vector<8x8xf32>
      %cst_83 = arith.constant 0.353553385 : f32
      %171 = vector.broadcast %cst_83 : f32 to vector<8x8xf32>
      %172 = arith.mulf %170, %171 : vector<8x8xf32>
      %cst_84 = arith.constant dense<0xFF800000> : vector<8xf32>
      %173 = vector.multi_reduction <maximumf>, %172, %cst_84 [1] : vector<8x8xf32> to vector<8xf32>
      %174 = vector.shape_cast %173 : vector<8xf32> to vector<8x1xf32>
      %175 = vector.broadcast %174 : vector<8x1xf32> to vector<8x8xf32>
      %176 = arith.subf %172, %175 : vector<8x8xf32>
      %177 = math.exp %176 : vector<8x8xf32>
      %cst_85 = arith.constant dense<0.000000e+00> : vector<8xf32>
      %178 = vector.multi_reduction <add>, %177, %cst_85 [1] : vector<8x8xf32> to vector<8xf32>
      %179 = vector.shape_cast %178 : vector<8xf32> to vector<8x1xf32>
      %180 = tpu.reciprocal %179 {approx = true} : vector<8x1xf32> -> vector<8x1xf32>
      %181 = vector.broadcast %180 : vector<8x1xf32> to vector<8x8xf32>
      %182 = arith.mulf %177, %181 : vector<8x8xf32>
      %183 = vector.extract_strided_slice %133 {offsets = [0, 16], sizes = [8, 8], strides = [1, 1]} : vector<8x64xf32> to vector<8x8xf32>
      %cst_86 = arith.constant dense<0.000000e+00> : vector<8x8xf32>
      %184 = tpu.matmul %182, %183, %cst_86 {dimension_numbers = #tpu.dot_dimension_numbers<[1], [0], [0], [1], [0, 0, 1, 1], [], []>} : vector<8x8xf32>, vector<8x8xf32>, vector<8x8xf32> -> vector<8x8xf32>
      %185 = vector.extract_strided_slice %117 {offsets = [0, 24], sizes = [8, 8], strides = [1, 1]} : vector<8x64xf32> to vector<8x8xf32>
      %186 = vector.extract_strided_slice %125 {offsets = [0, 24], sizes = [8, 8], strides = [1, 1]} : vector<8x64xf32> to vector<8x8xf32>
      %cst_87 = arith.constant dense<0.000000e+00> : vector<8x8xf32>
      %187 = tpu.matmul %185, %186, %cst_87 {dimension_numbers = #tpu.dot_dimension_numbers<[1], [1], [0], [0], [0, 0, 1, 0], [], []>} : vector<8x8xf32>, vector<8x8xf32>, vector<8x8xf32> -> vector<8x8xf32>
      %cst_88 = arith.constant 0.353553385 : f32
      %188 = vector.broadcast %cst_88 : f32 to vector<8x8xf32>
      %189 = arith.mulf %187, %188 : vector<8x8xf32>
      %cst_89 = arith.constant dense<0xFF800000> : vector<8xf32>
      %190 = vector.multi_reduction <maximumf>, %189, %cst_89 [1] : vector<8x8xf32> to vector<8xf32>
      %191 = vector.shape_cast %190 : vector<8xf32> to vector<8x1xf32>
      %192 = vector.broadcast %191 : vector<8x1xf32> to vector<8x8xf32>
      %193 = arith.subf %189, %192 : vector<8x8xf32>
      %194 = math.exp %193 : vector<8x8xf32>
      %cst_90 = arith.constant dense<0.000000e+00> : vector<8xf32>
      %195 = vector.multi_reduction <add>, %194, %cst_90 [1] : vector<8x8xf32> to vector<8xf32>
      %196 = vector.shape_cast %195 : vector<8xf32> to vector<8x1xf32>
      %197 = tpu.reciprocal %196 {approx = true} : vector<8x1xf32> -> vector<8x1xf32>
      %198 = vector.broadcast %197 : vector<8x1xf32> to vector<8x8xf32>
      %199 = arith.mulf %194, %198 : vector<8x8xf32>
      %200 = vector.extract_strided_slice %133 {offsets = [0, 24], sizes = [8, 8], strides = [1, 1]} : vector<8x64xf32> to vector<8x8xf32>
      %cst_91 = arith.constant dense<0.000000e+00> : vector<8x8xf32>
      %201 = tpu.matmul %199, %200, %cst_91 {dimension_numbers = #tpu.dot_dimension_numbers<[1], [0], [0], [1], [0, 0, 1, 1], [], []>} : vector<8x8xf32>, vector<8x8xf32>, vector<8x8xf32> -> vector<8x8xf32>
      %202 = vector.extract_strided_slice %117 {offsets = [0, 32], sizes = [8, 8], strides = [1, 1]} : vector<8x64xf32> to vector<8x8xf32>
      %203 = vector.extract_strided_slice %125 {offsets = [0, 32], sizes = [8, 8], strides = [1, 1]} : vector<8x64xf32> to vector<8x8xf32>
      %cst_92 = arith.constant dense<0.000000e+00> : vector<8x8xf32>
      %204 = tpu.matmul %202, %203, %cst_92 {dimension_numbers = #tpu.dot_dimension_numbers<[1], [1], [0], [0], [0, 0, 1, 0], [], []>} : vector<8x8xf32>, vector<8x8xf32>, vector<8x8xf32> -> vector<8x8xf32>
      %cst_93 = arith.constant 0.353553385 : f32
      %205 = vector.broadcast %cst_93 : f32 to vector<8x8xf32>
      %206 = arith.mulf %204, %205 : vector<8x8xf32>
      %cst_94 = arith.constant dense<0xFF800000> : vector<8xf32>
      %207 = vector.multi_reduction <maximumf>, %206, %cst_94 [1] : vector<8x8xf32> to vector<8xf32>
      %208 = vector.shape_cast %207 : vector<8xf32> to vector<8x1xf32>
      %209 = vector.broadcast %208 : vector<8x1xf32> to vector<8x8xf32>
      %210 = arith.subf %206, %209 : vector<8x8xf32>
      %211 = math.exp %210 : vector<8x8xf32>
      %cst_95 = arith.constant dense<0.000000e+00> : vector<8xf32>
      %212 = vector.multi_reduction <add>, %211, %cst_95 [1] : vector<8x8xf32> to vector<8xf32>
      %213 = vector.shape_cast %212 : vector<8xf32> to vector<8x1xf32>
      %214 = tpu.reciprocal %213 {approx = true} : vector<8x1xf32> -> vector<8x1xf32>
      %215 = vector.broadcast %214 : vector<8x1xf32> to vector<8x8xf32>
      %216 = arith.mulf %211, %215 : vector<8x8xf32>
      %217 = vector.extract_strided_slice %133 {offsets = [0, 32], sizes = [8, 8], strides = [1, 1]} : vector<8x64xf32> to vector<8x8xf32>
      %cst_96 = arith.constant dense<0.000000e+00> : vector<8x8xf32>
      %218 = tpu.matmul %216, %217, %cst_96 {dimension_numbers = #tpu.dot_dimension_numbers<[1], [0], [0], [1], [0, 0, 1, 1], [], []>} : vector<8x8xf32>, vector<8x8xf32>, vector<8x8xf32> -> vector<8x8xf32>
      %219 = vector.extract_strided_slice %117 {offsets = [0, 40], sizes = [8, 8], strides = [1, 1]} : vector<8x64xf32> to vector<8x8xf32>
      %220 = vector.extract_strided_slice %125 {offsets = [0, 40], sizes = [8, 8], strides = [1, 1]} : vector<8x64xf32> to vector<8x8xf32>
      %cst_97 = arith.constant dense<0.000000e+00> : vector<8x8xf32>
      %221 = tpu.matmul %219, %220, %cst_97 {dimension_numbers = #tpu.dot_dimension_numbers<[1], [1], [0], [0], [0, 0, 1, 0], [], []>} : vector<8x8xf32>, vector<8x8xf32>, vector<8x8xf32> -> vector<8x8xf32>
      %cst_98 = arith.constant 0.353553385 : f32
      %222 = vector.broadcast %cst_98 : f32 to vector<8x8xf32>
      %223 = arith.mulf %221, %222 : vector<8x8xf32>
      %cst_99 = arith.constant dense<0xFF800000> : vector<8xf32>
      %224 = vector.multi_reduction <maximumf>, %223, %cst_99 [1] : vector<8x8xf32> to vector<8xf32>
      %225 = vector.shape_cast %224 : vector<8xf32> to vector<8x1xf32>
      %226 = vector.broadcast %225 : vector<8x1xf32> to vector<8x8xf32>
      %227 = arith.subf %223, %226 : vector<8x8xf32>
      %228 = math.exp %227 : vector<8x8xf32>
      %cst_100 = arith.constant dense<0.000000e+00> : vector<8xf32>
      %229 = vector.multi_reduction <add>, %228, %cst_100 [1] : vector<8x8xf32> to vector<8xf32>
      %230 = vector.shape_cast %229 : vector<8xf32> to vector<8x1xf32>
      %231 = tpu.reciprocal %230 {approx = true} : vector<8x1xf32> -> vector<8x1xf32>
      %232 = vector.broadcast %231 : vector<8x1xf32> to vector<8x8xf32>
      %233 = arith.mulf %228, %232 : vector<8x8xf32>
      %234 = vector.extract_strided_slice %133 {offsets = [0, 40], sizes = [8, 8], strides = [1, 1]} : vector<8x64xf32> to vector<8x8xf32>
      %cst_101 = arith.constant dense<0.000000e+00> : vector<8x8xf32>
      %235 = tpu.matmul %233, %234, %cst_101 {dimension_numbers = #tpu.dot_dimension_numbers<[1], [0], [0], [1], [0, 0, 1, 1], [], []>} : vector<8x8xf32>, vector<8x8xf32>, vector<8x8xf32> -> vector<8x8xf32>
      %236 = vector.extract_strided_slice %117 {offsets = [0, 48], sizes = [8, 8], strides = [1, 1]} : vector<8x64xf32> to vector<8x8xf32>
      %237 = vector.extract_strided_slice %125 {offsets = [0, 48], sizes = [8, 8], strides = [1, 1]} : vector<8x64xf32> to vector<8x8xf32>
      %cst_102 = arith.constant dense<0.000000e+00> : vector<8x8xf32>
      %238 = tpu.matmul %236, %237, %cst_102 {dimension_numbers = #tpu.dot_dimension_numbers<[1], [1], [0], [0], [0, 0, 1, 0], [], []>} : vector<8x8xf32>, vector<8x8xf32>, vector<8x8xf32> -> vector<8x8xf32>
      %cst_103 = arith.constant 0.353553385 : f32
      %239 = vector.broadcast %cst_103 : f32 to vector<8x8xf32>
      %240 = arith.mulf %238, %239 : vector<8x8xf32>
      %cst_104 = arith.constant dense<0xFF800000> : vector<8xf32>
      %241 = vector.multi_reduction <maximumf>, %240, %cst_104 [1] : vector<8x8xf32> to vector<8xf32>
      %242 = vector.shape_cast %241 : vector<8xf32> to vector<8x1xf32>
      %243 = vector.broadcast %242 : vector<8x1xf32> to vector<8x8xf32>
      %244 = arith.subf %240, %243 : vector<8x8xf32>
      %245 = math.exp %244 : vector<8x8xf32>
      %cst_105 = arith.constant dense<0.000000e+00> : vector<8xf32>
      %246 = vector.multi_reduction <add>, %245, %cst_105 [1] : vector<8x8xf32> to vector<8xf32>
      %247 = vector.shape_cast %246 : vector<8xf32> to vector<8x1xf32>
      %248 = tpu.reciprocal %247 {approx = true} : vector<8x1xf32> -> vector<8x1xf32>
      %249 = vector.broadcast %248 : vector<8x1xf32> to vector<8x8xf32>
      %250 = arith.mulf %245, %249 : vector<8x8xf32>
      %251 = vector.extract_strided_slice %133 {offsets = [0, 48], sizes = [8, 8], strides = [1, 1]} : vector<8x64xf32> to vector<8x8xf32>
      %cst_106 = arith.constant dense<0.000000e+00> : vector<8x8xf32>
      %252 = tpu.matmul %250, %251, %cst_106 {dimension_numbers = #tpu.dot_dimension_numbers<[1], [0], [0], [1], [0, 0, 1, 1], [], []>} : vector<8x8xf32>, vector<8x8xf32>, vector<8x8xf32> -> vector<8x8xf32>
      %253 = vector.extract_strided_slice %117 {offsets = [0, 56], sizes = [8, 8], strides = [1, 1]} : vector<8x64xf32> to vector<8x8xf32>
      %254 = vector.extract_strided_slice %125 {offsets = [0, 56], sizes = [8, 8], strides = [1, 1]} : vector<8x64xf32> to vector<8x8xf32>
      %cst_107 = arith.constant dense<0.000000e+00> : vector<8x8xf32>
      %255 = tpu.matmul %253, %254, %cst_107 {dimension_numbers = #tpu.dot_dimension_numbers<[1], [1], [0], [0], [0, 0, 1, 0], [], []>} : vector<8x8xf32>, vector<8x8xf32>, vector<8x8xf32> -> vector<8x8xf32>
      %cst_108 = arith.constant 0.353553385 : f32
      %256 = vector.broadcast %cst_108 : f32 to vector<8x8xf32>
      %257 = arith.mulf %255, %256 : vector<8x8xf32>
      %cst_109 = arith.constant dense<0xFF800000> : vector<8xf32>
      %258 = vector.multi_reduction <maximumf>, %257, %cst_109 [1] : vector<8x8xf32> to vector<8xf32>
      %259 = vector.shape_cast %258 : vector<8xf32> to vector<8x1xf32>
      %260 = vector.broadcast %259 : vector<8x1xf32> to vector<8x8xf32>
      %261 = arith.subf %257, %260 : vector<8x8xf32>
      %262 = math.exp %261 : vector<8x8xf32>
      %cst_110 = arith.constant dense<0.000000e+00> : vector<8xf32>
      %263 = vector.multi_reduction <add>, %262, %cst_110 [1] : vector<8x8xf32> to vector<8xf32>
      %264 = vector.shape_cast %263 : vector<8xf32> to vector<8x1xf32>
      %265 = tpu.reciprocal %264 {approx = true} : vector<8x1xf32> -> vector<8x1xf32>
      %266 = vector.broadcast %265 : vector<8x1xf32> to vector<8x8xf32>
      %267 = arith.mulf %262, %266 : vector<8x8xf32>
      %268 = vector.extract_strided_slice %133 {offsets = [0, 56], sizes = [8, 8], strides = [1, 1]} : vector<8x64xf32> to vector<8x8xf32>
      %cst_111 = arith.constant dense<0.000000e+00> : vector<8x8xf32>
      %269 = tpu.matmul %267, %268, %cst_111 {dimension_numbers = #tpu.dot_dimension_numbers<[1], [0], [0], [1], [0, 0, 1, 1], [], []>} : vector<8x8xf32>, vector<8x8xf32>, vector<8x8xf32> -> vector<8x8xf32>
      %270 = tpu.concatenate %150, %167, %184, %201, %218, %235, %252, %269 in 1 : vector<8x8xf32>, vector<8x8xf32>, vector<8x8xf32>, vector<8x8xf32>, vector<8x8xf32>, vector<8x8xf32>, vector<8x8xf32>, vector<8x8xf32> -> vector<8x64xf32>
      %271 = arith.index_cast %arg27 : i32 to index
      %c3_112 = arith.constant 3 : index
      %c0_113 = arith.constant 0 : index
      %c0_114 = arith.constant 0 : index
      %272 = vector.load %arg9[%271, %c3_112, %c0_113, %c0_114] : memref<4x4x64x64xf32, #tpu.memory_space<vmem>>, vector<1x1x64x64xf32>
      %273 = vector.shape_cast %272 : vector<1x1x64x64xf32> to vector<64x64xf32>
      %cst_115 = arith.constant dense<0.000000e+00> : vector<8x64xf32>
      %274 = tpu.matmul %270, %273, %cst_115 {dimension_numbers = #tpu.dot_dimension_numbers<[1], [0], [0], [1], [0, 0, 1, 1], [], []>} : vector<8x64xf32>, vector<64x64xf32>, vector<8x64xf32> -> vector<8x64xf32>
      %275 = vector.extract_strided_slice %109 {offsets = [3, 0, 0], sizes = [1, 1, 64], strides = [1, 1, 1]} : vector<4x1x64xf32> to vector<1x1x64xf32>
      %276 = vector.shape_cast %275 : vector<1x1x64xf32> to vector<1x64xf32>
      %277 = vector.broadcast %276 : vector<1x64xf32> to vector<8x64xf32>
      %278 = arith.addf %274, %277 : vector<8x64xf32>
      %279 = arith.addf %arg28, %278 : vector<8x64xf32>
      %280 = vector.extract_strided_slice %106 {offsets = [0, 0, 0], sizes = [1, 1, 64], strides = [1, 1, 1]} : vector<4x1x64xf32> to vector<1x1x64xf32>
      %281 = vector.shape_cast %280 : vector<1x1x64xf32> to vector<1x64xf32>
      %282 = vector.extract_strided_slice %106 {offsets = [1, 0, 0], sizes = [1, 1, 64], strides = [1, 1, 1]} : vector<4x1x64xf32> to vector<1x1x64xf32>
      %283 = vector.shape_cast %282 : vector<1x1x64xf32> to vector<1x64xf32>
      %cst_116 = arith.constant dense<0.000000e+00> : vector<8xf32>
      %284 = vector.multi_reduction <add>, %279, %cst_116 [1] : vector<8x64xf32> to vector<8xf32>
      %285 = vector.shape_cast %284 : vector<8xf32> to vector<8x1xf32>
      %cst_117 = arith.constant 6.400000e+01 : f32
      %286 = vector.broadcast %cst_117 : f32 to vector<8x1xf32>
      %287 = arith.divf %285, %286 : vector<8x1xf32>
      %288 = vector.broadcast %287 : vector<8x1xf32> to vector<8x64xf32>
      %289 = arith.subf %279, %288 : vector<8x64xf32>
      %290 = arith.mulf %289, %289 : vector<8x64xf32>
      %cst_118 = arith.constant dense<0.000000e+00> : vector<8xf32>
      %291 = vector.multi_reduction <add>, %290, %cst_118 [1] : vector<8x64xf32> to vector<8xf32>
      %292 = vector.shape_cast %291 : vector<8xf32> to vector<8x1xf32>
      %cst_119 = arith.constant 6.400000e+01 : f32
      %293 = vector.broadcast %cst_119 : f32 to vector<8x1xf32>
      %294 = arith.divf %292, %293 : vector<8x1xf32>
      %295 = vector.broadcast %287 : vector<8x1xf32> to vector<8x64xf32>
      %296 = arith.subf %279, %295 : vector<8x64xf32>
      %cst_120 = arith.constant 9.99999974E-6 : f32
      %297 = vector.broadcast %cst_120 : f32 to vector<8x1xf32>
      %298 = arith.addf %294, %297 : vector<8x1xf32>
      %299 = math.rsqrt %298 : vector<8x1xf32>
      %300 = vector.broadcast %299 : vector<8x1xf32> to vector<8x64xf32>
      %301 = arith.mulf %296, %300 : vector<8x64xf32>
      %302 = vector.broadcast %281 : vector<1x64xf32> to vector<8x64xf32>
      %303 = arith.mulf %301, %302 : vector<8x64xf32>
      %304 = vector.broadcast %283 : vector<1x64xf32> to vector<8x64xf32>
      %305 = arith.addf %303, %304 : vector<8x64xf32>
      %306 = arith.index_cast %arg27 : i32 to index
      %c0_121 = arith.constant 0 : index
      %c0_122 = arith.constant 0 : index
      %307 = vector.load %arg12[%306, %c0_121, %c0_122] : memref<4x64x128xf32, #tpu.memory_space<vmem>>, vector<1x64x128xf32>
      %308 = vector.shape_cast %307 : vector<1x64x128xf32> to vector<64x128xf32>
      %cst_123 = arith.constant dense<0.000000e+00> : vector<8x128xf32>
      %309 = tpu.matmul %305, %308, %cst_123 {dimension_numbers = #tpu.dot_dimension_numbers<[1], [0], [0], [1], [0, 0, 1, 1], [], []>} : vector<8x64xf32>, vector<64x128xf32>, vector<8x128xf32> -> vector<8x128xf32>
      %310 = arith.index_cast %arg27 : i32 to index
      %c0_124 = arith.constant 0 : index
      %c0_125 = arith.constant 0 : index
      %311 = vector.load %arg13[%310, %c0_124, %c0_125] : memref<4x1x128xf32, #tpu.memory_space<vmem>>, vector<1x1x128xf32>
      %312 = vector.shape_cast %311 : vector<1x1x128xf32> to vector<1x128xf32>
      %313 = vector.broadcast %312 : vector<1x128xf32> to vector<8x128xf32>
      %314 = arith.addf %309, %313 : vector<8x128xf32>
      %cst_126 = arith.constant 5.000000e-01 : f32
      %315 = vector.broadcast %cst_126 : f32 to vector<8x128xf32>
      %316 = arith.mulf %315, %314 : vector<8x128xf32>
      %cst_127 = arith.constant 4.471500e-02 : f32
      %317 = vector.broadcast %cst_127 : f32 to vector<8x128xf32>
      %318 = arith.mulf %317, %314 : vector<8x128xf32>
      %319 = arith.mulf %318, %314 : vector<8x128xf32>
      %320 = arith.mulf %319, %314 : vector<8x128xf32>
      %321 = arith.addf %314, %320 : vector<8x128xf32>
      %cst_128 = arith.constant 0.797884583 : f32
      %322 = vector.broadcast %cst_128 : f32 to vector<8x128xf32>
      %323 = arith.mulf %322, %321 : vector<8x128xf32>
      %324 = math.tanh %323 : vector<8x128xf32>
      %cst_129 = arith.constant 1.000000e+00 : f32
      %325 = vector.broadcast %cst_129 : f32 to vector<8x128xf32>
      %326 = arith.addf %325, %324 : vector<8x128xf32>
      %327 = arith.mulf %316, %326 : vector<8x128xf32>
      %328 = arith.index_cast %arg27 : i32 to index
      %c0_130 = arith.constant 0 : index
      %c0_131 = arith.constant 0 : index
      %329 = vector.load %arg14[%328, %c0_130, %c0_131] : memref<4x128x64xf32, #tpu.memory_space<vmem>>, vector<1x128x64xf32>
      %330 = vector.shape_cast %329 : vector<1x128x64xf32> to vector<128x64xf32>
      %cst_132 = arith.constant dense<0.000000e+00> : vector<8x64xf32>
      %331 = tpu.matmul %327, %330, %cst_132 {dimension_numbers = #tpu.dot_dimension_numbers<[1], [0], [0], [1], [0, 0, 1, 1], [], []>} : vector<8x128xf32>, vector<128x64xf32>, vector<8x64xf32> -> vector<8x64xf32>
      %332 = arith.index_cast %arg27 : i32 to index
      %c0_133 = arith.constant 0 : index
      %c0_134 = arith.constant 0 : index
      %333 = vector.load %arg15[%332, %c0_133, %c0_134] : memref<4x1x64xf32, #tpu.memory_space<vmem>>, vector<1x1x64xf32>
      %334 = vector.shape_cast %333 : vector<1x1x64xf32> to vector<1x64xf32>
      %335 = vector.broadcast %334 : vector<1x64xf32> to vector<8x64xf32>
      %336 = arith.addf %331, %335 : vector<8x64xf32>
      %337 = arith.addf %305, %336 : vector<8x64xf32>
      %338 = vector.extract_strided_slice %106 {offsets = [2, 0, 0], sizes = [1, 1, 64], strides = [1, 1, 1]} : vector<4x1x64xf32> to vector<1x1x64xf32>
      %339 = vector.shape_cast %338 : vector<1x1x64xf32> to vector<1x64xf32>
      %340 = vector.extract_strided_slice %106 {offsets = [3, 0, 0], sizes = [1, 1, 64], strides = [1, 1, 1]} : vector<4x1x64xf32> to vector<1x1x64xf32>
      %341 = vector.shape_cast %340 : vector<1x1x64xf32> to vector<1x64xf32>
      %cst_135 = arith.constant dense<0.000000e+00> : vector<8xf32>
      %342 = vector.multi_reduction <add>, %337, %cst_135 [1] : vector<8x64xf32> to vector<8xf32>
      %343 = vector.shape_cast %342 : vector<8xf32> to vector<8x1xf32>
      %cst_136 = arith.constant 6.400000e+01 : f32
      %344 = vector.broadcast %cst_136 : f32 to vector<8x1xf32>
      %345 = arith.divf %343, %344 : vector<8x1xf32>
      %346 = vector.broadcast %345 : vector<8x1xf32> to vector<8x64xf32>
      %347 = arith.subf %337, %346 : vector<8x64xf32>
      %348 = arith.mulf %347, %347 : vector<8x64xf32>
      %cst_137 = arith.constant dense<0.000000e+00> : vector<8xf32>
      %349 = vector.multi_reduction <add>, %348, %cst_137 [1] : vector<8x64xf32> to vector<8xf32>
      %350 = vector.shape_cast %349 : vector<8xf32> to vector<8x1xf32>
      %cst_138 = arith.constant 6.400000e+01 : f32
      %351 = vector.broadcast %cst_138 : f32 to vector<8x1xf32>
      %352 = arith.divf %350, %351 : vector<8x1xf32>
      %353 = vector.broadcast %345 : vector<8x1xf32> to vector<8x64xf32>
      %354 = arith.subf %337, %353 : vector<8x64xf32>
      %cst_139 = arith.constant 9.99999974E-6 : f32
      %355 = vector.broadcast %cst_139 : f32 to vector<8x1xf32>
      %356 = arith.addf %352, %355 : vector<8x1xf32>
      %357 = math.rsqrt %356 : vector<8x1xf32>
      %358 = vector.broadcast %357 : vector<8x1xf32> to vector<8x64xf32>
      %359 = arith.mulf %354, %358 : vector<8x64xf32>
      %360 = vector.broadcast %339 : vector<1x64xf32> to vector<8x64xf32>
      %361 = arith.mulf %359, %360 : vector<8x64xf32>
      %362 = vector.broadcast %341 : vector<1x64xf32> to vector<8x64xf32>
      %363 = arith.addf %361, %362 : vector<8x64xf32>
      scf.yield %363 : vector<8x64xf32>
    }
    %c4_i32_27 = arith.constant 4 : i32
    %c0_28 = arith.constant 0 : index
    %c0_29 = arith.constant 0 : index
    %c0_30 = arith.constant 0 : index
    %47 = vector.load %arg25[%c0_28, %c0_29, %c0_30] : memref<4x1x64xf32, #tpu.memory_space<vmem>>, vector<1x1x64xf32>
    %48 = vector.shape_cast %47 : vector<1x1x64xf32> to vector<1x64xf32>
    %c1 = arith.constant 1 : index
    %c0_31 = arith.constant 0 : index
    %c0_32 = arith.constant 0 : index
    %49 = vector.load %arg25[%c1, %c0_31, %c0_32] : memref<4x1x64xf32, #tpu.memory_space<vmem>>, vector<1x1x64xf32>
    %50 = vector.shape_cast %49 : vector<1x1x64xf32> to vector<1x64xf32>
    %cst_33 = arith.constant dense<0.000000e+00> : vector<8xf32>
    %51 = vector.multi_reduction <add>, %46, %cst_33 [1] : vector<8x64xf32> to vector<8xf32>
    %52 = vector.shape_cast %51 : vector<8xf32> to vector<8x1xf32>
    %cst_34 = arith.constant 6.400000e+01 : f32
    %53 = vector.broadcast %cst_34 : f32 to vector<8x1xf32>
    %54 = arith.divf %52, %53 : vector<8x1xf32>
    %55 = vector.broadcast %54 : vector<8x1xf32> to vector<8x64xf32>
    %56 = arith.subf %46, %55 : vector<8x64xf32>
    %57 = arith.mulf %56, %56 : vector<8x64xf32>
    %cst_35 = arith.constant dense<0.000000e+00> : vector<8xf32>
    %58 = vector.multi_reduction <add>, %57, %cst_35 [1] : vector<8x64xf32> to vector<8xf32>
    %59 = vector.shape_cast %58 : vector<8xf32> to vector<8x1xf32>
    %cst_36 = arith.constant 6.400000e+01 : f32
    %60 = vector.broadcast %cst_36 : f32 to vector<8x1xf32>
    %61 = arith.divf %59, %60 : vector<8x1xf32>
    %62 = vector.broadcast %54 : vector<8x1xf32> to vector<8x64xf32>
    %63 = arith.subf %46, %62 : vector<8x64xf32>
    %cst_37 = arith.constant 9.99999974E-6 : f32
    %64 = vector.broadcast %cst_37 : f32 to vector<8x1xf32>
    %65 = arith.addf %61, %64 : vector<8x1xf32>
    %66 = math.rsqrt %65 : vector<8x1xf32>
    %67 = vector.broadcast %66 : vector<8x1xf32> to vector<8x64xf32>
    %68 = arith.mulf %63, %67 : vector<8x64xf32>
    %69 = vector.broadcast %48 : vector<1x64xf32> to vector<8x64xf32>
    %70 = arith.mulf %68, %69 : vector<8x64xf32>
    %71 = vector.broadcast %50 : vector<1x64xf32> to vector<8x64xf32>
    %72 = arith.addf %70, %71 : vector<8x64xf32>
    %c0_i32_38 = arith.constant 0 : i32
    %c4_i32_39 = arith.constant 4 : i32
    %73 = arith.addi %c0_i32_38, %c4_i32_39 : i32
    %c1_i32_40 = arith.constant 1 : i32
    %74 = scf.for %arg27 = %c0_i32_38 to %73 step %c1_i32_40 iter_args(%arg28 = %44) -> (vector<19x64xf32>)  : i32 {
      %104 = arith.index_cast %arg27 : i32 to index
      %c0_54 = arith.constant 0 : index
      %c0_55 = arith.constant 0 : index
      %c0_56 = arith.constant 0 : index
      %105 = vector.load %arg20[%104, %c0_54, %c0_55, %c0_56] : memref<4x6x1x64xf32, #tpu.memory_space<vmem>>, vector<1x6x1x64xf32>
      %106 = vector.shape_cast %105 : vector<1x6x1x64xf32> to vector<6x1x64xf32>
      %107 = arith.index_cast %arg27 : i32 to index
      %c0_57 = arith.constant 0 : index
      %c0_58 = arith.constant 0 : index
      %c0_59 = arith.constant 0 : index
      %108 = vector.load %arg17[%107, %c0_57, %c0_58, %c0_59] : memref<4x4x1x64xf32, #tpu.memory_space<vmem>>, vector<1x4x1x64xf32>
      %109 = vector.shape_cast %108 : vector<1x4x1x64xf32> to vector<4x1x64xf32>
      %110 = arith.index_cast %arg27 : i32 to index
      %c0_60 = arith.constant 0 : index
      %c0_61 = arith.constant 0 : index
      %c0_62 = arith.constant 0 : index
      %111 = vector.load %arg16[%110, %c0_60, %c0_61, %c0_62] : memref<4x4x64x64xf32, #tpu.memory_space<vmem>>, vector<1x1x64x64xf32>
      %112 = vector.shape_cast %111 : vector<1x1x64x64xf32> to vector<64x64xf32>
      %cst_63 = arith.constant dense<0.000000e+00> : vector<19x64xf32>
      %113 = tpu.matmul %arg28, %112, %cst_63 {dimension_numbers = #tpu.dot_dimension_numbers<[1], [0], [0], [1], [0, 0, 1, 1], [], []>} : vector<19x64xf32>, vector<64x64xf32>, vector<19x64xf32> -> vector<19x64xf32>
      %114 = vector.extract_strided_slice %109 {offsets = [0, 0, 0], sizes = [1, 1, 64], strides = [1, 1, 1]} : vector<4x1x64xf32> to vector<1x1x64xf32>
      %115 = vector.shape_cast %114 : vector<1x1x64xf32> to vector<1x64xf32>
      %116 = vector.broadcast %115 : vector<1x64xf32> to vector<19x64xf32>
      %117 = arith.addf %113, %116 : vector<19x64xf32>
      %118 = arith.index_cast %arg27 : i32 to index
      %c1_64 = arith.constant 1 : index
      %c0_65 = arith.constant 0 : index
      %c0_66 = arith.constant 0 : index
      %119 = vector.load %arg16[%118, %c1_64, %c0_65, %c0_66] : memref<4x4x64x64xf32, #tpu.memory_space<vmem>>, vector<1x1x64x64xf32>
      %120 = vector.shape_cast %119 : vector<1x1x64x64xf32> to vector<64x64xf32>
      %cst_67 = arith.constant dense<0.000000e+00> : vector<19x64xf32>
      %121 = tpu.matmul %arg28, %120, %cst_67 {dimension_numbers = #tpu.dot_dimension_numbers<[1], [0], [0], [1], [0, 0, 1, 1], [], []>} : vector<19x64xf32>, vector<64x64xf32>, vector<19x64xf32> -> vector<19x64xf32>
      %122 = vector.extract_strided_slice %109 {offsets = [1, 0, 0], sizes = [1, 1, 64], strides = [1, 1, 1]} : vector<4x1x64xf32> to vector<1x1x64xf32>
      %123 = vector.shape_cast %122 : vector<1x1x64xf32> to vector<1x64xf32>
      %124 = vector.broadcast %123 : vector<1x64xf32> to vector<19x64xf32>
      %125 = arith.addf %121, %124 : vector<19x64xf32>
      %126 = arith.index_cast %arg27 : i32 to index
      %c2_68 = arith.constant 2 : index
      %c0_69 = arith.constant 0 : index
      %c0_70 = arith.constant 0 : index
      %127 = vector.load %arg16[%126, %c2_68, %c0_69, %c0_70] : memref<4x4x64x64xf32, #tpu.memory_space<vmem>>, vector<1x1x64x64xf32>
      %128 = vector.shape_cast %127 : vector<1x1x64x64xf32> to vector<64x64xf32>
      %cst_71 = arith.constant dense<0.000000e+00> : vector<19x64xf32>
      %129 = tpu.matmul %arg28, %128, %cst_71 {dimension_numbers = #tpu.dot_dimension_numbers<[1], [0], [0], [1], [0, 0, 1, 1], [], []>} : vector<19x64xf32>, vector<64x64xf32>, vector<19x64xf32> -> vector<19x64xf32>
      %130 = vector.extract_strided_slice %109 {offsets = [2, 0, 0], sizes = [1, 1, 64], strides = [1, 1, 1]} : vector<4x1x64xf32> to vector<1x1x64xf32>
      %131 = vector.shape_cast %130 : vector<1x1x64xf32> to vector<1x64xf32>
      %132 = vector.broadcast %131 : vector<1x64xf32> to vector<19x64xf32>
      %133 = arith.addf %129, %132 : vector<19x64xf32>
      %134 = vector.extract_strided_slice %117 {offsets = [0, 0], sizes = [19, 8], strides = [1, 1]} : vector<19x64xf32> to vector<19x8xf32>
      %135 = vector.extract_strided_slice %125 {offsets = [0, 0], sizes = [19, 8], strides = [1, 1]} : vector<19x64xf32> to vector<19x8xf32>
      %cst_72 = arith.constant dense<0.000000e+00> : vector<19x19xf32>
      %136 = tpu.matmul %134, %135, %cst_72 {dimension_numbers = #tpu.dot_dimension_numbers<[1], [1], [0], [0], [0, 0, 1, 0], [], []>} : vector<19x8xf32>, vector<19x8xf32>, vector<19x19xf32> -> vector<19x19xf32>
      %cst_73 = arith.constant 0.353553385 : f32
      %137 = vector.broadcast %cst_73 : f32 to vector<19x19xf32>
      %138 = arith.mulf %136, %137 : vector<19x19xf32>
      %139 = arith.addf %138, %6 : vector<19x19xf32>
      %cst_74 = arith.constant dense<0xFF800000> : vector<19xf32>
      %140 = vector.multi_reduction <maximumf>, %139, %cst_74 [1] : vector<19x19xf32> to vector<19xf32>
      %141 = vector.shape_cast %140 : vector<19xf32> to vector<19x1xf32>
      %142 = vector.broadcast %141 : vector<19x1xf32> to vector<19x19xf32>
      %143 = arith.subf %139, %142 : vector<19x19xf32>
      %144 = math.exp %143 : vector<19x19xf32>
      %cst_75 = arith.constant dense<0.000000e+00> : vector<19xf32>
      %145 = vector.multi_reduction <add>, %144, %cst_75 [1] : vector<19x19xf32> to vector<19xf32>
      %146 = vector.shape_cast %145 : vector<19xf32> to vector<19x1xf32>
      %147 = tpu.reciprocal %146 {approx = true} : vector<19x1xf32> -> vector<19x1xf32>
      %148 = vector.broadcast %147 : vector<19x1xf32> to vector<19x19xf32>
      %149 = arith.mulf %144, %148 : vector<19x19xf32>
      %150 = vector.extract_strided_slice %133 {offsets = [0, 0], sizes = [19, 8], strides = [1, 1]} : vector<19x64xf32> to vector<19x8xf32>
      %cst_76 = arith.constant dense<0.000000e+00> : vector<19x8xf32>
      %151 = tpu.matmul %149, %150, %cst_76 {dimension_numbers = #tpu.dot_dimension_numbers<[1], [0], [0], [1], [0, 0, 1, 1], [], []>} : vector<19x19xf32>, vector<19x8xf32>, vector<19x8xf32> -> vector<19x8xf32>
      %152 = vector.extract_strided_slice %117 {offsets = [0, 8], sizes = [19, 8], strides = [1, 1]} : vector<19x64xf32> to vector<19x8xf32>
      %153 = vector.extract_strided_slice %125 {offsets = [0, 8], sizes = [19, 8], strides = [1, 1]} : vector<19x64xf32> to vector<19x8xf32>
      %cst_77 = arith.constant dense<0.000000e+00> : vector<19x19xf32>
      %154 = tpu.matmul %152, %153, %cst_77 {dimension_numbers = #tpu.dot_dimension_numbers<[1], [1], [0], [0], [0, 0, 1, 0], [], []>} : vector<19x8xf32>, vector<19x8xf32>, vector<19x19xf32> -> vector<19x19xf32>
      %cst_78 = arith.constant 0.353553385 : f32
      %155 = vector.broadcast %cst_78 : f32 to vector<19x19xf32>
      %156 = arith.mulf %154, %155 : vector<19x19xf32>
      %157 = arith.addf %156, %6 : vector<19x19xf32>
      %cst_79 = arith.constant dense<0xFF800000> : vector<19xf32>
      %158 = vector.multi_reduction <maximumf>, %157, %cst_79 [1] : vector<19x19xf32> to vector<19xf32>
      %159 = vector.shape_cast %158 : vector<19xf32> to vector<19x1xf32>
      %160 = vector.broadcast %159 : vector<19x1xf32> to vector<19x19xf32>
      %161 = arith.subf %157, %160 : vector<19x19xf32>
      %162 = math.exp %161 : vector<19x19xf32>
      %cst_80 = arith.constant dense<0.000000e+00> : vector<19xf32>
      %163 = vector.multi_reduction <add>, %162, %cst_80 [1] : vector<19x19xf32> to vector<19xf32>
      %164 = vector.shape_cast %163 : vector<19xf32> to vector<19x1xf32>
      %165 = tpu.reciprocal %164 {approx = true} : vector<19x1xf32> -> vector<19x1xf32>
      %166 = vector.broadcast %165 : vector<19x1xf32> to vector<19x19xf32>
      %167 = arith.mulf %162, %166 : vector<19x19xf32>
      %168 = vector.extract_strided_slice %133 {offsets = [0, 8], sizes = [19, 8], strides = [1, 1]} : vector<19x64xf32> to vector<19x8xf32>
      %cst_81 = arith.constant dense<0.000000e+00> : vector<19x8xf32>
      %169 = tpu.matmul %167, %168, %cst_81 {dimension_numbers = #tpu.dot_dimension_numbers<[1], [0], [0], [1], [0, 0, 1, 1], [], []>} : vector<19x19xf32>, vector<19x8xf32>, vector<19x8xf32> -> vector<19x8xf32>
      %170 = vector.extract_strided_slice %117 {offsets = [0, 16], sizes = [19, 8], strides = [1, 1]} : vector<19x64xf32> to vector<19x8xf32>
      %171 = vector.extract_strided_slice %125 {offsets = [0, 16], sizes = [19, 8], strides = [1, 1]} : vector<19x64xf32> to vector<19x8xf32>
      %cst_82 = arith.constant dense<0.000000e+00> : vector<19x19xf32>
      %172 = tpu.matmul %170, %171, %cst_82 {dimension_numbers = #tpu.dot_dimension_numbers<[1], [1], [0], [0], [0, 0, 1, 0], [], []>} : vector<19x8xf32>, vector<19x8xf32>, vector<19x19xf32> -> vector<19x19xf32>
      %cst_83 = arith.constant 0.353553385 : f32
      %173 = vector.broadcast %cst_83 : f32 to vector<19x19xf32>
      %174 = arith.mulf %172, %173 : vector<19x19xf32>
      %175 = arith.addf %174, %6 : vector<19x19xf32>
      %cst_84 = arith.constant dense<0xFF800000> : vector<19xf32>
      %176 = vector.multi_reduction <maximumf>, %175, %cst_84 [1] : vector<19x19xf32> to vector<19xf32>
      %177 = vector.shape_cast %176 : vector<19xf32> to vector<19x1xf32>
      %178 = vector.broadcast %177 : vector<19x1xf32> to vector<19x19xf32>
      %179 = arith.subf %175, %178 : vector<19x19xf32>
      %180 = math.exp %179 : vector<19x19xf32>
      %cst_85 = arith.constant dense<0.000000e+00> : vector<19xf32>
      %181 = vector.multi_reduction <add>, %180, %cst_85 [1] : vector<19x19xf32> to vector<19xf32>
      %182 = vector.shape_cast %181 : vector<19xf32> to vector<19x1xf32>
      %183 = tpu.reciprocal %182 {approx = true} : vector<19x1xf32> -> vector<19x1xf32>
      %184 = vector.broadcast %183 : vector<19x1xf32> to vector<19x19xf32>
      %185 = arith.mulf %180, %184 : vector<19x19xf32>
      %186 = vector.extract_strided_slice %133 {offsets = [0, 16], sizes = [19, 8], strides = [1, 1]} : vector<19x64xf32> to vector<19x8xf32>
      %cst_86 = arith.constant dense<0.000000e+00> : vector<19x8xf32>
      %187 = tpu.matmul %185, %186, %cst_86 {dimension_numbers = #tpu.dot_dimension_numbers<[1], [0], [0], [1], [0, 0, 1, 1], [], []>} : vector<19x19xf32>, vector<19x8xf32>, vector<19x8xf32> -> vector<19x8xf32>
      %188 = vector.extract_strided_slice %117 {offsets = [0, 24], sizes = [19, 8], strides = [1, 1]} : vector<19x64xf32> to vector<19x8xf32>
      %189 = vector.extract_strided_slice %125 {offsets = [0, 24], sizes = [19, 8], strides = [1, 1]} : vector<19x64xf32> to vector<19x8xf32>
      %cst_87 = arith.constant dense<0.000000e+00> : vector<19x19xf32>
      %190 = tpu.matmul %188, %189, %cst_87 {dimension_numbers = #tpu.dot_dimension_numbers<[1], [1], [0], [0], [0, 0, 1, 0], [], []>} : vector<19x8xf32>, vector<19x8xf32>, vector<19x19xf32> -> vector<19x19xf32>
      %cst_88 = arith.constant 0.353553385 : f32
      %191 = vector.broadcast %cst_88 : f32 to vector<19x19xf32>
      %192 = arith.mulf %190, %191 : vector<19x19xf32>
      %193 = arith.addf %192, %6 : vector<19x19xf32>
      %cst_89 = arith.constant dense<0xFF800000> : vector<19xf32>
      %194 = vector.multi_reduction <maximumf>, %193, %cst_89 [1] : vector<19x19xf32> to vector<19xf32>
      %195 = vector.shape_cast %194 : vector<19xf32> to vector<19x1xf32>
      %196 = vector.broadcast %195 : vector<19x1xf32> to vector<19x19xf32>
      %197 = arith.subf %193, %196 : vector<19x19xf32>
      %198 = math.exp %197 : vector<19x19xf32>
      %cst_90 = arith.constant dense<0.000000e+00> : vector<19xf32>
      %199 = vector.multi_reduction <add>, %198, %cst_90 [1] : vector<19x19xf32> to vector<19xf32>
      %200 = vector.shape_cast %199 : vector<19xf32> to vector<19x1xf32>
      %201 = tpu.reciprocal %200 {approx = true} : vector<19x1xf32> -> vector<19x1xf32>
      %202 = vector.broadcast %201 : vector<19x1xf32> to vector<19x19xf32>
      %203 = arith.mulf %198, %202 : vector<19x19xf32>
      %204 = vector.extract_strided_slice %133 {offsets = [0, 24], sizes = [19, 8], strides = [1, 1]} : vector<19x64xf32> to vector<19x8xf32>
      %cst_91 = arith.constant dense<0.000000e+00> : vector<19x8xf32>
      %205 = tpu.matmul %203, %204, %cst_91 {dimension_numbers = #tpu.dot_dimension_numbers<[1], [0], [0], [1], [0, 0, 1, 1], [], []>} : vector<19x19xf32>, vector<19x8xf32>, vector<19x8xf32> -> vector<19x8xf32>
      %206 = vector.extract_strided_slice %117 {offsets = [0, 32], sizes = [19, 8], strides = [1, 1]} : vector<19x64xf32> to vector<19x8xf32>
      %207 = vector.extract_strided_slice %125 {offsets = [0, 32], sizes = [19, 8], strides = [1, 1]} : vector<19x64xf32> to vector<19x8xf32>
      %cst_92 = arith.constant dense<0.000000e+00> : vector<19x19xf32>
      %208 = tpu.matmul %206, %207, %cst_92 {dimension_numbers = #tpu.dot_dimension_numbers<[1], [1], [0], [0], [0, 0, 1, 0], [], []>} : vector<19x8xf32>, vector<19x8xf32>, vector<19x19xf32> -> vector<19x19xf32>
      %cst_93 = arith.constant 0.353553385 : f32
      %209 = vector.broadcast %cst_93 : f32 to vector<19x19xf32>
      %210 = arith.mulf %208, %209 : vector<19x19xf32>
      %211 = arith.addf %210, %6 : vector<19x19xf32>
      %cst_94 = arith.constant dense<0xFF800000> : vector<19xf32>
      %212 = vector.multi_reduction <maximumf>, %211, %cst_94 [1] : vector<19x19xf32> to vector<19xf32>
      %213 = vector.shape_cast %212 : vector<19xf32> to vector<19x1xf32>
      %214 = vector.broadcast %213 : vector<19x1xf32> to vector<19x19xf32>
      %215 = arith.subf %211, %214 : vector<19x19xf32>
      %216 = math.exp %215 : vector<19x19xf32>
      %cst_95 = arith.constant dense<0.000000e+00> : vector<19xf32>
      %217 = vector.multi_reduction <add>, %216, %cst_95 [1] : vector<19x19xf32> to vector<19xf32>
      %218 = vector.shape_cast %217 : vector<19xf32> to vector<19x1xf32>
      %219 = tpu.reciprocal %218 {approx = true} : vector<19x1xf32> -> vector<19x1xf32>
      %220 = vector.broadcast %219 : vector<19x1xf32> to vector<19x19xf32>
      %221 = arith.mulf %216, %220 : vector<19x19xf32>
      %222 = vector.extract_strided_slice %133 {offsets = [0, 32], sizes = [19, 8], strides = [1, 1]} : vector<19x64xf32> to vector<19x8xf32>
      %cst_96 = arith.constant dense<0.000000e+00> : vector<19x8xf32>
      %223 = tpu.matmul %221, %222, %cst_96 {dimension_numbers = #tpu.dot_dimension_numbers<[1], [0], [0], [1], [0, 0, 1, 1], [], []>} : vector<19x19xf32>, vector<19x8xf32>, vector<19x8xf32> -> vector<19x8xf32>
      %224 = vector.extract_strided_slice %117 {offsets = [0, 40], sizes = [19, 8], strides = [1, 1]} : vector<19x64xf32> to vector<19x8xf32>
      %225 = vector.extract_strided_slice %125 {offsets = [0, 40], sizes = [19, 8], strides = [1, 1]} : vector<19x64xf32> to vector<19x8xf32>
      %cst_97 = arith.constant dense<0.000000e+00> : vector<19x19xf32>
      %226 = tpu.matmul %224, %225, %cst_97 {dimension_numbers = #tpu.dot_dimension_numbers<[1], [1], [0], [0], [0, 0, 1, 0], [], []>} : vector<19x8xf32>, vector<19x8xf32>, vector<19x19xf32> -> vector<19x19xf32>
      %cst_98 = arith.constant 0.353553385 : f32
      %227 = vector.broadcast %cst_98 : f32 to vector<19x19xf32>
      %228 = arith.mulf %226, %227 : vector<19x19xf32>
      %229 = arith.addf %228, %6 : vector<19x19xf32>
      %cst_99 = arith.constant dense<0xFF800000> : vector<19xf32>
      %230 = vector.multi_reduction <maximumf>, %229, %cst_99 [1] : vector<19x19xf32> to vector<19xf32>
      %231 = vector.shape_cast %230 : vector<19xf32> to vector<19x1xf32>
      %232 = vector.broadcast %231 : vector<19x1xf32> to vector<19x19xf32>
      %233 = arith.subf %229, %232 : vector<19x19xf32>
      %234 = math.exp %233 : vector<19x19xf32>
      %cst_100 = arith.constant dense<0.000000e+00> : vector<19xf32>
      %235 = vector.multi_reduction <add>, %234, %cst_100 [1] : vector<19x19xf32> to vector<19xf32>
      %236 = vector.shape_cast %235 : vector<19xf32> to vector<19x1xf32>
      %237 = tpu.reciprocal %236 {approx = true} : vector<19x1xf32> -> vector<19x1xf32>
      %238 = vector.broadcast %237 : vector<19x1xf32> to vector<19x19xf32>
      %239 = arith.mulf %234, %238 : vector<19x19xf32>
      %240 = vector.extract_strided_slice %133 {offsets = [0, 40], sizes = [19, 8], strides = [1, 1]} : vector<19x64xf32> to vector<19x8xf32>
      %cst_101 = arith.constant dense<0.000000e+00> : vector<19x8xf32>
      %241 = tpu.matmul %239, %240, %cst_101 {dimension_numbers = #tpu.dot_dimension_numbers<[1], [0], [0], [1], [0, 0, 1, 1], [], []>} : vector<19x19xf32>, vector<19x8xf32>, vector<19x8xf32> -> vector<19x8xf32>
      %242 = vector.extract_strided_slice %117 {offsets = [0, 48], sizes = [19, 8], strides = [1, 1]} : vector<19x64xf32> to vector<19x8xf32>
      %243 = vector.extract_strided_slice %125 {offsets = [0, 48], sizes = [19, 8], strides = [1, 1]} : vector<19x64xf32> to vector<19x8xf32>
      %cst_102 = arith.constant dense<0.000000e+00> : vector<19x19xf32>
      %244 = tpu.matmul %242, %243, %cst_102 {dimension_numbers = #tpu.dot_dimension_numbers<[1], [1], [0], [0], [0, 0, 1, 0], [], []>} : vector<19x8xf32>, vector<19x8xf32>, vector<19x19xf32> -> vector<19x19xf32>
      %cst_103 = arith.constant 0.353553385 : f32
      %245 = vector.broadcast %cst_103 : f32 to vector<19x19xf32>
      %246 = arith.mulf %244, %245 : vector<19x19xf32>
      %247 = arith.addf %246, %6 : vector<19x19xf32>
      %cst_104 = arith.constant dense<0xFF800000> : vector<19xf32>
      %248 = vector.multi_reduction <maximumf>, %247, %cst_104 [1] : vector<19x19xf32> to vector<19xf32>
      %249 = vector.shape_cast %248 : vector<19xf32> to vector<19x1xf32>
      %250 = vector.broadcast %249 : vector<19x1xf32> to vector<19x19xf32>
      %251 = arith.subf %247, %250 : vector<19x19xf32>
      %252 = math.exp %251 : vector<19x19xf32>
      %cst_105 = arith.constant dense<0.000000e+00> : vector<19xf32>
      %253 = vector.multi_reduction <add>, %252, %cst_105 [1] : vector<19x19xf32> to vector<19xf32>
      %254 = vector.shape_cast %253 : vector<19xf32> to vector<19x1xf32>
      %255 = tpu.reciprocal %254 {approx = true} : vector<19x1xf32> -> vector<19x1xf32>
      %256 = vector.broadcast %255 : vector<19x1xf32> to vector<19x19xf32>
      %257 = arith.mulf %252, %256 : vector<19x19xf32>
      %258 = vector.extract_strided_slice %133 {offsets = [0, 48], sizes = [19, 8], strides = [1, 1]} : vector<19x64xf32> to vector<19x8xf32>
      %cst_106 = arith.constant dense<0.000000e+00> : vector<19x8xf32>
      %259 = tpu.matmul %257, %258, %cst_106 {dimension_numbers = #tpu.dot_dimension_numbers<[1], [0], [0], [1], [0, 0, 1, 1], [], []>} : vector<19x19xf32>, vector<19x8xf32>, vector<19x8xf32> -> vector<19x8xf32>
      %260 = vector.extract_strided_slice %117 {offsets = [0, 56], sizes = [19, 8], strides = [1, 1]} : vector<19x64xf32> to vector<19x8xf32>
      %261 = vector.extract_strided_slice %125 {offsets = [0, 56], sizes = [19, 8], strides = [1, 1]} : vector<19x64xf32> to vector<19x8xf32>
      %cst_107 = arith.constant dense<0.000000e+00> : vector<19x19xf32>
      %262 = tpu.matmul %260, %261, %cst_107 {dimension_numbers = #tpu.dot_dimension_numbers<[1], [1], [0], [0], [0, 0, 1, 0], [], []>} : vector<19x8xf32>, vector<19x8xf32>, vector<19x19xf32> -> vector<19x19xf32>
      %cst_108 = arith.constant 0.353553385 : f32
      %263 = vector.broadcast %cst_108 : f32 to vector<19x19xf32>
      %264 = arith.mulf %262, %263 : vector<19x19xf32>
      %265 = arith.addf %264, %6 : vector<19x19xf32>
      %cst_109 = arith.constant dense<0xFF800000> : vector<19xf32>
      %266 = vector.multi_reduction <maximumf>, %265, %cst_109 [1] : vector<19x19xf32> to vector<19xf32>
      %267 = vector.shape_cast %266 : vector<19xf32> to vector<19x1xf32>
      %268 = vector.broadcast %267 : vector<19x1xf32> to vector<19x19xf32>
      %269 = arith.subf %265, %268 : vector<19x19xf32>
      %270 = math.exp %269 : vector<19x19xf32>
      %cst_110 = arith.constant dense<0.000000e+00> : vector<19xf32>
      %271 = vector.multi_reduction <add>, %270, %cst_110 [1] : vector<19x19xf32> to vector<19xf32>
      %272 = vector.shape_cast %271 : vector<19xf32> to vector<19x1xf32>
      %273 = tpu.reciprocal %272 {approx = true} : vector<19x1xf32> -> vector<19x1xf32>
      %274 = vector.broadcast %273 : vector<19x1xf32> to vector<19x19xf32>
      %275 = arith.mulf %270, %274 : vector<19x19xf32>
      %276 = vector.extract_strided_slice %133 {offsets = [0, 56], sizes = [19, 8], strides = [1, 1]} : vector<19x64xf32> to vector<19x8xf32>
      %cst_111 = arith.constant dense<0.000000e+00> : vector<19x8xf32>
      %277 = tpu.matmul %275, %276, %cst_111 {dimension_numbers = #tpu.dot_dimension_numbers<[1], [0], [0], [1], [0, 0, 1, 1], [], []>} : vector<19x19xf32>, vector<19x8xf32>, vector<19x8xf32> -> vector<19x8xf32>
      %278 = tpu.concatenate %151, %169, %187, %205, %223, %241, %259, %277 in 1 : vector<19x8xf32>, vector<19x8xf32>, vector<19x8xf32>, vector<19x8xf32>, vector<19x8xf32>, vector<19x8xf32>, vector<19x8xf32>, vector<19x8xf32> -> vector<19x64xf32>
      %279 = arith.index_cast %arg27 : i32 to index
      %c3_112 = arith.constant 3 : index
      %c0_113 = arith.constant 0 : index
      %c0_114 = arith.constant 0 : index
      %280 = vector.load %arg16[%279, %c3_112, %c0_113, %c0_114] : memref<4x4x64x64xf32, #tpu.memory_space<vmem>>, vector<1x1x64x64xf32>
      %281 = vector.shape_cast %280 : vector<1x1x64x64xf32> to vector<64x64xf32>
      %cst_115 = arith.constant dense<0.000000e+00> : vector<19x64xf32>
      %282 = tpu.matmul %278, %281, %cst_115 {dimension_numbers = #tpu.dot_dimension_numbers<[1], [0], [0], [1], [0, 0, 1, 1], [], []>} : vector<19x64xf32>, vector<64x64xf32>, vector<19x64xf32> -> vector<19x64xf32>
      %283 = vector.extract_strided_slice %109 {offsets = [3, 0, 0], sizes = [1, 1, 64], strides = [1, 1, 1]} : vector<4x1x64xf32> to vector<1x1x64xf32>
      %284 = vector.shape_cast %283 : vector<1x1x64xf32> to vector<1x64xf32>
      %285 = vector.broadcast %284 : vector<1x64xf32> to vector<19x64xf32>
      %286 = arith.addf %282, %285 : vector<19x64xf32>
      %287 = arith.addf %arg28, %286 : vector<19x64xf32>
      %288 = vector.extract_strided_slice %106 {offsets = [0, 0, 0], sizes = [1, 1, 64], strides = [1, 1, 1]} : vector<6x1x64xf32> to vector<1x1x64xf32>
      %289 = vector.shape_cast %288 : vector<1x1x64xf32> to vector<1x64xf32>
      %290 = vector.extract_strided_slice %106 {offsets = [1, 0, 0], sizes = [1, 1, 64], strides = [1, 1, 1]} : vector<6x1x64xf32> to vector<1x1x64xf32>
      %291 = vector.shape_cast %290 : vector<1x1x64xf32> to vector<1x64xf32>
      %cst_116 = arith.constant dense<0.000000e+00> : vector<19xf32>
      %292 = vector.multi_reduction <add>, %287, %cst_116 [1] : vector<19x64xf32> to vector<19xf32>
      %293 = vector.shape_cast %292 : vector<19xf32> to vector<19x1xf32>
      %cst_117 = arith.constant 6.400000e+01 : f32
      %294 = vector.broadcast %cst_117 : f32 to vector<19x1xf32>
      %295 = arith.divf %293, %294 : vector<19x1xf32>
      %296 = vector.broadcast %295 : vector<19x1xf32> to vector<19x64xf32>
      %297 = arith.subf %287, %296 : vector<19x64xf32>
      %298 = arith.mulf %297, %297 : vector<19x64xf32>
      %cst_118 = arith.constant dense<0.000000e+00> : vector<19xf32>
      %299 = vector.multi_reduction <add>, %298, %cst_118 [1] : vector<19x64xf32> to vector<19xf32>
      %300 = vector.shape_cast %299 : vector<19xf32> to vector<19x1xf32>
      %cst_119 = arith.constant 6.400000e+01 : f32
      %301 = vector.broadcast %cst_119 : f32 to vector<19x1xf32>
      %302 = arith.divf %300, %301 : vector<19x1xf32>
      %303 = vector.broadcast %295 : vector<19x1xf32> to vector<19x64xf32>
      %304 = arith.subf %287, %303 : vector<19x64xf32>
      %cst_120 = arith.constant 9.99999974E-6 : f32
      %305 = vector.broadcast %cst_120 : f32 to vector<19x1xf32>
      %306 = arith.addf %302, %305 : vector<19x1xf32>
      %307 = math.rsqrt %306 : vector<19x1xf32>
      %308 = vector.broadcast %307 : vector<19x1xf32> to vector<19x64xf32>
      %309 = arith.mulf %304, %308 : vector<19x64xf32>
      %310 = vector.broadcast %289 : vector<1x64xf32> to vector<19x64xf32>
      %311 = arith.mulf %309, %310 : vector<19x64xf32>
      %312 = vector.broadcast %291 : vector<1x64xf32> to vector<19x64xf32>
      %313 = arith.addf %311, %312 : vector<19x64xf32>
      %314 = arith.index_cast %arg27 : i32 to index
      %c0_121 = arith.constant 0 : index
      %c0_122 = arith.constant 0 : index
      %c0_123 = arith.constant 0 : index
      %315 = vector.load %arg19[%314, %c0_121, %c0_122, %c0_123] : memref<4x4x1x64xf32, #tpu.memory_space<vmem>>, vector<1x4x1x64xf32>
      %316 = vector.shape_cast %315 : vector<1x4x1x64xf32> to vector<4x1x64xf32>
      %317 = arith.index_cast %arg27 : i32 to index
      %c0_124 = arith.constant 0 : index
      %c0_125 = arith.constant 0 : index
      %c0_126 = arith.constant 0 : index
      %318 = vector.load %arg18[%317, %c0_124, %c0_125, %c0_126] : memref<4x4x64x64xf32, #tpu.memory_space<vmem>>, vector<1x1x64x64xf32>
      %319 = vector.shape_cast %318 : vector<1x1x64x64xf32> to vector<64x64xf32>
      %cst_127 = arith.constant dense<0.000000e+00> : vector<19x64xf32>
      %320 = tpu.matmul %313, %319, %cst_127 {dimension_numbers = #tpu.dot_dimension_numbers<[1], [0], [0], [1], [0, 0, 1, 1], [], []>} : vector<19x64xf32>, vector<64x64xf32>, vector<19x64xf32> -> vector<19x64xf32>
      %321 = vector.extract_strided_slice %316 {offsets = [0, 0, 0], sizes = [1, 1, 64], strides = [1, 1, 1]} : vector<4x1x64xf32> to vector<1x1x64xf32>
      %322 = vector.shape_cast %321 : vector<1x1x64xf32> to vector<1x64xf32>
      %323 = vector.broadcast %322 : vector<1x64xf32> to vector<19x64xf32>
      %324 = arith.addf %320, %323 : vector<19x64xf32>
      %325 = arith.index_cast %arg27 : i32 to index
      %c1_128 = arith.constant 1 : index
      %c0_129 = arith.constant 0 : index
      %c0_130 = arith.constant 0 : index
      %326 = vector.load %arg18[%325, %c1_128, %c0_129, %c0_130] : memref<4x4x64x64xf32, #tpu.memory_space<vmem>>, vector<1x1x64x64xf32>
      %327 = vector.shape_cast %326 : vector<1x1x64x64xf32> to vector<64x64xf32>
      %cst_131 = arith.constant dense<0.000000e+00> : vector<8x64xf32>
      %328 = tpu.matmul %72, %327, %cst_131 {dimension_numbers = #tpu.dot_dimension_numbers<[1], [0], [0], [1], [0, 0, 1, 1], [], []>} : vector<8x64xf32>, vector<64x64xf32>, vector<8x64xf32> -> vector<8x64xf32>
      %329 = vector.extract_strided_slice %316 {offsets = [1, 0, 0], sizes = [1, 1, 64], strides = [1, 1, 1]} : vector<4x1x64xf32> to vector<1x1x64xf32>
      %330 = vector.shape_cast %329 : vector<1x1x64xf32> to vector<1x64xf32>
      %331 = vector.broadcast %330 : vector<1x64xf32> to vector<8x64xf32>
      %332 = arith.addf %328, %331 : vector<8x64xf32>
      %333 = arith.index_cast %arg27 : i32 to index
      %c2_132 = arith.constant 2 : index
      %c0_133 = arith.constant 0 : index
      %c0_134 = arith.constant 0 : index
      %334 = vector.load %arg18[%333, %c2_132, %c0_133, %c0_134] : memref<4x4x64x64xf32, #tpu.memory_space<vmem>>, vector<1x1x64x64xf32>
      %335 = vector.shape_cast %334 : vector<1x1x64x64xf32> to vector<64x64xf32>
      %cst_135 = arith.constant dense<0.000000e+00> : vector<8x64xf32>
      %336 = tpu.matmul %72, %335, %cst_135 {dimension_numbers = #tpu.dot_dimension_numbers<[1], [0], [0], [1], [0, 0, 1, 1], [], []>} : vector<8x64xf32>, vector<64x64xf32>, vector<8x64xf32> -> vector<8x64xf32>
      %337 = vector.extract_strided_slice %316 {offsets = [2, 0, 0], sizes = [1, 1, 64], strides = [1, 1, 1]} : vector<4x1x64xf32> to vector<1x1x64xf32>
      %338 = vector.shape_cast %337 : vector<1x1x64xf32> to vector<1x64xf32>
      %339 = vector.broadcast %338 : vector<1x64xf32> to vector<8x64xf32>
      %340 = arith.addf %336, %339 : vector<8x64xf32>
      %341 = vector.extract_strided_slice %324 {offsets = [0, 0], sizes = [19, 8], strides = [1, 1]} : vector<19x64xf32> to vector<19x8xf32>
      %342 = vector.extract_strided_slice %332 {offsets = [0, 0], sizes = [8, 8], strides = [1, 1]} : vector<8x64xf32> to vector<8x8xf32>
      %cst_136 = arith.constant dense<0.000000e+00> : vector<19x8xf32>
      %343 = tpu.matmul %341, %342, %cst_136 {dimension_numbers = #tpu.dot_dimension_numbers<[1], [1], [0], [0], [0, 0, 1, 0], [], []>} : vector<19x8xf32>, vector<8x8xf32>, vector<19x8xf32> -> vector<19x8xf32>
      %cst_137 = arith.constant 0.353553385 : f32
      %344 = vector.broadcast %cst_137 : f32 to vector<19x8xf32>
      %345 = arith.mulf %343, %344 : vector<19x8xf32>
      %cst_138 = arith.constant dense<0xFF800000> : vector<19xf32>
      %346 = vector.multi_reduction <maximumf>, %345, %cst_138 [1] : vector<19x8xf32> to vector<19xf32>
      %347 = vector.shape_cast %346 : vector<19xf32> to vector<19x1xf32>
      %348 = vector.broadcast %347 : vector<19x1xf32> to vector<19x8xf32>
      %349 = arith.subf %345, %348 : vector<19x8xf32>
      %350 = math.exp %349 : vector<19x8xf32>
      %cst_139 = arith.constant dense<0.000000e+00> : vector<19xf32>
      %351 = vector.multi_reduction <add>, %350, %cst_139 [1] : vector<19x8xf32> to vector<19xf32>
      %352 = vector.shape_cast %351 : vector<19xf32> to vector<19x1xf32>
      %353 = tpu.reciprocal %352 {approx = true} : vector<19x1xf32> -> vector<19x1xf32>
      %354 = vector.broadcast %353 : vector<19x1xf32> to vector<19x8xf32>
      %355 = arith.mulf %350, %354 : vector<19x8xf32>
      %356 = vector.extract_strided_slice %340 {offsets = [0, 0], sizes = [8, 8], strides = [1, 1]} : vector<8x64xf32> to vector<8x8xf32>
      %cst_140 = arith.constant dense<0.000000e+00> : vector<19x8xf32>
      %357 = tpu.matmul %355, %356, %cst_140 {dimension_numbers = #tpu.dot_dimension_numbers<[1], [0], [0], [1], [0, 0, 1, 1], [], []>} : vector<19x8xf32>, vector<8x8xf32>, vector<19x8xf32> -> vector<19x8xf32>
      %358 = vector.extract_strided_slice %324 {offsets = [0, 8], sizes = [19, 8], strides = [1, 1]} : vector<19x64xf32> to vector<19x8xf32>
      %359 = vector.extract_strided_slice %332 {offsets = [0, 8], sizes = [8, 8], strides = [1, 1]} : vector<8x64xf32> to vector<8x8xf32>
      %cst_141 = arith.constant dense<0.000000e+00> : vector<19x8xf32>
      %360 = tpu.matmul %358, %359, %cst_141 {dimension_numbers = #tpu.dot_dimension_numbers<[1], [1], [0], [0], [0, 0, 1, 0], [], []>} : vector<19x8xf32>, vector<8x8xf32>, vector<19x8xf32> -> vector<19x8xf32>
      %cst_142 = arith.constant 0.353553385 : f32
      %361 = vector.broadcast %cst_142 : f32 to vector<19x8xf32>
      %362 = arith.mulf %360, %361 : vector<19x8xf32>
      %cst_143 = arith.constant dense<0xFF800000> : vector<19xf32>
      %363 = vector.multi_reduction <maximumf>, %362, %cst_143 [1] : vector<19x8xf32> to vector<19xf32>
      %364 = vector.shape_cast %363 : vector<19xf32> to vector<19x1xf32>
      %365 = vector.broadcast %364 : vector<19x1xf32> to vector<19x8xf32>
      %366 = arith.subf %362, %365 : vector<19x8xf32>
      %367 = math.exp %366 : vector<19x8xf32>
      %cst_144 = arith.constant dense<0.000000e+00> : vector<19xf32>
      %368 = vector.multi_reduction <add>, %367, %cst_144 [1] : vector<19x8xf32> to vector<19xf32>
      %369 = vector.shape_cast %368 : vector<19xf32> to vector<19x1xf32>
      %370 = tpu.reciprocal %369 {approx = true} : vector<19x1xf32> -> vector<19x1xf32>
      %371 = vector.broadcast %370 : vector<19x1xf32> to vector<19x8xf32>
      %372 = arith.mulf %367, %371 : vector<19x8xf32>
      %373 = vector.extract_strided_slice %340 {offsets = [0, 8], sizes = [8, 8], strides = [1, 1]} : vector<8x64xf32> to vector<8x8xf32>
      %cst_145 = arith.constant dense<0.000000e+00> : vector<19x8xf32>
      %374 = tpu.matmul %372, %373, %cst_145 {dimension_numbers = #tpu.dot_dimension_numbers<[1], [0], [0], [1], [0, 0, 1, 1], [], []>} : vector<19x8xf32>, vector<8x8xf32>, vector<19x8xf32> -> vector<19x8xf32>
      %375 = vector.extract_strided_slice %324 {offsets = [0, 16], sizes = [19, 8], strides = [1, 1]} : vector<19x64xf32> to vector<19x8xf32>
      %376 = vector.extract_strided_slice %332 {offsets = [0, 16], sizes = [8, 8], strides = [1, 1]} : vector<8x64xf32> to vector<8x8xf32>
      %cst_146 = arith.constant dense<0.000000e+00> : vector<19x8xf32>
      %377 = tpu.matmul %375, %376, %cst_146 {dimension_numbers = #tpu.dot_dimension_numbers<[1], [1], [0], [0], [0, 0, 1, 0], [], []>} : vector<19x8xf32>, vector<8x8xf32>, vector<19x8xf32> -> vector<19x8xf32>
      %cst_147 = arith.constant 0.353553385 : f32
      %378 = vector.broadcast %cst_147 : f32 to vector<19x8xf32>
      %379 = arith.mulf %377, %378 : vector<19x8xf32>
      %cst_148 = arith.constant dense<0xFF800000> : vector<19xf32>
      %380 = vector.multi_reduction <maximumf>, %379, %cst_148 [1] : vector<19x8xf32> to vector<19xf32>
      %381 = vector.shape_cast %380 : vector<19xf32> to vector<19x1xf32>
      %382 = vector.broadcast %381 : vector<19x1xf32> to vector<19x8xf32>
      %383 = arith.subf %379, %382 : vector<19x8xf32>
      %384 = math.exp %383 : vector<19x8xf32>
      %cst_149 = arith.constant dense<0.000000e+00> : vector<19xf32>
      %385 = vector.multi_reduction <add>, %384, %cst_149 [1] : vector<19x8xf32> to vector<19xf32>
      %386 = vector.shape_cast %385 : vector<19xf32> to vector<19x1xf32>
      %387 = tpu.reciprocal %386 {approx = true} : vector<19x1xf32> -> vector<19x1xf32>
      %388 = vector.broadcast %387 : vector<19x1xf32> to vector<19x8xf32>
      %389 = arith.mulf %384, %388 : vector<19x8xf32>
      %390 = vector.extract_strided_slice %340 {offsets = [0, 16], sizes = [8, 8], strides = [1, 1]} : vector<8x64xf32> to vector<8x8xf32>
      %cst_150 = arith.constant dense<0.000000e+00> : vector<19x8xf32>
      %391 = tpu.matmul %389, %390, %cst_150 {dimension_numbers = #tpu.dot_dimension_numbers<[1], [0], [0], [1], [0, 0, 1, 1], [], []>} : vector<19x8xf32>, vector<8x8xf32>, vector<19x8xf32> -> vector<19x8xf32>
      %392 = vector.extract_strided_slice %324 {offsets = [0, 24], sizes = [19, 8], strides = [1, 1]} : vector<19x64xf32> to vector<19x8xf32>
      %393 = vector.extract_strided_slice %332 {offsets = [0, 24], sizes = [8, 8], strides = [1, 1]} : vector<8x64xf32> to vector<8x8xf32>
      %cst_151 = arith.constant dense<0.000000e+00> : vector<19x8xf32>
      %394 = tpu.matmul %392, %393, %cst_151 {dimension_numbers = #tpu.dot_dimension_numbers<[1], [1], [0], [0], [0, 0, 1, 0], [], []>} : vector<19x8xf32>, vector<8x8xf32>, vector<19x8xf32> -> vector<19x8xf32>
      %cst_152 = arith.constant 0.353553385 : f32
      %395 = vector.broadcast %cst_152 : f32 to vector<19x8xf32>
      %396 = arith.mulf %394, %395 : vector<19x8xf32>
      %cst_153 = arith.constant dense<0xFF800000> : vector<19xf32>
      %397 = vector.multi_reduction <maximumf>, %396, %cst_153 [1] : vector<19x8xf32> to vector<19xf32>
      %398 = vector.shape_cast %397 : vector<19xf32> to vector<19x1xf32>
      %399 = vector.broadcast %398 : vector<19x1xf32> to vector<19x8xf32>
      %400 = arith.subf %396, %399 : vector<19x8xf32>
      %401 = math.exp %400 : vector<19x8xf32>
      %cst_154 = arith.constant dense<0.000000e+00> : vector<19xf32>
      %402 = vector.multi_reduction <add>, %401, %cst_154 [1] : vector<19x8xf32> to vector<19xf32>
      %403 = vector.shape_cast %402 : vector<19xf32> to vector<19x1xf32>
      %404 = tpu.reciprocal %403 {approx = true} : vector<19x1xf32> -> vector<19x1xf32>
      %405 = vector.broadcast %404 : vector<19x1xf32> to vector<19x8xf32>
      %406 = arith.mulf %401, %405 : vector<19x8xf32>
      %407 = vector.extract_strided_slice %340 {offsets = [0, 24], sizes = [8, 8], strides = [1, 1]} : vector<8x64xf32> to vector<8x8xf32>
      %cst_155 = arith.constant dense<0.000000e+00> : vector<19x8xf32>
      %408 = tpu.matmul %406, %407, %cst_155 {dimension_numbers = #tpu.dot_dimension_numbers<[1], [0], [0], [1], [0, 0, 1, 1], [], []>} : vector<19x8xf32>, vector<8x8xf32>, vector<19x8xf32> -> vector<19x8xf32>
      %409 = vector.extract_strided_slice %324 {offsets = [0, 32], sizes = [19, 8], strides = [1, 1]} : vector<19x64xf32> to vector<19x8xf32>
      %410 = vector.extract_strided_slice %332 {offsets = [0, 32], sizes = [8, 8], strides = [1, 1]} : vector<8x64xf32> to vector<8x8xf32>
      %cst_156 = arith.constant dense<0.000000e+00> : vector<19x8xf32>
      %411 = tpu.matmul %409, %410, %cst_156 {dimension_numbers = #tpu.dot_dimension_numbers<[1], [1], [0], [0], [0, 0, 1, 0], [], []>} : vector<19x8xf32>, vector<8x8xf32>, vector<19x8xf32> -> vector<19x8xf32>
      %cst_157 = arith.constant 0.353553385 : f32
      %412 = vector.broadcast %cst_157 : f32 to vector<19x8xf32>
      %413 = arith.mulf %411, %412 : vector<19x8xf32>
      %cst_158 = arith.constant dense<0xFF800000> : vector<19xf32>
      %414 = vector.multi_reduction <maximumf>, %413, %cst_158 [1] : vector<19x8xf32> to vector<19xf32>
      %415 = vector.shape_cast %414 : vector<19xf32> to vector<19x1xf32>
      %416 = vector.broadcast %415 : vector<19x1xf32> to vector<19x8xf32>
      %417 = arith.subf %413, %416 : vector<19x8xf32>
      %418 = math.exp %417 : vector<19x8xf32>
      %cst_159 = arith.constant dense<0.000000e+00> : vector<19xf32>
      %419 = vector.multi_reduction <add>, %418, %cst_159 [1] : vector<19x8xf32> to vector<19xf32>
      %420 = vector.shape_cast %419 : vector<19xf32> to vector<19x1xf32>
      %421 = tpu.reciprocal %420 {approx = true} : vector<19x1xf32> -> vector<19x1xf32>
      %422 = vector.broadcast %421 : vector<19x1xf32> to vector<19x8xf32>
      %423 = arith.mulf %418, %422 : vector<19x8xf32>
      %424 = vector.extract_strided_slice %340 {offsets = [0, 32], sizes = [8, 8], strides = [1, 1]} : vector<8x64xf32> to vector<8x8xf32>
      %cst_160 = arith.constant dense<0.000000e+00> : vector<19x8xf32>
      %425 = tpu.matmul %423, %424, %cst_160 {dimension_numbers = #tpu.dot_dimension_numbers<[1], [0], [0], [1], [0, 0, 1, 1], [], []>} : vector<19x8xf32>, vector<8x8xf32>, vector<19x8xf32> -> vector<19x8xf32>
      %426 = vector.extract_strided_slice %324 {offsets = [0, 40], sizes = [19, 8], strides = [1, 1]} : vector<19x64xf32> to vector<19x8xf32>
      %427 = vector.extract_strided_slice %332 {offsets = [0, 40], sizes = [8, 8], strides = [1, 1]} : vector<8x64xf32> to vector<8x8xf32>
      %cst_161 = arith.constant dense<0.000000e+00> : vector<19x8xf32>
      %428 = tpu.matmul %426, %427, %cst_161 {dimension_numbers = #tpu.dot_dimension_numbers<[1], [1], [0], [0], [0, 0, 1, 0], [], []>} : vector<19x8xf32>, vector<8x8xf32>, vector<19x8xf32> -> vector<19x8xf32>
      %cst_162 = arith.constant 0.353553385 : f32
      %429 = vector.broadcast %cst_162 : f32 to vector<19x8xf32>
      %430 = arith.mulf %428, %429 : vector<19x8xf32>
      %cst_163 = arith.constant dense<0xFF800000> : vector<19xf32>
      %431 = vector.multi_reduction <maximumf>, %430, %cst_163 [1] : vector<19x8xf32> to vector<19xf32>
      %432 = vector.shape_cast %431 : vector<19xf32> to vector<19x1xf32>
      %433 = vector.broadcast %432 : vector<19x1xf32> to vector<19x8xf32>
      %434 = arith.subf %430, %433 : vector<19x8xf32>
      %435 = math.exp %434 : vector<19x8xf32>
      %cst_164 = arith.constant dense<0.000000e+00> : vector<19xf32>
      %436 = vector.multi_reduction <add>, %435, %cst_164 [1] : vector<19x8xf32> to vector<19xf32>
      %437 = vector.shape_cast %436 : vector<19xf32> to vector<19x1xf32>
      %438 = tpu.reciprocal %437 {approx = true} : vector<19x1xf32> -> vector<19x1xf32>
      %439 = vector.broadcast %438 : vector<19x1xf32> to vector<19x8xf32>
      %440 = arith.mulf %435, %439 : vector<19x8xf32>
      %441 = vector.extract_strided_slice %340 {offsets = [0, 40], sizes = [8, 8], strides = [1, 1]} : vector<8x64xf32> to vector<8x8xf32>
      %cst_165 = arith.constant dense<0.000000e+00> : vector<19x8xf32>
      %442 = tpu.matmul %440, %441, %cst_165 {dimension_numbers = #tpu.dot_dimension_numbers<[1], [0], [0], [1], [0, 0, 1, 1], [], []>} : vector<19x8xf32>, vector<8x8xf32>, vector<19x8xf32> -> vector<19x8xf32>
      %443 = vector.extract_strided_slice %324 {offsets = [0, 48], sizes = [19, 8], strides = [1, 1]} : vector<19x64xf32> to vector<19x8xf32>
      %444 = vector.extract_strided_slice %332 {offsets = [0, 48], sizes = [8, 8], strides = [1, 1]} : vector<8x64xf32> to vector<8x8xf32>
      %cst_166 = arith.constant dense<0.000000e+00> : vector<19x8xf32>
      %445 = tpu.matmul %443, %444, %cst_166 {dimension_numbers = #tpu.dot_dimension_numbers<[1], [1], [0], [0], [0, 0, 1, 0], [], []>} : vector<19x8xf32>, vector<8x8xf32>, vector<19x8xf32> -> vector<19x8xf32>
      %cst_167 = arith.constant 0.353553385 : f32
      %446 = vector.broadcast %cst_167 : f32 to vector<19x8xf32>
      %447 = arith.mulf %445, %446 : vector<19x8xf32>
      %cst_168 = arith.constant dense<0xFF800000> : vector<19xf32>
      %448 = vector.multi_reduction <maximumf>, %447, %cst_168 [1] : vector<19x8xf32> to vector<19xf32>
      %449 = vector.shape_cast %448 : vector<19xf32> to vector<19x1xf32>
      %450 = vector.broadcast %449 : vector<19x1xf32> to vector<19x8xf32>
      %451 = arith.subf %447, %450 : vector<19x8xf32>
      %452 = math.exp %451 : vector<19x8xf32>
      %cst_169 = arith.constant dense<0.000000e+00> : vector<19xf32>
      %453 = vector.multi_reduction <add>, %452, %cst_169 [1] : vector<19x8xf32> to vector<19xf32>
      %454 = vector.shape_cast %453 : vector<19xf32> to vector<19x1xf32>
      %455 = tpu.reciprocal %454 {approx = true} : vector<19x1xf32> -> vector<19x1xf32>
      %456 = vector.broadcast %455 : vector<19x1xf32> to vector<19x8xf32>
      %457 = arith.mulf %452, %456 : vector<19x8xf32>
      %458 = vector.extract_strided_slice %340 {offsets = [0, 48], sizes = [8, 8], strides = [1, 1]} : vector<8x64xf32> to vector<8x8xf32>
      %cst_170 = arith.constant dense<0.000000e+00> : vector<19x8xf32>
      %459 = tpu.matmul %457, %458, %cst_170 {dimension_numbers = #tpu.dot_dimension_numbers<[1], [0], [0], [1], [0, 0, 1, 1], [], []>} : vector<19x8xf32>, vector<8x8xf32>, vector<19x8xf32> -> vector<19x8xf32>
      %460 = vector.extract_strided_slice %324 {offsets = [0, 56], sizes = [19, 8], strides = [1, 1]} : vector<19x64xf32> to vector<19x8xf32>
      %461 = vector.extract_strided_slice %332 {offsets = [0, 56], sizes = [8, 8], strides = [1, 1]} : vector<8x64xf32> to vector<8x8xf32>
      %cst_171 = arith.constant dense<0.000000e+00> : vector<19x8xf32>
      %462 = tpu.matmul %460, %461, %cst_171 {dimension_numbers = #tpu.dot_dimension_numbers<[1], [1], [0], [0], [0, 0, 1, 0], [], []>} : vector<19x8xf32>, vector<8x8xf32>, vector<19x8xf32> -> vector<19x8xf32>
      %cst_172 = arith.constant 0.353553385 : f32
      %463 = vector.broadcast %cst_172 : f32 to vector<19x8xf32>
      %464 = arith.mulf %462, %463 : vector<19x8xf32>
      %cst_173 = arith.constant dense<0xFF800000> : vector<19xf32>
      %465 = vector.multi_reduction <maximumf>, %464, %cst_173 [1] : vector<19x8xf32> to vector<19xf32>
      %466 = vector.shape_cast %465 : vector<19xf32> to vector<19x1xf32>
      %467 = vector.broadcast %466 : vector<19x1xf32> to vector<19x8xf32>
      %468 = arith.subf %464, %467 : vector<19x8xf32>
      %469 = math.exp %468 : vector<19x8xf32>
      %cst_174 = arith.constant dense<0.000000e+00> : vector<19xf32>
      %470 = vector.multi_reduction <add>, %469, %cst_174 [1] : vector<19x8xf32> to vector<19xf32>
      %471 = vector.shape_cast %470 : vector<19xf32> to vector<19x1xf32>
      %472 = tpu.reciprocal %471 {approx = true} : vector<19x1xf32> -> vector<19x1xf32>
      %473 = vector.broadcast %472 : vector<19x1xf32> to vector<19x8xf32>
      %474 = arith.mulf %469, %473 : vector<19x8xf32>
      %475 = vector.extract_strided_slice %340 {offsets = [0, 56], sizes = [8, 8], strides = [1, 1]} : vector<8x64xf32> to vector<8x8xf32>
      %cst_175 = arith.constant dense<0.000000e+00> : vector<19x8xf32>
      %476 = tpu.matmul %474, %475, %cst_175 {dimension_numbers = #tpu.dot_dimension_numbers<[1], [0], [0], [1], [0, 0, 1, 1], [], []>} : vector<19x8xf32>, vector<8x8xf32>, vector<19x8xf32> -> vector<19x8xf32>
      %477 = tpu.concatenate %357, %374, %391, %408, %425, %442, %459, %476 in 1 : vector<19x8xf32>, vector<19x8xf32>, vector<19x8xf32>, vector<19x8xf32>, vector<19x8xf32>, vector<19x8xf32>, vector<19x8xf32>, vector<19x8xf32> -> vector<19x64xf32>
      %478 = arith.index_cast %arg27 : i32 to index
      %c3_176 = arith.constant 3 : index
      %c0_177 = arith.constant 0 : index
      %c0_178 = arith.constant 0 : index
      %479 = vector.load %arg18[%478, %c3_176, %c0_177, %c0_178] : memref<4x4x64x64xf32, #tpu.memory_space<vmem>>, vector<1x1x64x64xf32>
      %480 = vector.shape_cast %479 : vector<1x1x64x64xf32> to vector<64x64xf32>
      %cst_179 = arith.constant dense<0.000000e+00> : vector<19x64xf32>
      %481 = tpu.matmul %477, %480, %cst_179 {dimension_numbers = #tpu.dot_dimension_numbers<[1], [0], [0], [1], [0, 0, 1, 1], [], []>} : vector<19x64xf32>, vector<64x64xf32>, vector<19x64xf32> -> vector<19x64xf32>
      %482 = vector.extract_strided_slice %316 {offsets = [3, 0, 0], sizes = [1, 1, 64], strides = [1, 1, 1]} : vector<4x1x64xf32> to vector<1x1x64xf32>
      %483 = vector.shape_cast %482 : vector<1x1x64xf32> to vector<1x64xf32>
      %484 = vector.broadcast %483 : vector<1x64xf32> to vector<19x64xf32>
      %485 = arith.addf %481, %484 : vector<19x64xf32>
      %486 = arith.addf %313, %485 : vector<19x64xf32>
      %487 = vector.extract_strided_slice %106 {offsets = [2, 0, 0], sizes = [1, 1, 64], strides = [1, 1, 1]} : vector<6x1x64xf32> to vector<1x1x64xf32>
      %488 = vector.shape_cast %487 : vector<1x1x64xf32> to vector<1x64xf32>
      %489 = vector.extract_strided_slice %106 {offsets = [3, 0, 0], sizes = [1, 1, 64], strides = [1, 1, 1]} : vector<6x1x64xf32> to vector<1x1x64xf32>
      %490 = vector.shape_cast %489 : vector<1x1x64xf32> to vector<1x64xf32>
      %cst_180 = arith.constant dense<0.000000e+00> : vector<19xf32>
      %491 = vector.multi_reduction <add>, %486, %cst_180 [1] : vector<19x64xf32> to vector<19xf32>
      %492 = vector.shape_cast %491 : vector<19xf32> to vector<19x1xf32>
      %cst_181 = arith.constant 6.400000e+01 : f32
      %493 = vector.broadcast %cst_181 : f32 to vector<19x1xf32>
      %494 = arith.divf %492, %493 : vector<19x1xf32>
      %495 = vector.broadcast %494 : vector<19x1xf32> to vector<19x64xf32>
      %496 = arith.subf %486, %495 : vector<19x64xf32>
      %497 = arith.mulf %496, %496 : vector<19x64xf32>
      %cst_182 = arith.constant dense<0.000000e+00> : vector<19xf32>
      %498 = vector.multi_reduction <add>, %497, %cst_182 [1] : vector<19x64xf32> to vector<19xf32>
      %499 = vector.shape_cast %498 : vector<19xf32> to vector<19x1xf32>
      %cst_183 = arith.constant 6.400000e+01 : f32
      %500 = vector.broadcast %cst_183 : f32 to vector<19x1xf32>
      %501 = arith.divf %499, %500 : vector<19x1xf32>
      %502 = vector.broadcast %494 : vector<19x1xf32> to vector<19x64xf32>
      %503 = arith.subf %486, %502 : vector<19x64xf32>
      %cst_184 = arith.constant 9.99999974E-6 : f32
      %504 = vector.broadcast %cst_184 : f32 to vector<19x1xf32>
      %505 = arith.addf %501, %504 : vector<19x1xf32>
      %506 = math.rsqrt %505 : vector<19x1xf32>
      %507 = vector.broadcast %506 : vector<19x1xf32> to vector<19x64xf32>
      %508 = arith.mulf %503, %507 : vector<19x64xf32>
      %509 = vector.broadcast %488 : vector<1x64xf32> to vector<19x64xf32>
      %510 = arith.mulf %508, %509 : vector<19x64xf32>
      %511 = vector.broadcast %490 : vector<1x64xf32> to vector<19x64xf32>
      %512 = arith.addf %510, %511 : vector<19x64xf32>
      %513 = arith.index_cast %arg27 : i32 to index
      %c0_185 = arith.constant 0 : index
      %c0_186 = arith.constant 0 : index
      %514 = vector.load %arg21[%513, %c0_185, %c0_186] : memref<4x64x128xf32, #tpu.memory_space<vmem>>, vector<1x64x128xf32>
      %515 = vector.shape_cast %514 : vector<1x64x128xf32> to vector<64x128xf32>
      %cst_187 = arith.constant dense<0.000000e+00> : vector<19x128xf32>
      %516 = tpu.matmul %512, %515, %cst_187 {dimension_numbers = #tpu.dot_dimension_numbers<[1], [0], [0], [1], [0, 0, 1, 1], [], []>} : vector<19x64xf32>, vector<64x128xf32>, vector<19x128xf32> -> vector<19x128xf32>
      %517 = arith.index_cast %arg27 : i32 to index
      %c0_188 = arith.constant 0 : index
      %c0_189 = arith.constant 0 : index
      %518 = vector.load %arg22[%517, %c0_188, %c0_189] : memref<4x1x128xf32, #tpu.memory_space<vmem>>, vector<1x1x128xf32>
      %519 = vector.shape_cast %518 : vector<1x1x128xf32> to vector<1x128xf32>
      %520 = vector.broadcast %519 : vector<1x128xf32> to vector<19x128xf32>
      %521 = arith.addf %516, %520 : vector<19x128xf32>
      %cst_190 = arith.constant 5.000000e-01 : f32
      %522 = vector.broadcast %cst_190 : f32 to vector<19x128xf32>
      %523 = arith.mulf %522, %521 : vector<19x128xf32>
      %cst_191 = arith.constant 4.471500e-02 : f32
      %524 = vector.broadcast %cst_191 : f32 to vector<19x128xf32>
      %525 = arith.mulf %524, %521 : vector<19x128xf32>
      %526 = arith.mulf %525, %521 : vector<19x128xf32>
      %527 = arith.mulf %526, %521 : vector<19x128xf32>
      %528 = arith.addf %521, %527 : vector<19x128xf32>
      %cst_192 = arith.constant 0.797884583 : f32
      %529 = vector.broadcast %cst_192 : f32 to vector<19x128xf32>
      %530 = arith.mulf %529, %528 : vector<19x128xf32>
      %531 = math.tanh %530 : vector<19x128xf32>
      %cst_193 = arith.constant 1.000000e+00 : f32
      %532 = vector.broadcast %cst_193 : f32 to vector<19x128xf32>
      %533 = arith.addf %532, %531 : vector<19x128xf32>
      %534 = arith.mulf %523, %533 : vector<19x128xf32>
      %535 = arith.index_cast %arg27 : i32 to index
      %c0_194 = arith.constant 0 : index
      %c0_195 = arith.constant 0 : index
      %536 = vector.load %arg23[%535, %c0_194, %c0_195] : memref<4x128x64xf32, #tpu.memory_space<vmem>>, vector<1x128x64xf32>
      %537 = vector.shape_cast %536 : vector<1x128x64xf32> to vector<128x64xf32>
      %cst_196 = arith.constant dense<0.000000e+00> : vector<19x64xf32>
      %538 = tpu.matmul %534, %537, %cst_196 {dimension_numbers = #tpu.dot_dimension_numbers<[1], [0], [0], [1], [0, 0, 1, 1], [], []>} : vector<19x128xf32>, vector<128x64xf32>, vector<19x64xf32> -> vector<19x64xf32>
      %539 = arith.index_cast %arg27 : i32 to index
      %c0_197 = arith.constant 0 : index
      %c0_198 = arith.constant 0 : index
      %540 = vector.load %arg24[%539, %c0_197, %c0_198] : memref<4x1x64xf32, #tpu.memory_space<vmem>>, vector<1x1x64xf32>
      %541 = vector.shape_cast %540 : vector<1x1x64xf32> to vector<1x64xf32>
      %542 = vector.broadcast %541 : vector<1x64xf32> to vector<19x64xf32>
      %543 = arith.addf %538, %542 : vector<19x64xf32>
      %544 = arith.addf %512, %543 : vector<19x64xf32>
      %545 = vector.extract_strided_slice %106 {offsets = [4, 0, 0], sizes = [1, 1, 64], strides = [1, 1, 1]} : vector<6x1x64xf32> to vector<1x1x64xf32>
      %546 = vector.shape_cast %545 : vector<1x1x64xf32> to vector<1x64xf32>
      %547 = vector.extract_strided_slice %106 {offsets = [5, 0, 0], sizes = [1, 1, 64], strides = [1, 1, 1]} : vector<6x1x64xf32> to vector<1x1x64xf32>
      %548 = vector.shape_cast %547 : vector<1x1x64xf32> to vector<1x64xf32>
      %cst_199 = arith.constant dense<0.000000e+00> : vector<19xf32>
      %549 = vector.multi_reduction <add>, %544, %cst_199 [1] : vector<19x64xf32> to vector<19xf32>
      %550 = vector.shape_cast %549 : vector<19xf32> to vector<19x1xf32>
      %cst_200 = arith.constant 6.400000e+01 : f32
      %551 = vector.broadcast %cst_200 : f32 to vector<19x1xf32>
      %552 = arith.divf %550, %551 : vector<19x1xf32>
      %553 = vector.broadcast %552 : vector<19x1xf32> to vector<19x64xf32>
      %554 = arith.subf %544, %553 : vector<19x64xf32>
      %555 = arith.mulf %554, %554 : vector<19x64xf32>
      %cst_201 = arith.constant dense<0.000000e+00> : vector<19xf32>
      %556 = vector.multi_reduction <add>, %555, %cst_201 [1] : vector<19x64xf32> to vector<19xf32>
      %557 = vector.shape_cast %556 : vector<19xf32> to vector<19x1xf32>
      %cst_202 = arith.constant 6.400000e+01 : f32
      %558 = vector.broadcast %cst_202 : f32 to vector<19x1xf32>
      %559 = arith.divf %557, %558 : vector<19x1xf32>
      %560 = vector.broadcast %552 : vector<19x1xf32> to vector<19x64xf32>
      %561 = arith.subf %544, %560 : vector<19x64xf32>
      %cst_203 = arith.constant 9.99999974E-6 : f32
      %562 = vector.broadcast %cst_203 : f32 to vector<19x1xf32>
      %563 = arith.addf %559, %562 : vector<19x1xf32>
      %564 = math.rsqrt %563 : vector<19x1xf32>
      %565 = vector.broadcast %564 : vector<19x1xf32> to vector<19x64xf32>
      %566 = arith.mulf %561, %565 : vector<19x64xf32>
      %567 = vector.broadcast %546 : vector<1x64xf32> to vector<19x64xf32>
      %568 = arith.mulf %566, %567 : vector<19x64xf32>
      %569 = vector.broadcast %548 : vector<1x64xf32> to vector<19x64xf32>
      %570 = arith.addf %568, %569 : vector<19x64xf32>
      scf.yield %570 : vector<19x64xf32>
    }
    %c4_i32_41 = arith.constant 4 : i32
    %c2 = arith.constant 2 : index
    %c0_42 = arith.constant 0 : index
    %c0_43 = arith.constant 0 : index
    %75 = vector.load %arg25[%c2, %c0_42, %c0_43] : memref<4x1x64xf32, #tpu.memory_space<vmem>>, vector<1x1x64xf32>
    %76 = vector.shape_cast %75 : vector<1x1x64xf32> to vector<1x64xf32>
    %c3 = arith.constant 3 : index
    %c0_44 = arith.constant 0 : index
    %c0_45 = arith.constant 0 : index
    %77 = vector.load %arg25[%c3, %c0_44, %c0_45] : memref<4x1x64xf32, #tpu.memory_space<vmem>>, vector<1x1x64xf32>
    %78 = vector.shape_cast %77 : vector<1x1x64xf32> to vector<1x64xf32>
    %cst_46 = arith.constant dense<0.000000e+00> : vector<19xf32>
    %79 = vector.multi_reduction <add>, %74, %cst_46 [1] : vector<19x64xf32> to vector<19xf32>
    %80 = vector.shape_cast %79 : vector<19xf32> to vector<19x1xf32>
    %cst_47 = arith.constant 6.400000e+01 : f32
    %81 = vector.broadcast %cst_47 : f32 to vector<19x1xf32>
    %82 = arith.divf %80, %81 : vector<19x1xf32>
    %83 = vector.broadcast %82 : vector<19x1xf32> to vector<19x64xf32>
    %84 = arith.subf %74, %83 : vector<19x64xf32>
    %85 = arith.mulf %84, %84 : vector<19x64xf32>
    %cst_48 = arith.constant dense<0.000000e+00> : vector<19xf32>
    %86 = vector.multi_reduction <add>, %85, %cst_48 [1] : vector<19x64xf32> to vector<19xf32>
    %87 = vector.shape_cast %86 : vector<19xf32> to vector<19x1xf32>
    %cst_49 = arith.constant 6.400000e+01 : f32
    %88 = vector.broadcast %cst_49 : f32 to vector<19x1xf32>
    %89 = arith.divf %87, %88 : vector<19x1xf32>
    %90 = vector.broadcast %82 : vector<19x1xf32> to vector<19x64xf32>
    %91 = arith.subf %74, %90 : vector<19x64xf32>
    %cst_50 = arith.constant 9.99999974E-6 : f32
    %92 = vector.broadcast %cst_50 : f32 to vector<19x1xf32>
    %93 = arith.addf %89, %92 : vector<19x1xf32>
    %94 = math.rsqrt %93 : vector<19x1xf32>
    %95 = vector.broadcast %94 : vector<19x1xf32> to vector<19x64xf32>
    %96 = arith.mulf %91, %95 : vector<19x64xf32>
    %97 = vector.broadcast %76 : vector<1x64xf32> to vector<19x64xf32>
    %98 = arith.mulf %96, %97 : vector<19x64xf32>
    %99 = vector.broadcast %78 : vector<1x64xf32> to vector<19x64xf32>
    %100 = arith.addf %98, %99 : vector<19x64xf32>
    %c0_51 = arith.constant 0 : index
    %c0_52 = arith.constant 0 : index
    %c0_53 = arith.constant 0 : index
    %101 = vector.load %arg26[%c0_51, %c0_52, %c0_53] : memref<1x19x64xf32, #tpu.memory_space<vmem>>, vector<1x19x64xf32>
    %102 = vector.shape_cast %101 : vector<1x19x64xf32> to vector<19x64xf32>
    %103 = vector.shape_cast %100 : vector<19x64xf32> to vector<1x19x64xf32>
    tpu.vector_store %arg26[%c0_51, %c0_52, %c0_53], %103 {strides = array<i32>} : memref<1x19x64xf32, #tpu.memory_space<vmem>>, vector<1x19x64xf32>,
    return
  }
  func.func @transform_0(%arg0: i32) -> (i32, i32, i32) {
    %c0_i32 = arith.constant 0 : i32
    %c0_i32_0 = arith.constant 0 : i32
    %c0_i32_1 = arith.constant 0 : i32
    return %arg0, %c0_i32, %c0_i32_0 : i32, i32, i32
  }
  func.func @transform_1(%arg0: i32) -> (i32, i32, i32) {
    %c0_i32 = arith.constant 0 : i32
    %c0_i32_0 = arith.constant 0 : i32
    %c0_i32_1 = arith.constant 0 : i32
    return %arg0, %c0_i32, %c0_i32_0 : i32, i32, i32
  }
  func.func @transform_2(%arg0: i32) -> (i32, i32, i32) {
    %c0_i32 = arith.constant 0 : i32
    %c0_i32_0 = arith.constant 0 : i32
    %c0_i32_1 = arith.constant 0 : i32
    return %arg0, %c0_i32, %c0_i32_0 : i32, i32, i32
  }
  func.func @transform_3(%arg0: i32) -> (i32, i32) {
    %c0_i32 = arith.constant 0 : i32
    %c0_i32_0 = arith.constant 0 : i32
    %c0_i32_1 = arith.constant 0 : i32
    return %c0_i32, %c0_i32_0 : i32, i32
  }
  func.func @transform_4(%arg0: i32) -> (i32, i32) {
    %c0_i32 = arith.constant 0 : i32
    %c0_i32_0 = arith.constant 0 : i32
    %c0_i32_1 = arith.constant 0 : i32
    return %c0_i32, %c0_i32_0 : i32, i32
  }
  func.func @transform_5(%arg0: i32) -> (i32, i32) {
    %c0_i32 = arith.constant 0 : i32
    %c0_i32_0 = arith.constant 0 : i32
    %c0_i32_1 = arith.constant 0 : i32
    return %c0_i32, %c0_i32_0 : i32, i32
  }
  func.func @transform_6(%arg0: i32) -> (i32, i32) {
    %c0_i32 = arith.constant 0 : i32
    %c0_i32_0 = arith.constant 0 : i32
    %c0_i32_1 = arith.constant 0 : i32
    return %c0_i32, %c0_i32_0 : i32, i32
  }
  func.func @transform_7(%arg0: i32) -> (i32, i32) {
    %c0_i32 = arith.constant 0 : i32
    %c0_i32_0 = arith.constant 0 : i32
    %c0_i32_1 = arith.constant 0 : i32
    return %c0_i32, %c0_i32_0 : i32, i32
  }
  func.func @transform_8(%arg0: i32) -> (i32, i32, i32, i32) {
    %c0_i32 = arith.constant 0 : i32
    %c0_i32_0 = arith.constant 0 : i32
    %c0_i32_1 = arith.constant 0 : i32
    %c0_i32_2 = arith.constant 0 : i32
    %c0_i32_3 = arith.constant 0 : i32
    return %c0_i32, %c0_i32_0, %c0_i32_1, %c0_i32_2 : i32, i32, i32, i32
  }
  func.func @transform_9(%arg0: i32) -> (i32, i32, i32, i32) {
    %c0_i32 = arith.constant 0 : i32
    %c0_i32_0 = arith.constant 0 : i32
    %c0_i32_1 = arith.constant 0 : i32
    %c0_i32_2 = arith.constant 0 : i32
    %c0_i32_3 = arith.constant 0 : i32
    return %c0_i32, %c0_i32_0, %c0_i32_1, %c0_i32_2 : i32, i32, i32, i32
  }
  func.func @transform_10(%arg0: i32) -> (i32, i32, i32, i32) {
    %c0_i32 = arith.constant 0 : i32
    %c0_i32_0 = arith.constant 0 : i32
    %c0_i32_1 = arith.constant 0 : i32
    %c0_i32_2 = arith.constant 0 : i32
    %c0_i32_3 = arith.constant 0 : i32
    return %c0_i32, %c0_i32_0, %c0_i32_1, %c0_i32_2 : i32, i32, i32, i32
  }
  func.func @transform_11(%arg0: i32) -> (i32, i32, i32) {
    %c0_i32 = arith.constant 0 : i32
    %c0_i32_0 = arith.constant 0 : i32
    %c0_i32_1 = arith.constant 0 : i32
    %c0_i32_2 = arith.constant 0 : i32
    return %c0_i32, %c0_i32_0, %c0_i32_1 : i32, i32, i32
  }
  func.func @transform_12(%arg0: i32) -> (i32, i32, i32) {
    %c0_i32 = arith.constant 0 : i32
    %c0_i32_0 = arith.constant 0 : i32
    %c0_i32_1 = arith.constant 0 : i32
    %c0_i32_2 = arith.constant 0 : i32
    return %c0_i32, %c0_i32_0, %c0_i32_1 : i32, i32, i32
  }
  func.func @transform_13(%arg0: i32) -> (i32, i32, i32) {
    %c0_i32 = arith.constant 0 : i32
    %c0_i32_0 = arith.constant 0 : i32
    %c0_i32_1 = arith.constant 0 : i32
    %c0_i32_2 = arith.constant 0 : i32
    return %c0_i32, %c0_i32_0, %c0_i32_1 : i32, i32, i32
  }
  func.func @transform_14(%arg0: i32) -> (i32, i32, i32) {
    %c0_i32 = arith.constant 0 : i32
    %c0_i32_0 = arith.constant 0 : i32
    %c0_i32_1 = arith.constant 0 : i32
    %c0_i32_2 = arith.constant 0 : i32
    return %c0_i32, %c0_i32_0, %c0_i32_1 : i32, i32, i32
  }
  func.func @transform_15(%arg0: i32) -> (i32, i32, i32, i32) {
    %c0_i32 = arith.constant 0 : i32
    %c0_i32_0 = arith.constant 0 : i32
    %c0_i32_1 = arith.constant 0 : i32
    %c0_i32_2 = arith.constant 0 : i32
    %c0_i32_3 = arith.constant 0 : i32
    return %c0_i32, %c0_i32_0, %c0_i32_1, %c0_i32_2 : i32, i32, i32, i32
  }
  func.func @transform_16(%arg0: i32) -> (i32, i32, i32, i32) {
    %c0_i32 = arith.constant 0 : i32
    %c0_i32_0 = arith.constant 0 : i32
    %c0_i32_1 = arith.constant 0 : i32
    %c0_i32_2 = arith.constant 0 : i32
    %c0_i32_3 = arith.constant 0 : i32
    return %c0_i32, %c0_i32_0, %c0_i32_1, %c0_i32_2 : i32, i32, i32, i32
  }
  func.func @transform_17(%arg0: i32) -> (i32, i32, i32, i32) {
    %c0_i32 = arith.constant 0 : i32
    %c0_i32_0 = arith.constant 0 : i32
    %c0_i32_1 = arith.constant 0 : i32
    %c0_i32_2 = arith.constant 0 : i32
    %c0_i32_3 = arith.constant 0 : i32
    return %c0_i32, %c0_i32_0, %c0_i32_1, %c0_i32_2 : i32, i32, i32, i32
  }
  func.func @transform_18(%arg0: i32) -> (i32, i32, i32, i32) {
    %c0_i32 = arith.constant 0 : i32
    %c0_i32_0 = arith.constant 0 : i32
    %c0_i32_1 = arith.constant 0 : i32
    %c0_i32_2 = arith.constant 0 : i32
    %c0_i32_3 = arith.constant 0 : i32
    return %c0_i32, %c0_i32_0, %c0_i32_1, %c0_i32_2 : i32, i32, i32, i32
  }
  func.func @transform_19(%arg0: i32) -> (i32, i32, i32, i32) {
    %c0_i32 = arith.constant 0 : i32
    %c0_i32_0 = arith.constant 0 : i32
    %c0_i32_1 = arith.constant 0 : i32
    %c0_i32_2 = arith.constant 0 : i32
    %c0_i32_3 = arith.constant 0 : i32
    return %c0_i32, %c0_i32_0, %c0_i32_1, %c0_i32_2 : i32, i32, i32, i32
  }
  func.func @transform_20(%arg0: i32) -> (i32, i32, i32) {
    %c0_i32 = arith.constant 0 : i32
    %c0_i32_0 = arith.constant 0 : i32
    %c0_i32_1 = arith.constant 0 : i32
    %c0_i32_2 = arith.constant 0 : i32
    return %c0_i32, %c0_i32_0, %c0_i32_1 : i32, i32, i32
  }
  func.func @transform_21(%arg0: i32) -> (i32, i32, i32) {
    %c0_i32 = arith.constant 0 : i32
    %c0_i32_0 = arith.constant 0 : i32
    %c0_i32_1 = arith.constant 0 : i32
    %c0_i32_2 = arith.constant 0 : i32
    return %c0_i32, %c0_i32_0, %c0_i32_1 : i32, i32, i32
  }
  func.func @transform_22(%arg0: i32) -> (i32, i32, i32) {
    %c0_i32 = arith.constant 0 : i32
    %c0_i32_0 = arith.constant 0 : i32
    %c0_i32_1 = arith.constant 0 : i32
    %c0_i32_2 = arith.constant 0 : i32
    return %c0_i32, %c0_i32_0, %c0_i32_1 : i32, i32, i32
  }
  func.func @transform_23(%arg0: i32) -> (i32, i32, i32) {
    %c0_i32 = arith.constant 0 : i32
    %c0_i32_0 = arith.constant 0 : i32
    %c0_i32_1 = arith.constant 0 : i32
    %c0_i32_2 = arith.constant 0 : i32
    return %c0_i32, %c0_i32_0, %c0_i32_1 : i32, i32, i32
  }
  func.func @transform_24(%arg0: i32) -> (i32, i32, i32) {
    %c0_i32 = arith.constant 0 : i32
    %c0_i32_0 = arith.constant 0 : i32
    %c0_i32_1 = arith.constant 0 : i32
    %c0_i32_2 = arith.constant 0 : i32
    return %c0_i32, %c0_i32_0, %c0_i32_1 : i32, i32, i32
  }
  func.func @transform_25(%arg0: i32) -> (i32, i32, i32) {
    %c0_i32 = arith.constant 0 : i32
    %c0_i32_0 = arith.constant 0 : i32
    %c0_i32_1 = arith.constant 0 : i32
    return %arg0, %c0_i32, %c0_i32_0 : i32, i32, i32
  }
}

module attributes {stable_mosaic.version = 11 : i64} {
  func.func @_flow_kernel(%arg0: memref<20x1xf32, #tpu.memory_space<vmem>>, %arg1: memref<20x64xf32, #tpu.memory_space<vmem>>, %arg2: memref<5x64x128xf32, #tpu.memory_space<vmem>>, %arg3: memref<5x1x128xf32, #tpu.memory_space<vmem>>, %arg4: memref<5x3x128x128xf32, #tpu.memory_space<vmem>>, %arg5: memref<5x3x1x128xf32, #tpu.memory_space<vmem>>, %arg6: memref<5x128x16xf32, #tpu.memory_space<vmem>>, %arg7: memref<5x1x16xf32, #tpu.memory_space<vmem>>, %arg8: memref<5x128x16xf32, #tpu.memory_space<vmem>>, %arg9: memref<5x1x16xf32, #tpu.memory_space<vmem>>, %arg10: memref<5x128x15xf32, #tpu.memory_space<vmem>>, %arg11: memref<5x1x15xf32, #tpu.memory_space<vmem>>, %arg12: memref<20x1xf32, #tpu.memory_space<vmem>>) attributes {dimension_semantics = [], scalar_prefetch = 0 : i64, scratch_operands = 0 : i64, tpu.core_type = #tpu.core_type<tc>} {
    %c0 = arith.constant 0 : index
    %c0_0 = arith.constant 0 : index
    %0 = vector.load %arg0[%c0, %c0_0] : memref<20x1xf32, #tpu.memory_space<vmem>>, vector<20x1xf32>
    %c0_1 = arith.constant 0 : index
    %c0_2 = arith.constant 0 : index
    %1 = vector.load %arg1[%c0_1, %c0_2] : memref<20x64xf32, #tpu.memory_space<vmem>>, vector<20x64xf32>
    %2 = tpu.iota {dimensions = array<i32: 0>} : vector<16x17xi32>
    %3 = tpu.iota {dimensions = array<i32: 1>} : vector<16x17xi32>
    %4 = arith.cmpi slt, %2, %3 : vector<16x17xi32>
    %5 = arith.extui %4 : vector<16x17xi1> to vector<16x17xi32>
    %6 = arith.sitofp %5 : vector<16x17xi32> to vector<16x17xf32>
    %cst = arith.constant 0.000000e+00 : f32
    %7 = vector.broadcast %cst : f32 to vector<20x1xf32>
    %c0_i32 = arith.constant 0 : i32
    %c5_i32 = arith.constant 5 : i32
    %8 = arith.addi %c0_i32, %c5_i32 : i32
    %c1_i32 = arith.constant 1 : i32
    %9:2 = scf.for %arg13 = %c0_i32 to %8 step %c1_i32 iter_args(%arg14 = %0, %arg15 = %7) -> (vector<20x1xf32>, vector<20x1xf32>)  : i32 {
      %20 = arith.index_cast %arg13 : i32 to index
      %c0_10 = arith.constant 0 : index
      %c0_11 = arith.constant 0 : index
      %21 = vector.load %arg2[%20, %c0_10, %c0_11] : memref<5x64x128xf32, #tpu.memory_space<vmem>>, vector<1x64x128xf32>
      %22 = vector.shape_cast %21 : vector<1x64x128xf32> to vector<64x128xf32>
      %cst_12 = arith.constant dense<0.000000e+00> : vector<20x128xf32>
      %23 = tpu.matmul %1, %22, %cst_12 {dimension_numbers = #tpu.dot_dimension_numbers<[1], [0], [0], [1], [0, 0, 1, 1], [], []>} : vector<20x64xf32>, vector<64x128xf32>, vector<20x128xf32> -> vector<20x128xf32>
      %24 = arith.index_cast %arg13 : i32 to index
      %c0_13 = arith.constant 0 : index
      %c0_14 = arith.constant 0 : index
      %25 = vector.load %arg3[%24, %c0_13, %c0_14] : memref<5x1x128xf32, #tpu.memory_space<vmem>>, vector<1x1x128xf32>
      %26 = vector.shape_cast %25 : vector<1x1x128xf32> to vector<1x128xf32>
      %27 = vector.broadcast %26 : vector<1x128xf32> to vector<20x128xf32>
      %28 = arith.addf %23, %27 : vector<20x128xf32>
      %cst_15 = arith.constant 0.000000e+00 : f32
      %29 = vector.broadcast %cst_15 : f32 to vector<20x128xf32>
      %30 = arith.maximumf %28, %29 : vector<20x128xf32>
      %31 = arith.index_cast %arg13 : i32 to index
      %c0_16 = arith.constant 0 : index
      %c0_17 = arith.constant 0 : index
      %c0_18 = arith.constant 0 : index
      %32 = vector.load %arg4[%31, %c0_16, %c0_17, %c0_18] : memref<5x3x128x128xf32, #tpu.memory_space<vmem>>, vector<1x1x128x128xf32>
      %33 = vector.shape_cast %32 : vector<1x1x128x128xf32> to vector<128x128xf32>
      %cst_19 = arith.constant dense<0.000000e+00> : vector<20x128xf32>
      %34 = tpu.matmul %30, %33, %cst_19 {dimension_numbers = #tpu.dot_dimension_numbers<[1], [0], [0], [1], [0, 0, 1, 1], [], []>} : vector<20x128xf32>, vector<128x128xf32>, vector<20x128xf32> -> vector<20x128xf32>
      %35 = arith.index_cast %arg13 : i32 to index
      %c0_20 = arith.constant 0 : index
      %c0_21 = arith.constant 0 : index
      %c0_22 = arith.constant 0 : index
      %36 = vector.load %arg5[%35, %c0_20, %c0_21, %c0_22] : memref<5x3x1x128xf32, #tpu.memory_space<vmem>>, vector<1x1x1x128xf32>
      %37 = vector.shape_cast %36 : vector<1x1x1x128xf32> to vector<1x128xf32>
      %38 = vector.broadcast %37 : vector<1x128xf32> to vector<20x128xf32>
      %39 = arith.addf %34, %38 : vector<20x128xf32>
      %cst_23 = arith.constant 0.000000e+00 : f32
      %40 = vector.broadcast %cst_23 : f32 to vector<20x128xf32>
      %41 = arith.maximumf %39, %40 : vector<20x128xf32>
      %42 = arith.index_cast %arg13 : i32 to index
      %c1 = arith.constant 1 : index
      %c0_24 = arith.constant 0 : index
      %c0_25 = arith.constant 0 : index
      %43 = vector.load %arg4[%42, %c1, %c0_24, %c0_25] : memref<5x3x128x128xf32, #tpu.memory_space<vmem>>, vector<1x1x128x128xf32>
      %44 = vector.shape_cast %43 : vector<1x1x128x128xf32> to vector<128x128xf32>
      %cst_26 = arith.constant dense<0.000000e+00> : vector<20x128xf32>
      %45 = tpu.matmul %41, %44, %cst_26 {dimension_numbers = #tpu.dot_dimension_numbers<[1], [0], [0], [1], [0, 0, 1, 1], [], []>} : vector<20x128xf32>, vector<128x128xf32>, vector<20x128xf32> -> vector<20x128xf32>
      %46 = arith.index_cast %arg13 : i32 to index
      %c1_27 = arith.constant 1 : index
      %c0_28 = arith.constant 0 : index
      %c0_29 = arith.constant 0 : index
      %47 = vector.load %arg5[%46, %c1_27, %c0_28, %c0_29] : memref<5x3x1x128xf32, #tpu.memory_space<vmem>>, vector<1x1x1x128xf32>
      %48 = vector.shape_cast %47 : vector<1x1x1x128xf32> to vector<1x128xf32>
      %49 = vector.broadcast %48 : vector<1x128xf32> to vector<20x128xf32>
      %50 = arith.addf %45, %49 : vector<20x128xf32>
      %cst_30 = arith.constant 0.000000e+00 : f32
      %51 = vector.broadcast %cst_30 : f32 to vector<20x128xf32>
      %52 = arith.maximumf %50, %51 : vector<20x128xf32>
      %53 = arith.index_cast %arg13 : i32 to index
      %c2 = arith.constant 2 : index
      %c0_31 = arith.constant 0 : index
      %c0_32 = arith.constant 0 : index
      %54 = vector.load %arg4[%53, %c2, %c0_31, %c0_32] : memref<5x3x128x128xf32, #tpu.memory_space<vmem>>, vector<1x1x128x128xf32>
      %55 = vector.shape_cast %54 : vector<1x1x128x128xf32> to vector<128x128xf32>
      %cst_33 = arith.constant dense<0.000000e+00> : vector<20x128xf32>
      %56 = tpu.matmul %52, %55, %cst_33 {dimension_numbers = #tpu.dot_dimension_numbers<[1], [0], [0], [1], [0, 0, 1, 1], [], []>} : vector<20x128xf32>, vector<128x128xf32>, vector<20x128xf32> -> vector<20x128xf32>
      %57 = arith.index_cast %arg13 : i32 to index
      %c2_34 = arith.constant 2 : index
      %c0_35 = arith.constant 0 : index
      %c0_36 = arith.constant 0 : index
      %58 = vector.load %arg5[%57, %c2_34, %c0_35, %c0_36] : memref<5x3x1x128xf32, #tpu.memory_space<vmem>>, vector<1x1x1x128xf32>
      %59 = vector.shape_cast %58 : vector<1x1x1x128xf32> to vector<1x128xf32>
      %60 = vector.broadcast %59 : vector<1x128xf32> to vector<20x128xf32>
      %61 = arith.addf %56, %60 : vector<20x128xf32>
      %cst_37 = arith.constant 0.000000e+00 : f32
      %62 = vector.broadcast %cst_37 : f32 to vector<20x128xf32>
      %63 = arith.maximumf %61, %62 : vector<20x128xf32>
      %64 = arith.index_cast %arg13 : i32 to index
      %c0_38 = arith.constant 0 : index
      %c0_39 = arith.constant 0 : index
      %65 = vector.load %arg6[%64, %c0_38, %c0_39] : memref<5x128x16xf32, #tpu.memory_space<vmem>>, vector<1x128x16xf32>
      %66 = vector.shape_cast %65 : vector<1x128x16xf32> to vector<128x16xf32>
      %cst_40 = arith.constant dense<0.000000e+00> : vector<20x16xf32>
      %67 = tpu.matmul %63, %66, %cst_40 {dimension_numbers = #tpu.dot_dimension_numbers<[1], [0], [0], [1], [0, 0, 1, 1], [], []>} : vector<20x128xf32>, vector<128x16xf32>, vector<20x16xf32> -> vector<20x16xf32>
      %68 = arith.index_cast %arg13 : i32 to index
      %c0_41 = arith.constant 0 : index
      %c0_42 = arith.constant 0 : index
      %69 = vector.load %arg7[%68, %c0_41, %c0_42] : memref<5x1x16xf32, #tpu.memory_space<vmem>>, vector<1x1x16xf32>
      %70 = vector.shape_cast %69 : vector<1x1x16xf32> to vector<1x16xf32>
      %71 = vector.broadcast %70 : vector<1x16xf32> to vector<20x16xf32>
      %72 = arith.addf %67, %71 : vector<20x16xf32>
      %73 = arith.index_cast %arg13 : i32 to index
      %c0_43 = arith.constant 0 : index
      %c0_44 = arith.constant 0 : index
      %74 = vector.load %arg8[%73, %c0_43, %c0_44] : memref<5x128x16xf32, #tpu.memory_space<vmem>>, vector<1x128x16xf32>
      %75 = vector.shape_cast %74 : vector<1x128x16xf32> to vector<128x16xf32>
      %cst_45 = arith.constant dense<0.000000e+00> : vector<20x16xf32>
      %76 = tpu.matmul %63, %75, %cst_45 {dimension_numbers = #tpu.dot_dimension_numbers<[1], [0], [0], [1], [0, 0, 1, 1], [], []>} : vector<20x128xf32>, vector<128x16xf32>, vector<20x16xf32> -> vector<20x16xf32>
      %77 = arith.index_cast %arg13 : i32 to index
      %c0_46 = arith.constant 0 : index
      %c0_47 = arith.constant 0 : index
      %78 = vector.load %arg9[%77, %c0_46, %c0_47] : memref<5x1x16xf32, #tpu.memory_space<vmem>>, vector<1x1x16xf32>
      %79 = vector.shape_cast %78 : vector<1x1x16xf32> to vector<1x16xf32>
      %80 = vector.broadcast %79 : vector<1x16xf32> to vector<20x16xf32>
      %81 = arith.addf %76, %80 : vector<20x16xf32>
      %82 = arith.index_cast %arg13 : i32 to index
      %c0_48 = arith.constant 0 : index
      %c0_49 = arith.constant 0 : index
      %83 = vector.load %arg10[%82, %c0_48, %c0_49] : memref<5x128x15xf32, #tpu.memory_space<vmem>>, vector<1x128x15xf32>
      %84 = vector.shape_cast %83 : vector<1x128x15xf32> to vector<128x15xf32>
      %cst_50 = arith.constant dense<0.000000e+00> : vector<20x15xf32>
      %85 = tpu.matmul %63, %84, %cst_50 {dimension_numbers = #tpu.dot_dimension_numbers<[1], [0], [0], [1], [0, 0, 1, 1], [], []>} : vector<20x128xf32>, vector<128x15xf32>, vector<20x15xf32> -> vector<20x15xf32>
      %86 = arith.index_cast %arg13 : i32 to index
      %c0_51 = arith.constant 0 : index
      %c0_52 = arith.constant 0 : index
      %87 = vector.load %arg11[%86, %c0_51, %c0_52] : memref<5x1x15xf32, #tpu.memory_space<vmem>>, vector<1x1x15xf32>
      %88 = vector.shape_cast %87 : vector<1x1x15xf32> to vector<1x15xf32>
      %89 = vector.broadcast %88 : vector<1x15xf32> to vector<20x15xf32>
      %90 = arith.addf %85, %89 : vector<20x15xf32>
      %cst_53 = arith.constant dense<0xFF800000> : vector<20xf32>
      %91 = vector.multi_reduction <maximumf>, %72, %cst_53 [1] : vector<20x16xf32> to vector<20xf32>
      %92 = vector.shape_cast %91 : vector<20xf32> to vector<20x1xf32>
      %93 = vector.broadcast %92 : vector<20x1xf32> to vector<20x16xf32>
      %94 = arith.subf %72, %93 : vector<20x16xf32>
      %95 = math.exp %94 : vector<20x16xf32>
      %cst_54 = arith.constant dense<0.000000e+00> : vector<20xf32>
      %96 = vector.multi_reduction <add>, %95, %cst_54 [1] : vector<20x16xf32> to vector<20xf32>
      %97 = vector.shape_cast %96 : vector<20xf32> to vector<20x1xf32>
      %98 = vector.broadcast %97 : vector<20x1xf32> to vector<20x16xf32>
      %99 = arith.divf %95, %98 : vector<20x16xf32>
      %cst_55 = arith.constant 2.000000e+00 : f32
      %100 = vector.broadcast %cst_55 : f32 to vector<20x16xf32>
      %101 = arith.mulf %99, %100 : vector<20x16xf32>
      %cst_56 = arith.constant dense<0xFF800000> : vector<20xf32>
      %102 = vector.multi_reduction <maximumf>, %81, %cst_56 [1] : vector<20x16xf32> to vector<20xf32>
      %103 = vector.shape_cast %102 : vector<20xf32> to vector<20x1xf32>
      %104 = vector.broadcast %103 : vector<20x1xf32> to vector<20x16xf32>
      %105 = arith.subf %81, %104 : vector<20x16xf32>
      %106 = math.exp %105 : vector<20x16xf32>
      %cst_57 = arith.constant dense<0.000000e+00> : vector<20xf32>
      %107 = vector.multi_reduction <add>, %106, %cst_57 [1] : vector<20x16xf32> to vector<20xf32>
      %108 = vector.shape_cast %107 : vector<20xf32> to vector<20x1xf32>
      %109 = vector.broadcast %108 : vector<20x1xf32> to vector<20x16xf32>
      %110 = arith.divf %106, %109 : vector<20x16xf32>
      %cst_58 = arith.constant 2.000000e+00 : f32
      %111 = vector.broadcast %cst_58 : f32 to vector<20x16xf32>
      %112 = arith.mulf %110, %111 : vector<20x16xf32>
      %cst_59 = arith.constant dense<0.000000e+00> : vector<20x17xf32>
      %113 = tpu.matmul %101, %6, %cst_59 {dimension_numbers = #tpu.dot_dimension_numbers<[1], [0], [0], [1], [0, 0, 1, 1], [], []>} : vector<20x16xf32>, vector<16x17xf32>, vector<20x17xf32> -> vector<20x17xf32>
      %cst_60 = arith.constant 1.000000e+00 : f32
      %114 = vector.broadcast %cst_60 : f32 to vector<20x17xf32>
      %115 = arith.subf %113, %114 : vector<20x17xf32>
      %cst_61 = arith.constant dense<0.000000e+00> : vector<20x17xf32>
      %116 = tpu.matmul %112, %6, %cst_61 {dimension_numbers = #tpu.dot_dimension_numbers<[1], [0], [0], [1], [0, 0, 1, 1], [], []>} : vector<20x16xf32>, vector<16x17xf32>, vector<20x17xf32> -> vector<20x17xf32>
      %cst_62 = arith.constant 1.000000e+00 : f32
      %117 = vector.broadcast %cst_62 : f32 to vector<20x17xf32>
      %118 = arith.subf %116, %117 : vector<20x17xf32>
      %cst_63 = arith.constant 0.000000e+00 : f32
      %119 = vector.broadcast %cst_63 : f32 to vector<20x15xf32>
      %120 = arith.maximumf %90, %119 : vector<20x15xf32>
      %121 = math.absf %90 : vector<20x15xf32>
      %cst_64 = arith.constant 0.000000e+00 : f32
      %122 = vector.broadcast %cst_64 : f32 to vector<20x15xf32>
      %123 = arith.subf %122, %121 : vector<20x15xf32>
      %124 = math.exp %123 : vector<20x15xf32>
      %cst_65 = arith.constant 1.000000e+00 : f32
      %125 = vector.broadcast %cst_65 : f32 to vector<20x15xf32>
      %126 = arith.addf %125, %124 : vector<20x15xf32>
      %127 = math.log %126 : vector<20x15xf32>
      %128 = arith.addf %120, %127 : vector<20x15xf32>
      %cst_66 = arith.constant -1.000000e+00 : f32
      %129 = vector.broadcast %cst_66 : f32 to vector<20x1xf32>
      %130 = arith.cmpf ogt, %arg14, %129 : vector<20x1xf32>
      %cst_67 = arith.constant 1.000000e+00 : f32
      %131 = vector.broadcast %cst_67 : f32 to vector<20x1xf32>
      %132 = arith.cmpf olt, %arg14, %131 : vector<20x1xf32>
      %133 = arith.andi %130, %132 : vector<20x1xi1>
      %134 = vector.extract_strided_slice %115 {offsets = [0, 0], sizes = [20, 16], strides = [1, 1]} : vector<20x17xf32> to vector<20x16xf32>
      %135 = vector.extract_strided_slice %115 {offsets = [0, 1], sizes = [20, 16], strides = [1, 1]} : vector<20x17xf32> to vector<20x16xf32>
      %136 = vector.broadcast %arg14 : vector<20x1xf32> to vector<20x16xf32>
      %137 = arith.cmpf oge, %136, %134 : vector<20x16xf32>
      %138 = vector.broadcast %arg14 : vector<20x1xf32> to vector<20x16xf32>
      %139 = arith.cmpf olt, %138, %135 : vector<20x16xf32>
      %140 = arith.andi %137, %139 : vector<20x16xi1>
      %141 = arith.extui %140 : vector<20x16xi1> to vector<20x16xi32>
      %142 = arith.sitofp %141 : vector<20x16xi32> to vector<20x16xf32>
      %cst_68 = arith.constant dense<0.000000e+00> : vector<20xf32>
      %143 = vector.multi_reduction <add>, %142, %cst_68 [1] : vector<20x16xf32> to vector<20xf32>
      %144 = vector.shape_cast %143 : vector<20xf32> to vector<20x1xf32>
      %cst_69 = arith.constant 5.000000e-01 : f32
      %145 = vector.broadcast %cst_69 : f32 to vector<20x1xf32>
      %146 = arith.cmpf ogt, %144, %145 : vector<20x1xf32>
      %147 = arith.andi %133, %146 : vector<20x1xi1>
      %148 = arith.mulf %142, %134 : vector<20x16xf32>
      %cst_70 = arith.constant dense<0.000000e+00> : vector<20xf32>
      %149 = vector.multi_reduction <add>, %148, %cst_70 [1] : vector<20x16xf32> to vector<20xf32>
      %150 = vector.shape_cast %149 : vector<20xf32> to vector<20x1xf32>
      %151 = vector.extract_strided_slice %118 {offsets = [0, 0], sizes = [20, 16], strides = [1, 1]} : vector<20x17xf32> to vector<20x16xf32>
      %152 = arith.mulf %142, %151 : vector<20x16xf32>
      %cst_71 = arith.constant dense<0.000000e+00> : vector<20xf32>
      %153 = vector.multi_reduction <add>, %152, %cst_71 [1] : vector<20x16xf32> to vector<20xf32>
      %154 = vector.shape_cast %153 : vector<20xf32> to vector<20x1xf32>
      %155 = arith.mulf %142, %101 : vector<20x16xf32>
      %cst_72 = arith.constant dense<0.000000e+00> : vector<20xf32>
      %156 = vector.multi_reduction <add>, %155, %cst_72 [1] : vector<20x16xf32> to vector<20xf32>
      %157 = vector.shape_cast %156 : vector<20xf32> to vector<20x1xf32>
      %cst_73 = arith.constant 1.000000e+00 : f32
      %158 = vector.broadcast %cst_73 : f32 to vector<20x1xf32>
      %159 = arith.select %147, %157, %158 : vector<20x1xi1>, vector<20x1xf32>
      %160 = arith.mulf %142, %112 : vector<20x16xf32>
      %cst_74 = arith.constant dense<0.000000e+00> : vector<20xf32>
      %161 = vector.multi_reduction <add>, %160, %cst_74 [1] : vector<20x16xf32> to vector<20xf32>
      %162 = vector.shape_cast %161 : vector<20xf32> to vector<20x1xf32>
      %cst_75 = arith.constant 1.000000e+00 : f32
      %163 = vector.broadcast %cst_75 : f32 to vector<20x1xf32>
      %164 = arith.select %147, %162, %163 : vector<20x1xi1>, vector<20x1xf32>
      %165 = vector.extract_strided_slice %142 {offsets = [0, 0], sizes = [20, 1], strides = [1, 1]} : vector<20x16xf32> to vector<20x1xf32>
      %166 = vector.extract_strided_slice %142 {offsets = [0, 1], sizes = [20, 15], strides = [1, 1]} : vector<20x16xf32> to vector<20x15xf32>
      %167 = arith.mulf %166, %128 : vector<20x15xf32>
      %cst_76 = arith.constant dense<0.000000e+00> : vector<20xf32>
      %168 = vector.multi_reduction <add>, %167, %cst_76 [1] : vector<20x15xf32> to vector<20xf32>
      %169 = vector.shape_cast %168 : vector<20xf32> to vector<20x1xf32>
      %170 = arith.addf %165, %169 : vector<20x1xf32>
      %171 = vector.extract_strided_slice %142 {offsets = [0, 15], sizes = [20, 1], strides = [1, 1]} : vector<20x16xf32> to vector<20x1xf32>
      %172 = vector.extract_strided_slice %142 {offsets = [0, 0], sizes = [20, 15], strides = [1, 1]} : vector<20x16xf32> to vector<20x15xf32>
      %173 = arith.mulf %172, %128 : vector<20x15xf32>
      %cst_77 = arith.constant dense<0.000000e+00> : vector<20xf32>
      %174 = vector.multi_reduction <add>, %173, %cst_77 [1] : vector<20x15xf32> to vector<20xf32>
      %175 = vector.shape_cast %174 : vector<20xf32> to vector<20x1xf32>
      %176 = arith.addf %171, %175 : vector<20x1xf32>
      %177 = arith.subf %arg14, %150 : vector<20x1xf32>
      %178 = arith.divf %177, %159 : vector<20x1xf32>
      %179 = arith.divf %164, %159 : vector<20x1xf32>
      %cst_78 = arith.constant 1.000000e+00 : f32
      %180 = vector.broadcast %cst_78 : f32 to vector<20x1xf32>
      %181 = arith.subf %180, %178 : vector<20x1xf32>
      %182 = arith.mulf %178, %181 : vector<20x1xf32>
      %183 = arith.mulf %179, %178 : vector<20x1xf32>
      %184 = arith.mulf %183, %178 : vector<20x1xf32>
      %185 = arith.mulf %170, %182 : vector<20x1xf32>
      %186 = arith.addf %184, %185 : vector<20x1xf32>
      %187 = arith.mulf %164, %186 : vector<20x1xf32>
      %188 = arith.addf %176, %170 : vector<20x1xf32>
      %cst_79 = arith.constant 2.000000e+00 : f32
      %189 = vector.broadcast %cst_79 : f32 to vector<20x1xf32>
      %190 = arith.mulf %189, %179 : vector<20x1xf32>
      %191 = arith.subf %188, %190 : vector<20x1xf32>
      %192 = arith.mulf %191, %182 : vector<20x1xf32>
      %193 = arith.addf %179, %192 : vector<20x1xf32>
      %194 = arith.divf %187, %193 : vector<20x1xf32>
      %195 = arith.addf %154, %194 : vector<20x1xf32>
      %cst_80 = arith.constant -1.000000e+00 : f32
      %cst_81 = arith.constant 1.000000e+00 : f32
      %196 = vector.broadcast %cst_80 : f32 to vector<20x1xf32>
      %197 = arith.maximumf %196, %195 : vector<20x1xf32>
      %198 = vector.broadcast %cst_81 : f32 to vector<20x1xf32>
      %199 = arith.minimumf %198, %197 : vector<20x1xf32>
      %cst_82 = arith.constant 1.000000e-30 : f32
      %200 = vector.broadcast %cst_82 : f32 to vector<20x1xf32>
      %201 = arith.maximumf %179, %200 : vector<20x1xf32>
      %202 = math.log %201 : vector<20x1xf32>
      %cst_83 = arith.constant 2.000000e+00 : f32
      %203 = vector.broadcast %cst_83 : f32 to vector<20x1xf32>
      %204 = arith.mulf %203, %202 : vector<20x1xf32>
      %205 = arith.mulf %176, %178 : vector<20x1xf32>
      %206 = arith.mulf %205, %178 : vector<20x1xf32>
      %cst_84 = arith.constant 2.000000e+00 : f32
      %207 = vector.broadcast %cst_84 : f32 to vector<20x1xf32>
      %208 = arith.mulf %207, %179 : vector<20x1xf32>
      %209 = arith.mulf %208, %182 : vector<20x1xf32>
      %210 = arith.addf %206, %209 : vector<20x1xf32>
      %cst_85 = arith.constant 1.000000e+00 : f32
      %211 = vector.broadcast %cst_85 : f32 to vector<20x1xf32>
      %212 = arith.subf %211, %178 : vector<20x1xf32>
      %213 = arith.mulf %212, %212 : vector<20x1xf32>
      %214 = arith.mulf %170, %213 : vector<20x1xf32>
      %215 = arith.addf %210, %214 : vector<20x1xf32>
      %cst_86 = arith.constant 1.000000e-30 : f32
      %216 = vector.broadcast %cst_86 : f32 to vector<20x1xf32>
      %217 = arith.maximumf %215, %216 : vector<20x1xf32>
      %218 = math.log %217 : vector<20x1xf32>
      %219 = arith.addf %204, %218 : vector<20x1xf32>
      %cst_87 = arith.constant 1.000000e-30 : f32
      %220 = vector.broadcast %cst_87 : f32 to vector<20x1xf32>
      %221 = arith.maximumf %193, %220 : vector<20x1xf32>
      %222 = math.log %221 : vector<20x1xf32>
      %cst_88 = arith.constant 2.000000e+00 : f32
      %223 = vector.broadcast %cst_88 : f32 to vector<20x1xf32>
      %224 = arith.mulf %223, %222 : vector<20x1xf32>
      %225 = arith.subf %219, %224 : vector<20x1xf32>
      %226 = arith.select %147, %199, %arg14 : vector<20x1xi1>, vector<20x1xf32>
      %cst_89 = arith.constant 0.000000e+00 : f32
      %227 = vector.broadcast %cst_89 : f32 to vector<20x1xf32>
      %228 = arith.select %147, %225, %227 : vector<20x1xi1>, vector<20x1xf32>
      %229 = arith.addf %arg15, %228 : vector<20x1xf32>
      scf.yield %226, %229 : vector<20x1xf32>, vector<20x1xf32>
    }
    %c5_i32_3 = arith.constant 5 : i32
    %cst_4 = arith.constant -1.000000e+00 : f32
    %10 = vector.broadcast %cst_4 : f32 to vector<20x1xf32>
    %11 = arith.cmpf oge, %9#0, %10 : vector<20x1xf32>
    %cst_5 = arith.constant 1.000000e+00 : f32
    %12 = vector.broadcast %cst_5 : f32 to vector<20x1xf32>
    %13 = arith.cmpf ole, %9#0, %12 : vector<20x1xf32>
    %14 = arith.andi %11, %13 : vector<20x1xi1>
    %cst_6 = arith.constant -0.693147182 : f32
    %cst_7 = arith.constant -1.000000e+30 : f32
    %15 = vector.broadcast %cst_6 : f32 to vector<20x1xf32>
    %16 = vector.broadcast %cst_7 : f32 to vector<20x1xf32>
    %17 = arith.select %14, %15, %16 : vector<20x1xi1>, vector<20x1xf32>
    %18 = arith.addf %17, %9#1 : vector<20x1xf32>
    %c0_8 = arith.constant 0 : index
    %c0_9 = arith.constant 0 : index
    %19 = vector.load %arg12[%c0_8, %c0_9] : memref<20x1xf32, #tpu.memory_space<vmem>>, vector<20x1xf32>
    tpu.vector_store %arg12[%c0_8, %c0_9], %18 {strides = array<i32>} : memref<20x1xf32, #tpu.memory_space<vmem>>, vector<20x1xf32>,
    return
  }
}

</mosaic_0001>

<bundles_post_ra>
// kernel: squeeze.3
= control target key start
LH: loop header
LB: loop body
LE: loop exit
PB: predicated region body
PF: predicated region fallthrough
CT: control target
= control target key end

     0   :  { %vm7_vm0 = vcmask 80896   ;;  %s39_s0 = inlined_call_operand.vmem [shape: f32[20], index: 0, kind: input, shape index: {}]   ;;  %s40_s1 = inlined_call_operand.vmem [shape: f32[2,10], index: 1, kind: output, shape index: {}]  }
   0x1   :  { %v4_v0 = vld [vmem:[%s39_s0] sm:$0x1]  ;;  %s22_s0 = smov 118  }
   0x2   :  { %5 = vst [vmem:[#allocation1] sm:$0x1] %v4_v0 }
   0x9   :  { %v9_v1 = vld [vmem:[#allocation1] sm:$0x1]  }
   0xa   :  { %v6_v2 = vld [vmem:[#allocation1] sm:$0x1]   ;;  %10 = vrot.lane.b32.xlu0 %v9_v1, %s22_s0 }
   0xb   :  { %8 = vst.msk [vmem:[#allocation0] sm:$0x1] %vm7_vm0, %v6_v2  }
  0x7c   :  { %v11_v3 = vpop.permute.xlu0 %10  }
  0x7d   :  { %14 = vst.msk [vmem:[#allocation0 + $0x1] sm:$0x1] %vm7_vm0, %v11_v3  }
  0x84   :  { %v17_v4 = vld [vmem:[#allocation0] sm:$0x3] }
  0x85   :  { %20 = vst [vmem:[%s40_s1] sm:$0x3] %v17_v4 }

// kernel: flow_existjet_forward.3
= control target key start
LH: loop header
LB: loop body
LE: loop exit
PB: predicated region body
PF: predicated region fallthrough
CT: control target
= control target key end

     0   :  { %v47_v0 = vlaneseq  ;;  %v1609_v10 = vmov 0.0   ;;  %v1611_v11 = vmov 0.0   ;;  %v1613_v12 = vmov 0.0   ;;  %s2169_s0 = inlined_call_operand.vmem [shape: f32[20,1], index: 0, kind: input, shape index: {}]   ;;  %s2170_s1 = inlined_call_operand.vmem [shape: f32[20,64], index: 1, kind: input, shape index: {}]   ;;  %s2171_s2 = inlined_call_operand.vmem [shape: f32[5,64,128], index: 2, kind: input, shape index: {}]   ;;  %s2172_s3 = inlined_call_operand.vmem [shape: f32[5,1,128], index: 3, kind: input, shape index: {}]   ;;  %s2173_s4 = inlined_call_operand.vmem [shape: f32[5,3,128,128], index: 4, kind: input, shape index: {}]   ;;  %s2174_s5 = inlined_call_operand.vmem [shape: f32[5,3,1,128], index: 5, kind: input, shape index: {}]   ;;  %s2175_s6 = inlined_call_operand.vmem [shape: f32[5,128,16], index: 6, kind: input, shape index: {}]   ;;  %s2176_s7 = inlined_call_operand.vmem [shape: f32[5,1,16], index: 7, kind: input, shape index: {}]   ;;  %s2177_s8 = inlined_call_operand.vmem [shape: f32[5,128,16], index: 8, kind: input, shape index: {}]   ;;  %s2178_s9 = inlined_call_operand.vmem [shape: f32[5,1,16], index: 9, kind: input, shape index: {}]   ;;  %s2179_s10 = inlined_call_operand.vmem [shape: f32[5,128,15], index: 10, kind: input, shape index: {}]   ;;  %s2180_s11 = inlined_call_operand.vmem [shape: f32[5,1,15], index: 11, kind: input, shape index: {}]   ;;  %s2181_s12 = inlined_call_operand.vmem [shape: f32[20,1], index: 12, kind: output, shape index: {}]  }
   0x1   :  { %v41_v1 = vld [vmem:[%s2169_s0] sm:$0xff]   ;;  %v42_v2 = vld [vmem:[%s2169_s0 + $0x8] sm:$0xff]   ;;  %v43_v3 = vld [vmem:[%s2169_s0 + $0x10] sm:$0xf]   ;;  %s1621_s0 = smov 0  }
   0x2   :  { %v1586_v4 = vld [vmem:[%s2170_s1] sm:$0xff]  ;;  %v1591_v5 = vld [vmem:[%s2170_s1 + $0x8] sm:$0xff]  ;;  %v1596_v6 = vld [vmem:[%s2170_s1 + $0x10] sm:$0xf]  ;;  %v1598_v7 = vshrl.u32 %v47_v0, 7  ;;  %v1600_v8 = vand.u32 127, %v47_v0 }
   0x4   :  { %v1603_v9 = vadd.s32 8, %v1598_v7  ;;  %vm52_vm0 = vcmp.lt.s32.totalorder %v1598_v7, %v1600_v8 }
   0x6   :  { %vm53_vm1 = vcmp.lt.s32.totalorder %v1603_v9, %v1600_v8 }
   0x7 LB: > { %s1242_s1 = sshll.u32 %s1499_s0, 6  ;;  %s124_s15 = smul.u32 384, %s1499_s0  ;;  %vm85_vm2 = vcmask 523264   ;;  %vm428_vm3 = vcmask 130048   ;;  %vm435_vm4 = vcmask 125952   ;;  %s1499_s0 = sphi %s1621_s0, %s63_s0   ;;  %v1495_v1 = vphi %v41_v1, %v2195_v1   ;;  %v1491_v2 = vphi %v42_v2, %v2194_v2   ;;  %v1487_v3 = vphi %v43_v3, %v2193_v3   ;;  %v1483_v12 = vphi %v1613_v12, %v2192_v12   ;;  %v1479_v11 = vphi %v1611_v11, %v2191_v11   ;;  %v1475_v10 = vphi %v1609_v10, %v2190_v10  }
   0x8   : > { %s71_s18 = scalar_lea.vmem %s2171_s2, %s1242_s1  ;;  %s80_s24 = scalar_lea.vmem %s2172_s3, %s1499_s0 }
   0x9   : > { %v79_v13 = vld [vmem:[%s71_s18 + $0x38] sm:$0xff]  ;;  %s1652_s21 = scalar_lea.vmem %s2173_s4, %s124_s15  ;;  %v78_v14 = vld [vmem:[%s71_s18 + $0x30] sm:$0xff]  ;;  %v77_v15 = vld [vmem:[%s71_s18 + $0x28] sm:$0xff]  ;;  %s142_s25 = smul.u32 3, %s1499_s0 }
   0xa   : > { %103 = vmatpush.msra.mxu0 %v79_v13  ;;  %v141_v16 = vld [vmem:[%s1652_s21 + $0x78] sm:$0xff]  ;;  %v140_v17 = vld [vmem:[%s1652_s21 + $0x70] sm:$0xff]  ;;  %v76_v18 = vld [vmem:[%s71_s18 + $0x20] sm:$0xff]  ;;  %s1280_s13 = sshll.u32 %s1499_s0, 7  ;;  %s349_s27 = scalar_lea.vmem %s2178_s9, %s1499_s0 }
   0xb   : > { %148 = vmatpush.msra.mxu1 %v141_v16  ;;  %v139_v19 = vld [vmem:[%s1652_s21 + $0x68] sm:$0xff]  ;;  %v75_v20 = vld [vmem:[%s71_s18 + $0x18] sm:$0xff]  ;;  %v138_v21 = vld [vmem:[%s1652_s21 + $0x60] sm:$0xff]  ;;  %s1681_s28 = scalar_lea.vmem %s2174_s5, %s142_s25  ;;  %s1728_s15 = scalar_lea.vmem %s2175_s6, %s1280_s13 }
   0xc   : > { %104 = vmatpush.msra.mxu0 %v78_v14  ;;  %v74_v22 = vld [vmem:[%s71_s18 + $0x10] sm:$0xff]  ;;  %v137_v23 = vld [vmem:[%s1652_s21 + $0x58] sm:$0xff]  ;;  %v73_v24 = vld [vmem:[%s71_s18 + $0x8] sm:$0xff]  ;;  %s1502_s1 = smov 1   ;;  %s1506_s16 = smov 15  }
   0xd   : > { %149 = vmatpush.msra.mxu1 %v140_v17  ;;  %v136_v25 = vld [vmem:[%s1652_s21 + $0x50] sm:$0xff]  ;;  %v72_v26 = vld [vmem:[%s71_s18] sm:$0xff]  ;;  %v135_v27 = vld [vmem:[%s1652_s21 + $0x48] sm:$0xff]  ;;  %s1733_s18 = scalar_lea.vmem %s2177_s8, %s1280_s13  ;;  %s1507_s17 = smov 113  }
   0xe   : > { %105 = vmatpush.msra.mxu0 %v77_v15  ;;  %v134_v28 = vld [vmem:[%s1652_s21 + $0x40] sm:$0xff]  ;;  %v133_v29 = vld [vmem:[%s1652_s21 + $0x38] sm:$0xff]  ;;  %v132_v30 = vld [vmem:[%s1652_s21 + $0x30] sm:$0xff] }
   0xf   : > { %150 = vmatpush.msra.mxu1 %v139_v19  ;;  %v131_v31 = vld [vmem:[%s1652_s21 + $0x28] sm:$0xff]  ;;  %v130_v32 = vld [vmem:[%s1652_s21 + $0x20] sm:$0xff]  ;;  %v129_v33 = vld [vmem:[%s1652_s21 + $0x18] sm:$0xff] }
  0x10   : > { %106 = vmatpush.msra.mxu0 %v76_v18  ;;  %v128_v34 = vld [vmem:[%s1652_s21 + $0x10] sm:$0xff]  ;;  %v127_v35 = vld [vmem:[%s1652_s21 + $0x8] sm:$0xff]  ;;  %v126_v36 = vld [vmem:[%s1652_s21] sm:$0xff] }
  0x11   : > { %151 = vmatpush.msra.mxu1 %v138_v21  ;;  %v1261_v37 = vld [vmem:[%s1652_s21 + $0xf8] sm:$0xff]  ;;  %v1260_v38 = vld [vmem:[%s1652_s21 + $0xf0] sm:$0xff]  ;;  %v1259_v39 = vld [vmem:[%s1652_s21 + $0xe8] sm:$0xff] }
  0x12   : > { %107 = vmatpush.msra.mxu0 %v75_v20  ;;  %201 = vmatpush.msra.mxu2 %v1261_v37  ;;  %v1258_v40 = vld [vmem:[%s1652_s21 + $0xe0] sm:$0xff]  ;;  %v1257_v41 = vld [vmem:[%s1652_s21 + $0xd8] sm:$0xff]  ;;  %v1256_v43 = vld [vmem:[%s1652_s21 + $0xd0] sm:$0xff] }
  0x13   : > { %152 = vmatpush.msra.mxu1 %v137_v23  ;;  %v1372_v42 = vld [vmem:[%s80_s24] ss:$0 sm:$0xff]  ;;  %v1255_v44 = vld [vmem:[%s1652_s21 + $0xc8] sm:$0xff]  ;;  %v1253_v49 = vld [vmem:[%s1652_s21 + $0xb8] sm:$0xff]  ;;  %s301_s24 = scalar_lea.vmem %s2176_s7, %s1499_s0 }
  0x14   : > { %108 = vmatpush.msra.mxu0 %v74_v22  ;;  %202 = vmatpush.msra.mxu2 %v1260_v38  ;;  %v1254_v47 = vld [vmem:[%s1652_s21 + $0xc0] sm:$0xff]  ;;  %v1252_v50 = vld [vmem:[%s1652_s21 + $0xb0] sm:$0xff]  ;;  %v1251_v51 = vld [vmem:[%s1652_s21 + $0xa8] sm:$0xff] }
  0x15   : > { %153 = vmatpush.msra.mxu1 %v136_v25  ;;  %v1250_v54 = vld [vmem:[%s1652_s21 + $0xa0] sm:$0xff]  ;;  %v1249_v56 = vld [vmem:[%s1652_s21 + $0x98] sm:$0xff]  ;;  %v1248_v60 = vld [vmem:[%s1652_s21 + $0x90] sm:$0xff] }
  0x16   : > { %109 = vmatpush.msra.mxu0 %v73_v24  ;;  %203 = vmatpush.msra.mxu2 %v1259_v39  ;;  %v1247_v61 = vld [vmem:[%s1652_s21 + $0x88] sm:$0xff]  ;;  %v1246_v62 = vld [vmem:[%s1652_s21 + $0x80] sm:$0xff]  ;;  %v1278_v63 = vld [vmem:[%s1652_s21 + $0x178] sm:$0xff] }
  0x17   : > { %154 = vmatpush.msra.mxu1 %v135_v27  ;;  %v1277_v0 = vld [vmem:[%s1652_s21 + $0x170] sm:$0xff]  ;;  %254 = vmatpush.msra.mxu3 %v1278_v63  ;;  %v1276_v13 = vld [vmem:[%s1652_s21 + $0x168] sm:$0xff]  ;;  %v1275_v14 = vld [vmem:[%s1652_s21 + $0x160] sm:$0xff] }
  0x18   : > { %110 = vmatpush.msra.mxu0 %v72_v26  ;;  %204 = vmatpush.msra.mxu2 %v1258_v40  ;;  %v1274_v15 = vld [vmem:[%s1652_s21 + $0x158] sm:$0xff]  ;;  %v1373_v16 = vld [vmem:[%s1681_s28] ss:$0 sm:$0xff]  ;;  %v1273_v17 = vld [vmem:[%s1652_s21 + $0x150] sm:$0xff] }
  0x19   : > { %1243 = vmatmul.msk.f32.vlgmr.msra.gmra.mxu0 %vm85_vm2, %v1586_v4  ;;  %155 = vmatpush.msra.mxu1 %v134_v28  ;;  %v1272_v18 = vld [vmem:[%s1652_s21 + $0x148] sm:$0xff]  ;;  %v1271_v21 = vld [vmem:[%s1652_s21 + $0x140] sm:$0xff]  ;;  %v1270_v23 = vld [vmem:[%s1652_s21 + $0x138] sm:$0xff] }
  0x1a   : > { %205 = vmatpush.msra.mxu2 %v1257_v41  ;;  %255 = vmatpush.msra.mxu3 %v1277_v0  ;;  %v1269_v24 = vld [vmem:[%s1652_s21 + $0x130] sm:$0xff]  ;;  %v1268_v25 = vld [vmem:[%s1652_s21 + $0x128] sm:$0xff]  ;;  %v1267_v28 = vld [vmem:[%s1652_s21 + $0x120] sm:$0xff] }
  0x1b   : > { %156 = vmatpush.msra.mxu1 %v133_v29  ;;  %v300_v37 = vld [vmem:[%s1728_s15 + $0x78] sm:$0xff]  ;;  %v299_v40 = vld [vmem:[%s1728_s15 + $0x70] sm:$0xff] }
  0x1c   : > { %206 = vmatpush.msra.mxu2 %v1256_v43  ;;  %256 = vmatpush.msra.mxu3 %v1276_v13  ;;  %v348_v38 = vld [vmem:[%s1733_s18 + $0x78] sm:$0xff]  ;;  %v347_v41 = vld [vmem:[%s1733_s18 + $0x70] sm:$0xff]  ;;  %v298_v43 = vld [vmem:[%s1728_s15 + $0x68] sm:$0xff] }
  0x1d   : > { %157 = vmatpush.msra.mxu1 %v132_v30  ;;  %v1266_v30 = vld [vmem:[%s1652_s21 + $0x118] sm:$0xff]  ;;  %306 = vmatpush.msrb.mxu0 %v300_v37  ;;  %v286_v37 = vld [vmem:[%s1728_s15 + $0x8] sm:$0xff] }
  0x1e   : > { %207 = vmatpush.msra.mxu2 %v1255_v44  ;;  %257 = vmatpush.msra.mxu3 %v1275_v14  ;;  %v346_v44 = vld [vmem:[%s1733_s18 + $0x68] sm:$0xff]  ;;  %v292_v13 = vld [vmem:[%s1728_s15 + $0x38] sm:$0xff] }
  0x1f   : > { %158 = vmatpush.msra.mxu1 %v131_v31  ;;  %307 = vmatpush.msrb.mxu0 %v299_v40  ;;  %v340_v14 = vld [vmem:[%s1733_s18 + $0x38] sm:$0xff]  ;;  %v285_v40 = vld [vmem:[%s1728_s15] sm:$0xff] }
  0x20   : > { %208 = vmatpush.msra.mxu2 %v1254_v47  ;;  %258 = vmatpush.msra.mxu3 %v1274_v15  ;;  %v345_v47 = vld [vmem:[%s1733_s18 + $0x60] sm:$0xff] }
  0x21   : > { %1244 = vmatmul.msk.f32.gmra.mxu0 %vm85_vm2, %v1591_v5  ;;  %159 = vmatpush.msra.mxu1 %v130_v32 }
  0x22   : > { %209 = vmatpush.msra.mxu2 %v1253_v49  ;;  %259 = vmatpush.msra.mxu3 %v1273_v17  ;;  %v296_v49 = vld [vmem:[%s1728_s15 + $0x58] sm:$0xff]  ;;  %v339_v17 = vld [vmem:[%s1733_s18 + $0x30] sm:$0xff] }
  0x23   : > { %160 = vmatpush.msra.mxu1 %v129_v33  ;;  %308 = vmatpush.msrb.mxu0 %v298_v43  ;;  %v1375_v43 = vld [vmem:[%s1681_s28 + $0x2] ss:$0 sm:$0xff] }
  0x24   : > { %210 = vmatpush.msra.mxu2 %v1252_v50  ;;  %260 = vmatpush.msra.mxu3 %v1272_v18  ;;  %v344_v50 = vld [vmem:[%s1733_s18 + $0x58] sm:$0xff] }
  0x25   : > { %161 = vmatpush.msra.mxu1 %v128_v34  ;;  %v1265_v34 = vld [vmem:[%s1652_s21 + $0x110] sm:$0xff] }
  0x26   : > { %211 = vmatpush.msra.mxu2 %v1251_v51  ;;  %261 = vmatpush.msra.mxu3 %v1271_v21 }
  0x27   : > { %162 = vmatpush.msra.mxu1 %v127_v35  ;;  %v1264_v35 = vld [vmem:[%s1652_s21 + $0x108] sm:$0xff] }
  0x28   : > { %212 = vmatpush.msra.mxu2 %v1250_v54  ;;  %262 = vmatpush.msra.mxu3 %v1270_v23  ;;  %v343_v54 = vld [vmem:[%s1733_s18 + $0x50] sm:$0xff] }
  0x29   : > { %1245 = vmatmul.msk.f32.gmra.mxu0 %vm85_vm2, %v1596_v6  ;;  %163 = vmatpush.msra.mxu1 %v126_v36  ;;  %v1263_v36 = vld [vmem:[%s1652_s21 + $0x100] sm:$0xff]  ;;  %s1738_s21 = scalar_lea.vmem %s2179_s10, %s1280_s13  ;;  %s397_s13 = scalar_lea.vmem %s2180_s11, %s1499_s0 }
  0x2a   : > { %213 = vmatpush.msra.mxu2 %v1249_v56  ;;  %263 = vmatpush.msra.mxu3 %v1269_v24  ;;  %v396_v39 = vld [vmem:[%s1738_s21 + $0x78] sm:$0xff]  ;;  %v294_v56 = vld [vmem:[%s1728_s15 + $0x48] sm:$0xff]  ;;  %v389_v63 = vld [vmem:[%s1738_s21 + $0x40] sm:$0xff]  ;;  %s63_s0 = sadd.s32 1, %s1499_s0  }
  0x2b   : > { %354 = vmatpush.msrb.mxu1 %v348_v38  ;;  %v392_v51 = vld [vmem:[%s1738_s21 + $0x58] sm:$0xff]  ;;  %v387_v18 = vld [vmem:[%s1738_s21 + $0x30] sm:$0xff]  ;;  %v289_v24 = vld [vmem:[%s1728_s15 + $0x20] sm:$0xff]  ;;  %p60_p0 = scmp.ge.s32.totalorder %s63_s0, 5  }
  0x2c   : > { %214 = vmatpush.msra.mxu2 %v1248_v60  ;;  %264 = vmatpush.msra.mxu3 %v1268_v25  ;;  %v388_v15 = vld [vmem:[%s1738_s21 + $0x38] sm:$0xff]  ;;  %v337_v25 = vld [vmem:[%s1733_s18 + $0x20] sm:$0xff]  ;;  %v334_v38 = vld [vmem:[%s1733_s18 + $0x8] sm:$0xff] }
  0x2d   : > { %355 = vmatpush.msrb.mxu1 %v347_v41  ;;  %v333_v41 = vld [vmem:[%s1733_s18] sm:$0xff] }
  0x2e   : > { %215 = vmatpush.msra.mxu2 %v1247_v61  ;;  %265 = vmatpush.msra.mxu3 %v1267_v28  ;;  %v293_v61 = vld [vmem:[%s1728_s15 + $0x40] sm:$0xff]  ;;  %v288_v28 = vld [vmem:[%s1728_s15 + $0x18] sm:$0xff] }
  0x2f   : > { %356 = vmatpush.msrb.mxu1 %v346_v44 }
  0x30   : > { %216 = vmatpush.msra.mxu2 %v1246_v62  ;;  %266 = vmatpush.msra.mxu3 %v1266_v30  ;;  %v341_v62 = vld [vmem:[%s1733_s18 + $0x40] sm:$0xff]  ;;  %v384_v30 = vld [vmem:[%s1738_s21 + $0x18] sm:$0xff] }
  0x31   : > { %357 = vmatpush.msrb.mxu1 %v345_v47 }
  0x32   : > { %267 = vmatpush.msra.mxu3 %v1265_v34  ;;  %402 = vmatpush.msrb.mxu2 %v396_v39  ;;  %v287_v34 = vld [vmem:[%s1728_s15 + $0x10] sm:$0xff]  ;;  %v382_v39 = vld [vmem:[%s1738_s21 + $0x8] sm:$0xff] }
  0x33   : > { %358 = vmatpush.msrb.mxu1 %v344_v50 }
  0x34   : > { %268 = vmatpush.msra.mxu3 %v1264_v35  ;;  %v335_v35 = vld [vmem:[%s1733_s18 + $0x10] sm:$0xff] }
  0x35   : > { %359 = vmatpush.msrb.mxu1 %v343_v54 }
  0x36   : > { %269 = vmatpush.msra.mxu3 %v1263_v36  ;;  %v383_v36 = vld [vmem:[%s1738_s21 + $0x10] sm:$0xff] }
  0x96   : > { %v112_v45 = vpop.f32.mrf.mxu0 }
  0x97   : > { %v113_v46 = vadd.f32 %v1372_v42, %v112_v45  ;;  %v394_v45 = vld [vmem:[%s1738_s21 + $0x68] sm:$0xff] }
  0x99   : > { %v121_v48 = vmax.f32 %v113_v46, 0.0  ;;  %v297_v46 = vld [vmem:[%s1728_s15 + $0x60] sm:$0xff] }
  0x9a   : > { %309 = vmatpush.msrb.mxu0 %v297_v46 }
  0x9b   : > { %164 = vmatmul.f32.vlgmr.msra.gmra.mxu1 %v121_v48  ;;  %v393_v48 = vld [vmem:[%s1738_s21 + $0x60] sm:$0xff] }
  0x9c   : > { %310 = vmatpush.msrb.mxu0 %v296_v49 }
  0x9e   : > { %v115_v52 = vpop.f32.mrf.mxu0 }
  0x9f   : > { %v116_v53 = vadd.f32 %v1372_v42, %v115_v52  ;;  %v1374_v52 = vld [vmem:[%s1681_s28 + $0x1] ss:$0 sm:$0xff] }
  0xa1   : > { %v122_v55 = vmax.f32 %v116_v53, 0.0  ;;  %v295_v53 = vld [vmem:[%s1728_s15 + $0x50] sm:$0xff] }
  0xa2   : > { %311 = vmatpush.msrb.mxu0 %v295_v53  ;;  %v1376_v53 = vld [vmem:[%s301_s24] ss:$0 sm:$0xff] }
  0xa3   : > { %167 = vmatmul.f32.gmra.mxu1 %v122_v55  ;;  %v391_v55 = vld [vmem:[%s1738_s21 + $0x50] sm:$0xff] }
  0xa4   : > { %312 = vmatpush.msrb.mxu0 %v294_v56 }
  0xa6   : > { %v118_v57 = vpop.f32.mrf.mxu0  ;;  %313 = vmatpush.msrb.mxu0 %v293_v61 }
  0xa7   : > { %v119_v58 = vadd.f32 %v1372_v42, %v118_v57  ;;  %v395_v42 = vld [vmem:[%s1738_s21 + $0x70] sm:$0xff]  ;;  %v342_v57 = vld [vmem:[%s1733_s18 + $0x48] sm:$0xff] }
  0xa8   : > { %403 = vmatpush.msrb.mxu2 %v395_v42  ;;  %360 = vmatpush.msrb.mxu1 %v342_v57  ;;  %v381_v42 = vld [vmem:[%s1738_s21] sm:$0xff] }
  0xa9   : > { %v123_v59 = vmax.f32 %v119_v58, 0.0  ;;  %314 = vmatpush.msrb.mxu0 %v292_v13 }
  0xaa   : > { %404 = vmatpush.msrb.mxu2 %v394_v45  ;;  %361 = vmatpush.msrb.mxu1 %v341_v62 }
  0xab   : > { %170 = vmatmul.f32.gmra.mxu1 %v123_v59  ;;  %v390_v59 = vld [vmem:[%s1738_s21 + $0x48] sm:$0xff] }
  0xac   : > { %405 = vmatpush.msrb.mxu2 %v393_v48  ;;  %362 = vmatpush.msrb.mxu1 %v340_v14  ;;  %v1501_v14 = vmov 0  }
  0xad   : > { %1369 = vset.pattern.permute.xlu0 %v1501_v14  ;;  %1370 = vset.pattern.permute.xlu1 %v1501_v14 }
  0xae   : > { %406 = vmatpush.msrb.mxu2 %v392_v51  ;;  %363 = vmatpush.msrb.mxu1 %v339_v17 }
  0xaf   : > { %1371 = vset.pattern.permute.xlu2 %v1501_v14 }
  0xb0   : > { %407 = vmatpush.msrb.mxu2 %v391_v55 }
  0xb2   : > { %408 = vmatpush.msrb.mxu2 %v390_v59  ;;  %v1377_v59 = vld [vmem:[%s349_s27] ss:$0 sm:$0xff] }
  0xb4   : > { %409 = vmatpush.msrb.mxu2 %v389_v63 }
  0xb6   : > { %410 = vmatpush.msrb.mxu2 %v388_v15 }
  0xb8   : > { %411 = vmatpush.msrb.mxu2 %v387_v18 }
 0x118   : > { %v165_v19 = vpop.f32.mrf.mxu1 }
 0x119   : > { %v166_v20 = vadd.f32 %v1373_v16, %v165_v19  ;;  %v290_v19 = vld [vmem:[%s1728_s15 + $0x28] sm:$0xff] }
 0x11b   : > { %v174_v22 = vmax.f32 %v166_v20, 0.0  ;;  %v338_v20 = vld [vmem:[%s1733_s18 + $0x28] sm:$0xff] }
 0x11c   : > { %364 = vmatpush.msrb.mxu1 %v338_v20 }
 0x11d   : > { %217 = vmatmul.f32.vlgmr.msra.gmra.mxu2 %v174_v22  ;;  %v386_v22 = vld [vmem:[%s1738_s21 + $0x28] sm:$0xff] }
 0x11e   : > { %412 = vmatpush.msrb.mxu2 %v386_v22  ;;  %365 = vmatpush.msrb.mxu1 %v337_v25 }
 0x120   : > { %v168_v26 = vpop.f32.mrf.mxu1 }
 0x121   : > { %v169_v27 = vadd.f32 %v1373_v16, %v168_v26  ;;  %v385_v26 = vld [vmem:[%s1738_s21 + $0x20] sm:$0xff] }
 0x122   : > { %413 = vmatpush.msrb.mxu2 %v385_v26 }
 0x123   : > { %v175_v29 = vmax.f32 %v169_v27, 0.0 }
 0x124   : > { %414 = vmatpush.msrb.mxu2 %v384_v30 }
 0x125   : > { %220 = vmatmul.f32.gmra.mxu2 %v175_v29  ;;  %v336_v29 = vld [vmem:[%s1733_s18 + $0x18] sm:$0xff] }
 0x126   : > { %366 = vmatpush.msrb.mxu1 %v336_v29  ;;  %415 = vmatpush.msrb.mxu2 %v383_v36 }
 0x128   : > { %v171_v31 = vpop.f32.mrf.mxu1  ;;  %367 = vmatpush.msrb.mxu1 %v335_v35  ;;  %416 = vmatpush.msrb.mxu2 %v382_v39 }
 0x129   : > { %v172_v32 = vadd.f32 %v1373_v16, %v171_v31  ;;  %v291_v16 = vld [vmem:[%s1728_s15 + $0x30] sm:$0xff]  ;;  %s1504_s15 = smov 127  }
 0x12a   : > { %315 = vmatpush.msrb.mxu0 %v291_v16  ;;  %368 = vmatpush.msrb.mxu1 %v334_v38 }
 0x12b   : > { %v176_v33 = vmax.f32 %v172_v32, 0.0  ;;  %417 = vmatpush.msrb.mxu2 %v381_v42 }
 0x12c   : > { %316 = vmatpush.msrb.mxu0 %v290_v19  ;;  %369 = vmatpush.msrb.mxu1 %v333_v41 }
 0x12d   : > { %223 = vmatmul.f32.gmra.mxu2 %v176_v33 }
 0x12e   : > { %317 = vmatpush.msrb.mxu0 %v289_v24 }
 0x130   : > { %318 = vmatpush.msrb.mxu0 %v288_v28 }
 0x132   : > { %319 = vmatpush.msrb.mxu0 %v287_v34 }
 0x134   : > { %320 = vmatpush.msrb.mxu0 %v286_v37 }
 0x136   : > { %321 = vmatpush.msrb.mxu0 %v285_v40 }
 0x1a0   : > { %v218_v58 = vpop.f32.mrf.mxu2 }
 0x1a1   : > { %v219_v60 = vadd.f32 %v1374_v52, %v218_v58  ;;  %v1808_v58 = vld [vmem:[%s397_s13] ss:$0 sm:$0xff] }
 0x1a3   : > { %v227_v0 = vmax.f32 %v219_v60, 0.0 }
 0x1a5   : > { %270 = vmatmul.f32.vlgmr.msra.gmra.mxu3 %v227_v0 }
 0x1a8   : > { %v221_v21 = vpop.f32.mrf.mxu2 }
 0x1a9   : > { %v222_v23 = vadd.f32 %v1374_v52, %v221_v21 }
 0x1ab   : > { %v228_v27 = vmax.f32 %v222_v23, 0.0 }
 0x1ad   : > { %273 = vmatmul.f32.gmra.mxu3 %v228_v27 }
 0x1b0   : > { %v224_v31 = vpop.f32.mrf.mxu2 }
 0x1b1   : > { %v225_v32 = vadd.f32 %v1374_v52, %v224_v31 }
 0x1b3   : > { %v229_v33 = vmax.f32 %v225_v32, 0.0 }
 0x1b5   : > { %276 = vmatmul.f32.gmra.mxu3 %v229_v33 }
 0x228   : > { %v271_v44 = vpop.f32.mrf.mxu3 }
 0x229   : > { %v272_v45 = vadd.f32 %v1375_v43, %v271_v44 }
 0x22b   : > { %v280_v46 = vmax.f32 %v272_v45, 0.0 }
 0x22d   : > { %322 = vmatmul.f32.vlgmr.msrb.gmra.mxu0 %v280_v46  ;;  %370 = vmatmul.f32.vlgmr.msrb.gmra.mxu1 %v280_v46 }
 0x22e   : > { %418 = vmatmul.f32.vlgmr.msrb.gmra.mxu2 %v280_v46 }
 0x230   : > { %v274_v47 = vpop.f32.mrf.mxu3 }
 0x231   : > { %v275_v48 = vadd.f32 %v1375_v43, %v274_v47 }
 0x233   : > { %v281_v49 = vmax.f32 %v275_v48, 0.0 }
 0x235   : > { %325 = vmatmul.f32.gmra.mxu0 %v281_v49  ;;  %373 = vmatmul.f32.gmra.mxu1 %v281_v49 }
 0x236   : > { %421 = vmatmul.f32.gmra.mxu2 %v281_v49 }
 0x238   : > { %v277_v50 = vpop.f32.mrf.mxu3 }
 0x239   : > { %v278_v51 = vadd.f32 %v1375_v43, %v277_v50 }
 0x23b   : > { %v282_v52 = vmax.f32 %v278_v51, 0.0 }
 0x23d   : > { %328 = vmatmul.f32.gmra.mxu0 %v282_v52  ;;  %376 = vmatmul.f32.gmra.mxu1 %v282_v52 }
 0x23e   : > { %424 = vmatmul.f32.gmra.mxu2 %v282_v52 }
 0x2aa   : > { %v323_v54 = vpop.f32.mrf.mxu0  ;;  %v371_v55 = vpop.f32.mrf.mxu1 }
 0x2ab   : > { %v324_v56 = vadd.f32 %v1376_v53, %v323_v54  ;;  %v372_v17 = vadd.f32 %v1377_v59, %v371_v55 }
 0x2ad   : > { %v429_v57 = vsel %vm428_vm3, %v324_v56, -inf  ;;  %v505_v21 = vsel %vm428_vm3, %v372_v17, -inf }
 0x2ae   : > { %430 = vmax.xlane.f32.xlu0 %v429_v57 }
 0x2b1   : > { %v419_v60 = vpop.f32.mrf.mxu2 }
 0x2b2   : > { %v1811_v61 = vadd.f32 %v1808_v58, %v419_v60  ;;  %v326_v62 = vpop.f32.mrf.mxu0  ;;  %v374_v63 = vpop.f32.mrf.mxu1 }
 0x2b3   : > { %v327_v0 = vadd.f32 %v1376_v53, %v326_v62  ;;  %v375_v13 = vadd.f32 %v1377_v59, %v374_v63 }
 0x2b5   : > { %v508_v15 = vsel %vm428_vm3, %v375_v13, -inf  ;;  %v432_v16 = vsel %vm428_vm3, %v327_v0, -inf }
 0x2b6   : > { %509 = vmax.xlane.f32.xlu2 %v508_v15  ;;  %433 = vmax.xlane.f32.xlu0 %v432_v16  ;;  %v1503_v16 = vmov 1.0  }
 0x2b7   : > { %1281 = vmatpush.msk.msrb.mxu3 %vm53_vm1, %v1503_v16  ;;  %1289 = vmatpush.msk.msra.mxu0 %vm53_vm1, %v1503_v16 }
 0x2b9   : > { %v422_v25 = vpop.f32.mrf.mxu2  ;;  %1282 = vmatpush.msk.msrb.mxu3 %vm52_vm0, %v1503_v16  ;;  %1290 = vmatpush.msk.msra.mxu0 %vm52_vm0, %v1503_v16 }
 0x2ba   : > { %v329_v18 = vpop.f32.mrf.mxu0  ;;  %v423_v30 = vadd.f32 %v1808_v58, %v422_v25  ;;  %v377_v35 = vpop.f32.mrf.mxu1 }
 0x2bb   : > { %v330_v19 = vadd.f32 %v1376_v53, %v329_v18  ;;  %v1826_v37 = vadd.f32 %v1377_v59, %v377_v35  ;;  %v659_v59 = vand.u32 2147483647, %v1811_v61  ;;  %1303 = vmatpush.msk.msra.mxu3 %vm53_vm1, %v1503_v16 }
 0x2bc   : > { %v660_v36 = vand.u32 2147483647, %v423_v30  ;;  %v657_v54 = vmax.f32 %v423_v30, 0.0 }
 0x2bd   : > { %v436_v20 = vsel %vm435_vm4, %v330_v19, -inf  ;;  %v511_v44 = vsel %vm435_vm4, %v1826_v37, -inf  ;;  %v662_v63 = vsub.f32 0.0, %v659_v59  ;;  %1304 = vmatpush.msk.msra.mxu3 %vm52_vm0, %v1503_v16 }
 0x2be   : > { %437 = vmax.xlane.f32.xlu1 %v436_v20  ;;  %506 = vmax.xlane.f32.xlu0 %v505_v21  ;;  %v663_v40 = vsub.f32 0.0, %v660_v36 }
 0x2c0   : > { %v667_v47 = vmul.f32 1.442695, %v663_v40 }
 0x2c1   : > { %v425_v60 = vpop.f32.mrf.mxu2 }
 0x2d2   : > { %694 = vperm.xlu0 %1369, %v1495_v1  }
 0x321   : > { %v431_v22 = vpop.xlane.xlu0 %430 }
 0x322   : > { %v439_v23 = vsub.f32 %v324_v56, %v431_v22 }
 0x324   : > { %v442_v24 = vmul.f32 1.442695, %v439_v23 }
 0x326   : > { %1379 = vpow2.f32 %v442_v24 }
 0x329   : > { %v510_v26 = vpop.xlane.xlu2 %509  ;;  %v434_v27 = vpop.xlane.xlu0 %433 }
 0x32a   : > { %v515_v28 = vsub.f32 %v375_v13, %v510_v26  ;;  %v440_v29 = vsub.f32 %v327_v0, %v434_v27  ;;  %v426_v0 = vadd.f32 %v1808_v58, %v425_v60  ;;  %v665_v13 = vmul.f32 1.442695, %v662_v63 }
 0x32b   : > { %v656_v26 = vmax.f32 %v1811_v61, 0.0 }
 0x32c   : > { %v1822_v31 = vpop.eup %1379  ;;  %v519_v32 = vmul.f32 1.442695, %v515_v28  ;;  %v444_v33 = vmul.f32 1.442695, %v440_v29  ;;  %v661_v15 = vand.u32 2147483647, %v426_v0 }
 0x32d   : > { %v448_v34 = vsel %vm428_vm3, %v1822_v31, 0.0  ;;  %v658_v29 = vmax.f32 %v426_v0, 0.0 }
 0x32e   : > { %1381 = vpow2.f32 %v519_v32  ;;  %449 = vadd.xlane.f32.xlu1 %v448_v34 }
 0x32f   : > { %1383 = vpow2.f32 %v444_v33 }
 0x331   : > { %v438_v38 = vpop.xlane.xlu1 %437  ;;  %v507_v56 = vpop.xlane.xlu0 %506 }
 0x332   : > { %v441_v39 = vsub.f32 %v330_v19, %v438_v38  ;;  %v514_v57 = vsub.f32 %v372_v17, %v507_v56  ;;  %v664_v17 = vsub.f32 0.0, %v661_v15 }
 0x334   : > { %v1828_v41 = vpop.eup %1381  ;;  %v446_v42 = vmul.f32 1.442695, %v441_v39  ;;  %v517_v62 = vmul.f32 1.442695, %v514_v57  ;;  %v669_v19 = vmul.f32 1.442695, %v664_v17 }
 0x335   : > { %v1830_v43 = vpop.eup %1383  ;;  %v526_v45 = vsel %vm428_vm3, %v1828_v41, 0.0 }
 0x336   : > { %1385 = vpow2.f32 %v446_v42  ;;  %512 = vmax.xlane.f32.xlu1 %v511_v44  ;;  %v451_v46 = vsel %vm428_vm3, %v1830_v43, 0.0  ;;  %527 = vadd.xlane.f32.xlu0 %v526_v45 }
 0x337   : > { %452 = vadd.xlane.f32.xlu2 %v451_v46  ;;  %1387 = vpow2.f32 %v667_v47 }
 0x33c   : > { %v1838_v48 = vpop.eup %1385 }
 0x33d   : > { %v454_v49 = vsel %vm435_vm4, %v1838_v48, 0.0  ;;  %v1388_v50 = vpop.eup %1387 }
 0x33e   : > { %v672_v51 = vadd.f32 1.0, %v1388_v50 }
 0x33f   : > { %455 = vadd.xlane.f32.xlu2 %v454_v49 }
 0x340   : > { %1389 = vlog2.f32 %v672_v51 }
 0x341   : > { %1391 = vpow2.f32 %v517_v62 }
 0x342   : > { %1393 = vpow2.f32 %v665_v13 }
 0x343   : > { %1395 = vpow2.f32 %v669_v19 }
 0x346   : > { %v1390_v52 = vpop.eup %1389 }
 0x347   : > { %v677_v53 = vmul.f32 0.6931472, %v1390_v52  ;;  %v1862_v58 = vpop.eup %1391 }
 0x348   : > { %v523_v18 = vsel %vm428_vm3, %v1862_v58, 0.0  ;;  %v1394_v20 = vpop.eup %1393 }
 0x349   : > { %v1843_v55 = vadd.f32 %v677_v53, %v657_v54  ;;  %v671_v21 = vadd.f32 1.0, %v1394_v20  ;;  %v1396_v22 = vpop.eup %1395 }
 0x34a   : > { %v673_v23 = vadd.f32 1.0, %v1396_v22 }
 0x34b   : > { %1397 = vlog2.f32 %v671_v21 }
 0x34c   : > { %1399 = vlog2.f32 %v673_v23 }
 0x34f   : > { %699 = vperm.xlu1 %1370, %v1491_v2  }
 0x351   : > { %v1398_v24 = vpop.eup %1397 }
 0x352   : > { %v675_v25 = vmul.f32 0.6931472, %v1398_v24  ;;  %v1400_v28 = vpop.eup %1399 }
 0x353   : > { %v679_v30 = vmul.f32 0.6931472, %v1400_v28 }
 0x354   : > { %v1873_v27 = vadd.f32 %v675_v25, %v656_v26 }
 0x355   : > { %v1877_v32 = vadd.f32 %v679_v30, %v658_v29 }
 0x357   : > { %704 = vperm.xlu2 %1371, %v1487_v3   ;;  %808 = vrot.lane.b32.xlu1 %v1843_v55, %s1502_s1 }
 0x380   : > { %524 = vadd.xlane.f32.xlu2 %v523_v18 }
 0x398   : > { %806 = vrot.lane.b32.xlu2 %v1873_v27, %s1502_s1 }
 0x3a0   : > { %810 = vrot.lane.b32.xlu2 %v1877_v32, %s1502_s1 }
 0x3a1   : > { %v450_v33 = vpop.xlane.xlu1 %449 }
 0x3a2   : > { %1401 = vrcp.f32 %v450_v33  ;;  %v468_v40 = vand.u32 2147483648, %v450_v33  ;;  %v466_v45 = vand.u32 2147483647, %v450_v33  ;;  %vm462_vm6 = vweird.f32 %v450_v33 }
 0x3a4   : > { %v469_v47 = vor.u32 1.1754944e-38, %v468_v40  ;;  %vm467_vm8 = vcmp.eq.f32.partialorder %v466_v45, 8.507059e+37 }
 0x3a8   : > { %v1402_v34 = vpop.eup %1401 }
 0x3a9   : > { %v458_v35 = vmul.f32 %v1402_v34, %v450_v33  ;;  %v513_v36 = vpop.xlane.xlu1 %512  ;;  %vm463_vm5 = vweird.f32 %v1402_v34 }
 0x3aa   : > { %v516_v61 = vsub.f32 %v1826_v37, %v513_v36  ;;  %v453_v38 = vpop.xlane.xlu2 %452  ;;  %vm464_vm7 = vmor %vm462_vm6, %vm463_vm5 }
 0x3ab   : > { %v459_v39 = vsub.f32 1.0, %v458_v35  ;;  %1403 = vrcp.f32 %v453_v38  ;;  %v483_v57 = vand.u32 2147483648, %v453_v38  ;;  %v481_v63 = vand.u32 2147483647, %v453_v38 }
 0x3ac   : > { %v521_v42 = vmul.f32 1.442695, %v516_v61  ;;  %vm477_vm10 = vweird.f32 %v453_v38 }
 0x3ad   : > { %v460_v44 = vmul.f32 %v1402_v34, %v459_v39  ;;  %v484_v15 = vor.u32 1.1754944e-38, %v483_v57  ;;  %vm482_vm12 = vcmp.eq.f32.partialorder %v481_v63, 8.507059e+37 }
 0x3ae   : > { %1405 = vpow2.f32 %v521_v42 }
 0x3af   : > { %v461_v46 = vadd.f32 %v1402_v34, %v460_v44 }
 0x3b1   : > { %v1404_v49 = vpop.eup %1403  ;;  %v465_v50 = vsel %vm464_vm7, %v1402_v34, %v461_v46 }
 0x3b2   : > { %v473_v51 = vmul.f32 %v1404_v49, %v453_v38  ;;  %v456_v52 = vpop.xlane.xlu2 %455  ;;  %v470_v53 = vsel %vm467_vm8, %v469_v47, %v465_v50  ;;  %vm478_vm9 = vweird.f32 %v1404_v49 }
 0x3b3   : > { %1407 = vrcp.f32 %v456_v52  ;;  %v471_v56 = vmul.f32 %v1822_v31, %v470_v53  ;;  %vm479_vm11 = vmor %vm477_vm10, %vm478_vm9  ;;  %v498_v20 = vand.u32 2147483648, %v456_v52  ;;  %v496_v23 = vand.u32 2147483647, %v456_v52 }
 0x3b4   : > { %v1882_v37 = vpop.eup %1405  ;;  %v474_v54 = vsub.f32 1.0, %v473_v51  ;;  %vm492_vm14 = vweird.f32 %v456_v52 }
 0x3b5   : > { %v529_v59 = vsel %vm435_vm4, %v1882_v37, 0.0  ;;  %v1887_v62 = vmul.f32 2.0, %v471_v56  ;;  %v499_v25 = vor.u32 1.1754944e-38, %v498_v20  ;;  %vm497_vm2 = vcmp.eq.f32.partialorder %v496_v23, 8.507059e+37 }
 0x3b6   : > { %v475_v60 = vmul.f32 %v1404_v49, %v474_v54  ;;  %530 = vadd.xlane.f32.xlu1 %v529_v59 }
 0x3b7   : > { %1283 = vmatmul.msk.f32.vlgmr.msrb.gmra.mxu3 %vm428_vm3, %v1887_v62 }
 0x3b8   : > { %v476_v0 = vadd.f32 %v1404_v49, %v475_v60 }
 0x3b9   : > { %v1408_v13 = vpop.eup %1407 }
 0x3ba   : > { %v488_v16 = vmul.f32 %v1408_v13, %v456_v52  ;;  %v480_v31 = vsel %vm479_vm11, %v1404_v49, %v476_v0  ;;  %vm493_vm13 = vweird.f32 %v1408_v13  ;;  %v1903_v34 = vpop.permute.xlu2 %704 }
 0x3bb   : > { %v485_v17 = vsel %vm482_vm12, %v484_v15, %v480_v31  ;;  %vm494_vm15 = vmor %vm492_vm14, %vm493_vm13 }
 0x3bc   : > { %v489_v18 = vsub.f32 1.0, %v488_v16  ;;  %v486_v19 = vmul.f32 %v1830_v43, %v485_v17  ;;  %v1901_v43 = vpop.permute.xlu0 %694 }
 0x3be   : > { %v490_v21 = vmul.f32 %v1408_v13, %v489_v18  ;;  %v1892_v22 = vmul.f32 2.0, %v486_v19 }
 0x3c0   : > { %1284 = vmatmul.msk.f32.gmra.mxu3 %vm428_vm3, %v1892_v22  ;;  %v491_v24 = vadd.f32 %v1408_v13, %v490_v21 }
 0x3c1   : > { %v700_v15 = vpop.permute.xlu1 %699 }
 0x3c2   : > { %v495_v26 = vsel %vm494_vm15, %v1408_v13, %v491_v24 }
 0x3c3   : > { %v500_v28 = vsel %vm497_vm2, %v499_v25, %v495_v26 }
 0x3c4   : > { %v501_v29 = vmul.f32 %v1838_v48, %v500_v28  ;;  %v528_v33 = vpop.xlane.xlu0 %527 }
 0x3c5   : > { %1409 = vrcp.f32 %v528_v33  ;;  %v558_v50 = vand.u32 2147483648, %v528_v33  ;;  %vm552_vm9 = vweird.f32 %v528_v33  ;;  %v556_v53 = vand.u32 2147483647, %v528_v33 }
 0x3c6   : > { %v1897_v30 = vmul.f32 2.0, %v501_v29 }
 0x3c7   : > { %v559_v59 = vor.u32 1.1754944e-38, %v558_v50  ;;  %vm557_vm12 = vcmp.eq.f32.partialorder %v556_v53, 8.507059e+37 }
 0x3c8   : > { %1285 = vmatmul.msk.f32.gmra.mxu3 %vm428_vm3, %v1897_v30 }
 0x3c9   : > { %v809_v16 = vpop.permute.xlu1 %808 }
 0x3cb   : > { %v1410_v35 = vpop.eup %1409 }
 0x3cc   : > { %v548_v61 = vmul.f32 %v1410_v35, %v528_v33  ;;  %vm553_vm6 = vweird.f32 %v1410_v35 }
 0x3cd   : > { %vm554_vm11 = vmor %vm552_vm9, %vm553_vm6 }
 0x3ce   : > { %v549_v38 = vsub.f32 1.0, %v548_v61 }
 0x3d0   : > { %v550_v42 = vmul.f32 %v1410_v35, %v549_v38 }
 0x3d2   : > { %v551_v49 = vadd.f32 %v1410_v35, %v550_v42 }
 0x3d4   : > { %v555_v57 = vsel %vm554_vm11, %v1410_v35, %v551_v49 }
 0x3d5   : > { %v560_v63 = vsel %vm557_vm12, %v559_v59, %v555_v57 }
 0x3d6   : > { %v561_v0 = vmul.f32 %v1828_v41, %v560_v63 }
 0x3d8   : > { %v1911_v13 = vmul.f32 2.0, %v561_v0 }
 0x3f3   : > { %v525_v36 = vpop.xlane.xlu2 %524 }
 0x3f4   : > { %1411 = vrcp.f32 %v525_v36  ;;  %v543_v44 = vand.u32 2147483648, %v525_v36  ;;  %v541_v46 = vand.u32 2147483647, %v525_v36  ;;  %vm537_vm7 = vweird.f32 %v525_v36 }
 0x3f6   : > { %v544_v51 = vor.u32 1.1754944e-38, %v543_v44  ;;  %vm542_vm10 = vcmp.eq.f32.partialorder %v541_v46, 8.507059e+37 }
 0x3fa   : > { %v1412_v39 = vpop.eup %1411 }
 0x3fb   : > { %v533_v40 = vmul.f32 %v1412_v39, %v525_v36  ;;  %vm538_vm5 = vweird.f32 %v1412_v39  ;;  %v807_v42 = vpop.permute.xlu2 %806 }
 0x3fc   : > { %vm539_vm8 = vmor %vm537_vm7, %vm538_vm5 }
 0x3fd   : > { %v534_v48 = vsub.f32 1.0, %v533_v40 }
 0x3ff   : > { %v535_v45 = vmul.f32 %v1412_v39, %v534_v48 }
 0x401   : > { %v536_v47 = vadd.f32 %v1412_v39, %v535_v45  ;;  %v1505_v45 = vmov 0.0  }
 0x403   : > { %v540_v52 = vsel %vm539_vm8, %v1412_v39, %v536_v47  ;;  %v811_v48 = vpop.permute.xlu2 %810 }
 0x404   : > { %v545_v54 = vsel %vm542_vm10, %v544_v51, %v540_v52 }
 0x405   : > { %v546_v56 = vmul.f32 %v1862_v58, %v545_v54 }
 0x407   : > { %v1906_v60 = vmul.f32 2.0, %v546_v56 }
 0x409   : > { %1291 = vmatmul.msk.f32.vlgmr.msra.gmra.mxu0 %vm428_vm3, %v1906_v60 }
 0x411   : > { %1292 = vmatmul.msk.f32.gmra.mxu0 %vm428_vm3, %v1911_v13 }
 0x429   : > { %v531_v31 = vpop.xlane.xlu1 %530 }
 0x42a   : > { %1413 = vrcp.f32 %v531_v31  ;;  %v573_v19 = vand.u32 2147483648, %v531_v31  ;;  %v571_v21 = vand.u32 2147483647, %v531_v31  ;;  %vm567_vm14 = vweird.f32 %v531_v31 }
 0x42c   : > { %v574_v41 = vor.u32 1.1754944e-38, %v573_v19  ;;  %vm572_vm2 = vcmp.eq.f32.partialorder %v571_v21, 8.507059e+37 }
 0x430   : > { %v1414_v58 = vpop.eup %1413 }
 0x431   : > { %v563_v17 = vmul.f32 %v1414_v58, %v531_v31  ;;  %vm568_vm13 = vweird.f32 %v1414_v58 }
 0x432   : > { %vm569_vm15 = vmor %vm567_vm14, %vm568_vm13 }
 0x433   : > { %v564_v18 = vsub.f32 1.0, %v563_v17 }
 0x435   : > { %v565_v20 = vmul.f32 %v1414_v58, %v564_v18 }
 0x437   : > { %v566_v23 = vadd.f32 %v1414_v58, %v565_v20 }
 0x439   : > { %v570_v24 = vsel %vm569_vm15, %v1414_v58, %v566_v23 }
 0x43a   : > { %v575_v25 = vsel %vm572_vm2, %v574_v41, %v570_v24  ;;  %v606_v28 = vpop.f32.mrf.mxu3 }
 0x43b   : > { %v576_v26 = vmul.f32 %v1882_v37, %v575_v25  ;;  %v1286_v29 = vadd.f32 -1.0, %v606_v28 }
 0x43d   : > { %v1916_v33 = vmul.f32 2.0, %v576_v26  ;;  %vm710_vm5 = vcmp.lt.f32.partialorder %v1901_v43, %v1286_v29  ;;  %vm707_vm8 = vcmp.ge.f32.partialorder %v1901_v43, %v1286_v29 }
 0x43e   : > { %v713_v35 = vsel %vm710_vm5, 1, %v1501_v14  ;;  %vm830_vm5 = vcmask 121856  }
 0x43f   : > { %1293 = vmatmul.msk.f32.vlgmr.msra.gmra.mxu3 %vm428_vm3, %v1916_v33  ;;  %716 = vrot.lane.b32.xlu2 %v713_v35, %s1504_s15 }
 0x443   : > { %v609_v36 = vpop.f32.mrf.mxu3 }
 0x444   : > { %v1287_v61 = vadd.f32 -1.0, %v609_v36 }
 0x446   : > { %vm711_vm6 = vcmp.lt.f32.partialorder %v700_v15, %v1287_v61  ;;  %vm708_vm11 = vcmp.ge.f32.partialorder %v700_v15, %v1287_v61 }
 0x447   : > { %v714_v38 = vsel %vm711_vm6, 1, %v1501_v14  ;;  %vm837_vm6 = vcmask 117760  }
 0x448   : > { %718 = vrot.lane.b32.xlu1 %v714_v38, %s1504_s15 }
 0x44b   : > { %v612_v37 = vpop.f32.mrf.mxu3 }
 0x44c   : > { %v1288_v39 = vadd.f32 -1.0, %v612_v37 }
 0x44e   : > { %vm712_vm7 = vcmp.lt.f32.partialorder %v1903_v34, %v1288_v39  ;;  %vm709_vm14 = vcmp.ge.f32.partialorder %v1903_v34, %v1288_v39 }
 0x44f   : > { %v715_v40 = vsel %vm712_vm7, 1, %v1501_v14  ;;  %vm683_vm7 = vcmp.gt.f32.partialorder %v1495_v1, -1.0 }
 0x450   : > { %720 = vrot.lane.b32.xlu0 %v715_v40, %s1504_s15 }
 0x499   : > { %v717_v44 = vpop.permute.xlu2 %716 }
 0x49a   : > { %vm722_vm9 = vcmp.ne.s32.totalorder %v717_v44, 0 }
 0x49b   : > { %vm725_vm10 = vmand %vm707_vm8, %vm722_vm9  ;;  %vm686_vm8 = vcmp.lt.f32.partialorder %v1495_v1, 1.0 }
 0x49c   : > { %v1929_v46 = vsel %vm725_vm10, 1.0, %v1505_v45  ;;  %vm689_vm9 = vmand %vm683_vm7, %vm686_vm8 }
 0x49d   : > { %v734_v47 = vsel %vm428_vm3, %v1929_v46, 0.0  ;;  %v815_v49 = vmul.f32 %v1929_v46, %v807_v42  ;;  %v773_v57 = vmul.f32 %v1929_v46, %v1887_v62  ;;  %v749_v59 = vmul.f32 %v1929_v46, %v1286_v29 }
 0x49e   : > { %735 = vadd.xlane.f32.xlu1 %v734_v47  ;;  %v788_v0 = vmul.f32 %v1929_v46, %v1906_v60 }
 0x49f   : > { %v776_v34 = vsel %vm428_vm3, %v773_v57, 0.0  ;;  %v752_v63 = vsel %vm428_vm3, %v749_v59, 0.0 }
 0x4a0   : > { %v791_v15 = vsel %vm428_vm3, %v788_v0, 0.0 }
 0x4b7   : > { %821 = vrot.lane.b32.xlu1 %v815_v49, %s1504_s15 }
 0x4ba   : > { %v719_v14 = vpop.permute.xlu1 %718 }
 0x4bb   : > { %vm723_vm12 = vcmp.ne.s32.totalorder %v719_v14, 0 }
 0x4bc   : > { %vm726_vm13 = vmand %vm708_vm11, %vm723_vm12 }
 0x4bd   : > { %v1935_v50 = vsel %vm726_vm13, 1.0, %v1505_v45 }
 0x4be   : > { %v737_v43 = vsel %vm428_vm3, %v1935_v50, 0.0  ;;  %v816_v54 = vmul.f32 %v1935_v50, %v809_v16  ;;  %v844_v16 = vmul.f32 %v1929_v46, %v1873_v27  ;;  %v774_v62 = vmul.f32 %v1935_v50, %v1892_v22 }
 0x4bf   : > { %738 = vadd.xlane.f32.xlu0 %v737_v43  ;;  %v750_v17 = vmul.f32 %v1935_v50, %v1287_v61  ;;  %v789_v22 = vmul.f32 %v1935_v50, %v1911_v13 }
 0x4c0   : > { %v847_v31 = vsel %vm830_vm5, %v844_v16, 0.0  ;;  %v779_v58 = vsel %vm428_vm3, %v774_v62, 0.0 }
 0x4c1   : > { %v755_v18 = vsel %vm428_vm3, %v750_v17, 0.0  ;;  %v794_v20 = vsel %vm428_vm3, %v789_v22, 0.0 }
 0x4c2   : > { %v721_v51 = vpop.permute.xlu0 %720 }
 0x4c3   : > { %vm724_vm15 = vcmp.ne.s32.totalorder %v721_v51, 0 }
 0x4c4   : > { %vm727_vm2 = vmand %vm709_vm14, %vm724_vm15 }
 0x4c5   : > { %v1940_v52 = vsel %vm727_vm2, 1.0, %v1505_v45  ;;  %vm684_vm2 = vcmp.gt.f32.partialorder %v1491_v2, -1.0 }
 0x4c6   : > { %v740_v53 = vsel %vm435_vm4, %v1940_v52, 0.0  ;;  %v817_v56 = vmul.f32 %v1940_v52, %v811_v48  ;;  %v775_v60 = vmul.f32 %v1940_v52, %v1897_v30  ;;  %v751_v19 = vmul.f32 %v1940_v52, %v1288_v39 }
 0x4c7   : > { %741 = vadd.xlane.f32.xlu2 %v740_v53  ;;  %v845_v30 = vmul.f32 %v1935_v50, %v1843_v55  ;;  %v790_v23 = vmul.f32 %v1940_v52, %v1916_v33  ;;  %v846_v13 = vmul.f32 %v1940_v52, %v1877_v32 }
 0x4c8   : > { %v782_v27 = vsel %vm435_vm4, %v775_v60, 0.0  ;;  %v758_v21 = vsel %vm435_vm4, %v751_v19, 0.0 }
 0x4c9   : > { %v850_v41 = vsel %vm830_vm5, %v845_v30, 0.0  ;;  %v797_v24 = vsel %vm435_vm4, %v790_v23, 0.0  ;;  %v853_v25 = vsel %vm837_vm6, %v846_v13, 0.0 }
 0x4d3   : > { %823 = vrot.lane.b32.xlu0 %v816_v54, %s1504_s15 }
 0x4df   : > { %825 = vrot.lane.b32.xlu2 %v817_v56, %s1504_s15 }
 0x4e1   : > { %777 = vadd.xlane.f32.xlu1 %v776_v34 }
 0x4e9   : > { %753 = vadd.xlane.f32.xlu1 %v752_v63  ;;  %v1508_v63 = vmov (%p60_p0), -1e+30  }
 0x4f1   : > { %792 = vadd.xlane.f32.xlu1 %v791_v15 }
 0x4f9   : > { %848 = vadd.xlane.f32.xlu1 %v847_v31 }
 0x4fd   : > { %780 = vadd.xlane.f32.xlu0 %v779_v58 }
 0x505   : > { %756 = vadd.xlane.f32.xlu0 %v755_v18 }
 0x508   : > { %783 = vadd.xlane.f32.xlu2 %v782_v27 }
 0x50d   : > { %795 = vadd.xlane.f32.xlu0 %v794_v20 }
 0x510   : > { %759 = vadd.xlane.f32.xlu2 %v758_v21 }
 0x511   : > { %v736_v26 = vpop.xlane.xlu1 %735 }
 0x512   : > { %vm743_vm10 = vcmp.gt.f32.partialorder %v736_v26, 0.5 }
 0x513   : > { %vm1984_vm11 = vmand %vm689_vm9, %vm743_vm10  ;;  %vm685_vm9 = vcmp.gt.f32.partialorder %v1487_v3, -1.0  ;;  %vm688_vm10 = vcmp.lt.f32.partialorder %v1487_v3, 1.0 }
 0x515   : > { %851 = vadd.xlane.f32.xlu0 %v850_v41 }
 0x518   : > { %798 = vadd.xlane.f32.xlu2 %v797_v24 }
 0x520   : > { %854 = vadd.xlane.f32.xlu2 %v853_v25 }
 0x529   : > { %v822_v28 = vpop.permute.xlu1 %821 }
 0x52a   : > { %v831_v29 = vsel %vm830_vm5, %v822_v28, 0.0 }
 0x52b   : > { %832 = vadd.xlane.f32.xlu1 %v831_v29 }
 0x532   : > { %v739_v35 = vpop.xlane.xlu0 %738 }
 0x533   : > { %vm744_vm7 = vcmp.gt.f32.partialorder %v739_v35, 0.5 }
 0x53a   : > { %v742_v55 = vpop.xlane.xlu2 %741 }
 0x542   : > { %v826_v33 = vpop.permute.xlu2 %825 }
 0x543   : > { %v838_v36 = vsel %vm837_vm6, %v826_v33, 0.0 }
 0x544   : > { %839 = vadd.xlane.f32.xlu2 %v838_v36 }
 0x545   : > { %v824_v61 = vpop.permute.xlu0 %823 }
 0x546   : > { %v834_v38 = vsel %vm830_vm5, %v824_v61, 0.0  ;;  %vm687_vm5 = vcmp.lt.f32.partialorder %v1491_v2, 1.0 }
 0x547   : > { %835 = vadd.xlane.f32.xlu0 %v834_v38  ;;  %vm690_vm6 = vmand %vm684_vm2, %vm687_vm5 }
 0x548   : > { %vm2004_vm8 = vmand %vm690_vm6, %vm744_vm7 }
 0x554   : > { %v778_v37 = vpop.xlane.xlu1 %777 }
 0x555   : > { %v785_v39 = vsel %vm1984_vm11, %v778_v37, 1.0 }
 0x556   : > { %1415 = vrcp.f32 %v785_v39  ;;  %v873_v45 = vand.u32 2147483648, %v785_v39  ;;  %v871_v49 = vand.u32 2147483647, %v785_v39  ;;  %vm867_vm13 = vweird.f32 %v785_v39 }
 0x558   : > { %v874_v43 = vor.u32 1.1754944e-38, %v873_v45  ;;  %vm872_vm15 = vcmp.eq.f32.partialorder %v871_v49, 8.507059e+37 }
 0x55c   : > { %v1416_v40 = vpop.eup %1415  ;;  %v754_v42 = vpop.xlane.xlu1 %753 }
 0x55d   : > { %v863_v48 = vmul.f32 %v1416_v40, %v785_v39  ;;  %vm868_vm12 = vweird.f32 %v1416_v40  ;;  %v859_v53 = vsub.f32 %v1495_v1, %v754_v42 }
 0x55e   : > { %vm869_vm14 = vmor %vm867_vm13, %vm868_vm12  ;;  %vm745_vm13 = vcmp.gt.f32.partialorder %v742_v55, 0.5 }
 0x55f   : > { %v864_v44 = vsub.f32 1.0, %v863_v48  ;;  %vm691_vm12 = vmand %vm685_vm9, %vm688_vm10 }
 0x561   : > { %v865_v47 = vmul.f32 %v1416_v40, %v864_v44 }
 0x563   : > { %v866_v14 = vadd.f32 %v1416_v40, %v865_v47 }
 0x564   : > { %v793_v54 = vpop.xlane.xlu1 %792 }
 0x565   : > { %v870_v51 = vsel %vm869_vm14, %v1416_v40, %v866_v14  ;;  %v1995_v34 = vsel %vm1984_vm11, %v793_v54, 1.0  ;;  %vm2023_vm14 = vmand %vm691_vm12, %vm745_vm13 }
 0x566   : > { %v875_v56 = vsel %vm872_vm15, %v874_v43, %v870_v51 }
 0x567   : > { %v1991_v57 = vmul.f32 %v875_v56, %v859_v53  ;;  %v2002_v59 = vmul.f32 %v875_v56, %v1995_v34 }
 0x569   : > { %1063 = vrot.lane.b32.xlu0 %v1991_v57, %s1506_s16  ;;  %v946_v15 = vmul.f32 2.0, %v2002_v59  ;;  %v2013_v62 = vsub.f32 1.0, %v1991_v57 }
 0x56b   : > { %v2019_v17 = vmul.f32 %v2013_v62, %v1991_v57 }
 0x56d   : > { %v1078_v24 = vmul.f32 %v946_v15, %v2019_v17 }
 0x570   : > { %v781_v0 = vpop.xlane.xlu0 %780 }
 0x571   : > { %v786_v16 = vsel %vm2004_vm8, %v781_v0, 1.0  ;;  %952 = vrot.lane.b32.xlu0 %v946_v15, %s1506_s16  ;;  %v849_v15 = vpop.xlane.xlu1 %848 }
 0x572   : > { %1417 = vrcp.f32 %v786_v16  ;;  %v888_v19 = vand.u32 2147483648, %v786_v16  ;;  %v886_v30 = vand.u32 2147483647, %v786_v16  ;;  %vm882_vm2 = vweird.f32 %v786_v16 }
 0x574   : > { %v889_v41 = vor.u32 1.1754944e-38, %v888_v19  ;;  %vm887_vm6 = vcmp.eq.f32.partialorder %v886_v30, 8.507059e+37  ;;  %v1096_v19 = vmul.f32 %v2013_v62, %v2013_v62 }
 0x578   : > { %v1418_v31 = vpop.eup %1417  ;;  %v757_v58 = vpop.xlane.xlu0 %756 }
 0x579   : > { %v878_v60 = vmul.f32 %v1418_v31, %v786_v16  ;;  %967 = vrot.lane.b32.xlu0 %v2019_v17, %s1506_s16  ;;  %vm883_vm15 = vweird.f32 %v1418_v31  ;;  %v860_v25 = vsub.f32 %v1491_v2, %v757_v58  ;;  %v916_v58 = vmul.f32 %v2002_v59, %v1991_v57 }
 0x57a   : > { %vm884_vm5 = vmor %vm882_vm2, %vm883_vm15 }
 0x57b   : > { %v879_v27 = vsub.f32 1.0, %v878_v60  ;;  %v784_v22 = vpop.xlane.xlu2 %783  ;;  %v919_v30 = vmul.f32 %v916_v58, %v1991_v57 }
 0x57c   : > { %v787_v20 = vsel %vm2023_vm14, %v784_v22, 1.0 }
 0x57d   : > { %v880_v21 = vmul.f32 %v1418_v31, %v879_v27  ;;  %1419 = vrcp.f32 %v787_v20  ;;  %v903_v38 = vand.u32 2147483648, %v787_v20  ;;  %v901_v40 = vand.u32 2147483647, %v787_v20 }
 0x57e   : > { %vm897_vm9 = vweird.f32 %v787_v20 }
 0x57f   : > { %v881_v23 = vadd.f32 %v1418_v31, %v880_v21  ;;  %v904_v48 = vor.u32 1.1754944e-38, %v903_v38  ;;  %vm902_vm12 = vcmp.eq.f32.partialorder %v901_v40, 8.507059e+37 }
 0x580   : > { %v796_v26 = vpop.xlane.xlu0 %795 }
 0x581   : > { %v885_v13 = vsel %vm884_vm5, %v1418_v31, %v881_v23  ;;  %1084 = vrot.lane.b32.xlu0 %v1078_v24, %s1506_s16  ;;  %v2036_v36 = vsel %vm2004_vm8, %v796_v26, 1.0 }
 0x582   : > { %v890_v28 = vsel %vm887_vm6, %v889_v41, %v885_v13 }
 0x583   : > { %v1420_v29 = vpop.eup %1419  ;;  %v2032_v55 = vmul.f32 %v890_v28, %v860_v25  ;;  %v760_v35 = vpop.xlane.xlu2 %759  ;;  %v2041_v37 = vmul.f32 %v890_v28, %v2036_v36 }
 0x584   : > { %v893_v33 = vmul.f32 %v1420_v29, %v787_v20  ;;  %vm898_vm7 = vweird.f32 %v1420_v29  ;;  %v861_v45 = vsub.f32 %v1487_v3, %v760_v35 }
 0x585   : > { %1065 = vrot.lane.b32.xlu1 %v2032_v55, %s1506_s16  ;;  %vm899_vm10 = vmor %vm897_vm9, %vm898_vm7  ;;  %v947_v44 = vmul.f32 2.0, %v2041_v37  ;;  %v911_v53 = vsub.f32 1.0, %v2032_v55  ;;  %v917_v57 = vmul.f32 %v2041_v37, %v2032_v55 }
 0x586   : > { %v894_v61 = vsub.f32 1.0, %v893_v33 }
 0x587   : > { %v914_v56 = vmul.f32 %v911_v53, %v2032_v55  ;;  %v1097_v33 = vmul.f32 %v911_v53, %v911_v53  ;;  %v920_v40 = vmul.f32 %v917_v57, %v2032_v55 }
 0x588   : > { %v895_v39 = vmul.f32 %v1420_v29, %v894_v61  ;;  %v852_v25 = vpop.xlane.xlu0 %851 }
 0x589   : > { %v1079_v31 = vmul.f32 %v947_v44, %v914_v56 }
 0x58a   : > { %v896_v42 = vadd.f32 %v1420_v29, %v895_v39 }
 0x58b   : > { %v799_v49 = vpop.xlane.xlu2 %798 }
 0x58c   : > { %v900_v47 = vsel %vm899_vm10, %v1420_v29, %v896_v42  ;;  %v802_v51 = vsel %vm2023_vm14, %v799_v49, 1.0  ;;  %v856_v49 = vadd.f32 %v1929_v46, %v849_v15 }
 0x58d   : > { %v905_v14 = vsel %vm902_vm12, %v904_v48, %v900_v47  ;;  %954 = vrot.lane.b32.xlu1 %v947_v44, %s1506_s16 }
 0x58e   : > { %v906_v43 = vmul.f32 %v905_v14, %v861_v45  ;;  %v2050_v54 = vmul.f32 %v905_v14, %v802_v51 }
 0x590   : > { %1067 = vrot.lane.b32.xlu2 %v906_v43, %s1506_s16  ;;  %v948_v0 = vmul.f32 2.0, %v2050_v54  ;;  %v912_v16 = vsub.f32 1.0, %v906_v43  ;;  %v918_v62 = vmul.f32 %v2050_v54, %v906_v43 }
 0x592   : > { %v915_v60 = vmul.f32 %v912_v16, %v906_v43  ;;  %v921_v35 = vmul.f32 %v918_v62, %v906_v43  ;;  %v1098_v42 = vmul.f32 %v912_v16, %v912_v16 }
 0x593   : > { %v855_v13 = vpop.xlane.xlu2 %854 }
 0x594   : > { %v1080_v41 = vmul.f32 %v948_v0, %v915_v60 }
 0x595   : > { %969 = vrot.lane.b32.xlu1 %v914_v56, %s1506_s16 }
 0x598   : > { %956 = vrot.lane.b32.xlu2 %v948_v0, %s1506_s16 }
 0x59d   : > { %1086 = vrot.lane.b32.xlu1 %v1079_v31, %s1506_s16  ;;  %v857_v31 = vadd.f32 %v1935_v50, %v852_v25 }
 0x59e   : > { %v833_v27 = vpop.xlane.xlu1 %832 }
 0x59f   : > { %v841_v22 = vadd.f32 %v1929_v46, %v833_v27 }
 0x5a0   : > { %971 = vrot.lane.b32.xlu2 %v915_v60, %s1506_s16 }
 0x5a1   : > { %v922_v20 = vmul.f32 %v2019_v17, %v841_v22  ;;  %v1099_v21 = vmul.f32 %v1096_v19, %v841_v22 }
 0x5a3   : > { %1105 = vrot.lane.b32.xlu0 %v1099_v21, %s1506_s16  ;;  %v925_v23 = vadd.f32 %v922_v20, %v919_v30 }
 0x5a5   : > { %934 = vrot.lane.b32.xlu1 %v841_v22, %s1506_s16  ;;  %v2068_v24 = vmul.f32 %v925_v23, %v1995_v34 }
 0x5a8   : > { %1088 = vrot.lane.b32.xlu2 %v1080_v41, %s1506_s16 }
 0x5b7   : > { %v840_v26 = vpop.xlane.xlu2 %839 }
 0x5b8   : > { %v843_v17 = vadd.f32 %v1940_v52, %v840_v26 }
 0x5ba   : > { %v924_v28 = vmul.f32 %v915_v60, %v843_v17  ;;  %v836_v29 = vpop.xlane.xlu0 %835  ;;  %938 = vrot.lane.b32.xlu2 %v843_v17, %s1506_s16  ;;  %v1101_v45 = vmul.f32 %v1098_v42, %v843_v17 }
 0x5bb   : > { %v842_v34 = vadd.f32 %v1935_v50, %v836_v29 }
 0x5bc   : > { %v927_v61 = vadd.f32 %v924_v28, %v921_v35 }
 0x5bd   : > { %v923_v38 = vmul.f32 %v914_v56, %v842_v34  ;;  %936 = vrot.lane.b32.xlu0 %v842_v34, %s1506_s16  ;;  %v1100_v39 = vmul.f32 %v1097_v33, %v842_v34  ;;  %v858_v56 = vadd.f32 %v1940_v52, %v855_v13 }
 0x5be   : > { %v2079_v48 = vmul.f32 %v927_v61, %v802_v51 }
 0x5bf   : > { %1107 = vrot.lane.b32.xlu1 %v1100_v39, %s1506_s16  ;;  %v926_v44 = vadd.f32 %v923_v38, %v920_v40  ;;  %v650_v40 = vpop.f32.mrf.mxu3 }
 0x5c0   : > { %v1296_v42 = vadd.f32 -1.0, %v650_v40 }
 0x5c1   : > { %v2083_v47 = vmul.f32 %v926_v44, %v2036_v36  ;;  %v644_v44 = vpop.f32.mrf.mxu0 }
 0x5c2   : > { %1109 = vrot.lane.b32.xlu2 %v1101_v45, %s1506_s16  ;;  %v763_v45 = vmul.f32 %v1940_v52, %v1296_v42 }
 0x5db   : > { %v1064_v14 = vpop.permute.xlu0 %1063 }
 0x5dc   : > { %v1072_v43 = vmul.f32 %v1064_v14, %v856_v49 }
 0x5de   : > { %v1075_v53 = vmul.f32 %v1072_v43, %v1064_v14  ;;  %v770_v14 = vsel %vm435_vm4, %v763_v45, 0.0 }
 0x5e3   : > { %v953_v15 = vpop.permute.xlu0 %952 }
 0x5ea   : > { %v1068_v55 = vpop.permute.xlu2 %1067 }
 0x5eb   : > { %v1074_v0 = vmul.f32 %v1068_v55, %v858_v56  ;;  %v968_v62 = vpop.permute.xlu0 %967 }
 0x5ed   : > { %v1077_v51 = vmul.f32 %v1074_v0, %v1068_v55 }
 0x5f2   : > { %v957_v16 = vpop.permute.xlu2 %956 }
 0x5f3   : > { %v1085_v35 = vpop.permute.xlu0 %1084 }
 0x5f7   : > { %v1066_v58 = vpop.permute.xlu1 %1065 }
 0x5f8   : > { %v1073_v60 = vmul.f32 %v1066_v58, %v857_v31 }
 0x5fa   : > { %v1076_v27 = vmul.f32 %v1073_v60, %v1066_v58  ;;  %v972_v36 = vpop.permute.xlu2 %971 }
 0x5ff   : > { %v955_v22 = vpop.permute.xlu1 %954 }
 0x602   : > { %v1089_v19 = vpop.permute.xlu2 %1088 }
 0x603   : > { %v1095_v20 = vadd.f32 %v1089_v19, %v1077_v51 }
 0x607   : > { %v970_v21 = vpop.permute.xlu1 %969 }
 0x60f   : > { %v1087_v30 = vpop.permute.xlu1 %1086 }
 0x610   : > { %v1094_v23 = vadd.f32 %v1087_v30, %v1076_v27  ;;  %v647_v27 = vpop.f32.mrf.mxu0 }
 0x614   : > { %v939_v41 = vpop.permute.xlu2 %938 }
 0x615   : > { %v945_v13 = vadd.f32 %v939_v41, %v858_v56  ;;  %v1106_v34 = vpop.permute.xlu0 %1105  ;;  %v1093_v56 = vadd.f32 %v1085_v35, %v1075_v53 }
 0x617   : > { %v963_v26 = vsub.f32 %v945_v13, %v957_v16  ;;  %v935_v17 = vpop.permute.xlu1 %934  ;;  %v1114_v51 = vadd.f32 %v1106_v34, %v1093_v56 }
 0x618   : > { %v943_v57 = vadd.f32 %v935_v17, %v856_v49  ;;  %v1294_v49 = vadd.f32 -1.0, %v644_v44 }
 0x619   : > { %v978_v28 = vmul.f32 %v972_v36, %v963_v26  ;;  %v1295_v36 = vadd.f32 -1.0, %v647_v27 }
 0x61a   : > { %v961_v29 = vsub.f32 %v943_v57, %v953_v15  ;;  %v761_v43 = vmul.f32 %v1929_v46, %v1294_v49 }
 0x61b   : > { %986 = vrot.lane.b32.xlu2 %v978_v28, %s1507_s17  ;;  %v762_v46 = vmul.f32 %v1935_v50, %v1295_v36 }
 0x61c   : > { %v976_v25 = vmul.f32 %v968_v62, %v961_v29  ;;  %v1110_v55 = vpop.permute.xlu2 %1109  ;;  %v764_v0 = vsel %vm428_vm3, %v761_v43, 0.0 }
 0x61d   : > { %v1116_v16 = vadd.f32 %v1110_v55, %v1095_v20  ;;  %v767_v53 = vsel %vm428_vm3, %v762_v46, 0.0 }
 0x61e   : > { %982 = vrot.lane.b32.xlu0 %v976_v25, %s1507_s17 }
 0x61f   : > { %v1119_v58 = vmax.f32 %v1116_v16, 1e-30 }
 0x62f   : > { %v937_v33 = vpop.permute.xlu0 %936 }
 0x630   : > { %v944_v61 = vadd.f32 %v937_v33, %v857_v31  ;;  %v1117_v31 = vmax.f32 %v1114_v51, 1e-30 }
 0x631   : > { %v1108_v20 = vpop.permute.xlu1 %1107 }
 0x632   : > { %v962_v38 = vsub.f32 %v944_v61, %v955_v22  ;;  %1421 = vlog2.f32 %v1117_v31 }
 0x633   : > { %1423 = vlog2.f32 %v1119_v58 }
 0x634   : > { %v977_v39 = vmul.f32 %v970_v21, %v962_v38  ;;  %v1115_v21 = vadd.f32 %v1108_v20, %v1094_v23 }
 0x636   : > { %984 = vrot.lane.b32.xlu1 %v977_v39, %s1507_s17  ;;  %v1118_v15 = vmax.f32 %v1115_v21, 1e-30  ;;  %v1050_v39 = vmax.f32 %v2050_v54, 1e-30 }
 0x638   : > { %v1422_v60 = vpop.eup %1421  ;;  %1425 = vlog2.f32 %v1118_v15 }
 0x639   : > { %v1424_v52 = vpop.eup %1423  ;;  %v1121_v22 = vmul.f32 0.6931472, %v1422_v60 }
 0x63a   : > { %v1125_v19 = vmul.f32 0.6931472, %v1424_v52 }
 0x63e   : > { %v1426_v30 = vpop.eup %1425 }
 0x63f   : > { %v1123_v41 = vmul.f32 0.6931472, %v1426_v30 }
 0x644   : > { %771 = vadd.xlane.f32.xlu2 %v770_v14 }
 0x648   : > { %765 = vadd.xlane.f32.xlu0 %v764_v0 }
 0x65c   : > { %1129 = vrot.lane.b32.xlu0 %v1121_v22, %s1507_s17  ;;  %1133 = vrot.lane.b32.xlu2 %v1125_v19, %s1507_s17 }
 0x660   : > { %768 = vadd.xlane.f32.xlu1 %v767_v53  ;;  %v1048_v53 = vmax.f32 %v2002_v59, 1e-30 }
 0x675   : > { %v987_v62 = vpop.permute.xlu2 %986 }
 0x676   : > { %v993_v13 = vadd.f32 %v987_v62, %v2050_v54 }
 0x678   : > { %1427 = vrcp.f32 %v993_v13  ;;  %v1035_v38 = vand.u32 2147483648, %v993_v13  ;;  %vm1029_vm4 = vweird.f32 %v993_v13  ;;  %v1033_v40 = vand.u32 2147483647, %v993_v13 }
 0x679   : > { %1131 = vrot.lane.b32.xlu1 %v1123_v41, %s1507_s17  ;;  %v1143_v42 = vmax.f32 %v993_v13, 1e-30 }
 0x67a   : > { %v1036_v14 = vor.u32 1.1754944e-38, %v1035_v38  ;;  %vm1034_vm2 = vcmp.eq.f32.partialorder %v1033_v40, 8.507059e+37 }
 0x67e   : > { %v1428_v17 = vpop.eup %1427 }
 0x67f   : > { %v1025_v57 = vmul.f32 %v1428_v17, %v993_v13  ;;  %vm1030_vm3 = vweird.f32 %v1428_v17 }
 0x680   : > { %vm1031_vm13 = vmor %vm1029_vm4, %vm1030_vm3 }
 0x681   : > { %v1026_v29 = vsub.f32 1.0, %v1025_v57 }
 0x683   : > { %v1027_v23 = vmul.f32 %v1428_v17, %v1026_v29 }
 0x685   : > { %v1028_v33 = vadd.f32 %v1428_v17, %v1027_v23 }
 0x687   : > { %v1032_v45 = vsel %vm1031_vm13, %v1428_v17, %v1028_v33 }
 0x688   : > { %v1037_v54 = vsel %vm1034_vm2, %v1036_v14, %v1032_v45 }
 0x689   : > { %v1038_v51 = vmul.f32 %v1037_v54, %v2079_v48 }
 0x690   : > { %v983_v26 = vpop.permute.xlu0 %982 }
 0x691   : > { %v991_v50 = vadd.f32 %v983_v26, %v2002_v59 }
 0x693   : > { %1429 = vrcp.f32 %v991_v50  ;;  %v1005_v43 = vand.u32 2147483648, %v991_v50  ;;  %vm999_vm5 = vweird.f32 %v991_v50  ;;  %v1003_v56 = vand.u32 2147483647, %v991_v50 }
 0x694   : > { %1431 = vlog2.f32 %v1050_v39  ;;  %v1141_v62 = vmax.f32 %v991_v50, 1e-30 }
 0x695   : > { %1433 = vlog2.f32 %v1143_v42  ;;  %v1006_v0 = vor.u32 1.1754944e-38, %v1005_v43  ;;  %vm1004_vm7 = vcmp.eq.f32.partialorder %v1003_v56, 8.507059e+37 }
 0x699   : > { %v1430_v28 = vpop.eup %1429 }
 0x69a   : > { %v995_v25 = vmul.f32 %v1430_v28, %v991_v50  ;;  %vm1000_vm15 = vweird.f32 %v1430_v28  ;;  %v1432_v16 = vpop.eup %1431 }
 0x69b   : > { %vm1001_vm6 = vmor %vm999_vm5, %vm1000_vm15  ;;  %v1434_v60 = vpop.eup %1433  ;;  %v1056_v19 = vmul.f32 0.6931472, %v1432_v16  ;;  %vm1180_vm5 = vcmask (%p60_p0), 7168  }
 0x69c   : > { %v996_v35 = vsub.f32 1.0, %v995_v25  ;;  %v1149_v21 = vmul.f32 0.6931472, %v1434_v60 }
 0x69d   : > { %v1059_v41 = vmul.f32 2.0, %v1056_v19 }
 0x69e   : > { %v997_v61 = vmul.f32 %v1430_v28, %v996_v35  ;;  %v1152_v26 = vmul.f32 2.0, %v1149_v21 }
 0x6a0   : > { %v998_v49 = vadd.f32 %v1430_v28, %v997_v61 }
 0x6a2   : > { %v1002_v55 = vsel %vm1001_vm6, %v1430_v28, %v998_v49 }
 0x6a3   : > { %v1007_v58 = vsel %vm1004_vm7, %v1006_v0, %v1002_v55 }
 0x6a4   : > { %v1008_v22 = vmul.f32 %v1007_v58, %v2068_v24 }
 0x6a8   : > { %v985_v34 = vpop.permute.xlu1 %984 }
 0x6a9   : > { %v2105_v44 = vadd.f32 %v985_v34, %v2041_v37 }
 0x6ab   : > { %1435 = vrcp.f32 %v2105_v44  ;;  %v1020_v34 = vand.u32 2147483648, %v2105_v44  ;;  %vm1014_vm10 = vweird.f32 %v2105_v44  ;;  %v1142_v16 = vmax.f32 %v2105_v44, 1e-30 }
 0x6ac   : > { %1437 = vlog2.f32 %v1048_v53 }
 0x6ad   : > { %1439 = vlog2.f32 %v1141_v62  ;;  %v1021_v38 = vor.u32 1.1754944e-38, %v1020_v34 }
 0x6b1   : > { %v1436_v52 = vpop.eup %1435 }
 0x6b2   : > { %v1010_v15 = vmul.f32 %v1436_v52, %v2105_v44  ;;  %v1438_v29 = vpop.eup %1437  ;;  %vm1015_vm9 = vweird.f32 %v1436_v52 }
 0x6b3   : > { %v1440_v50 = vpop.eup %1439  ;;  %v1052_v35 = vmul.f32 0.6931472, %v1438_v29  ;;  %vm1016_vm12 = vmor %vm1014_vm10, %vm1015_vm9  ;;  %vm1183_vm9 = vcmask (%p60_p0), 3072  }
 0x6b4   : > { %v1011_v17 = vsub.f32 1.0, %v1010_v15  ;;  %v1145_v33 = vmul.f32 0.6931472, %v1440_v50 }
 0x6b5   : > { %v1057_v18 = vmul.f32 2.0, %v1052_v35 }
 0x6b6   : > { %v1012_v28 = vmul.f32 %v1436_v52, %v1011_v17  ;;  %v1150_v40 = vmul.f32 2.0, %v1145_v33 }
 0x6b7   : > { %v772_v31 = vpop.xlane.xlu2 %771 }
 0x6b8   : > { %v1041_v27 = vadd.f32 %v1038_v51, %v772_v31  ;;  %v1013_v23 = vadd.f32 %v1436_v52, %v1012_v28  ;;  %v1049_v51 = vmax.f32 %v2041_v37, 1e-30 }
 0x6ba   : > { %v1302_v36 = vclamps-f32 %v1041_v27, 1.0  ;;  %v1017_v61 = vsel %vm1016_vm12, %v1436_v52, %v1013_v23  ;;  %1441 = vlog2.f32 %v1049_v51 }
 0x6bb   : > { %v766_v46 = vpop.xlane.xlu0 %765  ;;  %1443 = vlog2.f32 %v1142_v16 }
 0x6bc   : > { %v2114_v3 = vsel %vm2023_vm14, %v1302_v36, %v1487_v3   ;;  %v1039_v48 = vadd.f32 %v1008_v22, %v766_v46 }
 0x6bd   : > { %v2188_v20 = vmov %v2114_v3 }
 0x6be   : > { %v1300_v30 = vclamps-f32 %v1039_v48, 1.0  ;;  %vm1167_vm15 = vcmp.ge.f32.partialorder (%p60_p0), %v2188_v20, -1.0  ;;  %vm1170_vm2 = vcmp.le.f32.partialorder (%p60_p0), %v2188_v20, 1.0 }
 0x6bf   : > { %v1134_v13 = vpop.permute.xlu2 %1133  ;;  %vm1173_vm7 = vmand (%p60_p0), %vm1167_vm15, %vm1170_vm2 }
 0x6c0   : > { %v1156_v24 = vsel %vm1984_vm11, %v1300_v30, %v1495_v1   ;;  %v1140_v59 = vadd.f32 %v1134_v13, %v1059_v41  ;;  %v1018_v1 = vand.u32 2147483647, %v2105_v44  ;;  %v1442_v31 = vpop.eup %1441  ;;  %v1176_v48 = vsel (%p60_p0), %vm1173_vm7, -0.6931472, %v1508_v63 }
 0x6c1   : > { %v1054_v58 = vmul.f32 0.6931472, %v1442_v31 }
 0x6c2   : > { %v1155_v57 = vsub.f32 %v1140_v59, %v1152_v26 }
 0x6c3   : > { %v1058_v60 = vmul.f32 2.0, %v1054_v58 }
 0x6c4   : > { %v1161_v3 = vsel %vm2023_vm14, %v1155_v57, 0.0  ;;  %vm1019_vm14 = vcmp.eq.f32.partialorder %v1018_v1, 8.507059e+37  ;;  %v2195_v1 = vmov %v1156_v24 }
 0x6c5   : > { %v2123_v10 = vadd.f32 %v1475_v10, %v1161_v3   ;;  %v2193_v3 = vmov %v2188_v20 }
 0x6c7   : > { %v2189_v25 = vmov %v2123_v10  ;;  %v1022_v10 = vsel %vm1019_vm14, %v1021_v38, %v1017_v61 }
 0x6c8   : > { %v1023_v49 = vmul.f32 %v1022_v10, %v2083_v47  ;;  %v1444_v47 = vpop.eup %1443  ;;  %v2190_v10 = vmov %v2189_v25 }
 0x6c9   : > { %v1147_v32 = vmul.f32 0.6931472, %v1444_v47 }
 0x6cb   : > { %v1151_v52 = vmul.f32 2.0, %v1147_v32 }
 0x6ce   : > { %v1130_v39 = vpop.permute.xlu0 %1129 }
 0x6cf   : > { %v1138_v42 = vadd.f32 %v1130_v39, %v1057_v18 }
 0x6d1   : > { %v1153_v45 = vsub.f32 %v1138_v42, %v1150_v40 }
 0x6d3   : > { %v1159_v14 = vsel %vm1984_vm11, %v1153_v45, 0.0  ;;  %v769_v43 = vpop.xlane.xlu1 %768  ;;  %vm1165_vm11 = vcmp.ge.f32.partialorder (%p60_p0), %v1156_v24, -1.0 }
 0x6d4   : > { %v1162_v56 = vadd.f32 %v1483_v12, %v1159_v14   ;;  %v1040_v54 = vadd.f32 %v1023_v49, %v769_v43 }
 0x6d6   : > { %v1301_v55 = vclamps-f32 %v1040_v54, 1.0 }
 0x6d8   : > { %v1157_v0 = vsel %vm2004_vm8, %v1301_v55, %v1491_v2  }
 0x6d9   : > { %v2194_v2 = vmov %v1157_v0  ;;  %vm1166_vm4 = vcmp.ge.f32.partialorder (%p60_p0), %v1157_v0, -1.0  ;;  %vm1169_vm13 = vcmp.le.f32.partialorder (%p60_p0), %v1157_v0, 1.0 }
 0x6da   :  { %vm1172_vm6 = vmand (%p60_p0), %vm1166_vm4, %vm1169_vm13  ;;  %v1179_v2 = vadd.f32 (%p60_p0), %v1176_v48, %v2189_v25 }
 0x6db   :  { %v1175_v46 = vsel (%p60_p0), %vm1172_vm6, -0.6931472, %v1508_v63 }
 0x6dc   :  { %1184 = vst.msk [vmem:[%s2181_s12 + $0x10] sm:$0xf] (%p60_p0), %vm1183_vm9, %v1179_v2 }
 0x6eb   : > { %v1132_v27 = vpop.permute.xlu1 %1131 }
 0x6ec   : > { %v1139_v12 = vadd.f32 %v1132_v27, %v1058_v60 }
 0x6ee   : > { %v1154_v36 = vsub.f32 %v1139_v12, %v1151_v52  ;;  %v2192_v12 = vmov %v1162_v56 }
 0x6ef   :  { %62 = sbr.rel (!%p60_p0) target bundleno = 7 (0x7), region = 89 }
 0x6f0   : > { %v1160_v22 = vsel %vm2004_vm8, %v1154_v36, 0.0  ;;  %vm1168_vm8 = vcmp.le.f32.partialorder (%p60_p0), %v1156_v24, 1.0 }
 0x6f1   : > { %v1163_v19 = vadd.f32 %v1479_v11, %v1160_v22   ;;  %vm1171_vm3 = vmand (%p60_p0), %vm1165_vm11, %vm1168_vm8 }
 0x6f2   :  { %v1174_v37 = vsel (%p60_p0), %vm1171_vm3, -0.6931472, %v1508_v63 }
 0x6f3   : > { %v2191_v11 = vmov %v1163_v19  ;;  %v1177_v44 = vadd.f32 (%p60_p0), %v1174_v37, %v1162_v56  ;;  %v1178_v53 = vadd.f32 (%p60_p0), %v1175_v46, %v1163_v19 }
 0x6f5   :  { %1181 = vst.msk [vmem:[%s2181_s12] sm:$0xff] %vm1180_vm5, %v1177_v44 }
 0x6f6   :  { %1182 = vst.msk [vmem:[%s2181_s12 + $0x8] sm:$0xff] %vm1180_vm5, %v1178_v53 }

// kernel: flow_existjet_forward.2
= control target key start
LH: loop header
LB: loop body
LE: loop exit
PB: predicated region body
PF: predicated region fallthrough
CT: control target
= control target key end

     0   :  { %s5990_s29 = smov 0   ;;  %s7521_s0 = inlined_call_operand.vmem [shape: f32[2,19,4], index: 0, kind: input, shape index: {}]   ;;  %s7522_s1 = inlined_call_operand.vmem [shape: f32[2,19,1], index: 1, kind: input, shape index: {}]   ;;  %s7523_s2 = inlined_call_operand.vmem [shape: f32[2,8,4], index: 2, kind: input, shape index: {}]   ;;  %s7524_s3 = inlined_call_operand.vmem [shape: f32[19,19], index: 3, kind: input, shape index: {}]   ;;  %s7525_s4 = inlined_call_operand.vmem [shape: f32[4,64], index: 4, kind: input, shape index: {}]   ;;  %s7526_s5 = inlined_call_operand.vmem [shape: f32[1,64], index: 5, kind: input, shape index: {}]   ;;  %s7527_s6 = inlined_call_operand.vmem [shape: f32[4,64], index: 6, kind: input, shape index: {}]   ;;  %s7528_s7 = inlined_call_operand.vmem [shape: f32[1,64], index: 7, kind: input, shape index: {}]   ;;  %s7529_s8 = inlined_call_operand.vmem [shape: f32[4,4,64,64], index: 8, kind: input, shape index: {}]   ;;  %s7530_s9 = inlined_call_operand.vmem [shape: f32[4,4,1,64], index: 9, kind: input, shape index: {}]   ;;  %s7531_s10 = inlined_call_operand.vmem [shape: f32[4,4,1,64], index: 10, kind: input, shape index: {}]   ;;  %s7532_s11 = inlined_call_operand.vmem [shape: f32[4,64,128], index: 11, kind: input, shape index: {}]   ;;  %s7533_s12 = inlined_call_operand.vmem [shape: f32[4,1,128], index: 12, kind: input, shape index: {}]   ;;  %s7534_s13 = inlined_call_operand.vmem [shape: f32[4,128,64], index: 13, kind: input, shape index: {}]   ;;  %s7535_s14 = inlined_call_operand.vmem [shape: f32[4,1,64], index: 14, kind: input, shape index: {}]   ;;  %s7536_s15 = inlined_call_operand.vmem [shape: f32[4,4,64,64], index: 15, kind: input, shape index: {}]   ;;  %s7537_s16 = inlined_call_operand.vmem [shape: f32[4,4,1,64], index: 16, kind: input, shape index: {}]   ;;  %s7538_s17 = inlined_call_operand.vmem [shape: f32[4,4,64,64], index: 17, kind: input, shape index: {}]   ;;  %s7539_s18 = inlined_call_operand.vmem [shape: f32[4,4,1,64], index: 18, kind: input, shape index: {}]   ;;  %s7540_s19 = inlined_call_operand.vmem [shape: f32[4,6,1,64], index: 19, kind: input, shape index: {}]   ;;  %s7541_s20 = inlined_call_operand.vmem [shape: f32[4,64,128], index: 20, kind: input, shape index: {}]   ;;  %s7542_s21 = inlined_call_operand.vmem [shape: f32[4,1,128], index: 21, kind: input, shape index: {}]   ;;  %s7543_s22 = inlined_call_operand.vmem [shape: f32[4,128,64], index: 22, kind: input, shape index: {}]   ;;  %s7544_s23 = inlined_call_operand.vmem [shape: f32[4,1,64], index: 23, kind: input, shape index: {}]   ;;  %s7545_s24 = inlined_call_operand.vmem [shape: f32[4,1,64], index: 24, kind: input, shape index: {}]   ;;  %s7546_s25 = inlined_call_operand.vmem [shape: f32[2,19,64], index: 25, kind: output, shape index: {}]  }
   0x1   :  { %7569 = sst [smem:[#allocation3_spill]] %s7521_s0 }
   0x2   :  { %7570 = sst [smem:[#allocation4_spill]] %s7522_s1 }
   0x3   :  { %7571 = sst [smem:[#allocation5_spill]] %s7523_s2 }
   0x4   :  { %7572 = sst [smem:[#allocation6_spill]] %s7524_s3 }
   0x5   :  { %7573 = sst [smem:[#allocation7_spill]] %s7525_s4 }
   0x6   :  { %7574 = sst [smem:[#allocation8_spill]] %s7526_s5 }
   0x7   :  { %7575 = sst [smem:[#allocation9_spill]] %s7527_s6 }
   0x8   :  { %7576 = sst [smem:[#allocation10_spill]] %s7528_s7 }
   0x9   :  { %7577 = sst [smem:[#allocation11_spill]] %s7529_s8 }
   0xa   :  { %7578 = sst [smem:[#allocation12_spill]] %s7530_s9 }
   0xb   :  { %7579 = sst [smem:[#allocation13_spill]] %s7544_s23 }
   0xc LB: > { %7580 = sst [smem:[#allocation2_spill]] %s5804_s29  ;;  %s5044_s2 = sadd.s32 4294967295, %s5804_s29   ;;  %s5804_s29 = sphi %s5990_s29, %s35_s29  }
   0xd   : > { %p5048_p0 = scmp.ge.s32.totalorder %s5804_s29, 1  ;;  %p706_p1 = scmp.lt.s32.totalorder %s5804_s29, 3 }
   0xf   : > { %p707_p2 = pnand %p5048_p0, %p706_p1 }
  0x10   : > { %s7581_s7 = sld [smem:[#allocation6_spill]] (!%p707_p2)  ;;  %p783_p3 = scmp.lt.s32.totalorder (!%p707_p2), %s5044_s2, 1 }
  0x11   : > { %710 = sbr.rel (%p707_p2) target bundleno = 6130 (0x17f2), region = 120  ;;  %s7582_s28 = sld [smem:[#allocation9_spill]] (!%p707_p2) }
  0x12   : > { %s7583_s0 = sld [smem:[#allocation7_spill]] (!%p707_p2) }
  0x13   : > { %s7584_s1 = sld [smem:[#allocation5_spill]] (!%p707_p2) }
  0x14   : > { %s7586_s23 = sld [smem:[#allocation4_spill]] (!%p707_p2) }
  0x15   : > { %s7588_s29 = sld [smem:[#allocation8_spill]] (!%p707_p2) }
  0x16   : > { %v6001_v0 = vld [vmem:[%s7581_s7] sm:$0xff]  ;;  %v6006_v1 = vld [vmem:[%s7581_s7 + $0x8] sm:$0xff]  ;;  %v6011_v2 = vld [vmem:[%s7581_s7 + $0x10] sm:$0x7]  ;;  %vm821_vm0 = vcmask 1043456   ;;  %s7607_s2 = smov (!%p783_p3, %s5044_s2), 1 }
  0x17   : > { %v812_v3 = vld [vmem:[%s7582_s28] sm:$0xf]  ;;  %s5346_s6 = smul.u32 24, %s7607_s2  ;;  %s5051_s30 = sshll.u32 %s7607_s2, 3  ;;  %vm817_vm1 = vcmask 31744   ;;  %v5830_v5 = vmov 0  }
  0x18   : > { %v854_v4 = vld [vmem:[%s7583_s0] sm:$0xf]  ;;  %5053 = vmatpush.msk.msra.mxu0 %vm821_vm0, %v812_v3  ;;  %5433 = vset.pattern.permute.xlu0 %v5830_v5  ;;  %s7585_s0 = sld [smem:[#allocation3_spill]] }
  0x19   : > { %5055 = vmatpush.msk.msra.mxu1 %vm821_vm0, %v854_v4  ;;  %5341 = vmatpush.msk.msra.mxu2 %vm821_vm0, %v854_v4  ;;  %s796_s8 = scalar_lea.vmem %s7584_s1, %s5051_s30  ;;  %s6025_s28 = scalar_lea.vmem %s7546_s25, %s5346_s6 }
  0x1a   : > { %5342 = vmatpush.msk.msra.mxu3 %vm821_vm0, %v854_v4  ;;  %5434 = vset.pattern.permute.xlu1 %v5830_v5  ;;  %v808_v6 = vld [vmem:[%s796_s8] sm:$0xff]  ;;  %s792_s3 = scalar_lea.vmem %s7586_s23, %s5346_s6  ;;  %s7587_s1 = sld [smem:[#allocation10_spill]] }
  0x1b   : > { %5054 = vmatmul.msk.f32.vlgmr.msra.gmra.mxu0 %vm817_vm1, %v808_v6  ;;  %v805_v10 = vld [vmem:[%s792_s3] sm:$0xff]  ;;  %v807_v11 = vld [vmem:[%s792_s3 + $0x10] sm:$0x7]  ;;  %v806_v12 = vld [vmem:[%s792_s3 + $0x8] sm:$0xff]  ;;  %s6051_s23 = smov 0  }
  0x1c   : > { %899 = vperm.xlu0 %5433, %v805_v10   ;;  %909 = vperm.xlu1 %5434, %v807_v11   ;;  %v5436_v14 = vld [vmem:[%s7588_s29] ss:$0 sm:$0xff] }
  0x1e   : > { %s787_s7 = scalar_lea.vmem %s7585_s0, %s5346_s6 }
  0x1f   : > { %v802_v7 = vld [vmem:[%s787_s7] sm:$0xff]  ;;  %v803_v8 = vld [vmem:[%s787_s7 + $0x8] sm:$0xff]  ;;  %v804_v9 = vld [vmem:[%s787_s7 + $0x10] sm:$0x7] }
  0x20   : > { %5056 = vmatmul.msk.f32.vlgmr.msra.gmra.mxu1 %vm817_vm1, %v802_v7  ;;  %5057 = vmatmul.msk.f32.vlgmr.msra.gmra.mxu2 %vm817_vm1, %v803_v8  ;;  %v5435_v13 = vld [vmem:[%s7587_s1] ss:$0 sm:$0xff] }
  0x21   : > { %5058 = vmatmul.msk.f32.vlgmr.msra.gmra.mxu3 %vm817_vm1, %v804_v9 }
  0x24   : > { %904 = vperm.xlu0 %5433, %v806_v12  }
  0x8e   : > { %v900_v15 = vpop.permute.xlu0 %899  ;;  %v910_v29 = vpop.permute.xlu1 %909 }
  0x96   : > { %v905_v31 = vpop.permute.xlu0 %904 }
  0x98   : > { %v842_v16 = vpop.f32.mrf.mxu0 }
  0x99   : > { %v843_v17 = vadd.f32 %v5435_v13, %v842_v16 }
  0x9b   : > { %v846_v20 = vmul.f32 0.044715, %v843_v17  ;;  %v845_v48 = vmul.f32 0.5, %v843_v17 }
  0x9d   : > { %v888_v18 = vpop.f32.mrf.mxu1  ;;  %v847_v22 = vmul.f32 %v846_v20, %v843_v17 }
  0x9e   : > { %v889_v19 = vadd.f32 %v5436_v14, %v888_v18 }
  0x9f   : > { %v848_v24 = vmul.f32 %v847_v22, %v843_v17 }
  0xa0   : > { %v912_v21 = vmul.f32 %v900_v15, %v889_v19 }
  0xa1   : > { %v849_v30 = vadd.f32 %v848_v24, %v843_v17 }
  0xa2   : > { %v918_v23 = vmul.f32 0.044715, %v912_v21  ;;  %v915_v54 = vmul.f32 0.5, %v912_v21 }
  0xa3   : > { %v891_v25 = vpop.f32.mrf.mxu2  ;;  %v850_v35 = vmul.f32 0.7978846, %v849_v30 }
  0xa4   : > { %v921_v26 = vmul.f32 %v918_v23, %v912_v21  ;;  %v892_v27 = vadd.f32 %v5436_v14, %v891_v25  ;;  %v894_v28 = vpop.f32.mrf.mxu3 }
  0xa5   : > { %v895_v32 = vadd.f32 %v5436_v14, %v894_v28  ;;  %5437 = vtanh.f32 %v850_v35 }
  0xa6   : > { %v924_v33 = vmul.f32 %v921_v26, %v912_v21  ;;  %v913_v34 = vmul.f32 %v905_v31, %v892_v27 }
  0xa7   : > { %v914_v36 = vmul.f32 %v910_v29, %v895_v32 }
  0xa8   : > { %v927_v37 = vadd.f32 %v924_v33, %v912_v21  ;;  %v919_v38 = vmul.f32 0.044715, %v913_v34  ;;  %v916_v59 = vmul.f32 0.5, %v913_v34 }
  0xa9   : > { %v920_v39 = vmul.f32 0.044715, %v914_v36  ;;  %v917_v61 = vmul.f32 0.5, %v914_v36 }
  0xaa   : > { %v930_v40 = vmul.f32 0.7978846, %v927_v37  ;;  %v922_v41 = vmul.f32 %v919_v38, %v913_v34 }
  0xab   : > { %v923_v42 = vmul.f32 %v920_v39, %v914_v36  ;;  %v5438_v46 = vpop.eup %5437 }
  0xac   : > { %5439 = vtanh.f32 %v930_v40  ;;  %v925_v43 = vmul.f32 %v922_v41, %v913_v34  ;;  %v852_v49 = vadd.f32 1.0, %v5438_v46 }
  0xad   : > { %v926_v44 = vmul.f32 %v923_v42, %v914_v36 }
  0xae   : > { %v928_v45 = vadd.f32 %v925_v43, %v913_v34  ;;  %v853_v53 = vmul.f32 %v852_v49, %v845_v48  }
  0xaf   : > { %v929_v47 = vadd.f32 %v926_v44, %v914_v36 }
  0xb0   : > { %v931_v50 = vmul.f32 0.7978846, %v928_v45 }
  0xb1   : > { %v932_v51 = vmul.f32 0.7978846, %v929_v47 }
  0xb2   : > { %v5440_v52 = vpop.eup %5439  ;;  %5441 = vtanh.f32 %v931_v50 }
  0xb3   : > { %v936_v55 = vadd.f32 1.0, %v5440_v52  ;;  %5443 = vtanh.f32 %v932_v51 }
  0xb5   : > { %v6043_v56 = vmul.f32 %v936_v55, %v915_v54  }
  0xb8   : > { %v5442_v57 = vpop.eup %5441 }
  0xb9   : > { %v5444_v58 = vpop.eup %5443  ;;  %v937_v60 = vadd.f32 1.0, %v5442_v57 }
  0xba   : > { %v938_v62 = vadd.f32 1.0, %v5444_v58 }
  0xbb   : > { %v6045_v63 = vmul.f32 %v937_v60, %v916_v59  }
  0xbc   : > { %v6047_v3 = vmul.f32 %v938_v62, %v917_v61  }
  0xbd LB: >> { %s5060_s6 = sshll.u32 %s5812_s23, 8  ;;  %s7589_s9 = sld [smem:[#allocation11_spill]]  ;;  %vm973_vm2 = vcmask 523264   ;;  %vm1063_vm3 = vcmask 64512   ;;  %vm1617_vm4 = vcmask 130048   ;;  %vm1619_vm5 = vcmask 195584   ;;  %s5812_s23 = sphi %s6051_s23, %s947_s23   ;;  %v5808_v53 = vphi %v853_v53, %v7591_v53  }
  0xbe   : >> { %s5059_s0 = sshll.u32 %s5812_s23, 2  ;;  %s7590_s7 = sld [smem:[#allocation12_spill]]  ;;  %vm1621_vm6 = vcmask 261120   ;;  %vm1623_vm7 = vcmask 326656   ;;  %vm1625_vm8 = vcmask 392192   ;;  %vm1627_vm9 = vcmask 457728  }
  0xbf   : >> { %s6078_s30 = scalar_lea.vmem %s7531_s10, %s5059_s0  ;;  %s5831_s29 = smov 112  }
  0xc0   : >> { %s5833_s27 = smov 104   ;;  %s5834_s4 = smov 88  }
  0xc1   : >> { %s5837_s2 = smov 72   ;;  %s5838_s3 = smov 16  }
  0xc2   : >> { %s5839_s26 = smov 8   ;;  %s5840_s1 = smov 24  }
  0xc3   : >> { %s6063_s5 = scalar_lea.vmem %s7589_s9, %s5060_s6  ;;  %s5832_s6 = smov 120  }
  0xc4   : >> { %v969_v4 = vld [vmem:[%s6063_s5 + $0x38] sm:$0xff]  ;;  %v968_v6 = vld [vmem:[%s6063_s5 + $0x30] sm:$0xff]  ;;  %v967_v8 = vld [vmem:[%s6063_s5 + $0x28] sm:$0xff]  ;;  %s6084_s8 = scalar_lea.vmem %s7590_s7, %s5059_s0  ;;  %s5835_s9 = smov 96  }
  0xc5   : >> { %v5070_v5 = vld [vmem:[%s6063_s5 + $0x78] sm:$0xff]  ;;  %985 = vmatpush.msra.mxu0 %v969_v4  ;;  %v5069_v7 = vld [vmem:[%s6063_s5 + $0x70] sm:$0xff]  ;;  %v5068_v9 = vld [vmem:[%s6063_s5 + $0x68] sm:$0xff]  ;;  %s5836_s0 = smov 80   ;;  %s5841_s7 = smov 32  }
  0xc6   : >> { %1018 = vmatpush.msra.mxu1 %v5070_v5  ;;  %v966_v10 = vld [vmem:[%s6063_s5 + $0x20] sm:$0xff]  ;;  %v965_v12 = vld [vmem:[%s6063_s5 + $0x18] sm:$0xff]  ;;  %v964_v14 = vld [vmem:[%s6063_s5 + $0x10] sm:$0xff] }
  0xc7   : >> { %986 = vmatpush.msra.mxu0 %v968_v6  ;;  %v5067_v11 = vld [vmem:[%s6063_s5 + $0x60] sm:$0xff]  ;;  %v5066_v13 = vld [vmem:[%s6063_s5 + $0x58] sm:$0xff]  ;;  %v5065_v15 = vld [vmem:[%s6063_s5 + $0x50] sm:$0xff] }
  0xc8   : >> { %1019 = vmatpush.msra.mxu1 %v5069_v7  ;;  %v963_v16 = vld [vmem:[%s6063_s5 + $0x8] sm:$0xff]  ;;  %v962_v18 = vld [vmem:[%s6063_s5] sm:$0xff]  ;;  %v5080_v30 = vld [vmem:[%s6063_s5 + $0xb8] sm:$0xff] }
  0xc9   : >> { %987 = vmatpush.msra.mxu0 %v967_v8  ;;  %v5064_v17 = vld [vmem:[%s6063_s5 + $0x48] sm:$0xff]  ;;  %v5063_v19 = vld [vmem:[%s6063_s5 + $0x40] sm:$0xff]  ;;  %v5079_v31 = vld [vmem:[%s6063_s5 + $0xb0] sm:$0xff]  ;;  %1051 = vmatpush.msra.mxu2 %v5080_v30 }
  0xca   : >> { %1020 = vmatpush.msra.mxu1 %v5068_v9  ;;  %v5445_v20 = vld [vmem:[%s6084_s8] ss:$0 sm:$0xff]  ;;  %v5450_v21 = vld [vmem:[%s6084_s8 + $0x1] ss:$0 sm:$0xff]  ;;  %v5078_v32 = vld [vmem:[%s6063_s5 + $0xa8] sm:$0xff] }
  0xcb   : >> { %988 = vmatpush.msra.mxu0 %v966_v10  ;;  %1052 = vmatpush.msra.mxu2 %v5079_v31  ;;  %v5077_v33 = vld [vmem:[%s6063_s5 + $0xa0] sm:$0xff]  ;;  %v5076_v35 = vld [vmem:[%s6063_s5 + $0x98] sm:$0xff]  ;;  %v5075_v38 = vld [vmem:[%s6063_s5 + $0x90] sm:$0xff] }
  0xcc   : >> { %1021 = vmatpush.msra.mxu1 %v5067_v11  ;;  %v5074_v39 = vld [vmem:[%s6063_s5 + $0x88] sm:$0xff]  ;;  %v5073_v40 = vld [vmem:[%s6063_s5 + $0x80] sm:$0xff] }
  0xcd   : >> { %989 = vmatpush.msra.mxu0 %v965_v12  ;;  %1053 = vmatpush.msra.mxu2 %v5078_v32  ;;  %v5451_v5 = vld [vmem:[%s6084_s8 + $0x2] ss:$0 sm:$0xff] }
  0xce   : >> { %1022 = vmatpush.msra.mxu1 %v5066_v13 }
  0xcf   : >> { %990 = vmatpush.msra.mxu0 %v964_v14  ;;  %1054 = vmatpush.msra.mxu2 %v5077_v33 }
  0xd0   : >> { %1023 = vmatpush.msra.mxu1 %v5065_v15 }
  0xd1   : >> { %991 = vmatpush.msra.mxu0 %v963_v16  ;;  %1055 = vmatpush.msra.mxu2 %v5076_v35 }
  0xd2   : >> { %1024 = vmatpush.msra.mxu1 %v5064_v17 }
  0xd3   : >> { %992 = vmatpush.msra.mxu0 %v962_v18  ;;  %1056 = vmatpush.msra.mxu2 %v5075_v38 }
  0xd4   : >> { %1025 = vmatpush.msra.mxu1 %v5063_v19  ;;  %5061 = vmatmul.msk.f32.vlgmr.msra.gmra.mxu0 %vm973_vm2, %v5808_v53 }
  0xd5   : >> { %5071 = vmatmul.msk.f32.vlgmr.msra.gmra.mxu1 %vm973_vm2, %v5808_v53  ;;  %1057 = vmatpush.msra.mxu2 %v5074_v39 }
  0xd7   : >> { %1058 = vmatpush.msra.mxu2 %v5073_v40 }
  0xd8   : >> { %5081 = vmatmul.msk.f32.vlgmr.msra.gmra.mxu2 %vm973_vm2, %v5808_v53 }
 0x151   : >> { %v994_v22 = vpop.f32.mrf.mxu0 }
 0x152   : >> { %v1027_v23 = vpop.f32.mrf.mxu1  ;;  %v995_v24 = vadd.f32 %v5445_v20, %v994_v22 }
 0x153   : >> { %v1028_v25 = vadd.f32 %v5450_v21, %v1027_v23 }
 0x154   : >> { %1192 = vrot.lane.b32.xlu2 %v995_v24, %s5831_s29 }
 0x155   : >> { %1194 = vrot.lane.b32.xlu1 %v1028_v25, %s5831_s29  ;;  %1127 = vrot.lane.b32.xlu0 %v1028_v25, %s5832_s6 }
 0x156   : >> { %5082 = vmatpush.xpose.msk.msrb.mxu0 %vm1063_vm3, %v1028_v25 }
 0x159   : >> { %5083 = vmatmul.msk.f32.vlgmr.msrb.gmra.mxu0 %vm1063_vm3, %v995_v24 }
 0x15b   : >> { %v1060_v9 = vpop.f32.mrf.mxu2 }
 0x15c   : >> { %1258 = vrot.lane.b32.xlu2 %v995_v24, %s5833_s27  ;;  %v6143_v10 = vadd.f32 %v5451_v5, %v1060_v9 }
 0x15d   : >> { %1260 = vrot.lane.b32.xlu1 %v1028_v25, %s5833_s27  ;;  %1125 = vrot.lane.b32.xlu0 %v995_v24, %s5832_s6 }
 0x15e   : >> { %1120 = vmatpush.msra.mxu0 %v6143_v10 }
 0x164   : >> { %1324 = vrot.lane.b32.xlu2 %v995_v24, %s5835_s9 }
 0x165   : >> { %1392 = vrot.lane.b32.xlu1 %v1028_v25, %s5834_s4  ;;  %1326 = vrot.lane.b32.xlu0 %v1028_v25, %s5835_s9 }
 0x16c   : >> { %1524 = vrot.lane.b32.xlu2 %v1028_v25, %s5837_s2 }
 0x16d   : >> { %1458 = vrot.lane.b32.xlu1 %v1028_v25, %s5836_s0  ;;  %1390 = vrot.lane.b32.xlu0 %v995_v24, %s5834_s4 }
 0x175   : >> { %1522 = vrot.lane.b32.xlu1 %v995_v24, %s5837_s2  ;;  %1456 = vrot.lane.b32.xlu0 %v995_v24, %s5836_s0 }
 0x1ae   : >> { %v1193_v26 = vpop.permute.xlu2 %1192 }
 0x1b6   : >> { %v1259_v27 = vpop.permute.xlu2 %1258 }
 0x1be   : >> { %v1325_v34 = vpop.permute.xlu2 %1324 }
 0x1c6   : >> { %v1525_v45 = vpop.permute.xlu2 %1524 }
 0x1c7   : >> { %v1195_v28 = vpop.permute.xlu1 %1194  ;;  %v1128_v29 = vpop.permute.xlu0 %1127 }
 0x1c8   : >> { %5085 = vmatpush.xpose.msk.msra.mxu3 %vm1063_vm3, %v1128_v29  ;;  %5088 = vmatpush.xpose.msk.msrb.mxu1 %vm1063_vm3, %v1195_v28 }
 0x1cb   : >> { %5089 = vmatmul.msk.f32.vlgmr.msrb.gmra.mxu1 %vm1063_vm3, %v1193_v26 }
 0x1cf   : >> { %v1261_v36 = vpop.permute.xlu1 %1260  ;;  %v1126_v37 = vpop.permute.xlu0 %1125 }
 0x1d0   : >> { %5086 = vmatmul.msk.f32.vlgmr.msra.gmra.mxu3 %vm1063_vm3, %v1126_v37 }
 0x1d1   : >> { %5091 = vmatpush.xpose.msk.msrb.mxu3 %vm1063_vm3, %v1261_v36 }
 0x1d6   : >> { %v1087_v41 = vpop.f32.mrf.mxu0 }
 0x1d7   : >> { %v1090_v42 = vmul.f32 0.35355338, %v1087_v41  ;;  %v1393_v43 = vpop.permute.xlu1 %1392  ;;  %v1327_v44 = vpop.permute.xlu0 %1326 }
 0x1d8   : >> { %5092 = vmatmul.msk.f32.vlgmr.msrb.gmra.mxu3 %vm1063_vm3, %v1259_v27  ;;  %5094 = vmatpush.xpose.msk.msra.mxu1 %vm1063_vm3, %v1327_v44 }
 0x1d9   : >> { %5097 = vmatpush.xpose.msk.msra.mxu3 %vm1063_vm3, %v1393_v43  ;;  %v1091_v46 = vsel %vm1063_vm3, %v1090_v42, -inf }
 0x1da   : >> { %1092 = vmax.xlane.f32.xlu2 %v1091_v46 }
 0x1db   : >> { %5095 = vmatmul.msk.f32.vlgmr.msra.gmra.mxu1 %vm1063_vm3, %v1325_v34 }
 0x1dd   : >> { %5103 = vmatpush.xpose.msk.msrb.mxu3 %vm1063_vm3, %v1525_v45 }
 0x1df   : >> { %v1459_v47 = vpop.permute.xlu1 %1458  ;;  %v1391_v48 = vpop.permute.xlu0 %1390 }
 0x1e0   : >> { %5098 = vmatmul.msk.f32.vlgmr.msra.gmra.mxu3 %vm1063_vm3, %v1391_v48  ;;  %5100 = vmatpush.xpose.msk.msrb.mxu1 %vm1063_vm3, %v1459_v47 }
 0x1e7   : >> { %v1523_v49 = vpop.permute.xlu1 %1522  ;;  %v1457_v50 = vpop.permute.xlu0 %1456 }
 0x1e8   : >> { %5101 = vmatmul.msk.f32.vlgmr.msrb.gmra.mxu1 %vm1063_vm3, %v1457_v50  ;;  %5104 = vmatmul.msk.f32.vlgmr.msrb.gmra.mxu3 %vm1063_vm3, %v1523_v49 }
 0x248   : >> { %v1217_v51 = vpop.f32.mrf.mxu1 }
 0x249   : >> { %v1220_v52 = vmul.f32 0.35355338, %v1217_v51 }
 0x24b   : >> { %v1221_v54 = vsel %vm1063_vm3, %v1220_v52, -inf }
 0x24c   : >> { %1222 = vmax.xlane.f32.xlu1 %v1221_v54 }
 0x24d   : >> { %v1093_v55 = vpop.xlane.xlu2 %1092 }
 0x24e   : >> { %v1094_v57 = vsub.f32 %v1090_v42, %v1093_v55 }
 0x250   : >> { %v1095_v58 = vmul.f32 1.442695, %v1094_v57 }
 0x252   : >> { %5455 = vpow2.f32 %v1095_v58 }
 0x253   : >> { %v1150_v59 = vpop.f32.mrf.mxu3 }
 0x254   : >> { %v1153_v60 = vmul.f32 0.35355338, %v1150_v59 }
 0x256   : >> { %v1154_v61 = vsel %vm1063_vm3, %v1153_v60, -inf }
 0x257   : >> { %1155 = vmax.xlane.f32.xlu0 %v1154_v61 }
 0x258   : >> { %v1349_v62 = vpop.f32.mrf.mxu1  ;;  %v5456_v6 = vpop.eup %5455 }
 0x259   : >> { %v1352_v4 = vmul.f32 0.35355338, %v1349_v62  ;;  %v1097_v11 = vsel %vm1063_vm3, %v5456_v6, 0.0 }
 0x25b   : >> { %v1283_v7 = vpop.f32.mrf.mxu3  ;;  %v1353_v8 = vsel %vm1063_vm3, %v1352_v4, -inf }
 0x25c   : >> { %1354 = vmax.xlane.f32.xlu2 %v1353_v8  ;;  %v1286_v12 = vmul.f32 0.35355338, %v1283_v7 }
 0x25e   : >> { %v1287_v14 = vsel %vm1063_vm3, %v1286_v12, -inf }
 0x25f   : >> { %1098 = vadd.xlane.f32.xlu0 %v1097_v11 }
 0x263   : >> { %v1415_v13 = vpop.f32.mrf.mxu3 }
 0x264   : >> { %v1418_v15 = vmul.f32 0.35355338, %v1415_v13  ;;  %1288 = vmax.xlane.f32.xlu2 %v1287_v14 }
 0x265   : >> { %v1481_v16 = vpop.f32.mrf.mxu1 }
 0x266   : >> { %v1484_v17 = vmul.f32 0.35355338, %v1481_v16  ;;  %v1419_v18 = vsel %vm1063_vm3, %v1418_v15, -inf }
 0x267   : >> { %1420 = vmax.xlane.f32.xlu0 %v1419_v18 }
 0x268   : >> { %v1485_v19 = vsel %vm1063_vm3, %v1484_v17, -inf }
 0x269   : >> { %1486 = vmax.xlane.f32.xlu1 %v1485_v19 }
 0x26b   : >> { %v1547_v20 = vpop.f32.mrf.mxu3 }
 0x26c   : >> { %v1550_v21 = vmul.f32 0.35355338, %v1547_v20 }
 0x26e   : >> { %v1551_v22 = vsel %vm1063_vm3, %v1550_v21, -inf }
 0x26f   : >> { %1552 = vmax.xlane.f32.xlu2 %v1551_v22 }
 0x27b   : >> { %1232 = vrot.lane.b32.xlu0 %v6143_v10, %s5831_s29  ;;  %s5842_s29 = smov 40  }
 0x2bf   : >> { %v1223_v23 = vpop.xlane.xlu1 %1222 }
 0x2c0   : >> { %v1224_v24 = vsub.f32 %v1220_v52, %v1223_v23 }
 0x2c2   : >> { %v1225_v25 = vmul.f32 1.442695, %v1224_v24 }
 0x2c4   : >> { %5457 = vpow2.f32 %v1225_v25 }
 0x2ca   : >> { %v5458_v26 = vpop.eup %5457  ;;  %v1156_v27 = vpop.xlane.xlu0 %1155 }
 0x2cb   : >> { %v1157_v28 = vsub.f32 %v1153_v60, %v1156_v27  ;;  %v1227_v29 = vsel %vm1063_vm3, %v5458_v26, 0.0 }
 0x2cc   : >> { %1228 = vadd.xlane.f32.xlu2 %v1227_v29 }
 0x2cd   : >> { %v1158_v30 = vmul.f32 1.442695, %v1157_v28 }
 0x2cf   : >> { %5459 = vpow2.f32 %v1158_v30  ;;  %v1355_v31 = vpop.xlane.xlu2 %1354 }
 0x2d0   : >> { %v1356_v42 = vsub.f32 %v1352_v4, %v1355_v31 }
 0x2d2   : >> { %v1099_v32 = vpop.xlane.xlu0 %1098  ;;  %v1357_v43 = vmul.f32 1.442695, %v1356_v42  ;;  %v5112_v42 = vld [vmem:[%s6063_s5 + $0xe8] sm:$0xff] }
 0x2d3   : >> { %5461 = vrcp.f32 %v1099_v32 }
 0x2d5   : >> { %v5460_v33 = vpop.eup %5459 }
 0x2d6   : >> { %v1160_v34 = vsel %vm1063_vm3, %v5460_v33, 0.0 }
 0x2d7   : >> { %1161 = vadd.xlane.f32.xlu1 %v1160_v34  ;;  %v1289_v35 = vpop.xlane.xlu2 %1288 }
 0x2d8   : >> { %v1290_v36 = vsub.f32 %v1286_v12, %v1289_v35 }
 0x2d9   : >> { %v5462_v37 = vpop.eup %5461 }
 0x2da   : >> { %v1101_v38 = vmul.f32 %v5462_v37, %v5456_v6  ;;  %v1291_v39 = vmul.f32 1.442695, %v1290_v36  ;;  %v1421_v44 = vpop.xlane.xlu0 %1420 }
 0x2db   : >> { %v1422_v45 = vsub.f32 %v1418_v15, %v1421_v44  ;;  %v5110_v44 = vld [vmem:[%s6063_s5 + $0xd8] sm:$0xff] }
 0x2dc   : >> { %5463 = vpow2.f32 %v1291_v39  ;;  %5084 = vmatmul.msk.f32.vlgmr.msra.gmra.mxu0 %vm1063_vm3, %v1101_v38  ;;  %v1487_v46 = vpop.xlane.xlu1 %1486 }
 0x2dd   : >> { %5465 = vpow2.f32 %v1357_v43  ;;  %v1423_v47 = vmul.f32 1.442695, %v1422_v45  ;;  %v1488_v48 = vsub.f32 %v1484_v17, %v1487_v46  ;;  %v5111_v43 = vld [vmem:[%s6063_s5 + $0xe0] sm:$0xff]  ;;  %v5109_v45 = vld [vmem:[%s6063_s5 + $0xd0] sm:$0xff]  ;;  %v5108_v46 = vld [vmem:[%s6063_s5 + $0xc8] sm:$0xff] }
 0x2df   : >> { %5467 = vpow2.f32 %v1423_v47  ;;  %v1489_v50 = vmul.f32 1.442695, %v1488_v48  ;;  %v5107_v47 = vld [vmem:[%s6063_s5 + $0xc0] sm:$0xff] }
 0x2e1   : >> { %5469 = vpow2.f32 %v1489_v50 }
 0x2e2   : >> { %v5464_v40 = vpop.eup %5463  ;;  %v1553_v52 = vpop.xlane.xlu2 %1552 }
 0x2e3   : >> { %v1293_v41 = vsel %vm1063_vm3, %v5464_v40, 0.0  ;;  %v5466_v49 = vpop.eup %5465  ;;  %v1554_v54 = vsub.f32 %v1550_v21, %v1553_v52 }
 0x2e4   : >> { %1298 = vrot.lane.b32.xlu2 %v6143_v10, %s5833_s27  ;;  %1294 = vadd.xlane.f32.xlu0 %v1293_v41  ;;  %v1359_v51 = vsel %vm1063_vm3, %v5466_v49, 0.0  ;;  %s5844_s27 = smov 56   ;;  %v5113_v41 = vld [vmem:[%s6063_s5 + $0xf0] sm:$0xff] }
 0x2e5   : >> { %v5468_v55 = vpop.eup %5467  ;;  %v1555_v57 = vmul.f32 1.442695, %v1554_v54 }
 0x2e6   : >> { %v1425_v58 = vsel %vm1063_vm3, %v5468_v55, 0.0 }
 0x2e7   : >> { %v5470_v59 = vpop.eup %5469  ;;  %5471 = vpow2.f32 %v1555_v57 }
 0x2e8   : >> { %v1491_v60 = vsel %vm1063_vm3, %v5470_v59, 0.0 }
 0x2ed   : >> { %v5472_v61 = vpop.eup %5471  ;;  %v1233_v62 = vpop.permute.xlu0 %1232 }
 0x2ee   : >> { %v1557_v4 = vsel %vm1063_vm3, %v5472_v61, 0.0  ;;  %1253 = vmatpush.msrb.mxu2 %v1233_v62 }
 0x2f0   : >> { %1166 = vrot.lane.b32.xlu1 %v6143_v10, %s5832_s6  ;;  %s5843_s6 = smov 48  }
 0x2f8   : >> { %1364 = vrot.lane.b32.xlu0 %v6143_v10, %s5835_s9  ;;  %s5116_s9 = sshll.u32 %s5812_s23, 6 }
 0x30d   : >> { %1360 = vadd.xlane.f32.xlu2 %v1359_v51 }
 0x315   : >> { %1426 = vadd.xlane.f32.xlu2 %v1425_v58 }
 0x31a   : >> { %1492 = vadd.xlane.f32.xlu1 %v1491_v60 }
 0x322   : >> { %1558 = vadd.xlane.f32.xlu0 %v1557_v4 }
 0x32d   : >> { %1430 = vrot.lane.b32.xlu2 %v6143_v10, %s5834_s4  ;;  %s1713_s4 = scalar_lea.vmem %s7533_s12, %s5812_s23 }
 0x335   : >> { %1496 = vrot.lane.b32.xlu2 %v6143_v10, %s5836_s0 }
 0x33d   : >> { %1562 = vrot.lane.b32.xlu2 %v6143_v10, %s5837_s2 }
 0x33f   : >> { %v1229_v5 = vpop.xlane.xlu2 %1228 }
 0x340   : >> { %5473 = vrcp.f32 %v1229_v5  ;;  %v5452_v5 = vld [vmem:[%s6084_s8 + $0x3] ss:$0 sm:$0xff] }
 0x346   : >> { %v5474_v6 = vpop.eup %5473 }
 0x347   : >> { %v1231_v7 = vmul.f32 %v5474_v6, %v5458_v26  ;;  %v1299_v14 = vpop.permute.xlu2 %1298 }
 0x349   : >> { %5090 = vmatmul.msk.f32.vlgmr.msrb.gmra.mxu2 %vm1063_vm3, %v1231_v7 }
 0x34a   : >> { %v1162_v8 = vpop.xlane.xlu1 %1161 }
 0x34b   : >> { %5475 = vrcp.f32 %v1162_v8 }
 0x351   : >> { %v5476_v11 = vpop.eup %5475 }
 0x352   : >> { %v1164_v12 = vmul.f32 %v5476_v11, %v5460_v33  ;;  %v5845_v11 = vmov 64.0  }
 0x357   : >> { %v1295_v9 = vpop.xlane.xlu0 %1294 }
 0x358   : >> { %5477 = vrcp.f32 %v1295_v9 }
 0x359   : >> { %v1122_v33 = vpop.f32.mrf.mxu0 }
 0x35e   : >> { %v5478_v15 = vpop.eup %5477 }
 0x35f   : >> { %v1297_v10 = vmul.f32 %v5478_v15, %v5464_v40  ;;  %v5114_v40 = vld [vmem:[%s6063_s5 + $0xf8] sm:$0xff]  ;;  %s1768_s5 = scalar_lea.vmem %s7535_s14, %s5812_s23 }
 0x360   : >> { %1653 = vmatpush.msra.mxu1 %v5114_v40 }
 0x362   : >> { %v1167_v13 = vpop.permute.xlu1 %1166  ;;  %1654 = vmatpush.msra.mxu1 %v5113_v41 }
 0x363   : >> { %1187 = vmatpush.msrb.mxu0 %v1167_v13 }
 0x364   : >> { %5087 = vmatmul.msk.f32.vlgmr.msrb.gmra.mxu0 %vm1063_vm3, %v1164_v12  ;;  %1655 = vmatpush.msra.mxu1 %v5112_v42  ;;  %v5446_v42 = vld [vmem:[%s6078_s30] ss:$0 sm:$0xff] }
 0x365   : >> { %1319 = vmatpush.msra.mxu0 %v1299_v14 }
 0x366   : >> { %1656 = vmatpush.msra.mxu1 %v5111_v43 }
 0x368   : >> { %1657 = vmatpush.msra.mxu1 %v5110_v44  ;;  %v5447_v44 = vld [vmem:[%s6078_s30 + $0x1] ss:$0 sm:$0xff] }
 0x36a   : >> { %v1365_v16 = vpop.permute.xlu0 %1364  ;;  %1658 = vmatpush.msra.mxu1 %v5109_v45 }
 0x36b   : >> { %1385 = vmatpush.msra.mxu2 %v1365_v16 }
 0x36c   : >> { %5093 = vmatmul.msk.f32.vlgmr.msra.gmra.mxu0 %vm1063_vm3, %v1297_v10  ;;  %1659 = vmatpush.msra.mxu1 %v5108_v46 }
 0x36e   : >> { %1660 = vmatpush.msra.mxu1 %v5107_v47 }
 0x380   : >> { %v1361_v17 = vpop.xlane.xlu2 %1360 }
 0x381   : >> { %5479 = vrcp.f32 %v1361_v17 }
 0x387   : >> { %v5480_v18 = vpop.eup %5479 }
 0x388   : >> { %v1363_v19 = vmul.f32 %v5480_v18, %v5466_v49  ;;  %v1427_v20 = vpop.xlane.xlu2 %1426 }
 0x389   : >> { %5481 = vrcp.f32 %v1427_v20 }
 0x38a   : >> { %5096 = vmatmul.msk.f32.vlgmr.msra.gmra.mxu2 %vm1063_vm3, %v1363_v19 }
 0x38d   : >> { %v1493_v21 = vpop.xlane.xlu1 %1492 }
 0x38e   : >> { %5483 = vrcp.f32 %v1493_v21 }
 0x38f   : >> { %v5482_v22 = vpop.eup %5481 }
 0x390   : >> { %v1429_v23 = vmul.f32 %v5482_v22, %v5468_v55  ;;  %v1431_v24 = vpop.permute.xlu2 %1430 }
 0x391   : >> { %1451 = vmatpush.msrb.mxu0 %v1431_v24 }
 0x392   : >> { %5099 = vmatmul.msk.f32.vlgmr.msrb.gmra.mxu0 %vm1063_vm3, %v1429_v23 }
 0x394   : >> { %v5484_v25 = vpop.eup %5483 }
 0x395   : >> { %v1559_v26 = vpop.xlane.xlu0 %1558  ;;  %v1495_v27 = vmul.f32 %v5484_v25, %v5470_v59 }
 0x396   : >> { %5485 = vrcp.f32 %v1559_v26 }
 0x397   : >> { %5487 = vrcp.f32 %v5845_v11 }
 0x398   : >> { %v1497_v28 = vpop.permute.xlu2 %1496 }
 0x399   : >> { %1517 = vmatpush.msrb.mxu2 %v1497_v28 }
 0x39a   : >> { %5102 = vmatmul.msk.f32.vlgmr.msrb.gmra.mxu2 %vm1063_vm3, %v1495_v27 }
 0x39c   : >> { %v5486_v29 = vpop.eup %5485 }
 0x39d   : >> { %v1561_v30 = vmul.f32 %v5486_v29, %v5472_v61  ;;  %v5488_v12 = vpop.eup %5487 }
 0x39e   : >> { %v1670_v13 = vmul.f32 64.0, %v5488_v12  ;;  %vm1674_vm10 = vweird.f32 %v5488_v12 }
 0x3a0   : >> { %v1563_v31 = vpop.permute.xlu2 %1562  ;;  %v1671_v14 = vsub.f32 1.0, %v1670_v13 }
 0x3a1   : >> { %1583 = vmatpush.msra.mxu0 %v1563_v31 }
 0x3a2   : >> { %5105 = vmatmul.msk.f32.vlgmr.msra.gmra.mxu0 %vm1063_vm3, %v1561_v30  ;;  %v1672_v15 = vmul.f32 %v5488_v12, %v1671_v14 }
 0x3a4   : >> { %v1673_v10 = vadd.f32 %v5488_v12, %v1672_v15 }
 0x3a6   : >> { %v6199_v16 = vsel %vm1674_vm10, %v5488_v12, %v1673_v10  ;;  %v5454_v10 = vld [vmem:[%s1768_s5] ss:$0 sm:$0xff] }
 0x3cc   : >> { %v1255_v32 = vpop.f32.mrf.mxu2 }
 0x3cd   : >> { %1593 = vrot.lane.b32.xlu2 %v1255_v32, %s5838_s3  ;;  %s1704_s3 = scalar_lea.vmem %s7532_s11, %s5116_s9 }
 0x3ce   : >> { %v1712_v21 = vld [vmem:[%s1704_s3 + $0x38] sm:$0xff]  ;;  %v1711_v22 = vld [vmem:[%s1704_s3 + $0x30] sm:$0xff]  ;;  %v1710_v23 = vld [vmem:[%s1704_s3 + $0x28] sm:$0xff] }
 0x3cf   : >> { %1729 = vmatpush.msra.mxu2 %v1712_v21  ;;  %v1709_v24 = vld [vmem:[%s1704_s3 + $0x20] sm:$0xff]  ;;  %v1708_v25 = vld [vmem:[%s1704_s3 + $0x18] sm:$0xff]  ;;  %v1707_v26 = vld [vmem:[%s1704_s3 + $0x10] sm:$0xff] }
 0x3d0   : >> { %v1706_v27 = vld [vmem:[%s1704_s3 + $0x8] sm:$0xff]  ;;  %v1705_v28 = vld [vmem:[%s1704_s3] sm:$0xff] }
 0x3d1   : >> { %1730 = vmatpush.msra.mxu2 %v1711_v22 }
 0x3d3   : >> { %1731 = vmatpush.msra.mxu2 %v1710_v23 }
 0x3d5   : >> { %1732 = vmatpush.msra.mxu2 %v1709_v24 }
 0x3d7   : >> { %1733 = vmatpush.msra.mxu2 %v1708_v25 }
 0x3d9   : >> { %1734 = vmatpush.msra.mxu2 %v1707_v26 }
 0x3db   : >> { %1735 = vmatpush.msra.mxu2 %v1706_v27 }
 0x3dd   : >> { %1736 = vmatpush.msra.mxu2 %v1705_v28 }
 0x3e1   : >> { %v1189_v34 = vpop.f32.mrf.mxu0 }
 0x3e2   : >> { %1589 = vrot.lane.b32.xlu1 %v1189_v34, %s5839_s26  ;;  %s5118_s26 = sshll.u32 %s5812_s23, 7  ;;  %s947_s23 = sadd.s32 1, %s5812_s23  }
 0x3e3   : >> { %p944_p4 = scmp.ge.s32.totalorder %s947_s23, 4  }
 0x3e9   : >> { %v1321_v35 = vpop.f32.mrf.mxu0 }
 0x3ea   : >> { %1597 = vrot.lane.b32.xlu0 %v1321_v35, %s5840_s1 }
 0x40d   : >> { %v1387_v36 = vpop.f32.mrf.mxu2 }
 0x40e   : >> { %1601 = vrot.lane.b32.xlu2 %v1387_v36, %s5841_s7 }
 0x40f   : >> { %v1453_v37 = vpop.f32.mrf.mxu0 }
 0x416   : >> { %1605 = vrot.lane.b32.xlu2 %v1453_v37, %s5842_s29  ;;  %s6215_s29 = scalar_lea.vmem %s7534_s13, %s5118_s26  ;;  %s6283_s26 = smov (%p944_p4), 0  }
 0x417   : >> { %v1767_v29 = vld [vmem:[%s6215_s29 + $0x78] sm:$0xff]  ;;  %v1766_v30 = vld [vmem:[%s6215_s29 + $0x70] sm:$0xff]  ;;  %v1765_v31 = vld [vmem:[%s6215_s29 + $0x68] sm:$0xff] }
 0x418   : >> { %1773 = vmatpush.msra.mxu3 %v1767_v29  ;;  %v1764_v34 = vld [vmem:[%s6215_s29 + $0x60] sm:$0xff] }
 0x41a   : >> { %1774 = vmatpush.msra.mxu3 %v1766_v30 }
 0x41c   : >> { %1775 = vmatpush.msra.mxu3 %v1765_v31 }
 0x41d   : >> { %v1519_v38 = vpop.f32.mrf.mxu2 }
 0x41e   : >> { %1609 = vrot.lane.b32.xlu1 %v1519_v38, %s5843_s6  ;;  %1776 = vmatpush.msra.mxu3 %v1764_v34  ;;  %v5448_v34 = vld [vmem:[%s6078_s30 + $0x2] ss:$0 sm:$0xff] }
 0x41f   : >> { %v1585_v39 = vpop.f32.mrf.mxu0 }
 0x420   : >> { %1613 = vrot.lane.b32.xlu2 %v1585_v39, %s5844_s27 }
 0x427   : >> { %v1594_v48 = vpop.permute.xlu2 %1593 }
 0x454   : >> { %v1590_v50 = vpop.permute.xlu1 %1589 }
 0x455   : >> { %v1616_v52 = vsel %vm1063_vm3, %v1122_v33, %v1590_v50  ;;  %v1761_v50 = vld [vmem:[%s6215_s29 + $0x48] sm:$0xff] }
 0x456   : >> { %v1618_v55 = vsel %vm1617_vm4, %v1616_v52, %v1594_v48  ;;  %v1763_v48 = vld [vmem:[%s6215_s29 + $0x58] sm:$0xff] }
 0x457   : >> { %1777 = vmatpush.msra.mxu3 %v1763_v48  ;;  %v1759_v52 = vld [vmem:[%s6215_s29 + $0x38] sm:$0xff] }
 0x45c   : >> { %v1598_v54 = vpop.permute.xlu0 %1597 }
 0x45d   : >> { %v1620_v57 = vsel %vm1619_vm5, %v1618_v55, %v1598_v54  ;;  %v1758_v54 = vld [vmem:[%s6215_s29 + $0x30] sm:$0xff]  ;;  %v1757_v55 = vld [vmem:[%s6215_s29 + $0x28] sm:$0xff] }
 0x468   : >> { %v1602_v49 = vpop.permute.xlu2 %1601 }
 0x469   : >> { %v1622_v58 = vsel %vm1621_vm6, %v1620_v57, %v1602_v49  ;;  %v1762_v49 = vld [vmem:[%s6215_s29 + $0x50] sm:$0xff]  ;;  %v1756_v57 = vld [vmem:[%s6215_s29 + $0x20] sm:$0xff] }
 0x46a   : >> { %1778 = vmatpush.msra.mxu3 %v1762_v49 }
 0x46c   : >> { %1779 = vmatpush.msra.mxu3 %v1761_v50 }
 0x470   : >> { %v1606_v51 = vpop.permute.xlu2 %1605 }
 0x471   : >> { %v1624_v59 = vsel %vm1623_vm7, %v1622_v58, %v1606_v51  ;;  %v1760_v51 = vld [vmem:[%s6215_s29 + $0x40] sm:$0xff]  ;;  %v1755_v58 = vld [vmem:[%s6215_s29 + $0x18] sm:$0xff] }
 0x472   : >> { %1780 = vmatpush.msra.mxu3 %v1760_v51 }
 0x474   : >> { %1781 = vmatpush.msra.mxu3 %v1759_v52 }
 0x476   : >> { %1782 = vmatpush.msra.mxu3 %v1758_v54 }
 0x478   : >> { %1783 = vmatpush.msra.mxu3 %v1757_v55 }
 0x47a   : >> { %v1614_v61 = vpop.permute.xlu2 %1613  ;;  %1784 = vmatpush.msra.mxu3 %v1756_v57  ;;  %v5495_v57 = vld [vmem:[%s7545_s24] ss:$0 sm:$0xff] (%p944_p4) }
 0x47c   : >> { %1785 = vmatpush.msra.mxu3 %v1755_v58 }
 0x490   : >> { %v1610_v60 = vpop.permute.xlu1 %1609 }
 0x491   : >> { %v1626_v62 = vsel %vm1625_vm8, %v1624_v59, %v1610_v60  ;;  %v1754_v59 = vld [vmem:[%s6215_s29 + $0x10] sm:$0xff]  ;;  %v1753_v60 = vld [vmem:[%s6215_s29 + $0x8] sm:$0xff] }
 0x492   : >> { %v1628_v4 = vsel %vm1627_vm9, %v1626_v62, %v1614_v61  ;;  %1786 = vmatpush.msra.mxu3 %v1754_v59  ;;  %v1752_v61 = vld [vmem:[%s6215_s29] sm:$0xff] }
 0x493   : >> { %5115 = vmatmul.msk.f32.vlgmr.msra.gmra.mxu1 %vm973_vm2, %v1628_v4  ;;  %v5453_v62 = vld [vmem:[%s1713_s4] ss:$0 sm:$0xff] }
 0x494   : >> { %1787 = vmatpush.msra.mxu3 %v1753_v60  ;;  %v5496_v60 = vld [vmem:[%s7545_s24 + $0x1] ss:$0 sm:$0xff] (%p944_p4) }
 0x496   : >> { %1788 = vmatpush.msra.mxu3 %v1752_v61 }
 0x510   : >> { %v1662_v6 = vpop.f32.mrf.mxu1 }
 0x511   : >> { %v1663_v7 = vadd.f32 %v5452_v5, %v1662_v6 }
 0x513   : >> { %v1665_v8 = vadd.f32 %v5808_v53, %v1663_v7 }
 0x515   : >> { %v1666_v9 = vsel %vm973_vm2, %v1665_v8, 0.0 }
 0x516   : >> { %1667 = vadd.xlane.f32.xlu0 %v1666_v9 }
 0x589   : >> { %v1668_v17 = vpop.xlane.xlu0 %1667 }
 0x58a   : >> { %v1676_v18 = vmul.f32 %v6199_v16, %v1668_v17 }
 0x58c   : >> { %v1677_v19 = vsub.f32 %v1665_v8, %v1676_v18 }
 0x58e   : >> { %v1678_v53 = vmul.f32 %v1677_v19, %v1677_v19 }
 0x590   : >> { %v1679_v20 = vsel %vm973_vm2, %v1678_v53, 0.0 }
 0x591   : >> { %1680 = vadd.xlane.f32.xlu1 %v1679_v20 }
 0x604   : >> { %v1681_v32 = vpop.xlane.xlu1 %1680 }
 0x605   : >> { %v1682_v33 = vmul.f32 %v1681_v32, %v6199_v16 }
 0x607   : >> { %v1683_v35 = vadd.f32 1e-05, %v1682_v33 }
 0x609   : >> { %5489 = vrsqrt.f32 %v1683_v35  ;;  %vm1690_vm12 = vweird.f32 %v1683_v35 }
 0x60f   : >> { %v5490_v36 = vpop.eup %5489 }
 0x610   : >> { %v1685_v37 = vmul.f32 %v5490_v36, %v1683_v35  ;;  %vm1691_vm11 = vweird.f32 %v5490_v36 }
 0x611   : >> { %vm1692_vm13 = vmor %vm1690_vm12, %vm1691_vm11 }
 0x612   : >> { %v1686_v38 = vmul.f32 %v5490_v36, %v1685_v37 }
 0x614   : >> { %v1687_v39 = vmul.f32 0.5, %v1686_v38 }
 0x616   : >> { %v1688_v40 = vsub.f32 1.5, %v1687_v39 }
 0x618   : >> { %v1689_v41 = vmul.f32 %v5490_v36, %v1688_v40 }
 0x61a   : >> { %v1693_v43 = vsel %vm1692_vm13, %v5490_v36, %v1689_v41  ;;  %v5449_v36 = vld [vmem:[%s6078_s30 + $0x3] ss:$0 sm:$0xff] }
 0x61b   : >> { %v1694_v45 = vmul.f32 %v1693_v43, %v1677_v19 }
 0x61d   : >> { %v1698_v46 = vmul.f32 %v5446_v42, %v1694_v45 }
 0x61f   : >> { %v1702_v47 = vadd.f32 %v5447_v44, %v1698_v46 }
 0x621   : >> { %5117 = vmatmul.msk.f32.vlgmr.msra.gmra.mxu2 %vm973_vm2, %v1702_v47 }
 0x6a4   : >> { %v1738_v4 = vpop.f32.mrf.mxu2 }
 0x6a5   : >> { %v1739_v5 = vadd.f32 %v5453_v62, %v1738_v4 }
 0x6a7   : >> { %v1742_v6 = vmul.f32 0.044715, %v1739_v5  ;;  %v1741_v13 = vmul.f32 0.5, %v1739_v5 }
 0x6a9   : >> { %v1743_v7 = vmul.f32 %v1742_v6, %v1739_v5 }
 0x6ab   : >> { %v1744_v8 = vmul.f32 %v1743_v7, %v1739_v5 }
 0x6ad   : >> { %v1745_v9 = vadd.f32 %v1744_v8, %v1739_v5 }
 0x6af   : >> { %v1746_v11 = vmul.f32 0.7978846, %v1745_v9 }
 0x6b1   : >> { %5491 = vtanh.f32 %v1746_v11 }
 0x6b7   : >> { %v5492_v12 = vpop.eup %5491 }
 0x6b8   : >> { %v1748_v14 = vadd.f32 1.0, %v5492_v12 }
 0x6ba   : >> { %v1749_v15 = vmul.f32 %v1748_v14, %v1741_v13 }
 0x6bc   : >> { %1789 = vmatmul.f32.vlgmr.msra.gmra.mxu3 %v1749_v15 }
 0x73f   : >> { %v1790_v17 = vpop.f32.mrf.mxu3 }
 0x740   : >> { %v1791_v18 = vadd.f32 %v5454_v10, %v1790_v17 }
 0x742   : >> { %v1793_v19 = vadd.f32 %v1791_v18, %v1702_v47 }
 0x744   : >> { %v1794_v53 = vsel %vm973_vm2, %v1793_v19, 0.0 }
 0x745   : >> { %1795 = vadd.xlane.f32.xlu2 %v1794_v53 }
 0x7b8   : >> { %v1796_v20 = vpop.xlane.xlu2 %1795 }
 0x7b9   : >> { %v1797_v21 = vmul.f32 %v1796_v20, %v6199_v16 }
 0x7bb   : >> { %v1798_v22 = vsub.f32 %v1793_v19, %v1797_v21 }
 0x7bd   : >> { %v1799_v23 = vmul.f32 %v1798_v22, %v1798_v22 }
 0x7bf   : >> { %v1800_v24 = vsel %vm973_vm2, %v1799_v23, 0.0 }
 0x7c0   : >> { %1801 = vadd.xlane.f32.xlu0 %v1800_v24 }
 0x833   : >> { %v1802_v25 = vpop.xlane.xlu0 %1801 }
 0x834   : >> { %v1803_v26 = vmul.f32 %v1802_v25, %v6199_v16 }
 0x836   : >> { %v1804_v27 = vadd.f32 1e-05, %v1803_v26 }
 0x838   : >> { %5493 = vrsqrt.f32 %v1804_v27  ;;  %vm1811_vm15 = vweird.f32 %v1804_v27 }
 0x83e   : >> { %v5494_v28 = vpop.eup %5493 }
 0x83f   : >> { %v1806_v29 = vmul.f32 %v5494_v28, %v1804_v27  ;;  %vm1812_vm14 = vweird.f32 %v5494_v28 }
 0x840   : >> { %vm1813_vm0 = vmor %vm1811_vm15, %vm1812_vm14 }
 0x841   : >> { %v1807_v30 = vmul.f32 %v5494_v28, %v1806_v29 }
 0x843   : >> { %v1808_v31 = vmul.f32 0.5, %v1807_v30 }
 0x845   : >> { %v1809_v32 = vsub.f32 1.5, %v1808_v31 }
 0x847   : >> { %v1810_v33 = vmul.f32 %v5494_v28, %v1809_v32 }
 0x849   : >> { %v1814_v35 = vsel %vm1813_vm0, %v5494_v28, %v1810_v33 }
 0x84a   : >> { %v1815_v37 = vmul.f32 %v1814_v35, %v1798_v22 }
 0x84c   : >> { %v1819_v38 = vmul.f32 %v5448_v34, %v1815_v37  ;;  %946 = sbr.rel (!%p944_p4) target bundleno = 189 (0xbd), region = 198 }
 0x84e   : >> { %v1823_v39 = vadd.f32 %v5449_v36, %v1819_v38  }
 0x850   : >> { %v7591_v53 = vmov %v1823_v39  ;;  %v1828_v40 = vsel (%p944_p4), %vm973_vm2, %v1823_v39, 0.0 }
 0x851   : > { %1829 = vadd.xlane.f32.xlu0 %v1828_v40 }
 0x8c4   : > { %v1830_v41 = vpop.xlane.xlu0 %1829 }
 0x8c5   : > { %v1838_v42 = vmul.f32 %v1830_v41, %v6199_v16 }
 0x8c7   : > { %v1839_v43 = vsub.f32 %v1823_v39, %v1838_v42 }
 0x8c9   : > { %v1840_v44 = vmul.f32 %v1839_v43, %v1839_v43 }
 0x8cb   : > { %v1841_v45 = vsel %vm973_vm2, %v1840_v44, 0.0 }
 0x8cc   : > { %1842 = vadd.xlane.f32.xlu0 %v1841_v45 }
 0x93f   : > { %v1843_v46 = vpop.xlane.xlu0 %1842 }
 0x940   : > { %v1844_v47 = vmul.f32 %v1843_v46, %v6199_v16 }
 0x942   : > { %v1845_v48 = vadd.f32 1e-05, %v1844_v47 }
 0x944   : > { %5497 = vrsqrt.f32 %v1845_v48  ;;  %vm1852_vm10 = vweird.f32 %v1845_v48 }
 0x94a   : > { %v5498_v49 = vpop.eup %5497 }
 0x94b   : > { %v1847_v50 = vmul.f32 %v5498_v49, %v1845_v48  ;;  %vm1853_vm1 = vweird.f32 %v5498_v49 }
 0x94c   : > { %vm1854_vm11 = vmor %vm1852_vm10, %vm1853_vm1 }
 0x94d   : > { %v1848_v51 = vmul.f32 %v5498_v49, %v1847_v50 }
 0x94f   : > { %v1849_v52 = vmul.f32 0.5, %v1848_v51 }
 0x951   : > { %v1850_v54 = vsub.f32 1.5, %v1849_v52 }
 0x953   : > { %v1851_v55 = vmul.f32 %v5498_v49, %v1850_v54 }
 0x955   : > { %v1855_v58 = vsel %vm1854_vm11, %v5498_v49, %v1851_v55 }
 0x956   : > { %v1856_v59 = vmul.f32 %v1855_v58, %v1839_v43 }
 0x958   : > { %v1860_v61 = vmul.f32 %v5495_v57, %v1856_v59 }
 0x95a   : > { %v6272_v62 = vadd.f32 %v5496_v60, %v1860_v61 }
 0x95b LB: >> { %s5121_s1 = sshll.u32 %s5828_s26, 8  ;;  %s5120_s27 = sshll.u32 %s5828_s26, 2  ;;  %vm2109_vm12 = vcmask 1042432   ;;  %vm2065_vm13 = vcmask 154624   ;;  %vm2072_vm14 = vcmask 149504   ;;  %vm3247_vm15 = vcmask 518144   ;;  %s5828_s26 = sphi %s6283_s26, %s1870_s26   ;;  %v5824_v56 = vphi %v6043_v56, %v7604_v56   ;;  %v5820_v63 = vphi %v6045_v63, %v7603_v63   ;;  %v5816_v3 = vphi %v6047_v3, %v7602_v3  }
 0x95c   : >> { %s6303_s6 = scalar_lea.vmem %s7536_s15, %s5121_s1  ;;  %s6325_s9 = scalar_lea.vmem %s7537_s16, %s5120_s27 }
 0x95d   : >> { %v1897_v4 = vld [vmem:[%s6303_s6 + $0x38] sm:$0xff]  ;;  %v1896_v6 = vld [vmem:[%s6303_s6 + $0x30] sm:$0xff]  ;;  %v1895_v8 = vld [vmem:[%s6303_s6 + $0x28] sm:$0xff]  ;;  %s5846_s0 = smov 120   ;;  %s5847_s2 = smov 112  }
 0x95e   : >> { %v5133_v5 = vld [vmem:[%s6303_s6 + $0x78] sm:$0xff]  ;;  %1918 = vmatpush.msra.mxu0 %v1897_v4  ;;  %v5132_v7 = vld [vmem:[%s6303_s6 + $0x70] sm:$0xff]  ;;  %v5131_v9 = vld [vmem:[%s6303_s6 + $0x68] sm:$0xff]  ;;  %s5848_s23 = smov 104   ;;  %s7555_s30 = smov 96  }
 0x95f   : >> { %1957 = vmatpush.msra.mxu1 %v5133_v5  ;;  %v1894_v11 = vld [vmem:[%s6303_s6 + $0x20] sm:$0xff]  ;;  %v5145_v13 = vld [vmem:[%s6303_s6 + $0xb8] sm:$0xff]  ;;  %v5144_v14 = vld [vmem:[%s6303_s6 + $0xb0] sm:$0xff]  ;;  %s7557_s4 = smov 88   ;;  %s7553_s3 = smov 80  }
 0x960   : >> { %1919 = vmatpush.msra.mxu0 %v1896_v6  ;;  %v5130_v12 = vld [vmem:[%s6303_s6 + $0x60] sm:$0xff]  ;;  %v1893_v15 = vld [vmem:[%s6303_s6 + $0x18] sm:$0xff]  ;;  %1996 = vmatpush.msra.mxu2 %v5145_v13  ;;  %v1892_v17 = vld [vmem:[%s6303_s6 + $0x10] sm:$0xff]  ;;  %s7551_s7 = smov 72   ;;  %s5853_s29 = smov 8  }
 0x961   : >> { %1958 = vmatpush.msra.mxu1 %v5132_v7  ;;  %v5129_v10 = vld [vmem:[%s6303_s6 + $0x58] sm:$0xff]  ;;  %v5143_v18 = vld [vmem:[%s6303_s6 + $0xa8] sm:$0xff]  ;;  %v5128_v19 = vld [vmem:[%s6303_s6 + $0x50] sm:$0xff]  ;;  %s5854_s5 = smov 16   ;;  %s7567_s8 = smov 24  }
 0x962   : >> { %1920 = vmatpush.msra.mxu0 %v1895_v8  ;;  %1997 = vmatpush.msra.mxu2 %v5144_v14  ;;  %v5142_v53 = vld [vmem:[%s6303_s6 + $0xa0] sm:$0xff]  ;;  %v1891_v20 = vld [vmem:[%s6303_s6 + $0x8] sm:$0xff]  ;;  %v5141_v22 = vld [vmem:[%s6303_s6 + $0x98] sm:$0xff] }
 0x963   : >> { %1959 = vmatpush.msra.mxu1 %v5131_v9  ;;  %v5127_v21 = vld [vmem:[%s6303_s6 + $0x48] sm:$0xff]  ;;  %v1890_v23 = vld [vmem:[%s6303_s6] sm:$0xff]  ;;  %v5140_v25 = vld [vmem:[%s6303_s6 + $0x90] sm:$0xff] }
 0x964   : >> { %1921 = vmatpush.msra.mxu0 %v1894_v11  ;;  %1998 = vmatpush.msra.mxu2 %v5143_v18  ;;  %v5126_v24 = vld [vmem:[%s6303_s6 + $0x40] sm:$0xff]  ;;  %v5139_v26 = vld [vmem:[%s6303_s6 + $0x88] sm:$0xff] }
 0x965   : >> { %1960 = vmatpush.msra.mxu1 %v5130_v12  ;;  %v5138_v27 = vld [vmem:[%s6303_s6 + $0x80] sm:$0xff] }
 0x966   : >> { %1922 = vmatpush.msra.mxu0 %v1893_v15  ;;  %1999 = vmatpush.msra.mxu2 %v5142_v53  ;;  %v5535_v28 = vld [vmem:[%s6325_s9 + $0x1] ss:$0 sm:$0xff]  ;;  %v5534_v32 = vld [vmem:[%s6325_s9] ss:$0 sm:$0xff]  ;;  %v5536_v45 = vld [vmem:[%s6325_s9 + $0x2] ss:$0 sm:$0xff] }
 0x967   : >> { %1961 = vmatpush.msra.mxu1 %v5129_v10 }
 0x968   : >> { %1923 = vmatpush.msra.mxu0 %v1892_v17  ;;  %2000 = vmatpush.msra.mxu2 %v5141_v22 }
 0x969   : >> { %1962 = vmatpush.msra.mxu1 %v5128_v19 }
 0x96a   : >> { %1924 = vmatpush.msra.mxu0 %v1891_v20  ;;  %2001 = vmatpush.msra.mxu2 %v5140_v25 }
 0x96b   : >> { %1963 = vmatpush.msra.mxu1 %v5127_v21 }
 0x96c   : >> { %1925 = vmatpush.msra.mxu0 %v1890_v23  ;;  %2002 = vmatpush.msra.mxu2 %v5139_v26 }
 0x96d   : >> { %1964 = vmatpush.msra.mxu1 %v5126_v24  ;;  %5122 = vmatmul.msk.f32.vlgmr.msra.gmra.mxu0 %vm973_vm2, %v5824_v56 }
 0x96e   : >> { %5134 = vmatmul.msk.f32.vlgmr.msra.gmra.mxu1 %vm973_vm2, %v5824_v56  ;;  %2003 = vmatpush.msra.mxu2 %v5138_v27 }
 0x96f   : >> { %5146 = vmatmul.msk.f32.vlgmr.msra.gmra.mxu2 %vm973_vm2, %v5824_v56 }
 0x975   : >> { %5123 = vmatmul.msk.f32.gmra.mxu0 %vm973_vm2, %v5820_v63 }
 0x976   : >> { %5135 = vmatmul.msk.f32.gmra.mxu1 %vm973_vm2, %v5820_v63 }
 0x977   : >> { %5147 = vmatmul.msk.f32.gmra.mxu2 %vm973_vm2, %v5820_v63 }
 0x97d   : >> { %5124 = vmatmul.msk.f32.gmra.mxu0 %vm973_vm2, %v5816_v3 }
 0x97e   : >> { %5136 = vmatmul.msk.f32.gmra.mxu1 %vm973_vm2, %v5816_v3 }
 0x97f   : >> { %5148 = vmatmul.msk.f32.gmra.mxu2 %vm973_vm2, %v5816_v3 }
 0x9ea   : >> { %v1927_v29 = vpop.f32.mrf.mxu0 }
 0x9eb   : >> { %v1966_v30 = vpop.f32.mrf.mxu1  ;;  %v6358_v35 = vadd.f32 %v5534_v32, %v1927_v29 }
 0x9ec   : >> { %v1967_v31 = vadd.f32 %v5535_v28, %v1966_v30 }
 0x9ee   : >> { %2145 = vrot.lane.b32.xlu1 %v1967_v31, %s5846_s0 }
 0x9f2   : >> { %v1930_v33 = vpop.f32.mrf.mxu0  ;;  %v2005_v42 = vpop.f32.mrf.mxu2 }
 0x9f3   : >> { %v1969_v34 = vpop.f32.mrf.mxu1  ;;  %v1931_v36 = vadd.f32 %v5534_v32, %v1930_v33  ;;  %v2006_v46 = vadd.f32 %v5536_v45, %v2005_v42 }
 0x9f4   : >> { %v1970_v37 = vadd.f32 %v5535_v28, %v1969_v34 }
 0x9f5   : >> { %2141 = vrot.lane.b32.xlu2 %v1931_v36, %s5846_s0 }
 0x9f6   : >> { %2139 = vrot.lane.b32.xlu1 %v6358_v35, %s5846_s0  ;;  %2147 = vrot.lane.b32.xlu0 %v1970_v37, %s5846_s0 }
 0x9fa   : >> { %v1933_v40 = vpop.f32.mrf.mxu0  ;;  %v2008_v43 = vpop.f32.mrf.mxu2 }
 0x9fb   : >> { %v1972_v38 = vpop.f32.mrf.mxu1  ;;  %v1934_v41 = vadd.f32 %v5534_v32, %v1933_v40  ;;  %v2009_v47 = vadd.f32 %v5536_v45, %v2008_v43 }
 0x9fc   : >> { %v1973_v39 = vadd.f32 %v5535_v28, %v1972_v38 }
 0x9fd   : >> { %2417 = vrot.lane.b32.xlu2 %v1970_v37, %s5848_s23  ;;  %v6416_v51 = vpack.i.bf16 %v2006_v46, %v2009_v47 }
 0x9fe   : >> { %2281 = vrot.lane.b32.xlu1 %v1967_v31, %s5847_s2  ;;  %2149 = vrot.lane.b32.xlu0 %v1973_v39, %s5846_s0 }
 0x9ff   : >> { %5149 = vmatpush.xpose.msk.msra.mxu3 %vm1063_vm3, %v1973_v39 }
 0xa02   : >> { %v2011_v48 = vpop.f32.mrf.mxu2 }
 0xa03   : >> { %5150 = vmatpush.xpose.msk.msra.mxu3 %vm1063_vm3, %v1970_v37  ;;  %v6414_v50 = vadd.f32 %v5536_v45, %v2011_v48 }
 0xa05   : >> { %2409 = vrot.lane.b32.xlu2 %v6358_v35, %s5848_s23 }
 0xa06   : >> { %2415 = vrot.lane.b32.xlu1 %v1967_v31, %s5848_s23  ;;  %2283 = vrot.lane.b32.xlu0 %v1970_v37, %s5847_s2 }
 0xa07   : >> { %5151 = vmatpush.xpose.msk.msra.mxu3 %vm1063_vm3, %v1967_v31 }
 0xa0a   : >> { %5152 = vmatmul.msk.f32.vlgmr.msra.gmra.mxu3 %vm1063_vm3, %v6358_v35 }
 0xa0b   : >> { %5155 = vmatpush.msk.msrb.mxu3 %vm2109_vm12, %v6414_v50 }
 0xa0d   : >> { %2551 = vrot.lane.b32.xlu2 %v1970_v37, %s7555_s30  ;;  %2127 = vmatpush.msrb.mxu3 %v2009_v47 }
 0xa0e   : >> { %2549 = vrot.lane.b32.xlu1 %v1967_v31, %s7555_s30  ;;  %2275 = vrot.lane.b32.xlu0 %v6358_v35, %s5847_s2 }
 0xa0f   : >> { %2128 = vmatpush.msrb.mxu3 %v2006_v46 }
 0xa12   : >> { %5153 = vmatmul.msk.f32.gmra.mxu3 %vm1063_vm3, %v1931_v36 }
 0xa15   : >> { %2543 = vrot.lane.b32.xlu2 %v6358_v35, %s7555_s30 }
 0xa16   : >> { %2419 = vrot.lane.b32.xlu1 %v1973_v39, %s5848_s23  ;;  %2277 = vrot.lane.b32.xlu0 %v1931_v36, %s5847_s2 }
 0xa1a   : >> { %5154 = vmatmul.msk.f32.gmra.mxu3 %vm1063_vm3, %v1934_v41 }
 0xa1d   : >> { %2685 = vrot.lane.b32.xlu2 %v1970_v37, %s7557_s4 }
 0xa1e   : >> { %2411 = vrot.lane.b32.xlu0 %v1931_v36, %s5848_s23  ;;  %2279 = vrot.lane.b32.xlu1 %v1934_v41, %s5847_s2 }
 0xa25   : >> { %2285 = vrot.lane.b32.xlu2 %v1973_v39, %s5847_s2 }
 0xa26   : >> { %2553 = vrot.lane.b32.xlu0 %v1973_v39, %s7555_s30  ;;  %2683 = vrot.lane.b32.xlu1 %v1967_v31, %s7557_s4 }
 0xa2d   : >> { %2143 = vrot.lane.b32.xlu2 %v1934_v41, %s5846_s0 }
 0xa2e   : >> { %2545 = vrot.lane.b32.xlu0 %v1931_v36, %s7555_s30  ;;  %2413 = vrot.lane.b32.xlu1 %v1934_v41, %s5848_s23 }
 0xa35   : >> { %2677 = vrot.lane.b32.xlu2 %v6358_v35, %s7557_s4 }
 0xa36   : >> { %2687 = vrot.lane.b32.xlu0 %v1973_v39, %s7557_s4  ;;  %2547 = vrot.lane.b32.xlu1 %v1934_v41, %s7555_s30 }
 0xa3d   : >> { %2819 = vrot.lane.b32.xlu2 %v1970_v37, %s7553_s3 }
 0xa3e   : >> { %2821 = vrot.lane.b32.xlu0 %v1973_v39, %s7553_s3  ;;  %2817 = vrot.lane.b32.xlu1 %v1967_v31, %s7553_s3 }
 0xa45   : >> { %2811 = vrot.lane.b32.xlu2 %v6358_v35, %s7553_s3 }
 0xa46   : >> { %2679 = vrot.lane.b32.xlu0 %v1931_v36, %s7557_s4  ;;  %2681 = vrot.lane.b32.xlu1 %v1934_v41, %s7557_s4 }
 0xa4d   : >> { %2953 = vrot.lane.b32.xlu2 %v1970_v37, %s7551_s7 }
 0xa4e   : >> { %2955 = vrot.lane.b32.xlu0 %v1973_v39, %s7551_s7  ;;  %2951 = vrot.lane.b32.xlu1 %v1967_v31, %s7551_s7 }
 0xa4f   : >> { %v2142_v44 = vpop.permute.xlu2 %2141 }
 0xa55   : >> { %2945 = vrot.lane.b32.xlu2 %v6358_v35, %s7551_s7 }
 0xa56   : >> { %2813 = vrot.lane.b32.xlu0 %v1931_v36, %s7553_s3  ;;  %2947 = vrot.lane.b32.xlu1 %v1931_v36, %s7551_s7 }
 0xa57   : >> { %v2418_v49 = vpop.permute.xlu2 %2417 }
 0xa5d   : >> { %5505 = vrot.lane.b32.xlu2 %v6416_v51, %s5847_s2 }
 0xa5e   : >> { %2815 = vrot.lane.b32.xlu0 %v1934_v41, %s7553_s3  ;;  %2234 = vrot.lane.b32.xlu1 %v6414_v50, %s5846_s0 }
 0xa5f   : >> { %v2410_v54 = vpop.permute.xlu2 %2409 }
 0xa60   : >> { %v2146_v52 = vpop.permute.xlu1 %2145 }
 0xa65   : >> { %2949 = vrot.lane.b32.xlu2 %v1934_v41, %s7551_s7 }
 0xa66   : >> { %5500 = vrot.lane.b32.xlu0 %v6416_v51, %s5846_s0  ;;  %2502 = vrot.lane.b32.xlu1 %v6414_v50, %s5848_s23 }
 0xa67   : >> { %v2552_v58 = vpop.permute.xlu2 %2551 }
 0xa68   : >> { %v2140_v55 = vpop.permute.xlu1 %2139  ;;  %v2148_v57 = vpop.permute.xlu0 %2147 }
 0xa6d   : >> { %2368 = vrot.lane.b32.xlu2 %v6414_v50, %s5847_s2 }
 0xa6e   : >> { %5510 = vrot.lane.b32.xlu0 %v6416_v51, %s5848_s23  ;;  %5515 = vrot.lane.b32.xlu1 %v6416_v51, %s7555_s30 }
 0xa6f   : >> { %v2544_v61 = vpop.permute.xlu2 %2543 }
 0xa70   : >> { %v2282_v59 = vpop.permute.xlu1 %2281  ;;  %v2150_v60 = vpop.permute.xlu0 %2149 }
 0xa71   : >> { %5159 = vmatpush.xpose.msk.msrb.mxu0 %vm1063_vm3, %v2150_v60 }
 0xa75   : >> { %5160 = vmatpush.xpose.msk.msrb.mxu0 %vm1063_vm3, %v2148_v57  ;;  %2636 = vrot.lane.b32.xlu2 %v6414_v50, %s7555_s30  ;;  %s7559_s30 = smov 48  }
 0xa76   : >> { %2770 = vrot.lane.b32.xlu0 %v6414_v50, %s7557_s4  ;;  %5520 = vrot.lane.b32.xlu1 %v6416_v51, %s7557_s4  ;;  %s7561_s4 = smov 56  }
 0xa77   : >> { %v2686_v6 = vpop.permute.xlu2 %2685 }
 0xa78   : >> { %v2416_v4 = vpop.permute.xlu1 %2415  ;;  %v2284_v5 = vpop.permute.xlu0 %2283 }
 0xa79   : >> { %5161 = vmatpush.xpose.msk.msrb.mxu0 %vm1063_vm3, %v2146_v52 }
 0xa7c   : >> { %5162 = vmatmul.msk.f32.vlgmr.msrb.gmra.mxu0 %vm1063_vm3, %v2140_v55 }
 0xa7d   : >> { %2904 = vrot.lane.b32.xlu2 %v6414_v50, %s7553_s3 }
 0xa7f   : >> { %v2286_v9 = vpop.permute.xlu2 %2285 }
 0xa80   : >> { %v2550_v7 = vpop.permute.xlu1 %2549  ;;  %v2276_v8 = vpop.permute.xlu0 %2275  ;;  %5169 = vmatpush.xpose.msk.msrb.mxu2 %vm1063_vm3, %v2286_v9 }
 0xa84   : >> { %5163 = vmatmul.msk.f32.gmra.mxu0 %vm1063_vm3, %v2142_v44  ;;  %5170 = vmatpush.xpose.msk.msrb.mxu2 %vm1063_vm3, %v2284_v5 }
 0xa87   : >> { %v2144_v13 = vpop.permute.xlu2 %2143 }
 0xa88   : >> { %v2420_v11 = vpop.permute.xlu1 %2419  ;;  %v2278_v12 = vpop.permute.xlu0 %2277  ;;  %5171 = vmatpush.xpose.msk.msrb.mxu2 %vm1063_vm3, %v2282_v59 }
 0xa89   : >> { %5179 = vmatpush.xpose.msk.msra.mxu0 %vm1063_vm3, %v2420_v11 }
 0xa8b   : >> { %5172 = vmatmul.msk.f32.vlgmr.msrb.gmra.mxu2 %vm1063_vm3, %v2276_v8 }
 0xa8c   : >> { %5164 = vmatmul.msk.f32.gmra.mxu0 %vm1063_vm3, %v2144_v13 }
 0xa8d   : >> { %v2050_v14 = vpop.f32.mrf.mxu3  ;;  %5180 = vmatpush.xpose.msk.msra.mxu0 %vm1063_vm3, %v2418_v49 }
 0xa8e   : >> { %v2059_v18 = vmul.f32 0.35355338, %v2050_v14 }
 0xa8f   : >> { %v2678_v25 = vpop.permute.xlu2 %2677 }
 0xa90   : >> { %v2412_v15 = vpop.permute.xlu0 %2411  ;;  %v2280_v10 = vpop.permute.xlu1 %2279  ;;  %v6461_v21 = vadd.f32 %v2059_v18, %v6001_v0 }
 0xa91   : >> { %5181 = vmatpush.xpose.msk.msra.mxu0 %vm1063_vm3, %v2416_v4 }
 0xa92   : >> { %v2066_v26 = vsel %vm2065_vm13, %v6461_v21, -inf }
 0xa93   : >> { %5173 = vmatmul.msk.f32.gmra.mxu2 %vm1063_vm3, %v2278_v12 }
 0xa94   : >> { %5182 = vmatmul.msk.f32.vlgmr.msra.gmra.mxu0 %vm1063_vm3, %v2410_v54 }
 0xa95   : >> { %v2053_v17 = vpop.f32.mrf.mxu3 }
 0xa96   : >> { %v2060_v19 = vmul.f32 0.35355338, %v2053_v17 }
 0xa97   : >> { %v2820_v34 = vpop.permute.xlu2 %2819 }
 0xa98   : >> { %v2554_v53 = vpop.permute.xlu0 %2553  ;;  %v2684_v20 = vpop.permute.xlu1 %2683  ;;  %v6464_v22 = vadd.f32 %v2060_v19, %v6006_v1 }
 0xa99   : >> { %5189 = vmatpush.xpose.msk.msra.mxu2 %vm1063_vm3, %v2554_v53 }
 0xa9a   : >> { %v2069_v27 = vsel %vm2065_vm13, %v6464_v22, -inf }
 0xa9b   : >> { %5174 = vmatmul.msk.f32.gmra.mxu2 %vm1063_vm3, %v2280_v10 }
 0xa9c   : >> { %5183 = vmatmul.msk.f32.gmra.mxu0 %vm1063_vm3, %v2412_v15 }
 0xa9d   : >> { %v2056_v23 = vpop.f32.mrf.mxu3  ;;  %5190 = vmatpush.xpose.msk.msra.mxu2 %vm1063_vm3, %v2552_v58 }
 0xa9e   : >> { %v2061_v24 = vmul.f32 0.35355338, %v2056_v23 }
 0xa9f   : >> { %v2812_v37 = vpop.permute.xlu2 %2811 }
 0xaa0   : >> { %v2546_v28 = vpop.permute.xlu0 %2545  ;;  %2067 = vmax.xlane.f32.xlu0 %v2066_v26  ;;  %2070 = vmax.xlane.f32.xlu1 %v2069_v27  ;;  %v2414_v29 = vpop.permute.xlu1 %2413  ;;  %v6474_v30 = vadd.f32 %v2061_v24, %v6011_v2 }
 0xaa1   : >> { %5191 = vmatpush.xpose.msk.msra.mxu2 %vm1063_vm3, %v2550_v7 }
 0xaa2   : >> { %v2073_v31 = vsel %vm2072_vm14, %v6474_v30, -inf }
 0xaa4   : >> { %5184 = vmatmul.msk.f32.gmra.mxu0 %vm1063_vm3, %v2414_v29  ;;  %5192 = vmatmul.msk.f32.vlgmr.msra.gmra.mxu2 %vm1063_vm3, %v2544_v61 }
 0xaa6   : >> { %2074 = vmax.xlane.f32.xlu2 %v2073_v31 }
 0xaa7   : >> { %v2954_v40 = vpop.permute.xlu2 %2953 }
 0xaa8   : >> { %v2688_v32 = vpop.permute.xlu0 %2687  ;;  %v2548_v33 = vpop.permute.xlu1 %2547 }
 0xaa9   : >> { %5199 = vmatpush.xpose.msk.msrb.mxu0 %vm1063_vm3, %v2688_v32 }
 0xaac   : >> { %5193 = vmatmul.msk.f32.gmra.mxu2 %vm1063_vm3, %v2546_v28 }
 0xaad   : >> { %5200 = vmatpush.xpose.msk.msrb.mxu0 %vm1063_vm3, %v2686_v6 }
 0xaaf   : >> { %v2946_v43 = vpop.permute.xlu2 %2945 }
 0xab0   : >> { %v2822_v35 = vpop.permute.xlu0 %2821  ;;  %v2818_v36 = vpop.permute.xlu1 %2817 }
 0xab1   : >> { %5201 = vmatpush.xpose.msk.msrb.mxu0 %vm1063_vm3, %v2684_v20  ;;  %5209 = vmatpush.xpose.msk.msrb.mxu2 %vm1063_vm3, %v2822_v35 }
 0xab4   : >> { %5202 = vmatmul.msk.f32.vlgmr.msrb.gmra.mxu0 %vm1063_vm3, %v2678_v25  ;;  %5194 = vmatmul.msk.f32.gmra.mxu2 %vm1063_vm3, %v2548_v33 }
 0xab5   : >> { %5210 = vmatpush.xpose.msk.msrb.mxu2 %vm1063_vm3, %v2820_v34 }
 0xab7   : >> { %v6498_v48 = vpop.permute.xlu2 %5505 }
 0xab8   : >> { %v2680_v38 = vpop.permute.xlu0 %2679  ;;  %v2682_v39 = vpop.permute.xlu1 %2681 }
 0xab9   : >> { %5211 = vmatpush.xpose.msk.msrb.mxu2 %vm1063_vm3, %v2818_v36 }
 0xabc   : >> { %5203 = vmatmul.msk.f32.gmra.mxu0 %vm1063_vm3, %v2680_v38  ;;  %5212 = vmatmul.msk.f32.vlgmr.msrb.gmra.mxu2 %vm1063_vm3, %v2812_v37 }
 0xabf   : >> { %v2950_v49 = vpop.permute.xlu2 %2949 }
 0xac0   : >> { %v2956_v41 = vpop.permute.xlu0 %2955  ;;  %v2952_v42 = vpop.permute.xlu1 %2951 }
 0xac1   : >> { %5219 = vmatpush.xpose.msk.msra.mxu0 %vm1063_vm3, %v2956_v41 }
 0xac4   : >> { %5204 = vmatmul.msk.f32.gmra.mxu0 %vm1063_vm3, %v2682_v39 }
 0xac5   : >> { %5220 = vmatpush.xpose.msk.msra.mxu0 %vm1063_vm3, %v2954_v40 }
 0xac7   : >> { %v6511_v9 = vpop.permute.xlu2 %2368 }
 0xac8   : >> { %v2814_v44 = vpop.permute.xlu0 %2813  ;;  %v2948_v45 = vpop.permute.xlu1 %2947 }
 0xac9   : >> { %5213 = vmatmul.msk.f32.gmra.mxu2 %vm1063_vm3, %v2814_v44  ;;  %5221 = vmatpush.xpose.msk.msra.mxu0 %vm1063_vm3, %v2952_v42 }
 0xacc   : >> { %5222 = vmatmul.msk.f32.vlgmr.msra.gmra.mxu0 %vm1063_vm3, %v2946_v43 }
 0xacf   : >> { %v6525_v18 = vpop.permute.xlu2 %2636 }
 0xad0   : >> { %v2816_v46 = vpop.permute.xlu0 %2815  ;;  %v2235_v47 = vpop.permute.xlu1 %2234 }
 0xad1   : >> { %5214 = vmatmul.msk.f32.gmra.mxu2 %vm1063_vm3, %v2816_v46  ;;  %5165 = vmatpush.msk.msrb.mxu1 %vm2109_vm12, %v2235_v47 }
 0xad2   : >> { %5343 = vmatpush.msk.msra.mxu3 %vm2109_vm12, %v2235_v47 }
 0xad4   : >> { %5223 = vmatmul.msk.f32.gmra.mxu0 %vm1063_vm3, %v2948_v45 }
 0xad7   : >> { %v6537_v29 = vpop.permute.xlu2 %2904 }
 0xad8   : >> { %v5501_v52 = vpop.permute.xlu0 %5500  ;;  %v2503_v59 = vpop.permute.xlu1 %2502 }
 0xad9   : >> { %v5502_v54 = vunpack.i.l.bf16 %v5501_v52  ;;  %v5503_v55 = vunpack.i.h.bf16 %v5501_v52 }
 0xadb   : >> { %2263 = vmatpush.msrb.mxu1 %v5502_v54  ;;  %5344 = vmatpush.msra.mxu3 %v5502_v54 }
 0xadc   : >> { %5224 = vmatmul.msk.f32.gmra.mxu0 %vm1063_vm3, %v2950_v49 }
 0xadd   : >> { %2264 = vmatpush.msrb.mxu1 %v5503_v55  ;;  %5345 = vmatpush.msra.mxu3 %v5503_v55 }
 0xadf   : >> { %5185 = vmatpush.msk.msra.mxu1 %vm2109_vm12, %v2503_v59 }
 0xae0   : >> { %v5511_v57 = vpop.permute.xlu0 %5510  ;;  %v6516_v12 = vpop.permute.xlu1 %5515 }
 0xae1   : >> { %v5512_v58 = vunpack.i.l.bf16 %v5511_v57  ;;  %v5513_v60 = vunpack.i.h.bf16 %v5511_v57 }
 0xae3   : >> { %2531 = vmatpush.msra.mxu1 %v5512_v58 }
 0xae5   : >> { %2532 = vmatpush.msra.mxu1 %v5513_v60 }
 0xae8   : >> { %v6520_v15 = vpop.permute.xlu0 %2770  ;;  %v6529_v53 = vpop.permute.xlu1 %5520 }
 0xaf9   : >> { %v2180_v61 = vpop.f32.mrf.mxu0 }
 0xafa   : >> { %v2189_v4 = vmul.f32 0.35355338, %v2180_v61 }
 0xafc   : >> { %v6507_v5 = vadd.f32 %v2189_v4, %v6001_v0 }
 0xafe   : >> { %v2195_v6 = vsel %vm2065_vm13, %v6507_v5, -inf }
 0xaff   : >> { %2196 = vmax.xlane.f32.xlu2 %v2195_v6 }
 0xb01   : >> { %v2183_v7 = vpop.f32.mrf.mxu0 }
 0xb02   : >> { %v2190_v8 = vmul.f32 0.35355338, %v2183_v7 }
 0xb04   : >> { %v6514_v11 = vadd.f32 %v2190_v8, %v6006_v1 }
 0xb06   : >> { %v2198_v13 = vsel %vm2065_vm13, %v6514_v11, -inf }
 0xb07   : >> { %2199 = vmax.xlane.f32.xlu1 %v2198_v13 }
 0xb09   : >> { %v2186_v14 = vpop.f32.mrf.mxu0 }
 0xb0a   : >> { %v2191_v10 = vmul.f32 0.35355338, %v2186_v14 }
 0xb0c   : >> { %v6523_v17 = vadd.f32 %v2191_v10, %v6011_v2 }
 0xb0e   : >> { %v2201_v19 = vsel %vm2072_vm14, %v6523_v17, -inf  ;;  %v2316_v20 = vpop.f32.mrf.mxu2 }
 0xb0f   : >> { %2202 = vmax.xlane.f32.xlu0 %v2201_v19  ;;  %v2325_v23 = vmul.f32 0.35355338, %v2316_v20 }
 0xb11   : >> { %v2450_v24 = vpop.f32.mrf.mxu0  ;;  %v6532_v25 = vadd.f32 %v2325_v23, %v6001_v0 }
 0xb12   : >> { %v2459_v54 = vmul.f32 0.35355338, %v2450_v24 }
 0xb13   : >> { %v2068_v26 = vpop.xlane.xlu0 %2067  ;;  %v2331_v28 = vsel %vm2065_vm13, %v6532_v25, -inf  ;;  %v2071_v33 = vpop.xlane.xlu1 %2070 }
 0xb14   : >> { %v2076_v27 = vsub.f32 %v6461_v21, %v2068_v26  ;;  %2332 = vmax.xlane.f32.xlu2 %v2331_v28  ;;  %v2077_v38 = vsub.f32 %v6464_v22, %v2071_v33 }
 0xb16   : >> { %v2079_v31 = vmul.f32 1.442695, %v2076_v27  ;;  %v2319_v32 = vpop.f32.mrf.mxu2  ;;  %v2081_v41 = vmul.f32 1.442695, %v2077_v38 }
 0xb17   : >> { %v2326_v34 = vmul.f32 0.35355338, %v2319_v32 }
 0xb18   : >> { %5550 = vpow2.f32 %v2079_v31 }
 0xb19   : >> { %v2453_v35 = vpop.f32.mrf.mxu0  ;;  %v6540_v37 = vadd.f32 %v2326_v34, %v6006_v1  ;;  %v2075_v43 = vpop.xlane.xlu2 %2074  ;;  %5552 = vpow2.f32 %v2081_v41 }
 0xb1a   : >> { %v2460_v36 = vmul.f32 0.35355338, %v2453_v35  ;;  %v2078_v49 = vsub.f32 %v6474_v30, %v2075_v43  ;;  %v6566_v30 = vadd.f32 %v2459_v54, %v6001_v0 }
 0xb1b   : >> { %v2334_v39 = vsel %vm2065_vm13, %v6540_v37, -inf }
 0xb1c   : >> { %v6544_v21 = vadd.f32 %v2460_v36, %v6006_v1  ;;  %2335 = vmax.xlane.f32.xlu1 %v2334_v39  ;;  %v2083_v59 = vmul.f32 1.442695, %v2078_v49  ;;  %v2465_v7 = vsel %vm2065_vm13, %v6566_v30, -inf }
 0xb1e   : >> { %v2468_v40 = vsel %vm2065_vm13, %v6544_v21, -inf  ;;  %v2322_v42 = vpop.f32.mrf.mxu2  ;;  %v6550_v46 = vpop.eup %5550  ;;  %5554 = vpow2.f32 %v2083_v59 }
 0xb1f   : >> { %2469 = vmax.xlane.f32.xlu2 %v2468_v40  ;;  %v2327_v44 = vmul.f32 0.35355338, %v2322_v42  ;;  %v2085_v55 = vsel %vm2065_vm13, %v6550_v46, 0.0  ;;  %v6568_v61 = vpop.eup %5552 }
 0xb20   : >> { %v2088_v6 = vsel %vm2065_vm13, %v6568_v61, 0.0 }
 0xb21   : >> { %v2456_v45 = vpop.f32.mrf.mxu0  ;;  %v6553_v22 = vadd.f32 %v2327_v44, %v6011_v2 }
 0xb22   : >> { %v2461_v47 = vmul.f32 0.35355338, %v2456_v45 }
 0xb23   : >> { %v2337_v57 = vsel %vm2072_vm14, %v6553_v22, -inf }
 0xb24   : >> { %v6557_v52 = vadd.f32 %v2461_v47, %v6011_v2  ;;  %2086 = vadd.xlane.f32.xlu1 %v2085_v55  ;;  %2338 = vmax.xlane.f32.xlu0 %v2337_v57  ;;  %v6577_v10 = vpop.eup %5554 }
 0xb25   : >> { %v2091_v26 = vsel %vm2072_vm14, %v6577_v10, 0.0 }
 0xb26   : >> { %v2471_v58 = vsel %vm2072_vm14, %v6557_v52, -inf }
 0xb27   : >> { %2472 = vmax.xlane.f32.xlu2 %v2471_v58  ;;  %v2584_v60 = vpop.f32.mrf.mxu2 }
 0xb28   : >> { %v2593_v4 = vmul.f32 0.35355338, %v2584_v60 }
 0xb2a   : >> { %v6575_v13 = vadd.f32 %v2593_v4, %v6001_v0 }
 0xb2c   : >> { %2089 = vadd.xlane.f32.xlu1 %v2088_v6  ;;  %2466 = vmax.xlane.f32.xlu0 %v2465_v7  ;;  %v2599_v24 = vsel %vm2065_vm13, %v6575_v13, -inf }
 0xb2f   : >> { %v2587_v8 = vpop.f32.mrf.mxu2 }
 0xb30   : >> { %v2594_v23 = vmul.f32 0.35355338, %v2587_v8 }
 0xb31   : >> { %v2718_v14 = vpop.f32.mrf.mxu0 }
 0xb32   : >> { %v2727_v19 = vmul.f32 0.35355338, %v2718_v14  ;;  %v6589_v31 = vadd.f32 %v2594_v23, %v6006_v1 }
 0xb34   : >> { %v6580_v20 = vadd.f32 %v2727_v19, %v6001_v0  ;;  %2600 = vmax.xlane.f32.xlu0 %v2599_v24  ;;  %2092 = vadd.xlane.f32.xlu1 %v2091_v26  ;;  %v2602_v34 = vsel %vm2065_vm13, %v6589_v31, -inf }
 0xb36   : >> { %v2733_v27 = vsel %vm2065_vm13, %v6580_v20, -inf }
 0xb37   : >> { %2734 = vmax.xlane.f32.xlu2 %v2733_v27  ;;  %v2590_v28 = vpop.f32.mrf.mxu2 }
 0xb38   : >> { %v2595_v33 = vmul.f32 0.35355338, %v2590_v28 }
 0xb39   : >> { %v2721_v32 = vpop.f32.mrf.mxu0 }
 0xb3a   : >> { %v6594_v36 = vadd.f32 %v2595_v33, %v6011_v2  ;;  %v2728_v41 = vmul.f32 0.35355338, %v2721_v32 }
 0xb3c   : >> { %2603 = vmax.xlane.f32.xlu0 %v2602_v34  ;;  %v2605_v42 = vsel %vm2072_vm14, %v6594_v36, -inf  ;;  %v6604_v44 = vadd.f32 %v2728_v41, %v6006_v1 }
 0xb3e   : >> { %v2736_v57 = vsel %vm2065_vm13, %v6604_v44, -inf }
 0xb3f   : >> { %v2852_v35 = vpop.f32.mrf.mxu2 }
 0xb40   : >> { %v2861_v38 = vmul.f32 0.35355338, %v2852_v35 }
 0xb41   : >> { %v2724_v39 = vpop.f32.mrf.mxu0 }
 0xb42   : >> { %v6597_v40 = vadd.f32 %v2861_v38, %v6001_v0  ;;  %v2729_v60 = vmul.f32 0.35355338, %v2724_v39 }
 0xb44   : >> { %v2867_v43 = vsel %vm2065_vm13, %v6597_v40, -inf  ;;  %2606 = vmax.xlane.f32.xlu0 %v2605_v42  ;;  %v6619_v6 = vadd.f32 %v2729_v60, %v6011_v2 }
 0xb45   : >> { %2868 = vmax.xlane.f32.xlu2 %v2867_v43 }
 0xb46   : >> { %v2739_v14 = vsel %vm2072_vm14, %v6619_v6, -inf }
 0xb49   : >> { %v2986_v45 = vpop.f32.mrf.mxu0 }
 0xb4a   : >> { %v2995_v47 = vmul.f32 0.35355338, %v2986_v45 }
 0xb4c   : >> { %v6607_v49 = vadd.f32 %v2995_v47, %v6001_v0  ;;  %v2855_v54 = vpop.f32.mrf.mxu2 }
 0xb4d   : >> { %v2862_v55 = vmul.f32 0.35355338, %v2855_v54  ;;  %2737 = vmax.xlane.f32.xlu2 %v2736_v57 }
 0xb4e   : >> { %v3001_v58 = vsel %vm2065_vm13, %v6607_v49, -inf }
 0xb4f   : >> { %v6614_v59 = vadd.f32 %v2862_v55, %v6006_v1  ;;  %3002 = vmax.xlane.f32.xlu1 %v3001_v58 }
 0xb51   : >> { %v2870_v4 = vsel %vm2065_vm13, %v6614_v59, -inf  ;;  %v2989_v19 = vpop.f32.mrf.mxu0 }
 0xb52   : >> { %2871 = vmax.xlane.f32.xlu0 %v2870_v4  ;;  %v2996_v24 = vmul.f32 0.35355338, %v2989_v19 }
 0xb54   : >> { %v2858_v7 = vpop.f32.mrf.mxu2  ;;  %v6629_v27 = vadd.f32 %v2996_v24, %v6006_v1 }
 0xb55   : >> { %v2863_v8 = vmul.f32 0.35355338, %v2858_v7 }
 0xb56   : >> { %v3004_v33 = vsel %vm2065_vm13, %v6629_v27, -inf }
 0xb57   : >> { %v6624_v23 = vadd.f32 %v2863_v8, %v6011_v2 }
 0xb59   : >> { %v2873_v26 = vsel %vm2072_vm14, %v6624_v23, -inf  ;;  %v2992_v28 = vpop.f32.mrf.mxu0 }
 0xb5a   : >> { %2740 = vmax.xlane.f32.xlu0 %v2739_v14  ;;  %v2997_v32 = vmul.f32 0.35355338, %v2992_v28 }
 0xb5c   : >> { %v6634_v34 = vadd.f32 %v2997_v32, %v6011_v2 }
 0xb5e   : >> { %v3007_v35 = vsel %vm2072_vm14, %v6634_v34, -inf }
 0xb62   : >> { %2874 = vmax.xlane.f32.xlu0 %v2873_v26 }
 0xb6a   : >> { %3005 = vmax.xlane.f32.xlu0 %v3004_v33 }
 0xb72   : >> { %3008 = vmax.xlane.f32.xlu0 %v3007_v35  ;;  %v2197_v38 = vpop.xlane.xlu2 %2196 }
 0xb73   : >> { %v2204_v39 = vsub.f32 %v6507_v5, %v2197_v38 }
 0xb75   : >> { %v2207_v41 = vmul.f32 1.442695, %v2204_v39 }
 0xb77   : >> { %5556 = vpow2.f32 %v2207_v41 }
 0xb7a   : >> { %v2200_v45 = vpop.xlane.xlu1 %2199 }
 0xb7b   : >> { %v2205_v55 = vsub.f32 %v6514_v11, %v2200_v45 }
 0xb7d   : >> { %v6639_v42 = vpop.eup %5556  ;;  %v2209_v58 = vmul.f32 1.442695, %v2205_v55 }
 0xb7e   : >> { %v2213_v43 = vsel %vm2065_vm13, %v6639_v42, 0.0 }
 0xb7f   : >> { %2214 = vadd.xlane.f32.xlu1 %v2213_v43 }
 0xb82   : >> { %v2203_v60 = vpop.xlane.xlu0 %2202 }
 0xb83   : >> { %v2206_v14 = vsub.f32 %v6523_v17, %v2203_v60 }
 0xb85   : >> { %v2211_v11 = vmul.f32 1.442695, %v2206_v14 }
 0xb87   : >> { %v2333_v47 = vpop.xlane.xlu2 %2332 }
 0xb88   : >> { %v2340_v54 = vsub.f32 %v6532_v25, %v2333_v47 }
 0xb8a   : >> { %v2343_v57 = vmul.f32 1.442695, %v2340_v54 }
 0xb8c   : >> { %5558 = vpow2.f32 %v2343_v57 }
 0xb8d   : >> { %5560 = vpow2.f32 %v2209_v58 }
 0xb8f   : >> { %v2336_v4 = vpop.xlane.xlu1 %2335 }
 0xb90   : >> { %v2341_v5 = vsub.f32 %v6540_v37, %v2336_v4 }
 0xb92   : >> { %v2470_v7 = vpop.xlane.xlu2 %2469  ;;  %v6646_v8 = vpop.eup %5558  ;;  %v2345_v19 = vmul.f32 1.442695, %v2341_v5 }
 0xb93   : >> { %v2475_v24 = vsub.f32 %v6544_v21, %v2470_v7  ;;  %v2349_v25 = vsel %vm2065_vm13, %v6646_v8, 0.0  ;;  %v6652_v33 = vpop.eup %5560 }
 0xb94   : >> { %5562 = vpow2.f32 %v2345_v19  ;;  %2350 = vadd.xlane.f32.xlu2 %v2349_v25  ;;  %v2216_v35 = vsel %vm2065_vm13, %v6652_v33, 0.0 }
 0xb95   : >> { %v2479_v26 = vmul.f32 1.442695, %v2475_v24 }
 0xb97   : >> { %v2087_v28 = vpop.xlane.xlu1 %2086  ;;  %v2339_v32 = vpop.xlane.xlu0 %2338 }
 0xb98   : >> { %5564 = vrcp.f32 %v2087_v28  ;;  %v2342_v17 = vsub.f32 %v6553_v22, %v2339_v32  ;;  %v5507_v22 = vunpack.i.l.bf16 %v6498_v48 }
 0xb99   : >> { %5566 = vpow2.f32 %v2211_v11 }
 0xb9a   : >> { %v6654_v37 = vpop.eup %5562  ;;  %5568 = vpow2.f32 %v2479_v26  ;;  %v2347_v39 = vmul.f32 1.442695, %v2342_v17  ;;  %v2473_v4 = vpop.xlane.xlu2 %2472 }
 0xb9b   : >> { %v2352_v21 = vsel %vm2065_vm13, %v6654_v37, 0.0 }
 0xb9c   : >> { %2353 = vadd.xlane.f32.xlu1 %v2352_v21  ;;  %2217 = vadd.xlane.f32.xlu2 %v2216_v35 }
 0xb9e   : >> { %v5565_v38 = vpop.eup %5564 }
 0xb9f   : >> { %v2090_v41 = vpop.xlane.xlu1 %2089  ;;  %v2467_v43 = vpop.xlane.xlu0 %2466  ;;  %v2097_v45 = vmul.f32 %v5565_v38, %v6550_v46  ;;  %v5508_v46 = vunpack.i.h.bf16 %v6498_v48 }
 0xba0   : >> { %v6662_v47 = vpop.eup %5566  ;;  %5570 = vrcp.f32 %v2090_v41  ;;  %v2474_v55 = vsub.f32 %v6566_v30, %v2467_v43 }
 0xba1   : >> { %v6664_v54 = vpop.eup %5568  ;;  %5156 = vmatmul.msk.f32.vlgmr.msrb.gmra.mxu3 %vm2065_vm13, %v2097_v45  ;;  %5572 = vpow2.f32 %v2347_v39  ;;  %v2219_v57 = vsel %vm2072_vm14, %v6662_v47, 0.0 }
 0xba2   : >> { %5175 = vmatpush.msk.msrb.mxu3 %vm2109_vm12, %v6511_v9  ;;  %v2486_v58 = vsel %vm2065_vm13, %v6664_v54, 0.0  ;;  %v2477_v5 = vmul.f32 1.442695, %v2474_v55 }
 0xba4   : >> { %2397 = vmatpush.msrb.mxu3 %v5507_v22  ;;  %2220 = vadd.xlane.f32.xlu2 %v2219_v57 }
 0xba5   : >> { %2487 = vadd.xlane.f32.xlu1 %v2486_v58 }
 0xba6   : >> { %v5571_v60 = vpop.eup %5570  ;;  %2398 = vmatpush.msrb.mxu3 %v5508_v46 }
 0xba7   : >> { %v2601_v7 = vpop.xlane.xlu0 %2600  ;;  %v2093_v30 = vpop.xlane.xlu1 %2092  ;;  %v2098_v14 = vmul.f32 %v5571_v60, %v6568_v61 }
 0xba8   : >> { %v6677_v9 = vpop.eup %5572  ;;  %5574 = vrcp.f32 %v2093_v30  ;;  %v2608_v48 = vsub.f32 %v6575_v13, %v2601_v7 }
 0xba9   : >> { %5157 = vmatmul.msk.f32.gmra.mxu3 %vm2065_vm13, %v2098_v14  ;;  %5576 = vpow2.f32 %v2477_v5  ;;  %v2355_v19 = vsel %vm2072_vm14, %v6677_v9, 0.0 }
 0xbaa   : >> { %v2611_v25 = vmul.f32 1.442695, %v2608_v48  ;;  %v2735_v11 = vpop.xlane.xlu2 %2734 }
 0xbab   : >> { %v2742_v41 = vsub.f32 %v6580_v20, %v2735_v11 }
 0xbac   : >> { %2356 = vadd.xlane.f32.xlu2 %v2355_v19  ;;  %5578 = vpow2.f32 %v2611_v25 }
 0xbad   : >> { %v2745_v22 = vmul.f32 1.442695, %v2742_v41 }
 0xbae   : >> { %v5575_v24 = vpop.eup %5574 }
 0xbaf   : >> { %v2604_v26 = vpop.xlane.xlu0 %2603  ;;  %v2099_v28 = vmul.f32 %v5575_v24, %v6577_v10  ;;  %v6684_v32 = vpop.eup %5576  ;;  %v2476_v10 = vsub.f32 %v6557_v52, %v2473_v4 }
 0xbb0   : >> { %v2609_v61 = vsub.f32 %v6589_v31, %v2604_v26  ;;  %v2483_v13 = vsel %vm2065_vm13, %v6684_v32, 0.0 }
 0xbb1   : >> { %5158 = vmatmul.msk.f32.gmra.mxu3 %vm2065_vm13, %v2099_v28  ;;  %v2481_v45 = vmul.f32 1.442695, %v2476_v10 }
 0xbb2   : >> { %v2613_v17 = vmul.f32 1.442695, %v2609_v61  ;;  %v6690_v38 = vpop.eup %5578 }
 0xbb3   : >> { %v2617_v31 = vsel %vm2065_vm13, %v6690_v38, 0.0 }
 0xbb4   : >> { %2484 = vadd.xlane.f32.xlu2 %v2483_v13  ;;  %5580 = vpow2.f32 %v2613_v17 }
 0xbb7   : >> { %v2607_v21 = vpop.xlane.xlu0 %2606 }
 0xbb8   : >> { %v2869_v35 = vpop.xlane.xlu2 %2868  ;;  %v2610_v39 = vsub.f32 %v6594_v36, %v2607_v21 }
 0xbb9   : >> { %v2876_v36 = vsub.f32 %v6597_v40, %v2869_v35 }
 0xbba   : >> { %v2615_v43 = vmul.f32 1.442695, %v2610_v39  ;;  %v6697_v57 = vpop.eup %5580 }
 0xbbb   : >> { %v2620_v4 = vsel %vm2065_vm13, %v6697_v57, 0.0 }
 0xbbc   : >> { %5582 = vpow2.f32 %v2615_v43  ;;  %2618 = vadd.xlane.f32.xlu2 %v2617_v31 }
 0xbbd   : >> { %5584 = vpow2.f32 %v2481_v45 }
 0xbbe   : >> { %5586 = vpow2.f32 %v2745_v22  ;;  %v5522_v22 = vunpack.i.l.bf16 %v6529_v53 }
 0xbc0   : >> { %v2738_v55 = vpop.xlane.xlu2 %2737 }
 0xbc1   : >> { %v2743_v46 = vsub.f32 %v6604_v44, %v2738_v55  ;;  %v2879_v44 = vmul.f32 1.442695, %v2876_v36 }
 0xbc2   : >> { %v6701_v52 = vpop.eup %5582  ;;  %v3003_v7 = vpop.xlane.xlu1 %3002 }
 0xbc3   : >> { %v2747_v20 = vmul.f32 1.442695, %v2743_v46  ;;  %v2623_v60 = vsel %vm2072_vm14, %v6701_v52, 0.0  ;;  %v6708_v40 = vpop.eup %5584  ;;  %v3010_v48 = vsub.f32 %v6607_v49, %v3003_v7  ;;  %v5523_v46 = vunpack.i.h.bf16 %v6529_v53 }
 0xbc4   : >> { %2624 = vadd.xlane.f32.xlu0 %v2623_v60  ;;  %2621 = vadd.xlane.f32.xlu2 %v2620_v4  ;;  %v6710_v14 = vpop.eup %5586  ;;  %v2489_v25 = vsel %vm2072_vm14, %v6708_v40, 0.0 }
 0xbc5   : >> { %v2872_v58 = vpop.xlane.xlu0 %2871  ;;  %5588 = vpow2.f32 %v2747_v20  ;;  %v3013_v28 = vmul.f32 1.442695, %v3010_v48 }
 0xbc6   : >> { %v2877_v5 = vsub.f32 %v6614_v59, %v2872_v58  ;;  %5590 = vpow2.f32 %v2879_v44  ;;  %v2751_v59 = vsel %vm2065_vm13, %v6710_v14, 0.0 }
 0xbc8   : >> { %v2881_v30 = vmul.f32 1.442695, %v2877_v5 }
 0xbca   : >> { %5592 = vpow2.f32 %v2881_v30 }
 0xbcb   : >> { %v6713_v19 = vpop.eup %5588  ;;  %5594 = vpow2.f32 %v3013_v28  ;;  %v5518_v28 = vunpack.i.h.bf16 %v6516_v12 }
 0xbcc   : >> { %v2754_v11 = vsel %vm2065_vm13, %v6713_v19, 0.0  ;;  %2490 = vadd.xlane.f32.xlu2 %v2489_v25  ;;  %2752 = vadd.xlane.f32.xlu0 %v2751_v59  ;;  %v6722_v61 = vpop.eup %5590 }
 0xbcd   : >> { %v2741_v24 = vpop.xlane.xlu0 %2740  ;;  %2755 = vadd.xlane.f32.xlu1 %v2754_v11  ;;  %v2885_v21 = vsel %vm2065_vm13, %v6722_v61, 0.0 }
 0xbce   : >> { %v2744_v26 = vsub.f32 %v6619_v6, %v2741_v24 }
 0xbd0   : >> { %v2749_v49 = vmul.f32 1.442695, %v2744_v26  ;;  %v6724_v13 = vpop.eup %5592 }
 0xbd1   : >> { %v2888_v17 = vsel %vm2065_vm13, %v6724_v13, 0.0  ;;  %v6730_v6 = vpop.eup %5594 }
 0xbd2   : >> { %5596 = vpow2.f32 %v2749_v49  ;;  %v3019_v39 = vsel %vm2065_vm13, %v6730_v6, 0.0 }
 0xbd4   : >> { %2889 = vadd.xlane.f32.xlu0 %v2888_v17  ;;  %2886 = vadd.xlane.f32.xlu2 %v2885_v21 }
 0xbd5   : >> { %v2875_v43 = vpop.xlane.xlu0 %2874 }
 0xbd8   : >> { %v6732_v35 = vpop.eup %5596 }
 0xbd9   : >> { %v2757_v10 = vsel %vm2072_vm14, %v6732_v35, 0.0 }
 0xbdc   : >> { %3020 = vadd.xlane.f32.xlu0 %v3019_v39  ;;  %2758 = vadd.xlane.f32.xlu2 %v2757_v10 }
 0xbdd   : >> { %v3006_v55 = vpop.xlane.xlu0 %3005 }
 0xbde   : >> { %v3011_v58 = vsub.f32 %v6629_v27, %v3006_v55 }
 0xbe0   : >> { %v3015_v5 = vmul.f32 1.442695, %v3011_v58 }
 0xbe5   : >> { %v3009_v20 = vpop.xlane.xlu0 %3008 }
 0xbe6   : >> { %5525 = vrot.lane.b32.xlu1 %v6416_v51, %s7553_s3  ;;  %s7565_s3 = smov 40  }
 0xbf0   : >> { %5530 = vrot.lane.b32.xlu0 %v6416_v51, %s7551_s7  ;;  %v2878_v51 = vsub.f32 %v6624_v23, %v2875_v43 }
 0xbf2   : >> { %v2215_v41 = vpop.xlane.xlu1 %2214  ;;  %v2883_v36 = vmul.f32 1.442695, %v2878_v51 }
 0xbf3   : >> { %5598 = vrcp.f32 %v2215_v41 }
 0xbf4   : >> { %3038 = vrot.lane.b32.xlu2 %v6414_v50, %s7551_s7  ;;  %5600 = vpow2.f32 %v2883_v36  ;;  %s7563_s7 = smov 32  }
 0xbf9   : >> { %v5599_v31 = vpop.eup %5598 }
 0xbfa   : >> { %v2225_v45 = vmul.f32 %v5599_v31, %v6639_v42  ;;  %v3012_v42 = vsub.f32 %v6634_v34, %v3009_v20  ;;  %v6753_v60 = vpop.eup %5600 }
 0xbfc   : >> { %5166 = vmatmul.msk.f32.vlgmr.msrb.gmra.mxu1 %vm2065_vm13, %v2225_v45  ;;  %v3017_v4 = vmul.f32 1.442695, %v3012_v42 }
 0xbfd   : >> { %5205 = vmatpush.msk.msrb.mxu1 %vm2109_vm12, %v6520_v15  ;;  %v2891_v15 = vsel %vm2072_vm14, %v6753_v60, 0.0 }
 0xbfe   : >> { %5602 = vpow2.f32 %v3017_v4 }
 0xbff   : >> { %2799 = vmatpush.msrb.mxu1 %v5522_v22 }
 0xc01   : >> { %2800 = vmatpush.msrb.mxu1 %v5523_v46 }
 0xc04   : >> { %v6757_v23 = vpop.eup %5602 }
 0xc05   : >> { %v3025_v30 = vsel %vm2072_vm14, %v6757_v23, 0.0 }
 0xc07   : >> { %v2351_v50 = vpop.xlane.xlu2 %2350 }
 0xc0f   : >> { %v2218_v53 = vpop.xlane.xlu2 %2217  ;;  %v2354_v11 = vpop.xlane.xlu1 %2353 }
 0xc10   : >> { %2892 = vadd.xlane.f32.xlu1 %v2891_v15  ;;  %5604 = vrcp.f32 %v2218_v53 }
 0xc11   : >> { %5606 = vpow2.f32 %v3015_v5 }
 0xc16   : >> { %v5605_v44 = vpop.eup %5604 }
 0xc17   : >> { %v2221_v7 = vpop.xlane.xlu2 %2220  ;;  %v2226_v34 = vmul.f32 %v5605_v44, %v6652_v33  ;;  %v6760_v27 = vpop.eup %5606  ;;  %v5517_v33 = vunpack.i.l.bf16 %v6516_v12 }
 0xc18   : >> { %5608 = vrcp.f32 %v2221_v7  ;;  %v3022_v48 = vsel %vm2065_vm13, %v6760_v27, 0.0 }
 0xc19   : >> { %5167 = vmatmul.msk.f32.gmra.mxu1 %vm2065_vm13, %v2226_v34  ;;  %5610 = vrcp.f32 %v2351_v50 }
 0xc1a   : >> { %3026 = vadd.xlane.f32.xlu0 %v3025_v30  ;;  %5612 = vrcp.f32 %v2354_v11 }
 0xc1d   : >> { %3023 = vadd.xlane.f32.xlu2 %v3022_v48 }
 0xc1e   : >> { %v5609_v24 = vpop.eup %5608 }
 0xc1f   : >> { %v2227_v25 = vmul.f32 %v5609_v24, %v6662_v47  ;;  %v2357_v59 = vpop.xlane.xlu2 %2356  ;;  %v5611_v26 = vpop.eup %5610 }
 0xc20   : >> { %v2361_v49 = vmul.f32 %v5611_v26, %v6646_v8  ;;  %v2488_v47 = vpop.xlane.xlu1 %2487  ;;  %v5613_v21 = vpop.eup %5612 }
 0xc21   : >> { %5168 = vmatmul.msk.f32.vlgmr.msra.gmra.mxu3 %vm2065_vm13, %v2227_v25  ;;  %v2362_v10 = vmul.f32 %v5613_v21, %v6654_v37 }
 0xc22   : >> { %5195 = vmatpush.msk.msra.mxu3 %vm2109_vm12, %v6525_v18 }
 0xc24   : >> { %2665 = vmatpush.msra.mxu3 %v5517_v33 }
 0xc26   : >> { %2666 = vmatpush.msra.mxu3 %v5518_v28  ;;  %v6807_v28 = vpop.f32.mrf.mxu3 }
 0xc27   : >> { %v2485_v17 = vpop.xlane.xlu2 %2484 }
 0xc28   : >> { %5614 = vrcp.f32 %v2485_v17 }
 0xc29   : >> { %5176 = vmatmul.msk.f32.vlgmr.msrb.gmra.mxu3 %vm2065_vm13, %v2361_v49  ;;  %5616 = vrcp.f32 %v2488_v47 }
 0xc2a   : >> { %5215 = vmatpush.msk.msrb.mxu3 %vm2109_vm12, %v6537_v29  ;;  %5618 = vrcp.f32 %v2357_v59 }
 0xc2e   : >> { %v5615_v39 = vpop.eup %5614  ;;  %v6811_v47 = vpop.f32.mrf.mxu3 }
 0xc2f   : >> { %v2495_v18 = vmul.f32 %v5615_v39, %v6684_v32  ;;  %v2619_v12 = vpop.xlane.xlu2 %2618  ;;  %v5617_v8 = vpop.eup %5616 }
 0xc30   : >> { %v5619_v41 = vpop.eup %5618  ;;  %5620 = vrcp.f32 %v2619_v12  ;;  %v2496_v29 = vmul.f32 %v5617_v8, %v6664_v54 }
 0xc31   : >> { %5177 = vmatmul.msk.f32.gmra.mxu3 %vm2065_vm13, %v2362_v10  ;;  %5186 = vmatmul.msk.f32.vlgmr.msra.gmra.mxu1 %vm2065_vm13, %v2495_v18  ;;  %v2363_v31 = vmul.f32 %v5619_v41, %v6677_v9 }
 0xc36   : >> { %v5621_v45 = vpop.eup %5620  ;;  %v6816_v12 = vpop.f32.mrf.mxu3 }
 0xc37   : >> { %v2622_v43 = vpop.xlane.xlu2 %2621  ;;  %v2625_v32 = vpop.xlane.xlu0 %2624  ;;  %v2629_v37 = vmul.f32 %v5621_v45, %v6690_v38 }
 0xc38   : >> { %5622 = vrcp.f32 %v2622_v43 }
 0xc39   : >> { %5178 = vmatmul.msk.f32.gmra.mxu3 %vm2065_vm13, %v2363_v31  ;;  %5187 = vmatmul.msk.f32.gmra.mxu1 %vm2065_vm13, %v2496_v29 }
 0xc3e   : >> { %v5623_v55 = vpop.eup %5622 }
 0xc3f   : >> { %v2491_v22 = vpop.xlane.xlu2 %2490  ;;  %v2753_v46 = vpop.xlane.xlu0 %2752  ;;  %v2630_v9 = vmul.f32 %v5623_v55, %v6697_v57 }
 0xc40   : >> { %5624 = vrcp.f32 %v2491_v22  ;;  %v2756_v38 = vpop.xlane.xlu1 %2755 }
 0xc41   : >> { %5196 = vmatmul.msk.f32.vlgmr.msra.gmra.mxu3 %vm2065_vm13, %v2629_v37  ;;  %5626 = vrcp.f32 %v2625_v32 }
 0xc42   : >> { %5628 = vrcp.f32 %v2753_v46 }
 0xc43   : >> { %5630 = vrcp.f32 %v2756_v38 }
 0xc46   : >> { %v5625_v54 = vpop.eup %5624 }
 0xc47   : >> { %v2887_v51 = vpop.xlane.xlu2 %2886  ;;  %v2497_v36 = vmul.f32 %v5625_v54, %v6708_v40  ;;  %v5627_v20 = vpop.eup %5626 }
 0xc48   : >> { %v5629_v50 = vpop.eup %5628  ;;  %v2631_v58 = vmul.f32 %v5627_v20, %v6701_v52  ;;  %v2890_v4 = vpop.xlane.xlu0 %2889  ;;  %5632 = vrcp.f32 %v2887_v51 }
 0xc49   : >> { %5197 = vmatmul.msk.f32.gmra.mxu3 %vm2065_vm13, %v2630_v9  ;;  %5188 = vmatmul.msk.f32.gmra.mxu1 %vm2065_vm13, %v2497_v36  ;;  %v2763_v5 = vmul.f32 %v5629_v50, %v6710_v14  ;;  %v5631_v57 = vpop.eup %5630  ;;  %v5237_v50 = vld [vmem:[%s6303_s6 + $0xf8] sm:$0xff] }
 0xc4a   : >> { %v2764_v7 = vmul.f32 %v5631_v57, %v6713_v19  ;;  %3220 = vmatpush.msra.mxu2 %v5237_v50  ;;  %v5232_v57 = vld [vmem:[%s6303_s6 + $0xd0] sm:$0xff] }
 0xc4e   : >> { %v5633_v53 = vpop.eup %5632 }
 0xc4f   : >> { %v2759_v42 = vpop.xlane.xlu2 %2758  ;;  %v2897_v14 = vmul.f32 %v5633_v53, %v6722_v61  ;;  %v5230_v53 = vld [vmem:[%s6303_s6 + $0xc0] sm:$0xff] }
 0xc50   : >> { %5634 = vrcp.f32 %v2759_v42  ;;  %v3021_v52 = vpop.xlane.xlu0 %3020  ;;  %v5236_v42 = vld [vmem:[%s6303_s6 + $0xf0] sm:$0xff] }
 0xc51   : >> { %5198 = vmatmul.msk.f32.gmra.mxu3 %vm2065_vm13, %v2631_v58  ;;  %5206 = vmatmul.msk.f32.vlgmr.msrb.gmra.mxu1 %vm2065_vm13, %v2763_v5  ;;  %5636 = vrcp.f32 %v2890_v4  ;;  %v5235_v58 = vld [vmem:[%s6303_s6 + $0xe8] sm:$0xff]  ;;  %v5234_v4 = vld [vmem:[%s6303_s6 + $0xe0] sm:$0xff]  ;;  %v5233_v5 = vld [vmem:[%s6303_s6 + $0xd8] sm:$0xff] }
 0xc52   : >> { %5638 = vrcp.f32 %v3021_v52  ;;  %3221 = vmatpush.msra.mxu2 %v5236_v42 }
 0xc54   : >> { %3222 = vmatpush.msra.mxu2 %v5235_v58 }
 0xc56   : >> { %v5635_v30 = vpop.eup %5634  ;;  %3223 = vmatpush.msra.mxu2 %v5234_v4 }
 0xc57   : >> { %v3039_v40 = vpop.permute.xlu2 %3038  ;;  %v5637_v48 = vpop.eup %5636  ;;  %v2765_v24 = vmul.f32 %v5635_v30, %v6732_v35 }
 0xc58   : >> { %v5526_v15 = vpop.permute.xlu1 %5525  ;;  %5225 = vmatpush.msk.msra.mxu1 %vm2109_vm12, %v3039_v40  ;;  %v2898_v59 = vmul.f32 %v5637_v48, %v6724_v13  ;;  %v5639_v33 = vpop.eup %5638  ;;  %3224 = vmatpush.msra.mxu2 %v5233_v5  ;;  %v5231_v40 = vld [vmem:[%s6303_s6 + $0xc8] sm:$0xff]  ;;  %s1874_s6 = smul.u32 6, %s5828_s26 }
 0xc59   : >> { %v5527_v44 = vunpack.i.l.bf16 %v5526_v15  ;;  %v5528_v34 = vunpack.i.h.bf16 %v5526_v15  ;;  %5207 = vmatmul.msk.f32.gmra.mxu1 %vm2065_vm13, %v2764_v7  ;;  %v3031_v61 = vmul.f32 %v5639_v33, %v6730_v6 }
 0xc5a   : >> { %3225 = vmatpush.msra.mxu2 %v5232_v57 }
 0xc5b   : >> { %2933 = vmatpush.msrb.mxu3 %v5527_v44 }
 0xc5c   : >> { %3226 = vmatpush.msra.mxu2 %v5231_v40 }
 0xc5d   : >> { %2934 = vmatpush.msrb.mxu3 %v5528_v34 }
 0xc5e   : >> { %5216 = vmatmul.msk.f32.vlgmr.msrb.gmra.mxu3 %vm2065_vm13, %v2897_v14  ;;  %3227 = vmatpush.msra.mxu2 %v5230_v53 }
 0xc61   : >> { %5208 = vmatmul.msk.f32.gmra.mxu1 %vm2065_vm13, %v2765_v24 }
 0xc62   : >> { %v5531_v25 = vpop.permute.xlu0 %5530 }
 0xc63   : >> { %v5532_v19 = vunpack.i.l.bf16 %v5531_v25  ;;  %v5533_v11 = vunpack.i.h.bf16 %v5531_v25 }
 0xc65   : >> { %3067 = vmatpush.msra.mxu1 %v5532_v19 }
 0xc66   : >> { %5217 = vmatmul.msk.f32.gmra.mxu3 %vm2065_vm13, %v2898_v59 }
 0xc67   : >> { %3068 = vmatpush.msra.mxu1 %v5533_v11 }
 0xc69   : >> { %5226 = vmatmul.msk.f32.vlgmr.msra.gmra.mxu1 %vm2065_vm13, %v3031_v61 }
 0xc79   : >> { %v2266_v26 = vpop.f32.mrf.mxu1 }
 0xc7a   : >> { %3082 = vrot.lane.b32.xlu2 %v2266_v26, %s5853_s29 }
 0xc83   : >> { %v2893_v35 = vpop.xlane.xlu1 %2892 }
 0xc84   : >> { %5640 = vrcp.f32 %v2893_v35 }
 0xc8a   : >> { %v5641_v49 = vpop.eup %5640 }
 0xc8b   : >> { %v2899_v13 = vmul.f32 %v5641_v49, %v6753_v60 }
 0xc8d   : >> { %5218 = vmatmul.msk.f32.gmra.mxu3 %vm2065_vm13, %v2899_v13  ;;  %v3027_v6 = vpop.xlane.xlu0 %3026 }
 0xc90   : >> { %v3024_v17 = vpop.xlane.xlu2 %3023 }
 0xc91   : >> { %5642 = vrcp.f32 %v3024_v17 }
 0xc92   : >> { %5644 = vrcp.f32 %v3027_v6 }
 0xc96   : >> { %v2269_v39 = vpop.f32.mrf.mxu1 }
 0xc97   : >> { %v5643_v21 = vpop.eup %5642  ;;  %3084 = vrot.lane.b32.xlu1 %v2269_v39, %s5853_s29 }
 0xc98   : >> { %v3032_v18 = vmul.f32 %v5643_v21, %v6760_v27  ;;  %v5645_v10 = vpop.eup %5644 }
 0xc99   : >> { %v3033_v60 = vmul.f32 %v5645_v10, %v6757_v23 }
 0xc9a   : >> { %5227 = vmatmul.msk.f32.gmra.mxu1 %vm2065_vm13, %v3032_v18 }
 0xca2   : >> { %5228 = vmatmul.msk.f32.gmra.mxu1 %vm2065_vm13, %v3033_v60 }
 0xca4   : >> { %v2272_v8 = vpop.f32.mrf.mxu3 }
 0xcac   : >> { %v2400_v41 = vpop.f32.mrf.mxu3 }
 0xcad   : >> { %3094 = vrot.lane.b32.xlu1 %v2400_v41, %s5854_s5 }
 0xcae   : >> { %v2534_v43 = vpop.f32.mrf.mxu1 }
 0xcaf   : >> { %3106 = vrot.lane.b32.xlu0 %v2534_v43, %s7567_s8 }
 0xcb4   : >> { %v2403_v31 = vpop.f32.mrf.mxu3 }
 0xcb5   : >> { %3096 = vrot.lane.b32.xlu2 %v2403_v31, %s5854_s5 }
 0xcb6   : >> { %v2537_v27 = vpop.f32.mrf.mxu1 }
 0xcb7   : >> { %3108 = vrot.lane.b32.xlu0 %v2537_v27, %s7567_s8 }
 0xcbc   : >> { %v2406_v29 = vpop.f32.mrf.mxu3 }
 0xcc4   : >> { %v2668_v32 = vpop.f32.mrf.mxu3 }
 0xcc5   : >> { %3118 = vrot.lane.b32.xlu2 %v2668_v32, %s7563_s7 }
 0xcc6   : >> { %v2540_v23 = vpop.f32.mrf.mxu1 }
 0xccc   : >> { %v2671_v45 = vpop.f32.mrf.mxu3 }
 0xcce   : >> { %v2802_v37 = vpop.f32.mrf.mxu1 }
 0xccf   : >> { %3130 = vrot.lane.b32.xlu1 %v2802_v37, %s7565_s3 }
 0xcd4   : >> { %v2674_v55 = vpop.f32.mrf.mxu3  ;;  %v3083_v15 = vpop.permute.xlu2 %3082 }
 0xcd5   : >> { %v3163_v30 = vsel %vm1063_vm3, %v6807_v28, %v3083_v15 }
 0xcd6   : >> { %v2805_v22 = vpop.f32.mrf.mxu1 }
 0xcd7   : >> { %3120 = vrot.lane.b32.xlu1 %v2671_v45, %s7563_s7  ;;  %3132 = vrot.lane.b32.xlu2 %v2805_v22, %s7565_s3 }
 0xcde   : >> { %v2808_v46 = vpop.f32.mrf.mxu1 }
 0xcdf   : >> { %3110 = vrot.lane.b32.xlu1 %v2540_v23, %s7567_s8  ;;  %s6917_s8 = scalar_lea.vmem %s7538_s17, %s5121_s1  ;;  %s7592_s1 = smov 88  }
 0xce1   : >> { %v2936_v51 = vpop.f32.mrf.mxu3 }
 0xce2   : >> { %3142 = vrot.lane.b32.xlu2 %v2936_v51, %s7559_s30  ;;  %v5537_v51 = vld [vmem:[%s6325_s9 + $0x3] ss:$0 sm:$0xff]  ;;  %s6910_s9 = scalar_lea.vmem %s7539_s18, %s5120_s27  ;;  %s7593_s27 = smov 96  }
 0xce6   : >> { %v3070_v9 = vpop.f32.mrf.mxu1 }
 0xce7   : >> { %3154 = vrot.lane.b32.xlu0 %v3070_v9, %s7561_s4 }
 0xce9   : >> { %v2939_v54 = vpop.f32.mrf.mxu3 }
 0xcea   : >> { %3086 = vrot.lane.b32.xlu2 %v2272_v8, %s5853_s29 }
 0xcef   : >> { %3098 = vrot.lane.b32.xlu0 %v2406_v29, %s5854_s5 }
 0xcf2   : >> { %3122 = vrot.lane.b32.xlu2 %v2674_v55, %s7563_s7  ;;  %s7595_s7 = smov 72  }
 0xcf7   : >> { %3144 = vrot.lane.b32.xlu0 %v2939_v54, %s7559_s30 }
 0xcff   : >> { %3134 = vrot.lane.b32.xlu0 %v2808_v46, %s7565_s3  ;;  %s7594_s3 = smov 80  }
 0xd09   : >> { %v3085_v7 = vpop.permute.xlu1 %3084 }
 0xd0a   : >> { %v3164_v21 = vsel %vm1063_vm3, %v6811_v47, %v3085_v7 }
 0xd0f   : >> { %v3097_v44 = vpop.permute.xlu2 %3096 }
 0xd10   : >> { %v2942_v20 = vpop.f32.mrf.mxu3  ;;  %v3168_v39 = vsel %vm1617_vm4, %v3164_v21, %v3097_v44  ;;  %v3327_v21 = vld [vmem:[%s6917_s8 + $0x8] sm:$0xff] }
 0xd17   : >> { %v3073_v36 = vpop.f32.mrf.mxu1 }
 0xd18   : >> { %3156 = vrot.lane.b32.xlu1 %v3073_v36, %s7561_s4 }
 0xd1f   : >> { %v3076_v38 = vpop.f32.mrf.mxu1  ;;  %v3119_v34 = vpop.permute.xlu2 %3118 }
 0xd20   : >> { %3146 = vrot.lane.b32.xlu1 %v2942_v20, %s7559_s30  ;;  %3158 = vrot.lane.b32.xlu2 %v3076_v38, %s7561_s4  ;;  %v3095_v14 = vpop.permute.xlu1 %3094  ;;  %s6891_s4 = scalar_lea.vmem %s7540_s19, %s1874_s6  ;;  %s4605_s6 = scalar_lea.vmem %s7542_s21, %s5828_s26 }
 0xd21   : >> { %v3107_v52 = vpop.permute.xlu0 %3106  ;;  %v3167_v48 = vsel %vm1617_vm4, %v3163_v30, %v3095_v14 }
 0xd22   : >> { %v3171_v19 = vsel %vm1619_vm5, %v3167_v48, %v3107_v52 }
 0xd23   : >> { %v3175_v11 = vsel %vm1621_vm6, %v3171_v19, %v3119_v34 }
 0xd29   : >> { %v3109_v25 = vpop.permute.xlu0 %3108 }
 0xd2a   : >> { %v3172_v18 = vsel %vm1619_vm5, %v3168_v39, %v3109_v25  ;;  %v5247_v39 = vld [vmem:[%s6917_s8 + $0x50] sm:$0xff] }
 0xd31   : >> { %v3133_v24 = vpop.permute.xlu2 %3132 }
 0xd3c   : >> { %v3143_v61 = vpop.permute.xlu2 %3142 }
 0xd41   : >> { %v3131_v59 = vpop.permute.xlu1 %3130 }
 0xd42   : >> { %v3179_v33 = vsel %vm1623_vm7, %v3175_v11, %v3131_v59  ;;  %v3333_v59 = vld [vmem:[%s6917_s8 + $0x38] sm:$0xff]  ;;  %v3332_v11 = vld [vmem:[%s6917_s8 + $0x30] sm:$0xff] }
 0xd43   : >> { %v3183_v26 = vsel %vm1625_vm8, %v3179_v33, %v3143_v61  ;;  %3354 = vmatpush.msra.mxu3 %v3333_v59  ;;  %v5252_v33 = vld [vmem:[%s6917_s8 + $0x78] sm:$0xff]  ;;  %v3331_v61 = vld [vmem:[%s6917_s8 + $0x28] sm:$0xff] }
 0xd44   : >> { %v3087_v17 = vpop.permute.xlu2 %3086  ;;  %3395 = vmatpush.msrb.mxu0 %v5252_v33 }
 0xd45   : >> { %v3165_v41 = vsel %vm1063_vm3, %v6816_v12, %v3087_v17  ;;  %3355 = vmatpush.msra.mxu3 %v3332_v11  ;;  %v3328_v17 = vld [vmem:[%s6917_s8 + $0x10] sm:$0xff] }
 0xd47   : >> { %3356 = vmatpush.msra.mxu3 %v3331_v61  ;;  %v5258_v61 = vld [vmem:[%s6917_s8 + $0x98] sm:$0xff] }
 0xd49   : >> { %v3121_v28 = vpop.permute.xlu1 %3120 }
 0xd4a   : >> { %v3176_v60 = vsel %vm1621_vm6, %v3172_v18, %v3121_v28  ;;  %v3329_v28 = vld [vmem:[%s6917_s8 + $0x18] sm:$0xff]  ;;  %v3326_v18 = vld [vmem:[%s6917_s8] sm:$0xff] }
 0xd4b   : >> { %v3180_v8 = vsel %vm1623_vm7, %v3176_v60, %v3133_v24  ;;  %v5245_v60 = vld [vmem:[%s6917_s8 + $0x40] sm:$0xff] }
 0xd4c   : >> { %v3123_v27 = vpop.permute.xlu2 %3122 }
 0xd51   : >> { %v3111_v6 = vpop.permute.xlu1 %3110 }
 0xd59   : >> { %v3155_v35 = vpop.permute.xlu0 %3154 }
 0xd5a   : >> { %v3187_v49 = vsel %vm1627_vm9, %v3183_v26, %v3155_v35  ;;  %v5251_v26 = vld [vmem:[%s6917_s8 + $0x70] sm:$0xff]  ;;  %v3330_v35 = vld [vmem:[%s6917_s8 + $0x20] sm:$0xff] }
 0xd5b   : >> { %5238 = vmatmul.msk.f32.vlgmr.msra.gmra.mxu2 %vm973_vm2, %v3187_v49  ;;  %3396 = vmatpush.msrb.mxu0 %v5251_v26  ;;  %v5250_v49 = vld [vmem:[%s6917_s8 + $0x68] sm:$0xff]  ;;  %v5257_v26 = vld [vmem:[%s6917_s8 + $0x90] sm:$0xff] }
 0xd5c   : >> { %3357 = vmatpush.msra.mxu3 %v3330_v35  ;;  %v5540_v35 = vld [vmem:[%s6910_s9 + $0x1] ss:$0 sm:$0xff] }
 0xd5d   : >> { %3397 = vmatpush.msrb.mxu0 %v5250_v49 }
 0xd5e   : >> { %3358 = vmatpush.msra.mxu3 %v3329_v28 }
 0xd60   : >> { %3359 = vmatpush.msra.mxu3 %v3328_v17  ;;  %v5541_v17 = vld [vmem:[%s6910_s9] ss:$0 sm:$0xff] }
 0xd61   : >> { %v3099_v13 = vpop.permute.xlu0 %3098 }
 0xd62   : >> { %v3169_v29 = vsel %vm1617_vm4, %v3165_v41, %v3099_v13  ;;  %v5249_v13 = vld [vmem:[%s6917_s8 + $0x60] sm:$0xff]  ;;  %3360 = vmatpush.msra.mxu3 %v3327_v21 }
 0xd63   : >> { %v3173_v32 = vsel %vm1619_vm5, %v3169_v29, %v3111_v6  ;;  %3398 = vmatpush.msrb.mxu0 %v5249_v13  ;;  %v5248_v6 = vld [vmem:[%s6917_s8 + $0x58] sm:$0xff]  ;;  %v5256_v13 = vld [vmem:[%s6917_s8 + $0x88] sm:$0xff] }
 0xd64   : >> { %v3177_v45 = vsel %vm1621_vm6, %v3173_v32, %v3123_v27  ;;  %3361 = vmatpush.msra.mxu3 %v3326_v18 }
 0xd65   : >> { %3399 = vmatpush.msrb.mxu0 %v5248_v6 }
 0xd67   : >> { %3400 = vmatpush.msrb.mxu0 %v5247_v39 }
 0xd69   : >> { %v3145_v10 = vpop.permute.xlu0 %3144 }
 0xd6a   : >> { %v3184_v43 = vsel %vm1625_vm8, %v3180_v8, %v3145_v10  ;;  %v5246_v10 = vld [vmem:[%s6917_s8 + $0x48] sm:$0xff] }
 0xd6b   : >> { %3401 = vmatpush.msrb.mxu0 %v5246_v10 }
 0xd6d   : >> { %3402 = vmatpush.msrb.mxu0 %v5245_v60 }
 0xd6e   : >> { %5253 = vmatmul.msk.f32.vlgmr.msrb.gmra.mxu0 %vm973_vm2, %v6272_v62 }
 0xd71   : >> { %v3135_v23 = vpop.permute.xlu0 %3134 }
 0xd72   : >> { %v3181_v37 = vsel %vm1623_vm7, %v3177_v45, %v3135_v23  ;;  %v5538_v45 = vld [vmem:[%s6891_s4] ss:$0 sm:$0xff] }
 0xd7a   : >> { %v3159_v12 = vpop.permute.xlu2 %3158 }
 0xd8a   : >> { %v3157_v31 = vpop.permute.xlu1 %3156 }
 0xd8b   : >> { %v3188_v47 = vsel %vm1627_vm9, %v3184_v43, %v3157_v31 }
 0xd8c   : >> { %5239 = vmatmul.msk.f32.gmra.mxu2 %vm973_vm2, %v3188_v47 }
 0xd92   : >> { %v3147_v22 = vpop.permute.xlu1 %3146 }
 0xd93   : >> { %v3185_v55 = vsel %vm1625_vm8, %v3181_v37, %v3147_v22 }
 0xd94   : >> { %v3189_v46 = vsel %vm1627_vm9, %v3185_v55, %v3159_v12  ;;  %v5539_v12 = vld [vmem:[%s6891_s4 + $0x1] ss:$0 sm:$0xff] }
 0xd95   : >> { %5240 = vmatmul.msk.f32.gmra.mxu2 %vm973_vm2, %v3189_v46 }
 0xdde   : >> { %v3229_v9 = vpop.f32.mrf.mxu2 }
 0xddf   : >> { %v3230_v54 = vadd.f32 %v5537_v51, %v3229_v9 }
 0xde1   : >> { %v3238_v36 = vadd.f32 %v5824_v56, %v3230_v54 }
 0xde3   : >> { %v3241_v20 = vsel %vm973_vm2, %v3238_v36, 0.0 }
 0xde4   : >> { %3242 = vadd.xlane.f32.xlu0 %v3241_v20  ;;  %v5261_v20 = vld [vmem:[%s6917_s8 + $0xb0] sm:$0xff] }
 0xdeb   : >> { %v3404_v49 = vpop.f32.mrf.mxu0 }
 0xdec   : >> { %v3405_v28 = vadd.f32 %v5540_v35, %v3404_v49 }
 0xdee   : >> { %5264 = vmatpush.xpose.msk.msrb.mxu2 %vm1063_vm3, %v3405_v28 }
 0xe0f   : >> { %v3232_v38 = vpop.f32.mrf.mxu2 }
 0xe10   : >> { %v3233_v50 = vadd.f32 %v5537_v51, %v3232_v38  ;;  %v5260_v38 = vld [vmem:[%s6917_s8 + $0xa8] sm:$0xff] }
 0xe12   : >> { %v3239_v42 = vadd.f32 %v5820_v63, %v3233_v50 }
 0xe14   : >> { %v3244_v58 = vsel %vm973_vm2, %v3239_v42, 0.0 }
 0xe15   : >> { %3245 = vadd.xlane.f32.xlu1 %v3244_v58  ;;  %v5259_v58 = vld [vmem:[%s6917_s8 + $0xa0] sm:$0xff] }
 0xe18   : >> { %v3235_v4 = vpop.f32.mrf.mxu2 }
 0xe19   : >> { %v3236_v5 = vadd.f32 %v5537_v51, %v3235_v4 }
 0xe1b   : >> { %v3240_v57 = vadd.f32 %v5816_v3, %v3236_v5 }
 0xe1d   : >> { %v3248_v40 = vsel %vm3247_vm15, %v3240_v57, 0.0 }
 0xe1e   : >> { %3249 = vadd.xlane.f32.xlu2 %v3248_v40 }
 0xe57   : >> { %v3243_v56 = vpop.xlane.xlu0 %3242 }
 0xe58   : >> { %v3251_v15 = vmul.f32 %v3243_v56, %v6199_v16 }
 0xe5a   : >> { %v6882_v53 = vsub.f32 %v3238_v36, %v3251_v15  ;;  %v5262_v36 = vld [vmem:[%s6917_s8 + $0xb8] sm:$0xff] }
 0xe5b   : >> { %3427 = vmatpush.msrb.mxu1 %v5262_v36 }
 0xe5c   : >> { %v3257_v44 = vmul.f32 %v6882_v53, %v6882_v53 }
 0xe5d   : >> { %3428 = vmatpush.msrb.mxu1 %v5261_v20 }
 0xe5e   : >> { %v3260_v63 = vsel %vm973_vm2, %v3257_v44, 0.0 }
 0xe5f   : >> { %3261 = vadd.xlane.f32.xlu0 %v3260_v63  ;;  %3429 = vmatpush.msrb.mxu1 %v5260_v38 }
 0xe61   : >> { %3430 = vmatpush.msrb.mxu1 %v5259_v58 }
 0xe63   : >> { %3431 = vmatpush.msrb.mxu1 %v5258_v61 }
 0xe65   : >> { %3432 = vmatpush.msrb.mxu1 %v5257_v26 }
 0xe67   : >> { %3433 = vmatpush.msrb.mxu1 %v5256_v13 }
 0xe73   : >> { %3555 = vrot.lane.b32.xlu0 %v3405_v28, %s5846_s0 }
 0xe88   : >> { %v3246_v3 = vpop.xlane.xlu1 %3245 }
 0xe89   : >> { %v3252_v7 = vmul.f32 %v3246_v3, %v6199_v16 }
 0xe8b   : >> { %v6894_v52 = vsub.f32 %v3239_v42, %v3252_v7 }
 0xe8d   : >> { %v3258_v34 = vmul.f32 %v6894_v52, %v6894_v52 }
 0xe8f   : >> { %v3263_v14 = vsel %vm973_vm2, %v3258_v34, 0.0 }
 0xe90   : >> { %3264 = vadd.xlane.f32.xlu1 %v3263_v14 }
 0xe91   : >> { %v3250_v30 = vpop.xlane.xlu2 %3249 }
 0xe92   : >> { %v3253_v48 = vmul.f32 %v3250_v30, %v6199_v16 }
 0xe94   : >> { %v6900_v24 = vsub.f32 %v3240_v57, %v3253_v48 }
 0xe96   : >> { %v3259_v25 = vmul.f32 %v6900_v24, %v6900_v24 }
 0xe98   : >> { %v3266_v19 = vsel %vm3247_vm15, %v3259_v25, 0.0 }
 0xe99   : >> { %3267 = vadd.xlane.f32.xlu2 %v3266_v19 }
 0xed2   : >> { %v3262_v8 = vpop.xlane.xlu0 %3261 }
 0xed3   : >> { %v3269_v41 = vmul.f32 %v3262_v8, %v6199_v16 }
 0xed5   : >> { %v3272_v43 = vadd.f32 1e-05, %v3269_v41  ;;  %v5542_v41 = vld [vmem:[%s6910_s9 + $0x2] ss:$0 sm:$0xff] }
 0xed7   : >> { %5646 = vrsqrt.f32 %v3272_v43  ;;  %vm3281_vm1 = vweird.f32 %v3272_v43 }
 0xedd   : >> { %v5647_v31 = vpop.eup %5646 }
 0xede   : >> { %v3276_v27 = vmul.f32 %v5647_v31, %v3272_v43  ;;  %vm3282_vm0 = vweird.f32 %v5647_v31 }
 0xedf   : >> { %vm3283_vm10 = vmor %vm3281_vm1, %vm3282_vm0 }
 0xee0   : >> { %v3277_v29 = vmul.f32 %v5647_v31, %v3276_v27 }
 0xee2   : >> { %v3278_v47 = vmul.f32 0.5, %v3277_v29 }
 0xee4   : >> { %v3279_v32 = vsub.f32 1.5, %v3278_v47 }
 0xee5   : >> { %v3556_v8 = vpop.permute.xlu0 %3555 }
 0xee6   : >> { %v3280_v23 = vmul.f32 %v5647_v31, %v3279_v32 }
 0xee8   : >> { %v3284_v37 = vsel %vm3283_vm10, %v5647_v31, %v3280_v23  ;;  %vm3486_vm10 = vcmask 59392  }
 0xee9   : >> { %v3305_v22 = vmul.f32 %v3284_v37, %v6882_v53 }
 0xeeb   : >> { %v3311_v55 = vmul.f32 %v5538_v45, %v3305_v22 }
 0xeed   : >> { %v6941_v46 = vadd.f32 %v5539_v12, %v3311_v55 }
 0xeef   : >> { %5241 = vmatmul.msk.f32.vlgmr.msra.gmra.mxu3 %vm973_vm2, %v6941_v46 }
 0xf03   : >> { %v3265_v51 = vpop.xlane.xlu1 %3264 }
 0xf04   : >> { %v3270_v9 = vmul.f32 %v3265_v51, %v6199_v16 }
 0xf06   : >> { %v3273_v54 = vadd.f32 1e-05, %v3270_v9 }
 0xf08   : >> { %5648 = vrsqrt.f32 %v3273_v54  ;;  %vm3291_vm12 = vweird.f32 %v3273_v54 }
 0xf0c   : >> { %v3268_v50 = vpop.xlane.xlu2 %3267 }
 0xf0d   : >> { %v3271_v42 = vmul.f32 %v3268_v50, %v6199_v16 }
 0xf0e   : >> { %v5649_v4 = vpop.eup %5648 }
 0xf0f   : >> { %v3286_v5 = vmul.f32 %v5649_v4, %v3273_v54  ;;  %v3274_v57 = vadd.f32 1e-05, %v3271_v42  ;;  %vm3292_vm11 = vweird.f32 %v5649_v4 }
 0xf10   : >> { %vm3293_vm13 = vmor %vm3291_vm12, %vm3292_vm11 }
 0xf11   : >> { %v3287_v40 = vmul.f32 %v5649_v4, %v3286_v5  ;;  %5650 = vrsqrt.f32 %v3274_v57  ;;  %vm3301_vm0 = vweird.f32 %v3274_v57 }
 0xf13   : >> { %v3288_v56 = vmul.f32 0.5, %v3287_v40 }
 0xf15   : >> { %v3289_v15 = vsub.f32 1.5, %v3288_v56 }
 0xf17   : >> { %v5651_v53 = vpop.eup %5650  ;;  %v3290_v44 = vmul.f32 %v5649_v4, %v3289_v15 }
 0xf18   : >> { %v3296_v63 = vmul.f32 %v5651_v53, %v3274_v57  ;;  %vm3302_vm14 = vweird.f32 %v5651_v53 }
 0xf19   : >> { %v3294_v3 = vsel %vm3293_vm13, %v5649_v4, %v3290_v44  ;;  %vm3303_vm1 = vmor %vm3301_vm0, %vm3302_vm14 }
 0xf1a   : >> { %v3297_v7 = vmul.f32 %v5651_v53, %v3296_v63  ;;  %v3306_v34 = vmul.f32 %v3294_v3, %v6894_v52 }
 0xf1c   : >> { %v3298_v14 = vmul.f32 0.5, %v3297_v7  ;;  %v3312_v30 = vmul.f32 %v5538_v45, %v3306_v34 }
 0xf1e   : >> { %v3299_v48 = vsub.f32 1.5, %v3298_v14  ;;  %v6952_v25 = vadd.f32 %v5539_v12, %v3312_v30 }
 0xf20   : >> { %v3300_v19 = vmul.f32 %v5651_v53, %v3299_v48  ;;  %5242 = vmatmul.msk.f32.gmra.mxu3 %vm973_vm2, %v6952_v25 }
 0xf22   : >> { %v3304_v59 = vsel %vm3303_vm1, %v5651_v53, %v3300_v19 }
 0xf23   : >> { %v3307_v11 = vmul.f32 %v3304_v59, %v6900_v24  ;;  %v5255_v24 = vld [vmem:[%s6917_s8 + $0x80] sm:$0xff] }
 0xf24   : >> { %3434 = vmatpush.msrb.mxu1 %v5255_v24 }
 0xf25   : >> { %v3313_v52 = vmul.f32 %v5538_v45, %v3307_v11  ;;  %5263 = vmatmul.msk.f32.vlgmr.msrb.gmra.mxu1 %vm973_vm2, %v6272_v62 }
 0xf26   : >> { %5271 = vmatpush.xpose.msk.msra.mxu1 %vm1063_vm3, %v3556_v8 }
 0xf27   : >> { %v6957_v33 = vadd.f32 %v5539_v12, %v3313_v52 }
 0xf29   : >> { %5243 = vmatmul.msk.f32.gmra.mxu3 %vm973_vm2, %v6957_v33 }
 0xf72   : >> { %v3363_v6 = vpop.f32.mrf.mxu3 }
 0xf73   : >> { %v3364_v21 = vadd.f32 %v5541_v17, %v3363_v6 }
 0xf75   : >> { %3549 = vrot.lane.b32.xlu1 %v3364_v21, %s5846_s0  ;;  %5265 = vmatmul.msk.f32.vlgmr.msrb.gmra.mxu2 %vm1063_vm3, %v3364_v21 }
 0xf7d   : >> { %3672 = vrot.lane.b32.xlu1 %v3405_v28, %s5847_s2 }
 0xf85   : >> { %3782 = vrot.lane.b32.xlu1 %v3364_v21, %s5848_s23 }
 0xfa2   : >> { %v3436_v43 = vpop.f32.mrf.mxu1 }
 0xfa3   : >> { %v3366_v39 = vpop.f32.mrf.mxu3  ;;  %v6998_v31 = vadd.f32 %v5542_v41, %v3436_v43 }
 0xfa4   : >> { %v3367_v18 = vadd.f32 %v5541_v17, %v3366_v39 }
 0xfa5   : >> { %3538 = vmatpush.msra.mxu0 %v6998_v31 }
 0xfa6   : >> { %5266 = vmatmul.msk.f32.gmra.mxu2 %vm1063_vm3, %v3367_v18  ;;  %3551 = vrot.lane.b32.xlu2 %v3367_v18, %s5846_s0 }
 0xfac   : >> { %v3369_v10 = vpop.f32.mrf.mxu3 }
 0xfad   : >> { %v3370_v60 = vadd.f32 %v5541_v17, %v3369_v10 }
 0xfae   : >> { %3666 = vrot.lane.b32.xlu2 %v3364_v21, %s5847_s2 }
 0xfaf   : >> { %3670 = vrot.lane.b32.xlu1 %v3370_v60, %s5847_s2  ;;  %3553 = vrot.lane.b32.xlu0 %v3370_v60, %s5846_s0 }
 0xfb0   : >> { %5267 = vmatmul.msk.f32.gmra.mxu2 %vm1063_vm3, %v3370_v60 }
 0xfb6   : >> { %3784 = vrot.lane.b32.xlu2 %v3367_v18, %s5848_s23 }
 0xfb7   : >> { %4020 = vrot.lane.b32.xlu1 %v3405_v28, %s7592_s1  ;;  %3788 = vrot.lane.b32.xlu0 %v3405_v28, %s5848_s23 }
 0xfbe   : >> { %3904 = vrot.lane.b32.xlu2 %v3405_v28, %s7593_s27 }
 0xfbf   : >> { %3900 = vrot.lane.b32.xlu1 %v3367_v18, %s7593_s27  ;;  %3668 = vrot.lane.b32.xlu0 %v3367_v18, %s5847_s2 }
 0xfc6   : >> { %4014 = vrot.lane.b32.xlu2 %v3364_v21, %s7592_s1 }
 0xfc7   : >> { %4018 = vrot.lane.b32.xlu1 %v3370_v60, %s7592_s1  ;;  %3786 = vrot.lane.b32.xlu0 %v3370_v60, %s5848_s23 }
 0xfce   : >> { %3902 = vrot.lane.b32.xlu2 %v3370_v60, %s7593_s27 }
 0xfcf   : >> { %4130 = vrot.lane.b32.xlu1 %v3364_v21, %s7594_s3  ;;  %3898 = vrot.lane.b32.xlu0 %v3364_v21, %s7593_s27 }
 0xfd6   : >> { %4252 = vrot.lane.b32.xlu2 %v3405_v28, %s7595_s7 }
 0xfd7   : >> { %4248 = vrot.lane.b32.xlu1 %v3367_v18, %s7595_s7  ;;  %4016 = vrot.lane.b32.xlu0 %v3367_v18, %s7592_s1 }
 0xfde   : >> { %4132 = vrot.lane.b32.xlu2 %v3367_v18, %s7594_s3 }
 0xfdf   : >> { %4136 = vrot.lane.b32.xlu0 %v3405_v28, %s7594_s3  ;;  %3628 = vrot.lane.b32.xlu1 %v6998_v31, %s5846_s0  ;;  %s7596_s0 = smov 24  }
 0xfe6   : >> { %4250 = vrot.lane.b32.xlu2 %v3370_v60, %s7595_s7 }
 0xfe7   : >> { %4246 = vrot.lane.b32.xlu0 %v3364_v21, %s7595_s7  ;;  %v3550_v27 = vpop.permute.xlu1 %3549 }
 0xfe8   : >> { %5272 = vmatmul.msk.f32.vlgmr.msra.gmra.mxu1 %vm1063_vm3, %v3550_v27 }
 0xfee   : >> { %3860 = vrot.lane.b32.xlu2 %v6998_v31, %s5848_s23  ;;  %s7598_s23 = smov 32  }
 0xfef   : >> { %4134 = vrot.lane.b32.xlu0 %v3370_v60, %s7594_s3  ;;  %v3673_v29 = vpop.permute.xlu1 %3672 }
 0xff0   : >> { %5278 = vmatpush.xpose.msk.msra.mxu2 %vm1063_vm3, %v3673_v29 }
 0xff6   : >> { %3744 = vrot.lane.b32.xlu2 %v6998_v31, %s5847_s2  ;;  %s7597_s2 = smov 40  }
 0xff7   : >> { %4092 = vrot.lane.b32.xlu0 %v6998_v31, %s7592_s1  ;;  %v3783_v37 = vpop.permute.xlu1 %3782 }
 0xff8   : >> { %v3468_v22 = vpop.f32.mrf.mxu2 }
 0xff9   : >> { %v7019_v12 = vmul.f32 0.35355338, %v3468_v22 }
 0xffb   : >> { %v3480_v51 = vsel %vm1063_vm3, %v7019_v12, -inf }
0x1000   : >> { %v3552_v47 = vpop.permute.xlu2 %3551 }
0x1001   : >> { %5273 = vmatmul.msk.f32.gmra.mxu1 %vm1063_vm3, %v3552_v47 }
0x1008   : >> { %v3667_v32 = vpop.permute.xlu2 %3666 }
0x1009   : >> { %5279 = vmatmul.msk.f32.vlgmr.msra.gmra.mxu2 %vm1063_vm3, %v3667_v32 }
0x1010   : >> { %v3785_v23 = vpop.permute.xlu2 %3784 }
0x1018   : >> { %v3905_v45 = vpop.permute.xlu2 %3904 }
0x1019   : >> { %5292 = vmatpush.xpose.msk.msrb.mxu2 %vm1063_vm3, %v3905_v45 }
0x1020   : >> { %v4015_v55 = vpop.permute.xlu2 %4014 }
0x1021   : >> { %v3671_v9 = vpop.permute.xlu1 %3670  ;;  %3481 = vmax.xlane.f32.xlu0 %v3480_v51  ;;  %v3554_v54 = vpop.permute.xlu0 %3553 }
0x1022   : >> { %5274 = vmatmul.msk.f32.gmra.mxu1 %vm1063_vm3, %v3554_v54 }
0x1028   : >> { %v3903_v36 = vpop.permute.xlu2 %3902 }
0x1029   : >> { %v3471_v20 = vpop.f32.mrf.mxu2  ;;  %v4021_v38 = vpop.permute.xlu1 %4020 }
0x102a   : >> { %v7024_v50 = vmul.f32 0.35355338, %v3471_v20  ;;  %v3789_v42 = vpop.permute.xlu0 %3788 }
0x102b   : >> { %5285 = vmatpush.xpose.msk.msrb.mxu1 %vm1063_vm3, %v3789_v42 }
0x102c   : >> { %v3483_v58 = vsel %vm1063_vm3, %v7024_v50, -inf }
0x102d   : >> { %3484 = vmax.xlane.f32.xlu1 %v3483_v58 }
0x102e   : >> { %5286 = vmatmul.msk.f32.vlgmr.msrb.gmra.mxu1 %vm1063_vm3, %v3783_v37 }
0x102f   : >> { %5299 = vmatpush.xpose.msk.msra.mxu1 %vm1063_vm3, %v4021_v38 }
0x1030   : >> { %v4253_v4 = vpop.permute.xlu2 %4252 }
0x1031   : >> { %v3901_v5 = vpop.permute.xlu1 %3900 }
0x1032   : >> { %v3669_v57 = vpop.permute.xlu0 %3668 }
0x1033   : >> { %5313 = vmatpush.xpose.msk.msrb.mxu1 %vm1063_vm3, %v4253_v4  ;;  %v3474_v40 = vpop.f32.mrf.mxu2  ;;  %5280 = vmatmul.msk.f32.gmra.mxu2 %vm1063_vm3, %v3669_v57 }
0x1034   : >> { %v7033_v56 = vmul.f32 0.35355338, %v3474_v40 }
0x1036   : >> { %5287 = vmatmul.msk.f32.gmra.mxu1 %vm1063_vm3, %v3785_v23  ;;  %v3487_v15 = vsel %vm3486_vm10, %v7033_v56, -inf }
0x1037   : >> { %3488 = vmax.xlane.f32.xlu2 %v3487_v15 }
0x1038   : >> { %v4133_v53 = vpop.permute.xlu2 %4132 }
0x1039   : >> { %v4019_v44 = vpop.permute.xlu1 %4018 }
0x103a   : >> { %v3787_v63 = vpop.permute.xlu0 %3786 }
0x103b   : >> { %5281 = vmatmul.msk.f32.gmra.mxu2 %vm1063_vm3, %v3671_v9 }
0x103e   : >> { %5288 = vmatmul.msk.f32.gmra.mxu1 %vm1063_vm3, %v3787_v63 }
0x1040   : >> { %v4251_v34 = vpop.permute.xlu2 %4250 }
0x1041   : >> { %v4131_v3 = vpop.permute.xlu1 %4130 }
0x1042   : >> { %v3899_v7 = vpop.permute.xlu0 %3898 }
0x1043   : >> { %5293 = vmatmul.msk.f32.vlgmr.msrb.gmra.mxu2 %vm1063_vm3, %v3899_v7 }
0x1046   : >> { %5300 = vmatmul.msk.f32.vlgmr.msra.gmra.mxu1 %vm1063_vm3, %v4015_v55 }
0x1048   : >> { %v3861_v48 = vpop.permute.xlu2 %3860 }
0x1049   : >> { %v4249_v14 = vpop.permute.xlu1 %4248 }
0x104a   : >> { %v4017_v30 = vpop.permute.xlu0 %4016 }
0x104b   : >> { %5294 = vmatmul.msk.f32.gmra.mxu2 %vm1063_vm3, %v3901_v5 }
0x104e   : >> { %5301 = vmatmul.msk.f32.gmra.mxu1 %vm1063_vm3, %v4017_v30 }
0x1050   : >> { %v3745_v11 = vpop.permute.xlu2 %3744 }
0x1051   : >> { %v3629_v19 = vpop.permute.xlu1 %3628  ;;  %3771 = vmatpush.msrb.mxu0 %v3745_v11 }
0x1052   : >> { %v4137_v59 = vpop.permute.xlu0 %4136  ;;  %3655 = vmatpush.msrb.mxu3 %v3629_v19 }
0x1053   : >> { %5295 = vmatmul.msk.f32.gmra.mxu2 %vm1063_vm3, %v3903_v36 }
0x1054   : >> { %3887 = vmatpush.msra.mxu3 %v3861_v48  ;;  %5306 = vmatpush.xpose.msk.msra.mxu2 %vm1063_vm3, %v4137_v59 }
0x1056   : >> { %5302 = vmatmul.msk.f32.gmra.mxu1 %vm1063_vm3, %v4019_v44 }
0x105a   : >> { %v4247_v52 = vpop.permute.xlu0 %4246 }
0x105b   : >> { %5307 = vmatmul.msk.f32.vlgmr.msra.gmra.mxu2 %vm1063_vm3, %v4131_v3 }
0x105e   : >> { %5314 = vmatmul.msk.f32.vlgmr.msrb.gmra.mxu1 %vm1063_vm3, %v4247_v52 }
0x1062   : >> { %v4135_v35 = vpop.permute.xlu0 %4134 }
0x1063   : >> { %5308 = vmatmul.msk.f32.gmra.mxu2 %vm1063_vm3, %v4133_v53 }
0x1065   : >> { %v3582_v61 = vpop.f32.mrf.mxu1 }
0x1066   : >> { %5315 = vmatmul.msk.f32.gmra.mxu1 %vm1063_vm3, %v4249_v14  ;;  %v7051_v26 = vmul.f32 0.35355338, %v3582_v61 }
0x1068   : >> { %v3594_v49 = vsel %vm1063_vm3, %v7051_v26, -inf }
0x1069   : >> { %3595 = vmax.xlane.f32.xlu1 %v3594_v49 }
0x106a   : >> { %v7063_v21 = vpop.permute.xlu0 %4092 }
0x106b   : >> { %5309 = vmatmul.msk.f32.gmra.mxu2 %vm1063_vm3, %v4135_v35 }
0x106e   : >> { %5316 = vmatmul.msk.f32.gmra.mxu1 %vm1063_vm3, %v4251_v34 }
0x107e   : >> { %v3585_v28 = vpop.f32.mrf.mxu1 }
0x107f   : >> { %v7057_v13 = vmul.f32 0.35355338, %v3585_v28 }
0x1081   : >> { %v3597_v24 = vsel %vm1063_vm3, %v7057_v13, -inf }
0x1082   : >> { %3598 = vmax.xlane.f32.xlu2 %v3597_v24 }
0x108c   : >> { %v3699_v17 = vpop.f32.mrf.mxu2 }
0x108d   : >> { %v7061_v6 = vmul.f32 0.35355338, %v3699_v17 }
0x108f   : >> { %v3711_v39 = vsel %vm1063_vm3, %v7061_v6, -inf }
0x1090   : >> { %3712 = vmax.xlane.f32.xlu0 %v3711_v39 }
0x1094   : >> { %v3482_v18 = vpop.xlane.xlu0 %3481 }
0x1095   : >> { %v3490_v10 = vsub.f32 %v7019_v12, %v3482_v18 }
0x1097   : >> { %v3493_v60 = vmul.f32 1.442695, %v3490_v10 }
0x1099   : >> { %5652 = vpow2.f32 %v3493_v60 }
0x109f   : >> { %v3588_v8 = vpop.f32.mrf.mxu1  ;;  %v7073_v32 = vpop.eup %5652 }
0x10a0   : >> { %v7068_v41 = vmul.f32 0.35355338, %v3588_v8  ;;  %v3485_v43 = vpop.xlane.xlu1 %3484  ;;  %v3499_v23 = vsel %vm1063_vm3, %v7073_v32, 0.0 }
0x10a1   : >> { %v3491_v27 = vsub.f32 %v7024_v50, %v3485_v43 }
0x10a2   : >> { %v3600_v29 = vsel %vm3486_vm10, %v7068_v41, -inf }
0x10a3   : >> { %3601 = vmax.xlane.f32.xlu0 %v3600_v29  ;;  %v3495_v47 = vmul.f32 1.442695, %v3491_v27 }
0x10a5   : >> { %5654 = vpow2.f32 %v3495_v47 }
0x10aa   : >> { %v3489_v55 = vpop.xlane.xlu2 %3488 }
0x10ab   : >> { %v3815_v45 = vpop.f32.mrf.mxu1  ;;  %3500 = vadd.xlane.f32.xlu0 %v3499_v23  ;;  %v7077_v37 = vpop.eup %5654  ;;  %v3492_v54 = vsub.f32 %v7033_v56, %v3489_v55 }
0x10ac   : >> { %v3502_v22 = vsel %vm1063_vm3, %v7077_v37, 0.0  ;;  %v7086_v38 = vmul.f32 0.35355338, %v3815_v45 }
0x10ad   : >> { %v3497_v20 = vmul.f32 1.442695, %v3492_v54 }
0x10ae   : >> { %v3827_v4 = vsel %vm1063_vm3, %v7086_v38, -inf }
0x10af   : >> { %5656 = vpow2.f32 %v3497_v20 }
0x10b3   : >> { %3503 = vadd.xlane.f32.xlu0 %v3502_v22  ;;  %v3818_v12 = vpop.f32.mrf.mxu1 }
0x10b4   : >> { %v7102_v63 = vmul.f32 0.35355338, %v3818_v12 }
0x10b5   : >> { %v7094_v57 = vpop.eup %5656 }
0x10b6   : >> { %v3702_v51 = vpop.f32.mrf.mxu2  ;;  %v3505_v44 = vsel %vm3486_vm10, %v7094_v57, 0.0  ;;  %v3830_v14 = vsel %vm1063_vm3, %v7102_v63, -inf }
0x10b7   : >> { %v7081_v9 = vmul.f32 0.35355338, %v3702_v51 }
0x10b9   : >> { %v3714_v36 = vsel %vm1063_vm3, %v7081_v9, -inf }
0x10ba   : >> { %3715 = vmax.xlane.f32.xlu1 %v3714_v36 }
0x10bb   : >> { %v3821_v50 = vpop.f32.mrf.mxu1 }
0x10bc   : >> { %v7114_v59 = vmul.f32 0.35355338, %v3821_v50 }
0x10be   : >> { %v3705_v42 = vpop.f32.mrf.mxu2  ;;  %v3833_v61 = vsel %vm3486_vm10, %v7114_v59, -inf }
0x10bf   : >> { %v7088_v58 = vmul.f32 0.35355338, %v3705_v42 }
0x10c1   : >> { %v3717_v5 = vsel %vm3486_vm10, %v7088_v58, -inf }
0x10c2   : >> { %3828 = vmax.xlane.f32.xlu1 %v3827_v4  ;;  %3718 = vmax.xlane.f32.xlu2 %v3717_v5 }
0x10c3   : >> { %v4047_v15 = vpop.f32.mrf.mxu1 }
0x10c4   : >> { %v7104_v3 = vmul.f32 0.35355338, %v4047_v15 }
0x10c6   : >> { %v3931_v40 = vpop.f32.mrf.mxu2  ;;  %v4059_v19 = vsel %vm1063_vm3, %v7104_v3, -inf }
0x10c7   : >> { %v7096_v56 = vmul.f32 0.35355338, %v3931_v40 }
0x10c9   : >> { %v3943_v53 = vsel %vm1063_vm3, %v7096_v56, -inf }
0x10ca   : >> { %3944 = vmax.xlane.f32.xlu2 %v3943_v53  ;;  %3506 = vadd.xlane.f32.xlu1 %v3505_v44 }
0x10cb   : >> { %v4050_v48 = vpop.f32.mrf.mxu1 }
0x10cc   : >> { %v7116_v11 = vmul.f32 0.35355338, %v4050_v48 }
0x10ce   : >> { %v3934_v7 = vpop.f32.mrf.mxu2  ;;  %v4062_v35 = vsel %vm1063_vm3, %v7116_v11, -inf }
0x10cf   : >> { %v7106_v34 = vmul.f32 0.35355338, %v3934_v7 }
0x10d1   : >> { %v3946_v30 = vsel %vm1063_vm3, %v7106_v34, -inf }
0x10d2   : >> { %3831 = vmax.xlane.f32.xlu2 %v3830_v14  ;;  %3947 = vmax.xlane.f32.xlu0 %v3946_v30 }
0x10d3   : >> { %4060 = vmax.xlane.f32.xlu1 %v4059_v19  ;;  %v4053_v49 = vpop.f32.mrf.mxu1 }
0x10d4   : >> { %v7130_v10 = vmul.f32 0.35355338, %v4053_v49 }
0x10d6   : >> { %v3937_v52 = vpop.f32.mrf.mxu2  ;;  %v4065_v27 = vsel %vm3486_vm10, %v7130_v10, -inf }
0x10d7   : >> { %v7122_v28 = vmul.f32 0.35355338, %v3937_v52 }
0x10d9   : >> { %v3949_v18 = vsel %vm3486_vm10, %v7122_v28, -inf }
0x10da   : >> { %3834 = vmax.xlane.f32.xlu0 %v3833_v61 }
0x10db   : >> { %4063 = vmax.xlane.f32.xlu1 %v4062_v35  ;;  %v4279_v60 = vpop.f32.mrf.mxu1 }
0x10dc   : >> { %v7138_v47 = vmul.f32 0.35355338, %v4279_v60  ;;  %v3596_v51 = vpop.xlane.xlu1 %3595 }
0x10dd   : >> { %v3603_v36 = vsub.f32 %v7051_v26, %v3596_v51 }
0x10de   : >> { %v4163_v24 = vpop.f32.mrf.mxu2  ;;  %v4291_v12 = vsel %vm1063_vm3, %v7138_v47, -inf }
0x10df   : >> { %v7124_v17 = vmul.f32 0.35355338, %v4163_v24  ;;  %v3606_v42 = vmul.f32 1.442695, %v3603_v36 }
0x10e1   : >> { %v4175_v39 = vsel %vm1063_vm3, %v7124_v17, -inf  ;;  %5658 = vpow2.f32 %v3606_v42 }
0x10e2   : >> { %4176 = vmax.xlane.f32.xlu2 %v4175_v39  ;;  %3950 = vmax.xlane.f32.xlu0 %v3949_v18 }
0x10e3   : >> { %v4282_v22 = vpop.f32.mrf.mxu1 }
0x10e4   : >> { %v7146_v54 = vmul.f32 0.35355338, %v4282_v22 }
0x10e6   : >> { %v4166_v8 = vpop.f32.mrf.mxu2  ;;  %v4294_v20 = vsel %vm1063_vm3, %v7146_v54, -inf }
0x10e7   : >> { %v7132_v43 = vmul.f32 0.35355338, %v4166_v8  ;;  %v7156_v44 = vpop.eup %5658 }
0x10e8   : >> { %v3612_v14 = vsel %vm1063_vm3, %v7156_v44, 0.0 }
0x10e9   : >> { %v4178_v29 = vsel %vm1063_vm3, %v7132_v43, -inf }
0x10ea   : >> { %4066 = vmax.xlane.f32.xlu2 %v4065_v27  ;;  %4179 = vmax.xlane.f32.xlu0 %v4178_v29 }
0x10eb   : >> { %v4285_v50 = vpop.f32.mrf.mxu1 }
0x10ec   : >> { %v7151_v4 = vmul.f32 0.35355338, %v4285_v50 }
0x10ee   : >> { %v4169_v23 = vpop.f32.mrf.mxu2  ;;  %v4297_v5 = vsel %vm3486_vm10, %v7151_v4, -inf }
0x10ef   : >> { %v7140_v45 = vmul.f32 0.35355338, %v4169_v23 }
0x10f1   : >> { %v4181_v55 = vsel %vm3486_vm10, %v7140_v45, -inf }
0x10f2   : >> { %4292 = vmax.xlane.f32.xlu2 %v4291_v12  ;;  %4182 = vmax.xlane.f32.xlu0 %v4181_v55 }
0x10f5   : >> { %v3599_v40 = vpop.xlane.xlu2 %3598 }
0x10f6   : >> { %v3604_v26 = vsub.f32 %v7057_v13, %v3599_v40 }
0x10f8   : >> { %v3608_v30 = vmul.f32 1.442695, %v3604_v26 }
0x10fa   : >> { %4295 = vmax.xlane.f32.xlu0 %v4294_v20 }
0x1102   : >> { %4298 = vmax.xlane.f32.xlu0 %v4297_v5 }
0x1103   : >> { %v3713_v15 = vpop.xlane.xlu0 %3712 }
0x1104   : >> { %v3720_v53 = vsub.f32 %v7061_v6, %v3713_v15 }
0x1106   : >> { %v3723_v7 = vmul.f32 1.442695, %v3720_v53 }
0x1108   : >> { %5660 = vpow2.f32 %v3723_v7 }
0x1109   : >> { %5662 = vpow2.f32 %v3608_v30 }
0x110a   : >> { %3613 = vadd.xlane.f32.xlu0 %v3612_v14 }
0x110e   : >> { %v7161_v48 = vpop.eup %5660 }
0x110f   : >> { %v3729_v19 = vsel %vm1063_vm3, %v7161_v48, 0.0  ;;  %v7165_v52 = vpop.eup %5662 }
0x1110   : >> { %3730 = vadd.xlane.f32.xlu2 %v3729_v19  ;;  %v3615_v13 = vsel %vm1063_vm3, %v7165_v52, 0.0 }
0x1116   : >> { %v3602_v6 = vpop.xlane.xlu0 %3601 }
0x1117   : >> { %v3605_v61 = vsub.f32 %v7068_v41, %v3602_v6 }
0x1118   : >> { %3616 = vadd.xlane.f32.xlu2 %v3615_v13 }
0x1119   : >> { %v3610_v35 = vmul.f32 1.442695, %v3605_v61 }
0x111b   : >> { %5664 = vpow2.f32 %v3610_v35 }
0x111e   : >> { %v3501_v49 = vpop.xlane.xlu0 %3500 }
0x111f   : >> { %5666 = vrcp.f32 %v3501_v49 }
0x1121   : >> { %v7170_v24 = vpop.eup %5664 }
0x1122   : >> { %v3618_v39 = vsel %vm3486_vm10, %v7170_v24, 0.0 }
0x1123   : >> { %3619 = vadd.xlane.f32.xlu2 %v3618_v39 }
0x1125   : >> { %v5667_v18 = vpop.eup %5666 }
0x1126   : >> { %v3504_v60 = vpop.xlane.xlu0 %3503  ;;  %v3511_v8 = vmul.f32 %v5667_v18, %v7073_v32 }
0x1127   : >> { %5668 = vrcp.f32 %v3504_v60 }
0x1128   : >> { %5268 = vmatmul.msk.f32.vlgmr.msra.gmra.mxu0 %vm1063_vm3, %v3511_v8 }
0x112d   : >> { %v5669_v41 = vpop.eup %5668  ;;  %v3716_v27 = vpop.xlane.xlu1 %3715 }
0x112e   : >> { %v3721_v29 = vsub.f32 %v7081_v9, %v3716_v27  ;;  %v3512_v23 = vmul.f32 %v5669_v41, %v7077_v37 }
0x1130   : >> { %v3725_v22 = vmul.f32 1.442695, %v3721_v29  ;;  %5269 = vmatmul.msk.f32.gmra.mxu0 %vm1063_vm3, %v3512_v23 }
0x1132   : >> { %5670 = vpow2.f32 %v3725_v22 }
0x1135   : >> { %v3829_v12 = vpop.xlane.xlu1 %3828  ;;  %v3719_v55 = vpop.xlane.xlu2 %3718 }
0x1136   : >> { %v3836_v51 = vsub.f32 %v7086_v38, %v3829_v12  ;;  %v3722_v36 = vsub.f32 %v7088_v58, %v3719_v55 }
0x1138   : >> { %v7181_v32 = vpop.eup %5670  ;;  %v3839_v20 = vmul.f32 1.442695, %v3836_v51  ;;  %v3727_v50 = vmul.f32 1.442695, %v3722_v36 }
0x1139   : >> { %v3732_v42 = vsel %vm1063_vm3, %v7181_v32, 0.0 }
0x113a   : >> { %5672 = vpow2.f32 %v3839_v20  ;;  %3733 = vadd.xlane.f32.xlu0 %v3732_v42 }
0x113b   : >> { %5674 = vpow2.f32 %v3727_v50 }
0x113d   : >> { %v3507_v37 = vpop.xlane.xlu1 %3506  ;;  %v3945_v9 = vpop.xlane.xlu2 %3944 }
0x113e   : >> { %5676 = vrcp.f32 %v3507_v37  ;;  %v3952_v5 = vsub.f32 %v7096_v56, %v3945_v9 }
0x1140   : >> { %v7186_v40 = vpop.eup %5672  ;;  %v3955_v38 = vmul.f32 1.442695, %v3952_v5 }
0x1141   : >> { %v7188_v15 = vpop.eup %5674  ;;  %v3845_v58 = vsel %vm1063_vm3, %v7186_v40, 0.0 }
0x1142   : >> { %5678 = vpow2.f32 %v3955_v38  ;;  %3846 = vadd.xlane.f32.xlu0 %v3845_v58  ;;  %v3735_v53 = vsel %vm3486_vm10, %v7188_v15, 0.0 }
0x1143   : >> { %3736 = vadd.xlane.f32.xlu2 %v3735_v53 }
0x1144   : >> { %v5677_v26 = vpop.eup %5676 }
0x1145   : >> { %v3948_v7 = vpop.xlane.xlu0 %3947  ;;  %v3832_v14 = vpop.xlane.xlu2 %3831  ;;  %v3513_v30 = vmul.f32 %v5677_v26, %v7094_v57 }
0x1146   : >> { %v3953_v56 = vsub.f32 %v7106_v34, %v3948_v7  ;;  %v3837_v19 = vsub.f32 %v7102_v63, %v3832_v14  ;;  %v4061_v49 = vpop.xlane.xlu1 %4060 }
0x1147   : >> { %5270 = vmatmul.msk.f32.gmra.mxu0 %vm1063_vm3, %v3513_v30  ;;  %v4068_v63 = vsub.f32 %v7104_v3, %v4061_v49 }
0x1148   : >> { %v7198_v6 = vpop.eup %5678  ;;  %v3957_v61 = vmul.f32 1.442695, %v3953_v56  ;;  %v3841_v13 = vmul.f32 1.442695, %v3837_v19 }
0x1149   : >> { %v3961_v35 = vsel %vm1063_vm3, %v7198_v6, 0.0  ;;  %v4071_v27 = vmul.f32 1.442695, %v4068_v63 }
0x114a   : >> { %5680 = vpow2.f32 %v3957_v61  ;;  %3962 = vadd.xlane.f32.xlu0 %v3961_v35 }
0x114b   : >> { %5682 = vpow2.f32 %v3841_v13 }
0x114d   : >> { %v3835_v39 = vpop.xlane.xlu0 %3834 }
0x114e   : >> { %v3838_v57 = vsub.f32 %v7114_v59, %v3835_v39  ;;  %v4064_v29 = vpop.xlane.xlu1 %4063 }
0x114f   : >> { %v4069_v12 = vsub.f32 %v7116_v11, %v4064_v29 }
0x1150   : >> { %v7203_v18 = vpop.eup %5680  ;;  %v3843_v34 = vmul.f32 1.442695, %v3838_v57 }
0x1151   : >> { %v3964_v60 = vsel %vm1063_vm3, %v7203_v18, 0.0  ;;  %v7208_v8 = vpop.eup %5682  ;;  %v4073_v36 = vmul.f32 1.442695, %v4069_v12 }
0x1152   : >> { %5684 = vpow2.f32 %v3843_v34  ;;  %3965 = vadd.xlane.f32.xlu1 %v3964_v60  ;;  %v3848_v41 = vsel %vm1063_vm3, %v7208_v8, 0.0 }
0x1153   : >> { %3849 = vadd.xlane.f32.xlu0 %v3848_v41  ;;  %5686 = vpow2.f32 %v4071_v27 }
0x1155   : >> { %v3951_v23 = vpop.xlane.xlu0 %3950  ;;  %v7212_v59 = vpop.xlane.xlu2 %4176 }
0x1156   : >> { %v3954_v22 = vsub.f32 %v7122_v28, %v3951_v23  ;;  %v4184_v29 = vsub.f32 %v7124_v17, %v7212_v59 }
0x1158   : >> { %v7215_v3 = vpop.eup %5684  ;;  %v3959_v55 = vmul.f32 1.442695, %v3954_v22 }
0x1159   : >> { %v3851_v51 = vsel %vm3486_vm10, %v7215_v3, 0.0  ;;  %v7220_v42 = vpop.eup %5686 }
0x115a   : >> { %5688 = vpow2.f32 %v3959_v55  ;;  %3852 = vadd.xlane.f32.xlu1 %v3851_v51  ;;  %v4077_v11 = vsel %vm1063_vm3, %v7220_v42, 0.0 }
0x115b   : >> { %5690 = vpow2.f32 %v4073_v36 }
0x115d   : >> { %v4180_v20 = vpop.xlane.xlu0 %4179  ;;  %v4067_v50 = vpop.xlane.xlu2 %4066 }
0x115e   : >> { %v4185_v37 = vsub.f32 %v7132_v43, %v4180_v20  ;;  %v4070_v5 = vsub.f32 %v7130_v10, %v4067_v50 }
0x1160   : >> { %v7223_v9 = vpop.eup %5688  ;;  %v4189_v28 = vmul.f32 1.442695, %v4185_v37  ;;  %v4075_v58 = vmul.f32 1.442695, %v4070_v5 }
0x1161   : >> { %v3967_v38 = vsel %vm3486_vm10, %v7223_v9, 0.0  ;;  %v7230_v26 = vpop.eup %5690 }
0x1162   : >> { %5692 = vpow2.f32 %v4189_v28  ;;  %4078 = vadd.xlane.f32.xlu1 %v4077_v11  ;;  %3968 = vadd.xlane.f32.xlu2 %v3967_v38  ;;  %v4080_v7 = vsel %vm1063_vm3, %v7230_v26, 0.0 }
0x1163   : >> { %5694 = vpow2.f32 %v4075_v58 }
0x1165   : >> { %v4183_v53 = vpop.xlane.xlu0 %4182  ;;  %v4293_v61 = vpop.xlane.xlu2 %4292 }
0x1166   : >> { %v4300_v60 = vsub.f32 %v7138_v47, %v4293_v61  ;;  %v4187_v47 = vmul.f32 1.442695, %v4184_v29 }
0x1168   : >> { %v7232_v43 = vpop.eup %5692 }
0x1169   : >> { %v4196_v10 = vsel %vm1063_vm3, %v7232_v43, 0.0  ;;  %v7238_v30 = vpop.eup %5694 }
0x116a   : >> { %4081 = vadd.xlane.f32.xlu1 %v4080_v7  ;;  %4197 = vadd.xlane.f32.xlu0 %v4196_v10  ;;  %v4083_v56 = vsel %vm3486_vm10, %v7238_v30, 0.0 }
0x116d   : >> { %v4296_v14 = vpop.xlane.xlu0 %4295 }
0x1172   : >> { %4084 = vadd.xlane.f32.xlu0 %v4083_v56 }
0x1175   : >> { %v4299_v19 = vpop.xlane.xlu0 %4298 }
0x117a   : >> { %4324 = vrot.lane.b32.xlu2 %v6998_v31, %s7595_s7  ;;  %s5336_s7 = sshll.u32 %s5828_s26, 7 }
0x117d   : >> { %v3614_v13 = vpop.xlane.xlu0 %3613 }
0x117e   : >> { %5696 = vrcp.f32 %v3614_v13 }
0x1183   : >> { %3976 = vrot.lane.b32.xlu1 %v6998_v31, %s7593_s27  ;;  %v3731_v35 = vpop.xlane.xlu2 %3730 }
0x1184   : >> { %v5697_v49 = vpop.eup %5696  ;;  %5698 = vrcp.f32 %v3731_v35 }
0x1185   : >> { %v3624_v39 = vmul.f32 %v5697_v49, %v7156_v44  ;;  %v4303_v44 = vmul.f32 1.442695, %v4300_v60 }
0x1186   : >> { %4208 = vrot.lane.b32.xlu0 %v6998_v31, %s7594_s3 }
0x1187   : >> { %5275 = vmatmul.msk.f32.vlgmr.msrb.gmra.mxu3 %vm1063_vm3, %v3624_v39 }
0x1188   : >> { %4119 = vmatpush.msrb.mxu3 %v7063_v21  ;;  %v4301_v21 = vsub.f32 %v7146_v54, %v4296_v14  ;;  %v4186_v54 = vsub.f32 %v7140_v45, %v4183_v53 }
0x118a   : >> { %v5699_v57 = vpop.eup %5698  ;;  %v4305_v23 = vmul.f32 1.442695, %v4301_v21  ;;  %v4191_v51 = vmul.f32 1.442695, %v4186_v54 }
0x118b   : >> { %v3617_v63 = vpop.xlane.xlu2 %3616  ;;  %v3741_v34 = vmul.f32 %v5699_v57, %v7161_v48 }
0x118c   : >> { %5700 = vrcp.f32 %v3617_v63 }
0x118d   : >> { %5282 = vmatmul.msk.f32.vlgmr.msrb.gmra.mxu0 %vm1063_vm3, %v3741_v34 }
0x1192   : >> { %v5701_v41 = vpop.eup %5700 }
0x1193   : >> { %v3625_v27 = vmul.f32 %v5701_v41, %v7165_v52  ;;  %v4302_v52 = vsub.f32 %v7151_v4, %v4299_v19 }
0x1195   : >> { %5276 = vmatmul.msk.f32.gmra.mxu3 %vm1063_vm3, %v3625_v27  ;;  %v4307_v17 = vmul.f32 1.442695, %v4302_v52 }
0x1196   : >> { %v3620_v31 = vpop.xlane.xlu2 %3619 }
0x1197   : >> { %5702 = vrcp.f32 %v3620_v31 }
0x1198   : >> { %5704 = vpow2.f32 %v4303_v44 }
0x1199   : >> { %5706 = vpow2.f32 %v4305_v23 }
0x119a   : >> { %5708 = vpow2.f32 %v4187_v47 }
0x119b   : >> { %5710 = vpow2.f32 %v4307_v17 }
0x119c   : >> { %5712 = vpow2.f32 %v4191_v51 }
0x119d   : >> { %v5703_v48 = vpop.eup %5702 }
0x119e   : >> { %v3626_v22 = vmul.f32 %v5703_v48, %v7170_v24  ;;  %v7260_v12 = vpop.eup %5704 }
0x119f   : >> { %v4309_v55 = vsel %vm1063_vm3, %v7260_v12, 0.0  ;;  %v7267_v59 = vpop.eup %5706 }
0x11a0   : >> { %5277 = vmatmul.msk.f32.gmra.mxu3 %vm1063_vm3, %v3626_v22  ;;  %v7269_v24 = vpop.eup %5708  ;;  %v4312_v36 = vsel %vm1063_vm3, %v7267_v59, 0.0 }
0x11a1   : >> { %v4193_v4 = vsel %vm1063_vm3, %v7269_v24, 0.0  ;;  %v7275_v45 = vpop.eup %5710 }
0x11a2   : >> { %v7277_v50 = vpop.eup %5712  ;;  %v4315_v37 = vsel %vm3486_vm10, %v7275_v45, 0.0 }
0x11a3   : >> { %4310 = vadd.xlane.f32.xlu2 %v4309_v55  ;;  %v4199_v5 = vsel %vm3486_vm10, %v7277_v50, 0.0 }
0x11a5   : >> { %v7298_v21 = vpop.f32.mrf.mxu0 }
0x11ab   : >> { %4313 = vadd.xlane.f32.xlu2 %v4312_v36 }
0x11ad   : >> { %v3734_v20 = vpop.xlane.xlu0 %3733  ;;  %4194 = vadd.xlane.f32.xlu1 %v4193_v4  ;;  %v7303_v22 = vpop.f32.mrf.mxu0 }
0x11ae   : >> { %5714 = vrcp.f32 %v3734_v20 }
0x11b3   : >> { %4316 = vadd.xlane.f32.xlu2 %v4315_v37 }
0x11b4   : >> { %v5715_v28 = vpop.eup %5714 }
0x11b5   : >> { %v3847_v11 = vpop.xlane.xlu0 %3846  ;;  %4200 = vadd.xlane.f32.xlu1 %v4199_v5  ;;  %v3742_v38 = vmul.f32 %v5715_v28, %v7181_v32 }
0x11b6   : >> { %5716 = vrcp.f32 %v3847_v11  ;;  %v3737_v58 = vpop.xlane.xlu2 %3736 }
0x11b7   : >> { %5718 = vrcp.f32 %v3737_v58  ;;  %5283 = vmatmul.msk.f32.gmra.mxu0 %vm1063_vm3, %v3742_v38 }
0x11bc   : >> { %v5717_v53 = vpop.eup %5716 }
0x11bd   : >> { %v5719_v7 = vpop.eup %5718  ;;  %v3963_v10 = vpop.xlane.xlu0 %3962  ;;  %v3857_v14 = vmul.f32 %v5717_v53, %v7186_v40 }
0x11be   : >> { %v3743_v56 = vmul.f32 %v5719_v7, %v7188_v15 }
0x11bf   : >> { %5289 = vmatmul.msk.f32.vlgmr.msra.gmra.mxu3 %vm1063_vm3, %v3857_v14 }
0x11c0   : >> { %5284 = vmatmul.msk.f32.gmra.mxu0 %vm1063_vm3, %v3743_v56 }
0x11c4   : >> { %v7307_v52 = vpop.f32.mrf.mxu0 }
0x11c5   : >> { %v3966_v19 = vpop.xlane.xlu1 %3965 }
0x11c6   : >> { %v3850_v61 = vpop.xlane.xlu0 %3849 }
0x11c7   : >> { %5720 = vrcp.f32 %v3850_v61 }
0x11cd   : >> { %v3853_v32 = vpop.xlane.xlu1 %3852  ;;  %v5721_v13 = vpop.eup %5720 }
0x11ce   : >> { %5722 = vrcp.f32 %v3853_v32  ;;  %v3858_v35 = vmul.f32 %v5721_v13, %v7208_v8 }
0x11d0   : >> { %5290 = vmatmul.msk.f32.gmra.mxu3 %vm1063_vm3, %v3858_v35 }
0x11d4   : >> { %v5723_v49 = vpop.eup %5722 }
0x11d5   : >> { %v4079_v39 = vpop.xlane.xlu1 %4078  ;;  %v3969_v57 = vpop.xlane.xlu2 %3968  ;;  %v3859_v40 = vmul.f32 %v5723_v49, %v7215_v3 }
0x11d6   : >> { %5724 = vrcp.f32 %v4079_v39 }
0x11d8   : >> { %5291 = vmatmul.msk.f32.gmra.mxu3 %vm1063_vm3, %v3859_v40 }
0x11dc   : >> { %v5725_v15 = vpop.eup %5724 }
0x11dd   : >> { %v4089_v63 = vmul.f32 %v5725_v15, %v7220_v42  ;;  %v4082_v34 = vpop.xlane.xlu1 %4081  ;;  %v4198_v60 = vpop.xlane.xlu0 %4197 }
0x11de   : >> { %5726 = vrcp.f32 %v4082_v34  ;;  %v4325_v41 = vpop.permute.xlu2 %4324 }
0x11df   : >> { %4351 = vmatpush.msra.mxu3 %v4325_v41  ;;  %v5328_v41 = vld [vmem:[%s6917_s8 + $0xf8] sm:$0xff] }
0x11e0   : >> { %5303 = vmatmul.msk.f32.vlgmr.msrb.gmra.mxu3 %vm1063_vm3, %v4089_v63  ;;  %4496 = vmatpush.msrb.mxu2 %v5328_v41 }
0x11e4   : >> { %v5727_v8 = vpop.eup %5726 }
0x11e5   : >> { %v4085_v27 = vpop.xlane.xlu0 %4084  ;;  %v4090_v44 = vmul.f32 %v5727_v8, %v7230_v26  ;;  %v5327_v8 = vld [vmem:[%s6917_s8 + $0xf0] sm:$0xff] }
0x11e6   : >> { %5728 = vrcp.f32 %v4085_v27  ;;  %v5326_v27 = vld [vmem:[%s6917_s8 + $0xe8] sm:$0xff]  ;;  %4497 = vmatpush.msrb.mxu2 %v5327_v8 }
0x11e7   : >> { %5730 = vrcp.f32 %v3963_v10 }
0x11e8   : >> { %5304 = vmatmul.msk.f32.gmra.mxu3 %vm1063_vm3, %v4090_v44  ;;  %5732 = vrcp.f32 %v3966_v19  ;;  %4498 = vmatpush.msrb.mxu2 %v5326_v27 }
0x11e9   : >> { %5734 = vrcp.f32 %v3969_v57 }
0x11ec   : >> { %v5729_v3 = vpop.eup %5728 }
0x11ed   : >> { %v4091_v31 = vmul.f32 %v5729_v3, %v7238_v30  ;;  %v5731_v42 = vpop.eup %5730 }
0x11ee   : >> { %v3973_v48 = vmul.f32 %v5731_v42, %v7198_v6  ;;  %v5733_v23 = vpop.eup %5732  ;;  %v5324_v42 = vld [vmem:[%s6917_s8 + $0xd8] sm:$0xff] }
0x11ef   : >> { %v3974_v30 = vmul.f32 %v5733_v23, %v7203_v18  ;;  %v5735_v47 = vpop.eup %5734 }
0x11f0   : >> { %5305 = vmatmul.msk.f32.gmra.mxu3 %vm1063_vm3, %v4091_v31  ;;  %v3975_v55 = vmul.f32 %v5735_v47, %v7223_v9  ;;  %v5325_v31 = vld [vmem:[%s6917_s8 + $0xe0] sm:$0xff] }
0x11f1   : >> { %4499 = vmatpush.msrb.mxu2 %v5325_v31 }
0x11f3   : >> { %4500 = vmatpush.msrb.mxu2 %v5324_v42 }
0x11f5   : >> { %v3977_v29 = vpop.permute.xlu1 %3976 }
0x11f6   : >> { %4003 = vmatpush.msra.mxu0 %v3977_v29  ;;  %v5323_v29 = vld [vmem:[%s6917_s8 + $0xd0] sm:$0xff] }
0x11f7   : >> { %5296 = vmatmul.msk.f32.vlgmr.msra.gmra.mxu0 %vm1063_vm3, %v3973_v48  ;;  %4501 = vmatpush.msrb.mxu2 %v5323_v29 }
0x11f8   : >> { %v4209_v26 = vpop.permute.xlu0 %4208 }
0x11f9   : >> { %4235 = vmatpush.msrb.mxu0 %v4209_v26  ;;  %v5322_v26 = vld [vmem:[%s6917_s8 + $0xc8] sm:$0xff] }
0x11fa   : >> { %4502 = vmatpush.msrb.mxu2 %v5322_v26 }
0x11ff   : >> { %5297 = vmatmul.msk.f32.gmra.mxu0 %vm1063_vm3, %v3974_v30  ;;  %v5321_v30 = vld [vmem:[%s6917_s8 + $0xc0] sm:$0xff]  ;;  %s7601_s8 = sld [smem:[#allocation13_spill]] }
0x1200   : >> { %4503 = vmatpush.msrb.mxu2 %v5321_v30 }
0x1205   : >> { %s4690_s30 = scalar_lea.vmem %s7601_s8, %s5828_s26 }
0x1207   : >> { %5298 = vmatmul.msk.f32.gmra.mxu0 %vm1063_vm3, %v3975_v55 }
0x120a   : >> { %v3657_v6 = vpop.f32.mrf.mxu3  ;;  %v3773_v54 = vpop.f32.mrf.mxu0 }
0x120b   : >> { %4365 = vrot.lane.b32.xlu1 %v3657_v6, %s5853_s29  ;;  %4377 = vrot.lane.b32.xlu0 %v3773_v54, %s5854_s5 }
0x1216   : >> { %v4311_v17 = vpop.xlane.xlu2 %4310 }
0x1217   : >> { %5736 = vrcp.f32 %v4311_v17 }
0x1218   : >> { %v3660_v51 = vpop.f32.mrf.mxu3 }
0x1219   : >> { %4367 = vrot.lane.b32.xlu1 %v3660_v51, %s5853_s29 }
0x121d   : >> { %v5737_v18 = vpop.eup %5736 }
0x121e   : >> { %v4321_v36 = vmul.f32 %v5737_v18, %v7260_v12  ;;  %v4314_v4 = vpop.xlane.xlu2 %4313 }
0x121f   : >> { %5738 = vrcp.f32 %v4314_v4 }
0x1220   : >> { %v4195_v20 = vpop.xlane.xlu1 %4194  ;;  %5317 = vmatmul.msk.f32.vlgmr.msra.gmra.mxu3 %vm1063_vm3, %v4321_v36 }
0x1221   : >> { %5740 = vrcp.f32 %v4195_v20 }
0x1222   : >> { %5742 = vrcp.f32 %v4198_v60 }
0x1223   : >> { %v3663_v9 = vpop.f32.mrf.mxu3 }
0x1224   : >> { %4369 = vrot.lane.b32.xlu1 %v3663_v9, %s5853_s29  ;;  %s7599_s29 = smov 56  }
0x1225   : >> { %v5739_v37 = vpop.eup %5738 }
0x1226   : >> { %v4317_v28 = vpop.xlane.xlu2 %4316  ;;  %v4322_v5 = vmul.f32 %v5739_v37, %v7267_v59 }
0x1227   : >> { %v5741_v11 = vpop.eup %5740  ;;  %5744 = vrcp.f32 %v4317_v28 }
0x1228   : >> { %v4205_v38 = vmul.f32 %v5741_v11, %v7269_v24  ;;  %5318 = vmatmul.msk.f32.gmra.mxu3 %vm1063_vm3, %v4322_v5  ;;  %v5743_v12 = vpop.eup %5742  ;;  %v4201_v58 = vpop.xlane.xlu1 %4200 }
0x1229   : >> { %5746 = vrcp.f32 %v4201_v58  ;;  %v4206_v10 = vmul.f32 %v5743_v12, %v7232_v43 }
0x122a   : >> { %5310 = vmatmul.msk.f32.vlgmr.msrb.gmra.mxu0 %vm1063_vm3, %v4205_v38 }
0x122d   : >> { %v5745_v53 = vpop.eup %5744 }
0x122e   : >> { %v4323_v7 = vmul.f32 %v5745_v53, %v7275_v45 }
0x122f   : >> { %v5747_v14 = vpop.eup %5746 }
0x1230   : >> { %5319 = vmatmul.msk.f32.gmra.mxu3 %vm1063_vm3, %v4323_v7  ;;  %v4207_v24 = vmul.f32 %v5747_v14, %v7277_v50 }
0x1232   : >> { %5311 = vmatmul.msk.f32.gmra.mxu0 %vm1063_vm3, %v4206_v10 }
0x1234   : >> { %v3776_v59 = vpop.f32.mrf.mxu0 }
0x1235   : >> { %4379 = vrot.lane.b32.xlu0 %v3776_v59, %s5854_s5 }
0x123a   : >> { %5312 = vmatmul.msk.f32.gmra.mxu0 %vm1063_vm3, %v4207_v24 }
0x123d   : >> { %v3779_v56 = vpop.f32.mrf.mxu0 }
0x123e   : >> { %4381 = vrot.lane.b32.xlu0 %v3779_v56, %s5854_s5  ;;  %s7600_s5 = smov 48  }
0x1242   : >> { %v3889_v19 = vpop.f32.mrf.mxu3 }
0x1246   : >> { %4389 = vrot.lane.b32.xlu0 %v3889_v19, %s7596_s0 }
0x1253   : >> { %v3892_v45 = vpop.f32.mrf.mxu3 }
0x1254   : >> { %4391 = vrot.lane.b32.xlu1 %v3892_v45, %s7596_s0 }
0x125b   : >> { %v3895_v43 = vpop.f32.mrf.mxu3 }
0x125c   : >> { %4393 = vrot.lane.b32.xlu2 %v3895_v43, %s7596_s0 }
0x1263   : >> { %v4121_v61 = vpop.f32.mrf.mxu3 }
0x1264   : >> { %4413 = vrot.lane.b32.xlu1 %v4121_v61, %s7597_s2 }
0x126b   : >> { %v4124_v32 = vpop.f32.mrf.mxu3 }
0x126c   : >> { %4415 = vrot.lane.b32.xlu1 %v4124_v32, %s7597_s2 }
0x1273   : >> { %v4127_v49 = vpop.f32.mrf.mxu3 }
0x1274   : >> { %v4005_v50 = vpop.f32.mrf.mxu0 }
0x1275   : >> { %4401 = vrot.lane.b32.xlu0 %v4005_v50, %s7598_s23 }
0x127c   : >> { %v4008_v13 = vpop.f32.mrf.mxu0 }
0x127d   : >> { %4403 = vrot.lane.b32.xlu0 %v4008_v13, %s7598_s23  ;;  %v4378_v60 = vpop.permute.xlu0 %4377  ;;  %v4366_v3 = vpop.permute.xlu1 %4365 }
0x127e   : >> { %v4446_v51 = vsel %vm1063_vm3, %v7298_v21, %v4366_v3 }
0x127f   : >> { %v4449_v4 = vsel %vm1617_vm4, %v4446_v51, %v4378_v60 }
0x1284   : >> { %v4011_v35 = vpop.f32.mrf.mxu0 }
0x1285   : >> { %4405 = vrot.lane.b32.xlu1 %v4011_v35, %s7598_s23  ;;  %s7418_s23 = scalar_lea.vmem %s7543_s22, %s5336_s7 }
0x128b   : >> { %v4368_v23 = vpop.permute.xlu1 %4367 }
0x128c   : >> { %v4447_v38 = vsel %vm1063_vm3, %v7303_v22, %v4368_v23 }
0x1296   : >> { %v4370_v55 = vpop.permute.xlu1 %4369 }
0x1297   : >> { %v4448_v19 = vsel %vm1063_vm3, %v7307_v52, %v4370_v55 }
0x12a3   : >> { %v4353_v39 = vpop.f32.mrf.mxu3 }
0x12a4   : >> { %4437 = vrot.lane.b32.xlu2 %v4353_v39, %s7599_s29 }
0x12a7   : >> { %v4237_v57 = vpop.f32.mrf.mxu0  ;;  %v4380_v44 = vpop.permute.xlu0 %4379 }
0x12a8   : >> { %4425 = vrot.lane.b32.xlu0 %v4237_v57, %s7600_s5  ;;  %v4450_v58 = vsel %vm1617_vm4, %v4447_v38, %v4380_v44  ;;  %v5543_v57 = vld [vmem:[%s6910_s9 + $0x3] ss:$0 sm:$0xff]  ;;  %s5332_s9 = sshll.u32 %s5828_s26, 6  ;;  %s1870_s26 = sadd.s32 1, %s5828_s26  }
0x12a9   : >> { %s4596_s3 = scalar_lea.vmem %s7541_s20, %s5332_s9  ;;  %p1867_p5 = scmp.ge.s32.totalorder %s1870_s26, 4  }
0x12ab   : >> { %v4356_v40 = vpop.f32.mrf.mxu3 }
0x12ac   : >> { %4439 = vrot.lane.b32.xlu2 %v4356_v40, %s7599_s29 }
0x12af   : >> { %v4240_v15 = vpop.f32.mrf.mxu0 }
0x12b0   : >> { %4427 = vrot.lane.b32.xlu0 %v4240_v15, %s7600_s5  ;;  %v4382_v48 = vpop.permute.xlu0 %4381 }
0x12b1   : >> { %v4451_v45 = vsel %vm1617_vm4, %v4448_v19, %v4382_v48 }
0x12b3   : >> { %v4359_v63 = vpop.f32.mrf.mxu3 }
0x12b4   : >> { %4441 = vrot.lane.b32.xlu1 %v4359_v63, %s7599_s29 }
0x12b6   : >> { %v4394_v17 = vpop.permute.xlu2 %4393 }
0x12b7   : >> { %v4243_v34 = vpop.f32.mrf.mxu0  ;;  %v4454_v43 = vsel %vm1619_vm5, %v4451_v45, %v4394_v17 }
0x12b8   : >> { %4417 = vrot.lane.b32.xlu0 %v4127_v49, %s7597_s2  ;;  %4429 = vrot.lane.b32.xlu2 %v4243_v34, %s7600_s5  ;;  %v4390_v47 = vpop.permute.xlu0 %4389 }
0x12b9   : >> { %v4452_v20 = vsel %vm1619_vm5, %v4449_v4, %v4390_v47  ;;  %v4602_v4 = vld [vmem:[%s4596_s3 + $0x28] sm:$0xff] }
0x12c6   : >> { %v4392_v54 = vpop.permute.xlu1 %4391 }
0x12c7   : >> { %v4453_v53 = vsel %vm1619_vm5, %v4450_v58, %v4392_v54 }
0x12d6   : >> { %v4414_v18 = vpop.permute.xlu1 %4413 }
0x12de   : >> { %v4416_v12 = vpop.permute.xlu1 %4415 }
0x12e7   : >> { %v4402_v6 = vpop.permute.xlu0 %4401 }
0x12e8   : >> { %v4455_v9 = vsel %vm1621_vm6, %v4452_v20, %v4402_v6  ;;  %v4601_v20 = vld [vmem:[%s4596_s3 + $0x20] sm:$0xff] }
0x12e9   : >> { %v4458_v28 = vsel %vm1623_vm7, %v4455_v9, %v4414_v18  ;;  %v4604_v18 = vld [vmem:[%s4596_s3 + $0x38] sm:$0xff] }
0x12ea   : >> { %4627 = vmatpush.msra.mxu0 %v4604_v18  ;;  %v4600_v9 = vld [vmem:[%s4596_s3 + $0x18] sm:$0xff]  ;;  %v4679_v18 = vld [vmem:[%s7418_s23 + $0x28] sm:$0xff] }
0x12ef   : >> { %v4404_v36 = vpop.permute.xlu0 %4403 }
0x12f0   : >> { %v4456_v7 = vsel %vm1621_vm6, %v4453_v53, %v4404_v36  ;;  %v4603_v36 = vld [vmem:[%s4596_s3 + $0x30] sm:$0xff] }
0x12f1   : >> { %v4459_v10 = vsel %vm1623_vm7, %v4456_v7, %v4416_v12  ;;  %4628 = vmatpush.msra.mxu0 %v4603_v36  ;;  %v4678_v36 = vld [vmem:[%s7418_s23 + $0x20] sm:$0xff] }
0x12f3   : >> { %4629 = vmatpush.msra.mxu0 %v4602_v4  ;;  %v4677_v4 = vld [vmem:[%s7418_s23 + $0x18] sm:$0xff] }
0x12f5   : >> { %4630 = vmatpush.msra.mxu0 %v4601_v20  ;;  %v4676_v20 = vld [vmem:[%s7418_s23 + $0x10] sm:$0xff] }
0x12f7   : >> { %v4406_v56 = vpop.permute.xlu1 %4405  ;;  %4631 = vmatpush.msra.mxu0 %v4600_v9  ;;  %v4675_v9 = vld [vmem:[%s7418_s23 + $0x8] sm:$0xff] }
0x12f8   : >> { %v4457_v61 = vsel %vm1621_vm6, %v4454_v43, %v4406_v56 }
0x12fe   : >> { %v4438_v37 = vpop.permute.xlu2 %4437 }
0x1306   : >> { %v4440_v14 = vpop.permute.xlu2 %4439 }
0x1312   : >> { %v4430_v50 = vpop.permute.xlu2 %4429 }
0x131a   : >> { %v4426_v5 = vpop.permute.xlu0 %4425 }
0x131b   : >> { %v4461_v11 = vsel %vm1625_vm8, %v4458_v28, %v4426_v5  ;;  %v4598_v28 = vld [vmem:[%s4596_s3 + $0x8] sm:$0xff]  ;;  %v4597_v5 = vld [vmem:[%s4596_s3] sm:$0xff] }
0x131c   : >> { %v4464_v21 = vsel %vm1627_vm9, %v4461_v11, %v4438_v37  ;;  %v4599_v37 = vld [vmem:[%s4596_s3 + $0x10] sm:$0xff] }
0x131d   : >> { %5329 = vmatmul.msk.f32.vlgmr.msrb.gmra.mxu2 %vm973_vm2, %v4464_v21  ;;  %4632 = vmatpush.msra.mxu0 %v4599_v37  ;;  %v4674_v37 = vld [vmem:[%s7418_s23] sm:$0xff] }
0x131f   : >> { %4633 = vmatpush.msra.mxu0 %v4598_v28  ;;  %v5546_v28 = vld [vmem:[%s4605_s6] ss:$0 sm:$0xff] }
0x1321   : >> { %4634 = vmatpush.msra.mxu0 %v4597_v5 }
0x1322   : >> { %v4428_v59 = vpop.permute.xlu0 %4427 }
0x1323   : >> { %v4462_v24 = vsel %vm1625_vm8, %v4459_v10, %v4428_v59 }
0x1324   : >> { %v4465_v22 = vsel %vm1627_vm9, %v4462_v24, %v4440_v14  ;;  %v4689_v14 = vld [vmem:[%s7418_s23 + $0x78] sm:$0xff]  ;;  %v4688_v24 = vld [vmem:[%s7418_s23 + $0x70] sm:$0xff] }
0x1325   : >> { %5330 = vmatmul.msk.f32.gmra.mxu2 %vm973_vm2, %v4465_v22  ;;  %4695 = vmatpush.msra.mxu1 %v4689_v14  ;;  %v4687_v22 = vld [vmem:[%s7418_s23 + $0x68] sm:$0xff] }
0x1326   : >> { %v4442_v35 = vpop.permute.xlu1 %4441 }
0x1327   : >> { %4696 = vmatpush.msra.mxu1 %v4688_v24 }
0x1329   : >> { %4697 = vmatpush.msra.mxu1 %v4687_v22 }
0x132a   : >> { %v4418_v32 = vpop.permute.xlu0 %4417 }
0x132b   : >> { %v4460_v13 = vsel %vm1623_vm7, %v4457_v61, %v4418_v32  ;;  %v4686_v61 = vld [vmem:[%s7418_s23 + $0x60] sm:$0xff] }
0x132c   : >> { %v4463_v49 = vsel %vm1625_vm8, %v4460_v13, %v4430_v50  ;;  %4698 = vmatpush.msra.mxu1 %v4686_v61 }
0x132d   : >> { %v4466_v39 = vsel %vm1627_vm9, %v4463_v49, %v4442_v35  ;;  %v5544_v49 = vld [vmem:[%s6891_s4 + $0x2] ss:$0 sm:$0xff] }
0x132e   : >> { %5331 = vmatmul.msk.f32.gmra.mxu2 %vm973_vm2, %v4466_v39 }
0x13a0   : >> { %v4505_v40 = vpop.f32.mrf.mxu2 }
0x13a1   : >> { %v4506_v52 = vadd.f32 %v5543_v57, %v4505_v40 }
0x13a3   : >> { %v4514_v15 = vadd.f32 %v4506_v52, %v6941_v46  ;;  %v5545_v52 = vld [vmem:[%s6891_s4 + $0x3] ss:$0 sm:$0xff] }
0x13a5   : >> { %v4517_v63 = vsel %vm973_vm2, %v4514_v15, 0.0 }
0x13a6   : >> { %4518 = vadd.xlane.f32.xlu0 %v4517_v63 }
0x13a8   : >> { %v4508_v34 = vpop.f32.mrf.mxu2 }
0x13a9   : >> { %v4509_v60 = vadd.f32 %v5543_v57, %v4508_v34 }
0x13ab   : >> { %v4515_v41 = vadd.f32 %v4509_v60, %v6952_v25 }
0x13ad   : >> { %v4520_v8 = vsel %vm973_vm2, %v4515_v41, 0.0 }
0x13ae   : >> { %4521 = vadd.xlane.f32.xlu2 %v4520_v8 }
0x13b1   : >> { %v4511_v27 = vpop.f32.mrf.mxu2 }
0x13b2   : >> { %v4512_v44 = vadd.f32 %v5543_v57, %v4511_v27 }
0x13b4   : >> { %v4516_v3 = vadd.f32 %v4512_v44, %v6957_v33 }
0x13b6   : >> { %v4523_v31 = vsel %vm3247_vm15, %v4516_v3, 0.0 }
0x13b7   : >> { %4524 = vadd.xlane.f32.xlu1 %v4523_v31 }
0x1419   : >> { %v4519_v42 = vpop.xlane.xlu0 %4518 }
0x141a   : >> { %v4526_v46 = vmul.f32 %v4519_v42, %v6199_v16 }
0x141c   : >> { %v7387_v29 = vsub.f32 %v4514_v15, %v4526_v46 }
0x141e   : >> { %v4532_v48 = vmul.f32 %v7387_v29, %v7387_v29 }
0x1420   : >> { %v4535_v25 = vsel %vm973_vm2, %v4532_v48, 0.0 }
0x1421   : >> { %4536 = vadd.xlane.f32.xlu2 %v4535_v25  ;;  %v4522_v26 = vpop.xlane.xlu2 %4521 }
0x1422   : >> { %v4527_v23 = vmul.f32 %v4522_v26, %v6199_v16 }
0x1424   : >> { %v7393_v33 = vsub.f32 %v4515_v41, %v4527_v23 }
0x1426   : >> { %v4533_v30 = vmul.f32 %v7393_v33, %v7393_v33 }
0x1428   : >> { %v4538_v47 = vsel %vm973_vm2, %v4533_v30, 0.0 }
0x1429   : >> { %4539 = vadd.xlane.f32.xlu0 %v4538_v47  ;;  %v4685_v47 = vld [vmem:[%s7418_s23 + $0x58] sm:$0xff] }
0x142a   : >> { %v4525_v55 = vpop.xlane.xlu1 %4524  ;;  %4699 = vmatpush.msra.mxu1 %v4685_v47 }
0x142b   : >> { %v4528_v6 = vmul.f32 %v4525_v55, %v6199_v16  ;;  %v4684_v55 = vld [vmem:[%s7418_s23 + $0x50] sm:$0xff] }
0x142c   : >> { %4700 = vmatpush.msra.mxu1 %v4684_v55 }
0x142d   : >> { %v7399_v54 = vsub.f32 %v4516_v3, %v4528_v6  ;;  %v4683_v6 = vld [vmem:[%s7418_s23 + $0x48] sm:$0xff] }
0x142e   : >> { %4701 = vmatpush.msra.mxu1 %v4683_v6 }
0x142f   : >> { %v4534_v17 = vmul.f32 %v7399_v54, %v7399_v54 }
0x1431   : >> { %v4541_v51 = vsel %vm3247_vm15, %v4534_v17, 0.0  ;;  %v4681_v17 = vld [vmem:[%s7418_s23 + $0x38] sm:$0xff] }
0x1432   : >> { %4542 = vadd.xlane.f32.xlu1 %v4541_v51  ;;  %v4680_v51 = vld [vmem:[%s7418_s23 + $0x30] sm:$0xff] }
0x1494   : >> { %v4537_v11 = vpop.xlane.xlu2 %4536 }
0x1495   : >> { %v4544_v38 = vmul.f32 %v4537_v11, %v6199_v16 }
0x1497   : >> { %v4547_v12 = vadd.f32 1e-05, %v4544_v38 }
0x1499   : >> { %5748 = vrsqrt.f32 %v4547_v12  ;;  %vm4556_vm12 = vweird.f32 %v4547_v12 }
0x149c   : >> { %v4540_v21 = vpop.xlane.xlu0 %4539 }
0x149d   : >> { %v4545_v58 = vmul.f32 %v4540_v21, %v6199_v16 }
0x149f   : >> { %v5749_v53 = vpop.eup %5748  ;;  %v4548_v7 = vadd.f32 1e-05, %v4545_v58 }
0x14a0   : >> { %v4551_v10 = vmul.f32 %v5749_v53, %v4547_v12  ;;  %vm4557_vm11 = vweird.f32 %v5749_v53 }
0x14a1   : >> { %5750 = vrsqrt.f32 %v4548_v7  ;;  %vm4558_vm13 = vmor %vm4556_vm12, %vm4557_vm11  ;;  %vm4566_vm0 = vweird.f32 %v4548_v7 }
0x14a2   : >> { %v4552_v59 = vmul.f32 %v5749_v53, %v4551_v10 }
0x14a4   : >> { %v4553_v56 = vmul.f32 0.5, %v4552_v59 }
0x14a5   : >> { %v4543_v19 = vpop.xlane.xlu1 %4542 }
0x14a6   : >> { %v4554_v45 = vsub.f32 1.5, %v4553_v56  ;;  %v4546_v43 = vmul.f32 %v4543_v19, %v6199_v16 }
0x14a7   : >> { %v5751_v32 = vpop.eup %5750 }
0x14a8   : >> { %v4555_v50 = vmul.f32 %v5749_v53, %v4554_v45  ;;  %v4561_v13 = vmul.f32 %v5751_v32, %v4548_v7  ;;  %v4549_v35 = vadd.f32 1e-05, %v4546_v43  ;;  %vm4567_vm14 = vweird.f32 %v5751_v32 }
0x14a9   : >> { %vm4568_vm1 = vmor %vm4566_vm0, %vm4567_vm14 }
0x14aa   : >> { %v4559_v39 = vsel %vm4558_vm13, %v5749_v53, %v4555_v50  ;;  %v4562_v57 = vmul.f32 %v5751_v32, %v4561_v13  ;;  %5752 = vrsqrt.f32 %v4549_v35  ;;  %vm4576_vm11 = vweird.f32 %v4549_v35 }
0x14ab   : >> { %v4580_v40 = vmul.f32 %v4559_v39, %v7387_v29 }
0x14ac   : >> { %v4563_v15 = vmul.f32 0.5, %v4562_v57 }
0x14ad   : >> { %v4586_v63 = vmul.f32 %v5544_v49, %v4580_v40 }
0x14ae   : >> { %v4564_v34 = vsub.f32 1.5, %v4563_v15 }
0x14af   : >> { %v7428_v60 = vadd.f32 %v5545_v52, %v4586_v63 }
0x14b0   : >> { %v5753_v41 = vpop.eup %5752  ;;  %v4565_v8 = vmul.f32 %v5751_v32, %v4564_v34 }
0x14b1   : >> { %v4571_v27 = vmul.f32 %v5753_v41, %v4549_v35  ;;  %5333 = vmatmul.msk.f32.vlgmr.msra.gmra.mxu0 %vm973_vm2, %v7428_v60  ;;  %vm4577_vm10 = vweird.f32 %v5753_v41 }
0x14b2   : >> { %v4569_v44 = vsel %vm4568_vm1, %v5751_v32, %v4565_v8  ;;  %vm4578_vm12 = vmor %vm4576_vm11, %vm4577_vm10 }
0x14b3   : >> { %v4572_v3 = vmul.f32 %v5753_v41, %v4571_v27  ;;  %v4581_v31 = vmul.f32 %v4569_v44, %v7393_v33  ;;  %v5547_v44 = vld [vmem:[%s4690_s30] ss:$0 sm:$0xff] }
0x14b5   : >> { %v4573_v42 = vmul.f32 0.5, %v4572_v3  ;;  %v4587_v46 = vmul.f32 %v5544_v49, %v4581_v31 }
0x14b7   : >> { %v4574_v29 = vsub.f32 1.5, %v4573_v42  ;;  %v7433_v48 = vadd.f32 %v5545_v52, %v4587_v46 }
0x14b9   : >> { %v4575_v25 = vmul.f32 %v5753_v41, %v4574_v29  ;;  %5334 = vmatmul.msk.f32.gmra.mxu0 %vm973_vm2, %v7433_v48 }
0x14bb   : >> { %v4579_v26 = vsel %vm4578_vm12, %v5753_v41, %v4575_v25 }
0x14bc   : >> { %v4582_v23 = vmul.f32 %v4579_v26, %v7399_v54  ;;  %v4682_v54 = vld [vmem:[%s7418_s23 + $0x40] sm:$0xff] }
0x14bd   : >> { %4702 = vmatpush.msra.mxu1 %v4682_v54 }
0x14be   : >> { %v4588_v33 = vmul.f32 %v5544_v49, %v4582_v23 }
0x14bf   : >> { %4703 = vmatpush.msra.mxu1 %v4681_v17 }
0x14c0   : >> { %v7438_v30 = vadd.f32 %v5545_v52, %v4588_v33 }
0x14c1   : >> { %4704 = vmatpush.msra.mxu1 %v4680_v51 }
0x14c2   : >> { %5335 = vmatmul.msk.f32.gmra.mxu0 %vm973_vm2, %v7438_v30 }
0x14c3   : >> { %4705 = vmatpush.msra.mxu1 %v4679_v18 }
0x14c5   : >> { %4706 = vmatpush.msra.mxu1 %v4678_v36 }
0x14c7   : >> { %4707 = vmatpush.msra.mxu1 %v4677_v4 }
0x14c9   : >> { %4708 = vmatpush.msra.mxu1 %v4676_v20 }
0x14cb   : >> { %4709 = vmatpush.msra.mxu1 %v4675_v9 }
0x14cd   : >> { %4710 = vmatpush.msra.mxu1 %v4674_v37 }
0x152e   : >> { %v4636_v5 = vpop.f32.mrf.mxu0 }
0x152f   : >> { %v4637_v11 = vadd.f32 %v5546_v28, %v4636_v5 }
0x1531   : >> { %v4648_v38 = vmul.f32 0.044715, %v4637_v11  ;;  %v4645_v61 = vmul.f32 0.5, %v4637_v11 }
0x1533   : >> { %v4651_v12 = vmul.f32 %v4648_v38, %v4637_v11 }
0x1535   : >> { %v4654_v21 = vmul.f32 %v4651_v12, %v4637_v11 }
0x1536   : >> { %v4639_v58 = vpop.f32.mrf.mxu0 }
0x1537   : >> { %v4657_v53 = vadd.f32 %v4654_v21, %v4637_v11  ;;  %v4640_v7 = vadd.f32 %v5546_v28, %v4639_v58 }
0x1539   : >> { %v4660_v10 = vmul.f32 0.7978846, %v4657_v53  ;;  %v4649_v59 = vmul.f32 0.044715, %v4640_v7  ;;  %v4646_v40 = vmul.f32 0.5, %v4640_v7 }
0x153b   : >> { %5754 = vtanh.f32 %v4660_v10  ;;  %v4652_v14 = vmul.f32 %v4649_v59, %v4640_v7 }
0x153d   : >> { %v4655_v24 = vmul.f32 %v4652_v14, %v4640_v7 }
0x153f   : >> { %v4642_v56 = vpop.f32.mrf.mxu0  ;;  %v4658_v22 = vadd.f32 %v4655_v24, %v4640_v7 }
0x1540   : >> { %v4643_v19 = vadd.f32 %v5546_v28, %v4642_v56 }
0x1541   : >> { %v5755_v45 = vpop.eup %5754  ;;  %v4661_v43 = vmul.f32 0.7978846, %v4658_v22 }
0x1542   : >> { %v4650_v32 = vmul.f32 0.044715, %v4643_v19  ;;  %v4666_v50 = vadd.f32 1.0, %v5755_v45  ;;  %v4647_v41 = vmul.f32 0.5, %v4643_v19 }
0x1543   : >> { %5756 = vtanh.f32 %v4661_v43 }
0x1544   : >> { %v4669_v13 = vmul.f32 %v4666_v50, %v4645_v61  ;;  %v4653_v35 = vmul.f32 %v4650_v32, %v4643_v19  ;;  %v5548_v50 = vld [vmem:[%s6891_s4 + $0x4] ss:$0 sm:$0xff] }
0x1546   : >> { %4711 = vmatmul.f32.vlgmr.msra.gmra.mxu1 %v4669_v13  ;;  %v4656_v49 = vmul.f32 %v4653_v35, %v4643_v19 }
0x1548   : >> { %v4659_v39 = vadd.f32 %v4656_v49, %v4643_v19  ;;  %v5549_v49 = vld [vmem:[%s6891_s4 + $0x5] ss:$0 sm:$0xff] }
0x1549   : >> { %v5757_v57 = vpop.eup %5756 }
0x154a   : >> { %v4667_v52 = vadd.f32 1.0, %v5757_v57  ;;  %v4662_v15 = vmul.f32 0.7978846, %v4659_v39 }
0x154c   : >> { %v4670_v63 = vmul.f32 %v4667_v52, %v4646_v40  ;;  %5758 = vtanh.f32 %v4662_v15 }
0x154e   : >> { %4714 = vmatmul.f32.gmra.mxu1 %v4670_v63 }
0x1552   : >> { %v5759_v34 = vpop.eup %5758 }
0x1553   : >> { %v4668_v8 = vadd.f32 1.0, %v5759_v34 }
0x1555   : >> { %v4671_v27 = vmul.f32 %v4668_v8, %v4647_v41 }
0x1557   : >> { %4717 = vmatmul.f32.gmra.mxu1 %v4671_v27 }
0x15c3   : >> { %v4712_v3 = vpop.f32.mrf.mxu1 }
0x15c4   : >> { %v4713_v31 = vadd.f32 %v5547_v44, %v4712_v3 }
0x15c6   : >> { %v4721_v42 = vadd.f32 %v4713_v31, %v7428_v60 }
0x15c8   : >> { %v4724_v46 = vsel %vm973_vm2, %v4721_v42, 0.0 }
0x15c9   : >> { %4725 = vadd.xlane.f32.xlu2 %v4724_v46 }
0x15cb   : >> { %v4715_v29 = vpop.f32.mrf.mxu1 }
0x15cc   : >> { %v4716_v25 = vadd.f32 %v5547_v44, %v4715_v29 }
0x15ce   : >> { %v4722_v26 = vadd.f32 %v4716_v25, %v7433_v48 }
0x15d0   : >> { %v4727_v23 = vsel %vm973_vm2, %v4722_v26, 0.0 }
0x15d1   : >> { %4728 = vadd.xlane.f32.xlu0 %v4727_v23 }
0x15d4   : >> { %v4718_v33 = vpop.f32.mrf.mxu1 }
0x15d5   : >> { %v4719_v47 = vadd.f32 %v5547_v44, %v4718_v33 }
0x15d7   : >> { %v4723_v55 = vadd.f32 %v4719_v47, %v7438_v30 }
0x15d9   : >> { %v4730_v6 = vsel %vm3247_vm15, %v4723_v55, 0.0 }
0x15da   : >> { %4731 = vadd.xlane.f32.xlu1 %v4730_v6 }
0x163c   : >> { %v4726_v54 = vpop.xlane.xlu2 %4725 }
0x163d   : >> { %v4733_v60 = vmul.f32 %v4726_v54, %v6199_v16 }
0x163f   : >> { %v4736_v17 = vsub.f32 %v4721_v42, %v4733_v60 }
0x1641   : >> { %v4739_v51 = vmul.f32 %v4736_v17, %v4736_v17 }
0x1643   : >> { %v4742_v18 = vsel %vm973_vm2, %v4739_v51, 0.0 }
0x1644   : >> { %v4729_v36 = vpop.xlane.xlu0 %4728  ;;  %4743 = vadd.xlane.f32.xlu2 %v4742_v18 }
0x1645   : >> { %v4734_v48 = vmul.f32 %v4729_v36, %v6199_v16 }
0x1647   : >> { %v4737_v4 = vsub.f32 %v4722_v26, %v4734_v48 }
0x1649   : >> { %v4740_v20 = vmul.f32 %v4737_v4, %v4737_v4 }
0x164b   : >> { %v4745_v9 = vsel %vm973_vm2, %v4740_v20, 0.0 }
0x164c   : >> { %4746 = vadd.xlane.f32.xlu0 %v4745_v9 }
0x164d   : >> { %v4732_v30 = vpop.xlane.xlu1 %4731 }
0x164e   : >> { %v4735_v37 = vmul.f32 %v4732_v30, %v6199_v16 }
0x1650   : >> { %v4738_v28 = vsub.f32 %v4723_v55, %v4735_v37 }
0x1652   : >> { %v4741_v5 = vmul.f32 %v4738_v28, %v4738_v28 }
0x1654   : >> { %v4748_v11 = vsel %vm3247_vm15, %v4741_v5, 0.0 }
0x1655   : >> { %4749 = vadd.xlane.f32.xlu1 %v4748_v11 }
0x16b7   : >> { %v4744_v38 = vpop.xlane.xlu2 %4743 }
0x16b8   : >> { %v4751_v12 = vmul.f32 %v4744_v38, %v6199_v16 }
0x16ba   : >> { %v4754_v21 = vadd.f32 1e-05, %v4751_v12 }
0x16bc   : >> { %5760 = vrsqrt.f32 %v4754_v21  ;;  %vm4763_vm14 = vweird.f32 %v4754_v21 }
0x16bf   : >> { %v4747_v58 = vpop.xlane.xlu0 %4746 }
0x16c0   : >> { %v4752_v53 = vmul.f32 %v4747_v58, %v6199_v16 }
0x16c2   : >> { %v5761_v7 = vpop.eup %5760  ;;  %v4755_v10 = vadd.f32 1e-05, %v4752_v53 }
0x16c3   : >> { %v4758_v59 = vmul.f32 %v5761_v7, %v4754_v21  ;;  %vm4764_vm13 = vweird.f32 %v5761_v7 }
0x16c4   : >> { %5762 = vrsqrt.f32 %v4755_v10  ;;  %vm4765_vm0 = vmor %vm4763_vm14, %vm4764_vm13  ;;  %vm4773_vm10 = vweird.f32 %v4755_v10 }
0x16c5   : >> { %v4759_v14 = vmul.f32 %v5761_v7, %v4758_v59 }
0x16c7   : >> { %v4760_v24 = vmul.f32 0.5, %v4759_v14 }
0x16c8   : >> { %v4750_v56 = vpop.xlane.xlu1 %4749 }
0x16c9   : >> { %v4761_v22 = vsub.f32 1.5, %v4760_v24  ;;  %v4753_v19 = vmul.f32 %v4750_v56, %v6199_v16 }
0x16ca   : >> { %v5763_v45 = vpop.eup %5762 }
0x16cb   : >> { %v4762_v43 = vmul.f32 %v5761_v7, %v4761_v22  ;;  %v4768_v61 = vmul.f32 %v5763_v45, %v4755_v10  ;;  %v4756_v32 = vadd.f32 1e-05, %v4753_v19  ;;  %vm4774_vm1 = vweird.f32 %v5763_v45 }
0x16cc   : >> { %vm4775_vm11 = vmor %vm4773_vm10, %vm4774_vm1 }
0x16cd   : >> { %v4766_v13 = vsel %vm4765_vm0, %v5761_v7, %v4762_v43  ;;  %v4769_v35 = vmul.f32 %v5763_v45, %v4768_v61  ;;  %5764 = vrsqrt.f32 %v4756_v32  ;;  %vm4783_vm13 = vweird.f32 %v4756_v32 }
0x16ce   : >> { %v4787_v39 = vmul.f32 %v4766_v13, %v4736_v17 }
0x16cf   : >> { %v4770_v57 = vmul.f32 0.5, %v4769_v35 }
0x16d0   : >> { %v4793_v40 = vmul.f32 %v5548_v50, %v4787_v39 }
0x16d1   : >> { %v4771_v52 = vsub.f32 1.5, %v4770_v57 }
0x16d2   : >> { %v4799_v15 = vadd.f32 %v5549_v49, %v4793_v40  }
0x16d3   : >> { %v5765_v63 = vpop.eup %5764  ;;  %v4772_v34 = vmul.f32 %v5763_v45, %v4771_v52 }
0x16d4   : >> { %v4778_v41 = vmul.f32 %v5765_v63, %v4756_v32  ;;  %vm4784_vm12 = vweird.f32 %v5765_v63  ;;  %v7604_v56 = vmov %v4799_v15  ;;  %v4806_v47 = vsel (%p1867_p5), %vm973_vm2, %v4799_v15, 0.0 }
0x16d5   : >> { %v4776_v8 = vsel %vm4775_vm11, %v5763_v45, %v4772_v34  ;;  %vm4785_vm14 = vmor %vm4783_vm13, %vm4784_vm12  ;;  %4807 = vadd.xlane.f32.xlu0 (%p1867_p5), %v4806_v47  ;;  %v5766_v45 = vld [vmem:[%s7545_s24 + $0x2] ss:$0 sm:$0xff] (%p1867_p5) }
0x16d6   : >> { %v4788_v27 = vmul.f32 %v4776_v8, %v4737_v4  ;;  %v4779_v44 = vmul.f32 %v5765_v63, %v4778_v41 }
0x16d8   : >> { %v4794_v3 = vmul.f32 %v5548_v50, %v4788_v27  ;;  %v4780_v31 = vmul.f32 0.5, %v4779_v44 }
0x16da   : >> { %v4800_v42 = vadd.f32 %v5549_v49, %v4794_v3   ;;  %v4781_v46 = vsub.f32 1.5, %v4780_v31 }
0x16dc   : >> { %v4782_v29 = vmul.f32 %v5765_v63, %v4781_v46  ;;  %v4809_v6 = vsel (%p1867_p5), %vm973_vm2, %v4800_v42, 0.0 }
0x16dd   : > { %4810 = vadd.xlane.f32.xlu0 (%p1867_p5), %v4809_v6 }
0x16de   : >> { %v4786_v25 = vsel %vm4785_vm14, %v5765_v63, %v4782_v29  ;;  %v7603_v63 = vmov %v4800_v42 }
0x16df   : >> { %v4789_v26 = vmul.f32 %v4786_v25, %v4738_v28 }
0x16e1   : >> { %v4795_v23 = vmul.f32 %v5548_v50, %v4789_v26  ;;  %1869 = sbr.rel (!%p1867_p5) target bundleno = 2395 (0x95b), region = 209 }
0x16e3   : >> { %v4801_v33 = vadd.f32 %v5549_v49, %v4795_v23  }
0x16e5   : >> { %v7602_v3 = vmov %v4801_v33  ;;  %v4813_v55 = vsel (%p1867_p5), %vm3247_vm15, %v4801_v33, 0.0 }
0x16e6   : > { %4814 = vadd.xlane.f32.xlu1 %v4813_v55 }
0x1748   : > { %v4808_v54 = vpop.xlane.xlu0 %4807 }
0x1749   : > { %v4816_v60 = vmul.f32 %v4808_v54, %v6199_v16 }
0x174b   : > { %v4819_v17 = vsub.f32 %v4799_v15, %v4816_v60 }
0x174d   : > { %v4822_v51 = vmul.f32 %v4819_v17, %v4819_v17 }
0x174f   : > { %v4825_v36 = vsel %vm973_vm2, %v4822_v51, 0.0 }
0x1750   : > { %4826 = vadd.xlane.f32.xlu1 %v4825_v36  ;;  %v4811_v48 = vpop.xlane.xlu0 %4810 }
0x1751   : > { %v4817_v0 = vmul.f32 %v4811_v48, %v6199_v16 }
0x1753   : > { %v4820_v2 = vsub.f32 %v4800_v42, %v4817_v0 }
0x1755   : > { %v4823_v4 = vmul.f32 %v4820_v2, %v4820_v2 }
0x1757   : > { %v4828_v20 = vsel %vm973_vm2, %v4823_v4, 0.0 }
0x1758   : > { %4829 = vadd.xlane.f32.xlu2 %v4828_v20 }
0x1759   : > { %v4815_v18 = vpop.xlane.xlu1 %4814 }
0x175a   : > { %v4818_v1 = vmul.f32 %v4815_v18, %v6199_v16 }
0x175c   : > { %v4821_v62 = vsub.f32 %v4801_v33, %v4818_v1 }
0x175e   : > { %v4824_v9 = vmul.f32 %v4821_v62, %v4821_v62 }
0x1760   : > { %v4831_v30 = vsel %vm3247_vm15, %v4824_v9, 0.0 }
0x1761   : > { %4832 = vadd.xlane.f32.xlu2 %v4831_v30 }
0x17c3   : > { %v4827_v37 = vpop.xlane.xlu1 %4826 }
0x17c4   : > { %v4834_v28 = vmul.f32 %v4827_v37, %v6199_v16 }
0x17c6   : > { %v4837_v5 = vadd.f32 1e-05, %v4834_v28 }
0x17c8   : > { %5768 = vrsqrt.f32 %v4837_v5  ;;  %vm4846_vm4 = vweird.f32 %v4837_v5 }
0x17cb   : > { %v4830_v11 = vpop.xlane.xlu2 %4829 }
0x17cc   : > { %v4835_v38 = vmul.f32 %v4830_v11, %v6199_v16 }
0x17ce   : > { %v5769_v12 = vpop.eup %5768  ;;  %v4838_v21 = vadd.f32 1e-05, %v4835_v38 }
0x17cf   : > { %v4841_v58 = vmul.f32 %v5769_v12, %v4837_v5  ;;  %vm4847_vm3 = vweird.f32 %v5769_v12 }
0x17d0   : > { %5770 = vrsqrt.f32 %v4838_v21  ;;  %vm4848_vm5 = vmor %vm4846_vm4, %vm4847_vm3  ;;  %vm4856_vm7 = vweird.f32 %v4838_v21 }
0x17d1   : > { %v4842_v53 = vmul.f32 %v5769_v12, %v4841_v58 }
0x17d3   : > { %v4843_v7 = vmul.f32 0.5, %v4842_v53 }
0x17d4   : > { %v4833_v10 = vpop.xlane.xlu2 %4832 }
0x17d5   : > { %v4836_v59 = vmul.f32 %v4833_v10, %v6199_v16  ;;  %v4844_v14 = vsub.f32 1.5, %v4843_v7  ;;  %v5767_v16 = vld [vmem:[%s7545_s24 + $0x3] ss:$0 sm:$0xff] }
0x17d6   : > { %v5771_v24 = vpop.eup %5770 }
0x17d7   : > { %v4839_v56 = vadd.f32 1e-05, %v4836_v59  ;;  %v4845_v22 = vmul.f32 %v5769_v12, %v4844_v14  ;;  %v4851_v19 = vmul.f32 %v5771_v24, %v4838_v21  ;;  %vm4857_vm6 = vweird.f32 %v5771_v24 }
0x17d8   : > { %vm4858_vm8 = vmor %vm4856_vm7, %vm4857_vm6 }
0x17d9   : > { %5772 = vrsqrt.f32 %v4839_v56  ;;  %v4849_v43 = vsel %vm4848_vm5, %v5769_v12, %v4845_v22  ;;  %v4852_v61 = vmul.f32 %v5771_v24, %v4851_v19  ;;  %vm4866_vm0 = vweird.f32 %v4839_v56 }
0x17da   : > { %v4870_v32 = vmul.f32 %v4849_v43, %v4819_v17 }
0x17db   : > { %v4853_v50 = vmul.f32 0.5, %v4852_v61 }
0x17dc   : > { %v4876_v13 = vmul.f32 %v5766_v45, %v4870_v32 }
0x17dd   : > { %v4854_v35 = vsub.f32 1.5, %v4853_v50 }
0x17de   : > { %v4882_v39 = vadd.f32 %v5767_v16, %v4876_v13 }
0x17df   : > { %v5773_v49 = vpop.eup %5772  ;;  %v4855_v57 = vmul.f32 %v5771_v24, %v4854_v35 }
0x17e0   : > { %v4861_v40 = vmul.f32 %v5773_v49, %v4839_v56  ;;  %4885 = vst.msk [vmem:[%s6025_s28] sm:$0xff] %vm973_vm2, %v4882_v39  ;;  %vm4867_vm9 = vweird.f32 %v5773_v49 }
0x17e1   : > { %v4859_v52 = vsel %vm4858_vm8, %v5771_v24, %v4855_v57  ;;  %vm4868_vm1 = vmor %vm4866_vm0, %vm4867_vm9 }
0x17e2   : > { %v4862_v15 = vmul.f32 %v5773_v49, %v4861_v40  ;;  %v4871_v63 = vmul.f32 %v4859_v52, %v4820_v2 }
0x17e4   : > { %v4863_v34 = vmul.f32 0.5, %v4862_v15  ;;  %v4877_v41 = vmul.f32 %v5766_v45, %v4871_v63 }
0x17e6   : > { %v4864_v8 = vsub.f32 1.5, %v4863_v34  ;;  %v4883_v27 = vadd.f32 %v5767_v16, %v4877_v41 }
0x17e8   : > { %v4865_v44 = vmul.f32 %v5773_v49, %v4864_v8  ;;  %4886 = vst.msk [vmem:[%s6025_s28 + $0x8] sm:$0xff] %vm973_vm2, %v4883_v27 }
0x17ea   : > { %v4869_v3 = vsel %vm4868_vm1, %v5773_v49, %v4865_v44 }
0x17eb   : > { %v4872_v31 = vmul.f32 %v4869_v3, %v4821_v62 }
0x17ed   : > { %v4878_v42 = vmul.f32 %v5766_v45, %v4872_v31 }
0x17ef   : > { %v4884_v46 = vadd.f32 %v5767_v16, %v4878_v42 }
0x17f1   : > { %4887 = vst.msk [vmem:[%s6025_s28 + $0x10] sm:$0x7] %vm3247_vm15, %v4884_v46 }
0x17f2 PF: > { %s7605_s0 = sld [smem:[#allocation2_spill]] }
0x17f8   : > { %s35_s29 = sadd.s32 1, %s7605_s0  }
0x17f9   : > { %p32_p6 = scmp.ge.s32.totalorder %s35_s29, 4  }
0x17fb   :  { %34 = sbr.rel (!%p32_p6) target bundleno = 12 (0xc), region = 220 }

</bundles_post_ra>
